<compile_context>
chip_gen: v7x
topology: tpu7x:2x2x1
jax: 0.10.0
libtpu: 0.0.40
codegen_flags: <defaults>
</compile_context>

<pallas_src>
import functools
import math

import jax
import jax.numpy as jnp
from jax.experimental import pallas as pl
from jax.experimental.pallas import tpu as pltpu


# Native MXU operand dtype; accumulation stays f32.
_MXU_DTYPE = jnp.bfloat16


# --------------------------------------------------------------------------
# Tiling / VMEM helpers
# --------------------------------------------------------------------------

def _round_up(x, m):
    return ((x + m - 1) // m) * m


def _choose_tile(dim, candidates):
    for c in candidates:
        if dim % c == 0:
            return c
    return dim  # full-dimension block (always legal)


_M_TILES = (512, 256, 128, 64, 32, 16, 8)
_N_TILES = (512, 256, 128)
_K_TILES = (512, 256, 128)


def _vmem_limit(est_bytes):
    """Explicit scoped-VMEM limit: 2x the double-buffered tile estimate, clamped
    to [32 MiB, 64 MiB] so it is safe on v5e/v6e (128 MiB) and v7x (64 MiB)."""
    return int(min(max(2 * est_bytes + (2 << 20), 32 << 20), 64 << 20))


# --------------------------------------------------------------------------
# Fused matmul kernel:  [LN prologue] -> X @ W + b -> [LN epilogue] -> [+residual]
# --------------------------------------------------------------------------

def _fused_matmul_kernel(*refs, nk, has_pre_ln, has_post_ln, has_res, eps):
    it = iter(refs)
    x_ref = next(it)
    w_ref = next(it)
    b_ref = next(it)
    pre_g = pre_b = post_g = post_b = res_ref = None
    if has_pre_ln:
        pre_g = next(it)
        pre_b = next(it)
    if has_post_ln:
        post_g = next(it)
        post_b = next(it)
    if has_res:
        res_ref = next(it)
    o_ref = next(it)
    acc_ref = next(it)

    @pl.when(pl.program_id(2) == 0)
    def _():
        acc_ref[...] = jnp.zeros_like(acc_ref)

    x = x_ref[...]
    if has_pre_ln:
        # LayerNorm over the full K (feature) dim; wrapper forces tk == K and
        # tn == N so this prologue runs exactly once per row tile.
        xf = x.astype(jnp.float32)
        mu = jnp.mean(xf, axis=-1, keepdims=True)
        xc = xf - mu
        var = jnp.mean(xc * xc, axis=-1, keepdims=True)
        x = (xc * jax.lax.rsqrt(var + eps) * pre_g[...].astype(jnp.float32)
             + pre_b[...].astype(jnp.float32))

    # bf16 MXU operands, f32 accumulation.
    acc_ref[...] += jnp.dot(x.astype(_MXU_DTYPE), w_ref[...].astype(_MXU_DTYPE),
                            preferred_element_type=jnp.float32)

    @pl.when(pl.program_id(2) == nk - 1)
    def _():
        out = acc_ref[...] + b_ref[...].astype(jnp.float32)
        if has_post_ln:
            mu = jnp.mean(out, axis=-1, keepdims=True)
            oc = out - mu
            var = jnp.mean(oc * oc, axis=-1, keepdims=True)
            out = (oc * jax.lax.rsqrt(var + eps)
                   * post_g[...].astype(jnp.float32)
                   + post_b[...].astype(jnp.float32))
        if has_res:
            out = out + res_ref[...].astype(jnp.float32)
        o_ref[...] = out.astype(o_ref.dtype)


def fused_matmul(x, w, b, *, pre_ln=None, post_ln=None, residual=None, eps=1e-6):
    """out = [LN_post]( [LN_pre](x) @ w + b ) [+ residual].

    x: (M, K), w: (K, N), b: (N,), residual: (M, N)."""
    M, K = x.shape
    Kw, N = w.shape
    assert K == Kw

    Mp = _round_up(M, 8)
    if Mp != M:
        x = jnp.pad(x, ((0, Mp - M), (0, 0)))
        if residual is not None:
            residual = jnp.pad(residual, ((0, Mp - M), (0, 0)))

    itemsize = x.dtype.itemsize
    # pre-LN needs the whole K row and (to avoid recomputing the prologue per
    # output tile) a single N tile; post-LN needs the whole N row.
    tn = N if (pre_ln is not None or post_ln is not None) else _choose_tile(N, _N_TILES)
    tk = K if pre_ln is not None else _choose_tile(K, _K_TILES)

    def est_bytes(tm):
        e = 2 * tm * tk * itemsize            # x tile, double-buffered
        e += 2 * tk * tn * itemsize           # w tile
        e += 2 * tn * itemsize                # bias
        e += 4 * tm * tn                      # f32 accumulator scratch
        e += 2 * tm * tn * itemsize           # output tile
        if pre_ln is not None:
            e += 4 * K * itemsize
        if post_ln is not None:
            e += 4 * tn * itemsize
        if residual is not None:
            e += 2 * tm * tn * itemsize
        return e

    budget = 10 << 20
    m_cands = [t for t in _M_TILES if Mp % t == 0]
    tm = m_cands[-1]
    for t in m_cands:
        if est_bytes(t) <= budget:
            tm = t
            break
    grid = (Mp // tm, N // tn, K // tk)

    in_specs = [
        pl.BlockSpec((tm, tk), lambda i, j, k: (i, k)),
        pl.BlockSpec((tk, tn), lambda i, j, k: (k, j)),
        pl.BlockSpec((1, tn), lambda i, j, k: (0, j)),
    ]
    inputs = [x, w, b.reshape(1, N)]
    if pre_ln is not None:
        g, bb = pre_ln
        in_specs.append(pl.BlockSpec((1, K), lambda i, j, k: (0, 0)))
        in_specs.append(pl.BlockSpec((1, K), lambda i, j, k: (0, 0)))
        inputs += [g.reshape(1, K), bb.reshape(1, K)]
    if post_ln is not None:
        g, bb = post_ln
        in_specs.append(pl.BlockSpec((1, tn), lambda i, j, k: (0, j)))
        in_specs.append(pl.BlockSpec((1, tn), lambda i, j, k: (0, j)))
        inputs += [g.reshape(1, N), bb.reshape(1, N)]
    if residual is not None:
        in_specs.append(pl.BlockSpec((tm, tn), lambda i, j, k: (i, j)))
        inputs.append(residual)

    kernel = functools.partial(
        _fused_matmul_kernel, nk=grid[2],
        has_pre_ln=pre_ln is not None,
        has_post_ln=post_ln is not None,
        has_res=residual is not None, eps=eps)

    out = pl.pallas_call(
        kernel,
        out_shape=jax.ShapeDtypeStruct((Mp, N), x.dtype),
        grid_spec=pltpu.PrefetchScalarGridSpec(
            num_scalar_prefetch=0,
            grid=grid,
            in_specs=in_specs,
            out_specs=pl.BlockSpec((tm, tn), lambda i, j, k: (i, j)),
            scratch_shapes=[pltpu.VMEM((tm, tn), jnp.float32)]),
        compiler_params=pltpu.CompilerParams(
            dimension_semantics=("parallel", "parallel", "arbitrary"),
            vmem_limit_bytes=_vmem_limit(est_bytes(tm))),
    )(*inputs)
    return out[:M] if Mp != M else out


# --------------------------------------------------------------------------
# Standalone LayerNorm (gridded over row tiles)
# --------------------------------------------------------------------------

def _layernorm_kernel(x_ref, g_ref, b_ref, o_ref, *, eps):
    x = x_ref[...].astype(jnp.float32)
    mu = jnp.mean(x, axis=-1, keepdims=True)
    xc = x - mu
    var = jnp.mean(xc * xc, axis=-1, keepdims=True)
    y = xc * jax.lax.rsqrt(var + eps)
    o_ref[...] = (y * g_ref[...].astype(jnp.float32)
                  + b_ref[...].astype(jnp.float32)).astype(o_ref.dtype)


def layernorm(x, gamma, beta, eps=1e-6):
    orig_shape = x.shape
    C = orig_shape[-1]
    x2 = x.reshape(-1, C)
    M = x2.shape[0]
    Mp = _round_up(M, 8)
    if Mp != M:
        x2 = jnp.pad(x2, ((0, Mp - M), (0, 0)))
    tm = _choose_tile(Mp, (1024,) + _M_TILES)
    est = (2 * tm * C + 4 * C + 2 * tm * C) * x.dtype.itemsize
    out = pl.pallas_call(
        functools.partial(_layernorm_kernel, eps=eps),
        out_shape=jax.ShapeDtypeStruct((Mp, C), x.dtype),
        grid_spec=pltpu.PrefetchScalarGridSpec(
            num_scalar_prefetch=0,
            grid=(Mp // tm,),
            in_specs=[pl.BlockSpec((tm, C), lambda i: (i, 0)),
                      pl.BlockSpec((1, C), lambda i: (0, 0)),
                      pl.BlockSpec((1, C), lambda i: (0, 0))],
            out_specs=pl.BlockSpec((tm, C), lambda i: (i, 0))),
        compiler_params=pltpu.CompilerParams(
            dimension_semantics=("parallel",),
            vmem_limit_bytes=_vmem_limit(est)),
    )(x2, gamma.reshape(1, C), beta.reshape(1, C))
    if Mp != M:
        out = out[:M]
    return out.reshape(orig_shape)


# --------------------------------------------------------------------------
# Attention: flash-style online softmax, grid over (batch, Lq tiles, Lk tiles).
# Heads are sliced on the lane dim in-kernel; running (m, l, acc) in VMEM scratch.
# --------------------------------------------------------------------------

def _flash_attn_kernel(q_ref, kv_ref, o_ref, m_sc, l_sc, acc_sc, *, n_heads, scale):
    # q_ref: (1, tq, E); kv_ref: (1, tlk, 2E)  ->  o_ref: (1, tq, E)
    j = pl.program_id(2)

    @pl.when(j == 0)
    def _():
        m_sc[...] = jnp.full_like(m_sc, -jnp.inf)
        l_sc[...] = jnp.zeros_like(l_sc)
        acc_sc[...] = jnp.zeros_like(acc_sc)

    q = q_ref[0]
    kv = kv_ref[0]
    E = q.shape[-1]
    Dh = E // n_heads
    for h in range(n_heads):
        qh = q[:, h * Dh:(h + 1) * Dh].astype(_MXU_DTYPE)
        kh = kv[:, h * Dh:(h + 1) * Dh].astype(_MXU_DTYPE)
        vh = kv[:, E + h * Dh:E + (h + 1) * Dh].astype(_MXU_DTYPE)
        # bf16 MXU operands, f32 scores; scale applied in f32 after the matmul
        # (scaling bf16 q beforehand would add rounding).
        s = jax.lax.dot_general(qh, kh, (((1,), (1,)), ((), ())),
                                preferred_element_type=jnp.float32) * scale
        m_prev = m_sc[h]
        m_new = jnp.maximum(m_prev, jnp.max(s, axis=-1, keepdims=True))
        alpha = jnp.exp(m_prev - m_new)
        # TODO(synk): on v6e/v7x the exp could run in bf16 (bf16 EUP); kept f32 so
        # the same kernel is correct/fast on v5e.
        p = jnp.exp(s - m_new)
        l_sc[h] = alpha * l_sc[h] + jnp.sum(p, axis=-1, keepdims=True)
        acc_sc[h] = alpha * acc_sc[h] + jnp.dot(p.astype(_MXU_DTYPE), vh,
                                                preferred_element_type=jnp.float32)
        m_sc[h] = m_new

    @pl.when(j == pl.num_programs(2) - 1)
    def _():
        outs = []
        for h in range(n_heads):
            inv = pl.reciprocal(l_sc[h], approx=True)
            outs.append(acc_sc[h] * inv)
        # Lane-dense (E-wide) single store for all heads.
        o_ref[0] = jnp.concatenate(outs, axis=-1).astype(o_ref.dtype)


def attention(q, kv, n_heads, scale):
    """q: (B, Lq, E); kv: (B, Lk, 2E) with [K | V] concatenated on the lane dim."""
    B, Lq, E = q.shape
    Lk = kv.shape[1]
    Dh = E // n_heads
    tq = _choose_tile(Lq, (256, 128, 64, 32, 16, 8))
    tlk = _choose_tile(Lk, (1024, 512, 256, 128))
    grid = (B, Lq // tq, Lk // tlk)
    itemsize = q.dtype.itemsize
    est = (2 * tq * E * itemsize            # q tile
           + 2 * tlk * 2 * E * itemsize     # kv tile (streamed over Lk)
           + 2 * tq * E * itemsize          # out tile
           + 4 * n_heads * tq * (Dh + 2)    # f32 acc/m/l scratch
           + 4 * tq * tlk)                  # f32 score tile (live vregs)
    return pl.pallas_call(
        functools.partial(_flash_attn_kernel, n_heads=n_heads, scale=scale),
        out_shape=jax.ShapeDtypeStruct((B, Lq, E), q.dtype),
        grid_spec=pltpu.PrefetchScalarGridSpec(
            num_scalar_prefetch=0,
            grid=grid,
            in_specs=[pl.BlockSpec((1, tq, E), lambda b, i, j: (b, i, 0)),
                      pl.BlockSpec((1, tlk, 2 * E), lambda b, i, j: (b, j, 0))],
            out_specs=pl.BlockSpec((1, tq, E), lambda b, i, j: (b, i, 0)),
            scratch_shapes=[pltpu.VMEM((n_heads, tq, 1), jnp.float32),
                            pltpu.VMEM((n_heads, tq, 1), jnp.float32),
                            pltpu.VMEM((n_heads, tq, Dh), jnp.float32)]),
        compiler_params=pltpu.CompilerParams(
            dimension_semantics=("parallel", "parallel", "arbitrary"),
            vmem_limit_bytes=_vmem_limit(est)),
    )(q, kv)


# --------------------------------------------------------------------------
# Depthwise 3x3 conv + GELU (gridded over batch and VMEM-budgeted channel tiles)
# --------------------------------------------------------------------------

def _dwconv3_gelu_kernel(xp_ref, w_ref, b_ref, o_ref):
    # xp_ref: (1, H+2, W+2, TC); w_ref: (9, TC); b_ref: (1, TC)
    _, Hp, Wp, C = xp_ref.shape
    H, W = Hp - 2, Wp - 2
    # TODO(synk): on v6e/v7x the tap accumulate + GELU could run in bf16 (bf16 VPU
    # / EUP); kept f32 so the same kernel is correct on v5e and matches the f32
    # PyTorch reference closely.
    xp = xp_ref[0].astype(jnp.float32)
    w = w_ref[...].astype(jnp.float32)
    bias = b_ref[...].astype(jnp.float32).reshape(1, 1, C)
    acc = None
    # TODO(synk): the j = +/-1 taps are unaligned sublane slices; a pltpu.roll-based
    # shift along W (XLU slot) would remove the hidden copies, but sublane rotation
    # of a non-8-multiple W+2 dim is not reliably supported, so slicing is kept.
    for t in range(9):
        i, j = divmod(t, 3)
        tap = xp[i:i + H, j:j + W, :] * w[t][None, None, :]
        acc = tap if acc is None else acc + tap
    acc = acc + bias
    # TODO(synk): PyTorch nn.GELU uses exact erf; tanh approximation used here
    # (max abs error ~1e-3).
    o_ref[0] = jax.nn.gelu(acc, approximate=True).astype(o_ref.dtype)


def dwconv3_gelu(x_nhwc, w, b):
    """Depthwise 3x3 conv (pad 1, stride 1, groups=C) + GELU, channels-last."""
    B, H, W, C = x_nhwc.shape
    xp = jnp.pad(x_nhwc, ((0, 0), (1, 1), (1, 1), (0, 0)))
    itemsize = x_nhwc.dtype.itemsize

    cands = [t for t in (512, 256, 128) if C % t == 0] or [C]

    def est(tc):
        return (2 * (H + 2) * (W + 2) * tc * itemsize   # padded input block
                + 2 * H * W * tc * itemsize             # output block
                + 4 * H * W * tc                        # f32 accumulator vregs
                + 2 * 10 * tc * itemsize)               # weights + bias

    budget = 12 << 20
    tc = cands[-1]
    for t in cands:
        if est(t) <= budget:
            tc = t
            break
    # TODO(synk): if even the smallest channel tile exceeds the budget (very large
    # H*W, e.g. SegFormer stage 1 on v7x), add H-row tiling with a 1-row halo via
    # manual overlapping DMA; channel tiling suffices for the shapes used here.
    return pl.pallas_call(
        _dwconv3_gelu_kernel,
        out_shape=jax.ShapeDtypeStruct((B, H, W, C), x_nhwc.dtype),
        grid_spec=pltpu.PrefetchScalarGridSpec(
            num_scalar_prefetch=0,
            grid=(B, C // tc),
            in_specs=[pl.BlockSpec((1, H + 2, W + 2, tc), lambda bb, c: (bb, 0, 0, c)),
                      pl.BlockSpec((9, tc), lambda bb, c: (0, c)),
                      pl.BlockSpec((1, tc), lambda bb, c: (0, c))],
            out_specs=pl.BlockSpec((1, H, W, tc), lambda bb, c: (bb, 0, 0, c))),
        compiler_params=pltpu.CompilerParams(
            dimension_semantics=("parallel", "parallel"),
            vmem_limit_bytes=_vmem_limit(est(tc))),
    )(xp, w.reshape(9, C), b.reshape(1, C))


# --------------------------------------------------------------------------
# Dense conv via im2col + fused matmul (patch embed & KV reduction)
# --------------------------------------------------------------------------

def conv2d_nhwc(x, w, b, stride, padding, post_ln=None, eps=1e-6):
    """x: (B, H, W, Cin), w: (kh, kw, Cin, Cout); optional fused LayerNorm epilogue."""
    B, H, W, C = x.shape
    kh, kw, _, O = w.shape
    xp = jnp.pad(x, ((0, 0), (padding, padding), (padding, padding), (0, 0)))
    Ho = (H + 2 * padding - kh) // stride + 1
    Wo = (W + 2 * padding - kw) // stride + 1
    cols = []
    for i in range(kh):
        for j in range(kw):
            cols.append(xp[:, i:i + stride * Ho:stride, j:j + stride * Wo:stride, :])
    # TODO(synk): im2col is materialized in HBM (~(kh*kw)/(stride*stride)x the input
    # bytes for the overlapping patch embed); an in-kernel per-tap grid axis with a
    # strided/Element index_map would remove this extra round trip.
    cols = jnp.concatenate(cols, axis=-1)                 # (B, Ho, Wo, kh*kw*Cin)
    mat = cols.reshape(B * Ho * Wo, kh * kw * C)
    wmat = w.reshape(kh * kw * C, O)                      # matches (i, j, c) ordering
    out = fused_matmul(mat, wmat, b, post_ln=post_ln, eps=eps)
    return out.reshape(B, Ho, Wo, O)


# --------------------------------------------------------------------------
# Model blocks (TransformerBlock semantics)
# --------------------------------------------------------------------------

def overlap_patch_embed(x_nhwc, p, patch_size, stride):
    # projection conv + LayerNorm fused into one gridded matmul.
    y = conv2d_nhwc(x_nhwc, p['w'], p['b'], stride, patch_size // 2,
                    post_ln=(p['ln_g'], p['ln_b']), eps=1e-6)
    B, Ho, Wo, E = y.shape
    return y.reshape(B, Ho * Wo, E), Ho, Wo


def efficient_self_attention(x, h, w, lp, n_heads, reduce_ratio):
    """x: (B, L, E) tokens BEFORE norm1; returns x + attn(norm1(x))."""
    B, L, E = x.shape
    Dh = E // n_heads
    scale = 1.0 / math.sqrt(Dh)
    x2 = x.reshape(B * L, E)
    a = lp['attn']

    if reduce_ratio > 1:
        # norm1 must be materialized: it feeds both the Q projection and the
        # spatial KV-reduction conv.
        y1 = layernorm(x, lp['ln1_g'], lp['ln1_b'], eps=1e-6)
        q = fused_matmul(y1.reshape(B * L, E), a['wq'], a['bq'])
        ykv = conv2d_nhwc(y1.reshape(B, h, w, E), lp['red_w'], lp['red_b'],
                          reduce_ratio, 0,
                          post_ln=(lp['red_ln_g'], lp['red_ln_b']), eps=1e-6)
        _, hr, wr, _ = ykv.shape
        Lk = hr * wr
        kv = fused_matmul(ykv.reshape(B * Lk, E), a['wkv'], a['bkv'])
        q = q.reshape(B, L, E)
        kv = kv.reshape(B, Lk, 2 * E)
    else:
        # Single fused Q|K|V projection: one (E, 3E) matmul with the norm1
        # prologue, so x is read from HBM and normalized exactly once.
        Lk = L
        wqkv = jnp.concatenate([a['wq'], a['wkv']], axis=1)       # (E, 3E)
        bqkv = jnp.concatenate([a['bq'], a['bkv']], axis=0)       # (3E,)
        qkv = fused_matmul(x2, wqkv, bqkv, pre_ln=(lp['ln1_g'], lp['ln1_b']))
        qkv = qkv.reshape(B, L, 3 * E)
        q = qkv[:, :, :E]
        kv = qkv[:, :, E:]

    o = attention(q, kv, n_heads, scale)
    # Output projection fused with the residual add (shortcut = x).
    out = fused_matmul(o.reshape(B * L, E), a['wo'], a['bo'], residual=x2)
    return out.reshape(B, L, E)


def mix_ffn(x, h, w, lp):
    """x: (B, L, E) tokens BEFORE norm2; returns x + ffn(norm2(x))."""
    B, L, E = x.shape
    p = lp['ffn']
    hidden = p['fc1_w'].shape[1]
    x2 = x.reshape(B * L, E)
    y = fused_matmul(x2, p['fc1_w'], p['fc1_b'],
                     pre_ln=(lp['ln2_g'], lp['ln2_b']))      # norm2 fused into fc1
    y = dwconv3_gelu(y.reshape(B, h, w, hidden), p['dw_w'], p['dw_b'])
    y = fused_matmul(y.reshape(B * L, hidden), p['fc2_w'], p['fc2_b'],
                     residual=x2)                            # fc2 + residual fused
    return y.reshape(B, L, E)


def transformer_layer(x, h, w, lp, n_heads, reduce_ratio):
    # DropPath is identity at inference.
    x = efficient_self_attention(x, h, w, lp, n_heads, reduce_ratio)
    x = mix_ffn(x, h, w, lp)
    return x


def transformer_block_forward(params, x_nchw, cfg):
    x = jnp.transpose(x_nchw, (0, 2, 3, 1))                 # NCHW -> NHWC
    tokens, h, w = overlap_patch_embed(x, params['patch'],
                                       cfg['patch_size'], cfg['stride'])
    for lp in params['layers']:
        tokens = transformer_layer(tokens, h, w, lp,
                                   cfg['n_heads'], cfg['reduce_ratio'])
    # Final block norm: nn.LayerNorm(embed_dim) uses the default eps=1e-5.
    tokens = layernorm(tokens, params['ln_g'], params['ln_b'], eps=1e-5)
    B, L, E = tokens.shape
    y = tokens.reshape(B, h, w, E)
    return jnp.transpose(y, (0, 3, 1, 2))                   # NHWC -> NCHW


# --------------------------------------------------------------------------
# Deterministic parameter initialization (matches module __init__ shapes)
# --------------------------------------------------------------------------

class _KeyGen:
    def __init__(self, key):
        self._key = key

    def __call__(self):
        self._key, sub = jax.random.split(self._key)
        return sub


def _conv_param(kg, kh, kw, cin, cout, groups=1, dtype=jnp.float32):
    fan_out = (kh * kw * cout) // groups
    std = math.sqrt(1.0 / fan_out)
    if groups == 1:
        w = jax.random.normal(kg(), (kh, kw, cin, cout), dtype) * std
    else:  # depthwise: groups == cin == cout
        w = jax.random.normal(kg(), (kh, kw, cout), dtype) * std
    return w, jnp.zeros((cout,), dtype)


def _linear_param(kg, cin, cout, dtype=jnp.float32):
    # NOTE: layouts are (Cin, Cout) / (kh, kw, Cin, Cout); PyTorch checkpoints
    # would need transposition before loading.
    w = jax.random.normal(kg(), (cin, cout), dtype) * 0.02
    return w, jnp.zeros((cout,), dtype)


def init_transformer_block(key, *, n_layers, in_channels, embed_dim, patch_size,
                           stride, n_heads, reduce_ratio, dtype=jnp.float32):
    kg = _KeyGen(key)
    E = embed_dim
    pw, pb = _conv_param(kg, patch_size, patch_size, in_channels, E, dtype=dtype)
    params = {
        'patch': {'w': pw, 'b': pb,
                  'ln_g': jnp.ones((E,), dtype), 'ln_b': jnp.zeros((E,), dtype)},
        'ln_g': jnp.ones((E,), dtype), 'ln_b': jnp.zeros((E,), dtype),
        'layers': [],
    }
    for _ in range(n_layers):
        lp = {'ln1_g': jnp.ones((E,), dtype), 'ln1_b': jnp.zeros((E,), dtype),
              'ln2_g': jnp.ones((E,), dtype), 'ln2_b': jnp.zeros((E,), dtype)}
        if reduce_ratio > 1:
            rw, rb = _conv_param(kg, reduce_ratio, reduce_ratio, E, E, dtype=dtype)
            lp.update(red_w=rw, red_b=rb,
                      red_ln_g=jnp.ones((E,), dtype),
                      red_ln_b=jnp.zeros((E,), dtype))
        wq, bq = _linear_param(kg, E, E, dtype)
        wkv, bkv = _linear_param(kg, E, 2 * E, dtype)   # fused [K | V] projection
        wo, bo = _linear_param(kg, E, E, dtype)
        lp['attn'] = {'wq': wq, 'bq': bq, 'wkv': wkv, 'bkv': bkv, 'wo': wo, 'bo': bo}
        hidden = 4 * E
        fc1w, fc1b = _linear_param(kg, E, hidden, dtype)
        dww, dwb = _conv_param(kg, 3, 3, hidden, hidden, groups=hidden, dtype=dtype)
        fc2w, fc2b = _linear_param(kg, hidden, E, dtype)
        lp['ffn'] = {'fc1_w': fc1w, 'fc1_b': fc1b,
                     'dw_w': dww, 'dw_b': dwb,
                     'fc2_w': fc2w, 'fc2_b': fc2b}
        params['layers'].append(lp)
    cfg = {'patch_size': patch_size, 'stride': stride,
           'n_heads': n_heads, 'reduce_ratio': reduce_ratio}
    return params, cfg


# --------------------------------------------------------------------------
# Demo
# --------------------------------------------------------------------------

if __name__ == "__main__":
    key = jax.random.PRNGKey(0)
    k1, k2, kx = jax.random.split(key, 3)

    # Block 1 exercises the reduce_ratio > 1 path (KV spatial reduction conv + LN).
    p1, cfg1 = init_transformer_block(
        k1, n_layers=2, in_channels=4, embed_dim=32,
        patch_size=7, stride=4, n_heads=2, reduce_ratio=2)
    # Block 2 exercises the reduce_ratio == 1 path (fused LN->Q|K|V projection).
    p2, cfg2 = init_transformer_block(
        k2, n_layers=2, in_channels=32, embed_dim=64,
        patch_size=3, stride=2, n_heads=2, reduce_ratio=1)

    x = jax.random.normal(kx, (2, 4, 16, 16), jnp.float32)   # NCHW input

    @jax.jit
    def fwd(p1, p2, x):
        y1 = transformer_block_forward(p1, x, cfg1)
        y2 = transformer_block_forward(p2, y1, cfg2)
        return y1, y2

    y1, y2 = fwd(p1, p2, x)
    jax.block_until_ready((y1, y2))

    assert y1.shape == (2, 32, 4, 4), y1.shape
    assert y2.shape == (2, 64, 2, 2), y2.shape
    assert bool(jnp.all(jnp.isfinite(y1))) and bool(jnp.all(jnp.isfinite(y2)))
    print("KERNEL_OK")
</pallas_src>

<mosaic_0001>
module attributes {stable_mosaic.version = 11 : i64} {
  func.func @_fused_matmul_kernel(%arg0: i32, %arg1: i32, %arg2: i32, %arg3: memref<32x196xf32, #tpu.memory_space<vmem>>, %arg4: memref<196x32xf32, #tpu.memory_space<vmem>>, %arg5: memref<1x32xf32, #tpu.memory_space<vmem>>, %arg6: memref<1x32xf32, #tpu.memory_space<vmem>>, %arg7: memref<1x32xf32, #tpu.memory_space<vmem>>, %arg8: memref<32x32xf32, #tpu.memory_space<vmem>>, %arg9: memref<32x32xf32, #tpu.memory_space<vmem>>) attributes {dimension_semantics = [#tpu.dimension_semantics<parallel>, #tpu.dimension_semantics<parallel>, #tpu.dimension_semantics<arbitrary>], iteration_bounds = array<i64: 1, 1, 1>, scalar_prefetch = 0 : i64, scratch_operands = 1 : i64, tpu.core_type = #tpu.core_type<tc>, window_params = [{transform_indices = @transform_0, window_bounds = array<i64: 32, 196>}, {transform_indices = @transform_1, window_bounds = array<i64: 196, 32>}, {transform_indices = @transform_2, window_bounds = array<i64: 1, 32>}, {transform_indices = @transform_3, window_bounds = array<i64: 1, 32>}, {transform_indices = @transform_4, window_bounds = array<i64: 1, 32>}, {transform_indices = @transform_5, window_bounds = array<i64: 32, 32>}]} {
    %c0_i32 = arith.constant 0 : i32
    %0 = arith.cmpi eq, %arg2, %c0_i32 : i32
    %1 = arith.extui %0 : i1 to i32
    %c0_i32_0 = arith.constant 0 : i32
    %2 = arith.cmpi ne, %1, %c0_i32_0 : i32
    scf.if %2 {
      %cst_10 = arith.constant 0.000000e+00 : f32
      %14 = vector.broadcast %cst_10 : f32 to vector<32x32xf32>
      %c0_11 = arith.constant 0 : index
      %c0_12 = arith.constant 0 : index
      %15 = vector.load %arg9[%c0_11, %c0_12] : memref<32x32xf32, #tpu.memory_space<vmem>>, vector<32x32xf32>
      tpu.vector_store %arg9[%c0_11, %c0_12], %14 {strides = array<i32>} : memref<32x32xf32, #tpu.memory_space<vmem>>, vector<32x32xf32>,
    } else {
    }
    %c0 = arith.constant 0 : index
    %c0_1 = arith.constant 0 : index
    %3 = vector.load %arg3[%c0, %c0_1] : memref<32x196xf32, #tpu.memory_space<vmem>>, vector<32x196xf32>
    %c0_2 = arith.constant 0 : index
    %c0_3 = arith.constant 0 : index
    %4 = vector.load %arg9[%c0_2, %c0_3] : memref<32x32xf32, #tpu.memory_space<vmem>>, vector<32x32xf32>
    %5 = arith.truncf %3 : vector<32x196xf32> to vector<32x196xbf16>
    %c0_4 = arith.constant 0 : index
    %c0_5 = arith.constant 0 : index
    %6 = vector.load %arg4[%c0_4, %c0_5] : memref<196x32xf32, #tpu.memory_space<vmem>>, vector<196x32xf32>
    %7 = arith.truncf %6 : vector<196x32xf32> to vector<196x32xbf16>
    %cst = arith.constant dense<0.000000e+00> : vector<32x32xf32>
    %8 = tpu.matmul %5, %7, %cst {dimension_numbers = #tpu.dot_dimension_numbers<[1], [0], [0], [1], [0, 0, 1, 1], [], []>} : vector<32x196xbf16>, vector<196x32xbf16>, vector<32x32xf32> -> vector<32x32xf32>
    %9 = arith.addf %4, %8 : vector<32x32xf32>
    %c0_6 = arith.constant 0 : index
    %c0_7 = arith.constant 0 : index
    %10 = vector.load %arg9[%c0_6, %c0_7] : memref<32x32xf32, #tpu.memory_space<vmem>>, vector<32x32xf32>
    tpu.vector_store %arg9[%c0_6, %c0_7], %9 {strides = array<i32>} : memref<32x32xf32, #tpu.memory_space<vmem>>, vector<32x32xf32>,
    %c0_i32_8 = arith.constant 0 : i32
    %11 = arith.cmpi eq, %arg2, %c0_i32_8 : i32
    %12 = arith.extui %11 : i1 to i32
    %c0_i32_9 = arith.constant 0 : i32
    %13 = arith.cmpi ne, %12, %c0_i32_9 : i32
    scf.if %13 {
      %c0_10 = arith.constant 0 : index
      %c0_11 = arith.constant 0 : index
      %14 = vector.load %arg9[%c0_10, %c0_11] : memref<32x32xf32, #tpu.memory_space<vmem>>, vector<32x32xf32>
      %c0_12 = arith.constant 0 : index
      %c0_13 = arith.constant 0 : index
      %15 = vector.load %arg5[%c0_12, %c0_13] : memref<1x32xf32, #tpu.memory_space<vmem>>, vector<1x32xf32>
      %16 = vector.broadcast %15 : vector<1x32xf32> to vector<32x32xf32>
      %17 = arith.addf %14, %16 : vector<32x32xf32>
      %cst_14 = arith.constant dense<0.000000e+00> : vector<32xf32>
      %18 = vector.multi_reduction <add>, %17, %cst_14 [1] : vector<32x32xf32> to vector<32xf32>
      %19 = vector.shape_cast %18 : vector<32xf32> to vector<32x1xf32>
      %cst_15 = arith.constant 3.200000e+01 : f32
      %20 = vector.broadcast %cst_15 : f32 to vector<32x1xf32>
      %21 = arith.divf %19, %20 : vector<32x1xf32>
      %22 = vector.broadcast %21 : vector<32x1xf32> to vector<32x32xf32>
      %23 = arith.subf %17, %22 : vector<32x32xf32>
      %24 = arith.mulf %23, %23 : vector<32x32xf32>
      %cst_16 = arith.constant dense<0.000000e+00> : vector<32xf32>
      %25 = vector.multi_reduction <add>, %24, %cst_16 [1] : vector<32x32xf32> to vector<32xf32>
      %26 = vector.shape_cast %25 : vector<32xf32> to vector<32x1xf32>
      %cst_17 = arith.constant 3.200000e+01 : f32
      %27 = vector.broadcast %cst_17 : f32 to vector<32x1xf32>
      %28 = arith.divf %26, %27 : vector<32x1xf32>
      %cst_18 = arith.constant 9.99999997E-7 : f32
      %29 = vector.broadcast %cst_18 : f32 to vector<32x1xf32>
      %30 = arith.addf %28, %29 : vector<32x1xf32>
      %31 = math.rsqrt %30 : vector<32x1xf32>
      %32 = vector.broadcast %31 : vector<32x1xf32> to vector<32x32xf32>
      %33 = arith.mulf %23, %32 : vector<32x32xf32>
      %c0_19 = arith.constant 0 : index
      %c0_20 = arith.constant 0 : index
      %34 = vector.load %arg6[%c0_19, %c0_20] : memref<1x32xf32, #tpu.memory_space<vmem>>, vector<1x32xf32>
      %35 = vector.broadcast %34 : vector<1x32xf32> to vector<32x32xf32>
      %36 = arith.mulf %33, %35 : vector<32x32xf32>
      %c0_21 = arith.constant 0 : index
      %c0_22 = arith.constant 0 : index
      %37 = vector.load %arg7[%c0_21, %c0_22] : memref<1x32xf32, #tpu.memory_space<vmem>>, vector<1x32xf32>
      %38 = vector.broadcast %37 : vector<1x32xf32> to vector<32x32xf32>
      %39 = arith.addf %36, %38 : vector<32x32xf32>
      %c0_23 = arith.constant 0 : index
      %c0_24 = arith.constant 0 : index
      %40 = vector.load %arg8[%c0_23, %c0_24] : memref<32x32xf32, #tpu.memory_space<vmem>>, vector<32x32xf32>
      tpu.vector_store %arg8[%c0_23, %c0_24], %39 {strides = array<i32>} : memref<32x32xf32, #tpu.memory_space<vmem>>, vector<32x32xf32>,
    } else {
    }
    return
  }
  func.func @transform_0(%arg0: i32, %arg1: i32, %arg2: i32) -> (i32, i32) {
    %c0_i32 = arith.constant 0 : i32
    return %arg0, %arg2 : i32, i32
  }
  func.func @transform_1(%arg0: i32, %arg1: i32, %arg2: i32) -> (i32, i32) {
    %c0_i32 = arith.constant 0 : i32
    return %arg2, %arg1 : i32, i32
  }
  func.func @transform_2(%arg0: i32, %arg1: i32, %arg2: i32) -> (i32, i32) {
    %c0_i32 = arith.constant 0 : i32
    %c0_i32_0 = arith.constant 0 : i32
    return %c0_i32, %arg1 : i32, i32
  }
  func.func @transform_3(%arg0: i32, %arg1: i32, %arg2: i32) -> (i32, i32) {
    %c0_i32 = arith.constant 0 : i32
    %c0_i32_0 = arith.constant 0 : i32
    return %c0_i32, %arg1 : i32, i32
  }
  func.func @transform_4(%arg0: i32, %arg1: i32, %arg2: i32) -> (i32, i32) {
    %c0_i32 = arith.constant 0 : i32
    %c0_i32_0 = arith.constant 0 : i32
    return %c0_i32, %arg1 : i32, i32
  }
  func.func @transform_5(%arg0: i32, %arg1: i32, %arg2: i32) -> (i32, i32) {
    %c0_i32 = arith.constant 0 : i32
    return %arg0, %arg1 : i32, i32
  }
}

module attributes {stable_mosaic.version = 11 : i64} {
  func.func @_layernorm_kernel(%arg0: i32, %arg1: memref<32x32xf32, #tpu.memory_space<vmem>>, %arg2: memref<1x32xf32, #tpu.memory_space<vmem>>, %arg3: memref<1x32xf32, #tpu.memory_space<vmem>>, %arg4: memref<32x32xf32, #tpu.memory_space<vmem>>) attributes {dimension_semantics = [#tpu.dimension_semantics<parallel>], iteration_bounds = array<i64: 1>, scalar_prefetch = 0 : i64, scratch_operands = 0 : i64, tpu.core_type = #tpu.core_type<tc>, window_params = [{transform_indices = @transform_0, window_bounds = array<i64: 32, 32>}, {pipeline_mode = #tpu.pipeline_mode<synchronous>, transform_indices = @transform_1, window_bounds = array<i64: 1, 32>}, {pipeline_mode = #tpu.pipeline_mode<synchronous>, transform_indices = @transform_2, window_bounds = array<i64: 1, 32>}, {transform_indices = @transform_3, window_bounds = array<i64: 32, 32>}]} {
    %c0 = arith.constant 0 : index
    %c0_0 = arith.constant 0 : index
    %0 = vector.load %arg1[%c0, %c0_0] : memref<32x32xf32, #tpu.memory_space<vmem>>, vector<32x32xf32>
    %cst = arith.constant dense<0.000000e+00> : vector<32xf32>
    %1 = vector.multi_reduction <add>, %0, %cst [1] : vector<32x32xf32> to vector<32xf32>
    %2 = vector.shape_cast %1 : vector<32xf32> to vector<32x1xf32>
    %cst_1 = arith.constant 3.200000e+01 : f32
    %3 = vector.broadcast %cst_1 : f32 to vector<32x1xf32>
    %4 = arith.divf %2, %3 : vector<32x1xf32>
    %5 = vector.broadcast %4 : vector<32x1xf32> to vector<32x32xf32>
    %6 = arith.subf %0, %5 : vector<32x32xf32>
    %7 = arith.mulf %6, %6 : vector<32x32xf32>
    %cst_2 = arith.constant dense<0.000000e+00> : vector<32xf32>
    %8 = vector.multi_reduction <add>, %7, %cst_2 [1] : vector<32x32xf32> to vector<32xf32>
    %9 = vector.shape_cast %8 : vector<32xf32> to vector<32x1xf32>
    %cst_3 = arith.constant 3.200000e+01 : f32
    %10 = vector.broadcast %cst_3 : f32 to vector<32x1xf32>
    %11 = arith.divf %9, %10 : vector<32x1xf32>
    %cst_4 = arith.constant 9.99999997E-7 : f32
    %12 = vector.broadcast %cst_4 : f32 to vector<32x1xf32>
    %13 = arith.addf %11, %12 : vector<32x1xf32>
    %14 = math.rsqrt %13 : vector<32x1xf32>
    %15 = vector.broadcast %14 : vector<32x1xf32> to vector<32x32xf32>
    %16 = arith.mulf %6, %15 : vector<32x32xf32>
    %c0_5 = arith.constant 0 : index
    %c0_6 = arith.constant 0 : index
    %17 = vector.load %arg2[%c0_5, %c0_6] : memref<1x32xf32, #tpu.memory_space<vmem>>, vector<1x32xf32>
    %18 = vector.broadcast %17 : vector<1x32xf32> to vector<32x32xf32>
    %19 = arith.mulf %16, %18 : vector<32x32xf32>
    %c0_7 = arith.constant 0 : index
    %c0_8 = arith.constant 0 : index
    %20 = vector.load %arg3[%c0_7, %c0_8] : memref<1x32xf32, #tpu.memory_space<vmem>>, vector<1x32xf32>
    %21 = vector.broadcast %20 : vector<1x32xf32> to vector<32x32xf32>
    %22 = arith.addf %19, %21 : vector<32x32xf32>
    %c0_9 = arith.constant 0 : index
    %c0_10 = arith.constant 0 : index
    %23 = vector.load %arg4[%c0_9, %c0_10] : memref<32x32xf32, #tpu.memory_space<vmem>>, vector<32x32xf32>
    tpu.vector_store %arg4[%c0_9, %c0_10], %22 {strides = array<i32>} : memref<32x32xf32, #tpu.memory_space<vmem>>, vector<32x32xf32>,
    return
  }
  func.func @transform_0(%arg0: i32) -> (i32, i32) {
    %c0_i32 = arith.constant 0 : i32
    %c0_i32_0 = arith.constant 0 : i32
    return %arg0, %c0_i32 : i32, i32
  }
  func.func @transform_1(%arg0: i32) -> (i32, i32) {
    %c0_i32 = arith.constant 0 : i32
    %c0_i32_0 = arith.constant 0 : i32
    %c0_i32_1 = arith.constant 0 : i32
    return %c0_i32, %c0_i32_0 : i32, i32
  }
  func.func @transform_2(%arg0: i32) -> (i32, i32) {
    %c0_i32 = arith.constant 0 : i32
    %c0_i32_0 = arith.constant 0 : i32
    %c0_i32_1 = arith.constant 0 : i32
    return %c0_i32, %c0_i32_0 : i32, i32
  }
  func.func @transform_3(%arg0: i32) -> (i32, i32) {
    %c0_i32 = arith.constant 0 : i32
    %c0_i32_0 = arith.constant 0 : i32
    return %arg0, %c0_i32 : i32, i32
  }
}

module attributes {stable_mosaic.version = 11 : i64} {
  func.func @_fused_matmul_kernel(%arg0: i32, %arg1: i32, %arg2: i32, %arg3: memref<8x32xf32, #tpu.memory_space<vmem>>, %arg4: memref<32x64xf32, #tpu.memory_space<vmem>>, %arg5: memref<1x64xf32, #tpu.memory_space<vmem>>, %arg6: memref<8x64xf32, #tpu.memory_space<vmem>>, %arg7: memref<8x64xf32, #tpu.memory_space<vmem>>) attributes {dimension_semantics = [#tpu.dimension_semantics<parallel>, #tpu.dimension_semantics<parallel>, #tpu.dimension_semantics<arbitrary>], iteration_bounds = array<i64: 1, 1, 1>, scalar_prefetch = 0 : i64, scratch_operands = 1 : i64, tpu.core_type = #tpu.core_type<tc>, window_params = [{transform_indices = @transform_0, window_bounds = array<i64: 8, 32>}, {transform_indices = @transform_1, window_bounds = array<i64: 32, 64>}, {transform_indices = @transform_2, window_bounds = array<i64: 1, 64>}, {transform_indices = @transform_3, window_bounds = array<i64: 8, 64>}]} {
    %c0_i32 = arith.constant 0 : i32
    %0 = arith.cmpi eq, %arg2, %c0_i32 : i32
    %1 = arith.extui %0 : i1 to i32
    %c0_i32_0 = arith.constant 0 : i32
    %2 = arith.cmpi ne, %1, %c0_i32_0 : i32
    scf.if %2 {
      %cst_10 = arith.constant 0.000000e+00 : f32
      %14 = vector.broadcast %cst_10 : f32 to vector<8x64xf32>
      %c0_11 = arith.constant 0 : index
      %c0_12 = arith.constant 0 : index
      %15 = vector.load %arg7[%c0_11, %c0_12] : memref<8x64xf32, #tpu.memory_space<vmem>>, vector<8x64xf32>
      tpu.vector_store %arg7[%c0_11, %c0_12], %14 {strides = array<i32>} : memref<8x64xf32, #tpu.memory_space<vmem>>, vector<8x64xf32>,
    } else {
    }
    %c0 = arith.constant 0 : index
    %c0_1 = arith.constant 0 : index
    %3 = vector.load %arg3[%c0, %c0_1] : memref<8x32xf32, #tpu.memory_space<vmem>>, vector<8x32xf32>
    %c0_2 = arith.constant 0 : index
    %c0_3 = arith.constant 0 : index
    %4 = vector.load %arg7[%c0_2, %c0_3] : memref<8x64xf32, #tpu.memory_space<vmem>>, vector<8x64xf32>
    %5 = arith.truncf %3 : vector<8x32xf32> to vector<8x32xbf16>
    %c0_4 = arith.constant 0 : index
    %c0_5 = arith.constant 0 : index
    %6 = vector.load %arg4[%c0_4, %c0_5] : memref<32x64xf32, #tpu.memory_space<vmem>>, vector<32x64xf32>
    %7 = arith.truncf %6 : vector<32x64xf32> to vector<32x64xbf16>
    %cst = arith.constant dense<0.000000e+00> : vector<8x64xf32>
    %8 = tpu.matmul %5, %7, %cst {dimension_numbers = #tpu.dot_dimension_numbers<[1], [0], [0], [1], [0, 0, 1, 1], [], []>} : vector<8x32xbf16>, vector<32x64xbf16>, vector<8x64xf32> -> vector<8x64xf32>
    %9 = arith.addf %4, %8 : vector<8x64xf32>
    %c0_6 = arith.constant 0 : index
    %c0_7 = arith.constant 0 : index
    %10 = vector.load %arg7[%c0_6, %c0_7] : memref<8x64xf32, #tpu.memory_space<vmem>>, vector<8x64xf32>
    tpu.vector_store %arg7[%c0_6, %c0_7], %9 {strides = array<i32>} : memref<8x64xf32, #tpu.memory_space<vmem>>, vector<8x64xf32>,
    %c0_i32_8 = arith.constant 0 : i32
    %11 = arith.cmpi eq, %arg2, %c0_i32_8 : i32
    %12 = arith.extui %11 : i1 to i32
    %c0_i32_9 = arith.constant 0 : i32
    %13 = arith.cmpi ne, %12, %c0_i32_9 : i32
    scf.if %13 {
      %c0_10 = arith.constant 0 : index
      %c0_11 = arith.constant 0 : index
      %14 = vector.load %arg7[%c0_10, %c0_11] : memref<8x64xf32, #tpu.memory_space<vmem>>, vector<8x64xf32>
      %c0_12 = arith.constant 0 : index
      %c0_13 = arith.constant 0 : index
      %15 = vector.load %arg5[%c0_12, %c0_13] : memref<1x64xf32, #tpu.memory_space<vmem>>, vector<1x64xf32>
      %16 = vector.broadcast %15 : vector<1x64xf32> to vector<8x64xf32>
      %17 = arith.addf %14, %16 : vector<8x64xf32>
      %c0_14 = arith.constant 0 : index
      %c0_15 = arith.constant 0 : index
      %18 = vector.load %arg6[%c0_14, %c0_15] : memref<8x64xf32, #tpu.memory_space<vmem>>, vector<8x64xf32>
      tpu.vector_store %arg6[%c0_14, %c0_15], %17 {strides = array<i32>} : memref<8x64xf32, #tpu.memory_space<vmem>>, vector<8x64xf32>,
    } else {
    }
    return
  }
  func.func @transform_0(%arg0: i32, %arg1: i32, %arg2: i32) -> (i32, i32) {
    %c0_i32 = arith.constant 0 : i32
    return %arg0, %arg2 : i32, i32
  }
  func.func @transform_1(%arg0: i32, %arg1: i32, %arg2: i32) -> (i32, i32) {
    %c0_i32 = arith.constant 0 : i32
    return %arg2, %arg1 : i32, i32
  }
  func.func @transform_2(%arg0: i32, %arg1: i32, %arg2: i32) -> (i32, i32) {
    %c0_i32 = arith.constant 0 : i32
    %c0_i32_0 = arith.constant 0 : i32
    return %c0_i32, %arg1 : i32, i32
  }
  func.func @transform_3(%arg0: i32, %arg1: i32, %arg2: i32) -> (i32, i32) {
    %c0_i32 = arith.constant 0 : i32
    return %arg0, %arg1 : i32, i32
  }
}

module attributes {stable_mosaic.version = 11 : i64} {
  func.func @_fused_matmul_kernel(%arg0: i32, %arg1: i32, %arg2: i32, %arg3: memref<8x128xf32, #tpu.memory_space<vmem>>, %arg4: memref<128x32xf32, #tpu.memory_space<vmem>>, %arg5: memref<1x32xf32, #tpu.memory_space<vmem>>, %arg6: memref<1x32xf32, #tpu.memory_space<vmem>>, %arg7: memref<1x32xf32, #tpu.memory_space<vmem>>, %arg8: memref<8x32xf32, #tpu.memory_space<vmem>>, %arg9: memref<8x32xf32, #tpu.memory_space<vmem>>) attributes {dimension_semantics = [#tpu.dimension_semantics<parallel>, #tpu.dimension_semantics<parallel>, #tpu.dimension_semantics<arbitrary>], iteration_bounds = array<i64: 1, 1, 1>, scalar_prefetch = 0 : i64, scratch_operands = 1 : i64, tpu.core_type = #tpu.core_type<tc>, window_params = [{transform_indices = @transform_0, window_bounds = array<i64: 8, 128>}, {transform_indices = @transform_1, window_bounds = array<i64: 128, 32>}, {transform_indices = @transform_2, window_bounds = array<i64: 1, 32>}, {transform_indices = @transform_3, window_bounds = array<i64: 1, 32>}, {transform_indices = @transform_4, window_bounds = array<i64: 1, 32>}, {transform_indices = @transform_5, window_bounds = array<i64: 8, 32>}]} {
    %c0_i32 = arith.constant 0 : i32
    %0 = arith.cmpi eq, %arg2, %c0_i32 : i32
    %1 = arith.extui %0 : i1 to i32
    %c0_i32_0 = arith.constant 0 : i32
    %2 = arith.cmpi ne, %1, %c0_i32_0 : i32
    scf.if %2 {
      %cst_10 = arith.constant 0.000000e+00 : f32
      %14 = vector.broadcast %cst_10 : f32 to vector<8x32xf32>
      %c0_11 = arith.constant 0 : index
      %c0_12 = arith.constant 0 : index
      %15 = vector.load %arg9[%c0_11, %c0_12] : memref<8x32xf32, #tpu.memory_space<vmem>>, vector<8x32xf32>
      tpu.vector_store %arg9[%c0_11, %c0_12], %14 {strides = array<i32>} : memref<8x32xf32, #tpu.memory_space<vmem>>, vector<8x32xf32>,
    } else {
    }
    %c0 = arith.constant 0 : index
    %c0_1 = arith.constant 0 : index
    %3 = vector.load %arg3[%c0, %c0_1] : memref<8x128xf32, #tpu.memory_space<vmem>>, vector<8x128xf32>
    %c0_2 = arith.constant 0 : index
    %c0_3 = arith.constant 0 : index
    %4 = vector.load %arg9[%c0_2, %c0_3] : memref<8x32xf32, #tpu.memory_space<vmem>>, vector<8x32xf32>
    %5 = arith.truncf %3 : vector<8x128xf32> to vector<8x128xbf16>
    %c0_4 = arith.constant 0 : index
    %c0_5 = arith.constant 0 : index
    %6 = vector.load %arg4[%c0_4, %c0_5] : memref<128x32xf32, #tpu.memory_space<vmem>>, vector<128x32xf32>
    %7 = arith.truncf %6 : vector<128x32xf32> to vector<128x32xbf16>
    %cst = arith.constant dense<0.000000e+00> : vector<8x32xf32>
    %8 = tpu.matmul %5, %7, %cst {dimension_numbers = #tpu.dot_dimension_numbers<[1], [0], [0], [1], [0, 0, 1, 1], [], []>} : vector<8x128xbf16>, vector<128x32xbf16>, vector<8x32xf32> -> vector<8x32xf32>
    %9 = arith.addf %4, %8 : vector<8x32xf32>
    %c0_6 = arith.constant 0 : index
    %c0_7 = arith.constant 0 : index
    %10 = vector.load %arg9[%c0_6, %c0_7] : memref<8x32xf32, #tpu.memory_space<vmem>>, vector<8x32xf32>
    tpu.vector_store %arg9[%c0_6, %c0_7], %9 {strides = array<i32>} : memref<8x32xf32, #tpu.memory_space<vmem>>, vector<8x32xf32>,
    %c0_i32_8 = arith.constant 0 : i32
    %11 = arith.cmpi eq, %arg2, %c0_i32_8 : i32
    %12 = arith.extui %11 : i1 to i32
    %c0_i32_9 = arith.constant 0 : i32
    %13 = arith.cmpi ne, %12, %c0_i32_9 : i32
    scf.if %13 {
      %c0_10 = arith.constant 0 : index
      %c0_11 = arith.constant 0 : index
      %14 = vector.load %arg9[%c0_10, %c0_11] : memref<8x32xf32, #tpu.memory_space<vmem>>, vector<8x32xf32>
      %c0_12 = arith.constant 0 : index
      %c0_13 = arith.constant 0 : index
      %15 = vector.load %arg5[%c0_12, %c0_13] : memref<1x32xf32, #tpu.memory_space<vmem>>, vector<1x32xf32>
      %16 = vector.broadcast %15 : vector<1x32xf32> to vector<8x32xf32>
      %17 = arith.addf %14, %16 : vector<8x32xf32>
      %cst_14 = arith.constant dense<0.000000e+00> : vector<8xf32>
      %18 = vector.multi_reduction <add>, %17, %cst_14 [1] : vector<8x32xf32> to vector<8xf32>
      %19 = vector.shape_cast %18 : vector<8xf32> to vector<8x1xf32>
      %cst_15 = arith.constant 3.200000e+01 : f32
      %20 = vector.broadcast %cst_15 : f32 to vector<8x1xf32>
      %21 = arith.divf %19, %20 : vector<8x1xf32>
      %22 = vector.broadcast %21 : vector<8x1xf32> to vector<8x32xf32>
      %23 = arith.subf %17, %22 : vector<8x32xf32>
      %24 = arith.mulf %23, %23 : vector<8x32xf32>
      %cst_16 = arith.constant dense<0.000000e+00> : vector<8xf32>
      %25 = vector.multi_reduction <add>, %24, %cst_16 [1] : vector<8x32xf32> to vector<8xf32>
      %26 = vector.shape_cast %25 : vector<8xf32> to vector<8x1xf32>
      %cst_17 = arith.constant 3.200000e+01 : f32
      %27 = vector.broadcast %cst_17 : f32 to vector<8x1xf32>
      %28 = arith.divf %26, %27 : vector<8x1xf32>
      %cst_18 = arith.constant 9.99999997E-7 : f32
      %29 = vector.broadcast %cst_18 : f32 to vector<8x1xf32>
      %30 = arith.addf %28, %29 : vector<8x1xf32>
      %31 = math.rsqrt %30 : vector<8x1xf32>
      %32 = vector.broadcast %31 : vector<8x1xf32> to vector<8x32xf32>
      %33 = arith.mulf %23, %32 : vector<8x32xf32>
      %c0_19 = arith.constant 0 : index
      %c0_20 = arith.constant 0 : index
      %34 = vector.load %arg6[%c0_19, %c0_20] : memref<1x32xf32, #tpu.memory_space<vmem>>, vector<1x32xf32>
      %35 = vector.broadcast %34 : vector<1x32xf32> to vector<8x32xf32>
      %36 = arith.mulf %33, %35 : vector<8x32xf32>
      %c0_21 = arith.constant 0 : index
      %c0_22 = arith.constant 0 : index
      %37 = vector.load %arg7[%c0_21, %c0_22] : memref<1x32xf32, #tpu.memory_space<vmem>>, vector<1x32xf32>
      %38 = vector.broadcast %37 : vector<1x32xf32> to vector<8x32xf32>
      %39 = arith.addf %36, %38 : vector<8x32xf32>
      %c0_23 = arith.constant 0 : index
      %c0_24 = arith.constant 0 : index
      %40 = vector.load %arg8[%c0_23, %c0_24] : memref<8x32xf32, #tpu.memory_space<vmem>>, vector<8x32xf32>
      tpu.vector_store %arg8[%c0_23, %c0_24], %39 {strides = array<i32>} : memref<8x32xf32, #tpu.memory_space<vmem>>, vector<8x32xf32>,
    } else {
    }
    return
  }
  func.func @transform_0(%arg0: i32, %arg1: i32, %arg2: i32) -> (i32, i32) {
    %c0_i32 = arith.constant 0 : i32
    return %arg0, %arg2 : i32, i32
  }
  func.func @transform_1(%arg0: i32, %arg1: i32, %arg2: i32) -> (i32, i32) {
    %c0_i32 = arith.constant 0 : i32
    return %arg2, %arg1 : i32, i32
  }
  func.func @transform_2(%arg0: i32, %arg1: i32, %arg2: i32) -> (i32, i32) {
    %c0_i32 = arith.constant 0 : i32
    %c0_i32_0 = arith.constant 0 : i32
    return %c0_i32, %arg1 : i32, i32
  }
  func.func @transform_3(%arg0: i32, %arg1: i32, %arg2: i32) -> (i32, i32) {
    %c0_i32 = arith.constant 0 : i32
    %c0_i32_0 = arith.constant 0 : i32
    return %c0_i32, %arg1 : i32, i32
  }
  func.func @transform_4(%arg0: i32, %arg1: i32, %arg2: i32) -> (i32, i32) {
    %c0_i32 = arith.constant 0 : i32
    %c0_i32_0 = arith.constant 0 : i32
    return %c0_i32, %arg1 : i32, i32
  }
  func.func @transform_5(%arg0: i32, %arg1: i32, %arg2: i32) -> (i32, i32) {
    %c0_i32 = arith.constant 0 : i32
    return %arg0, %arg1 : i32, i32
  }
}

module attributes {stable_mosaic.version = 11 : i64} {
  func.func @_fused_matmul_kernel(%arg0: i32, %arg1: i32, %arg2: i32, %arg3: memref<32x32xf32, #tpu.memory_space<vmem>>, %arg4: memref<32x32xf32, #tpu.memory_space<vmem>>, %arg5: memref<1x32xf32, #tpu.memory_space<vmem>>, %arg6: memref<32x32xf32, #tpu.memory_space<vmem>>, %arg7: memref<32x32xf32, #tpu.memory_space<vmem>>) attributes {dimension_semantics = [#tpu.dimension_semantics<parallel>, #tpu.dimension_semantics<parallel>, #tpu.dimension_semantics<arbitrary>], iteration_bounds = array<i64: 1, 1, 1>, scalar_prefetch = 0 : i64, scratch_operands = 1 : i64, tpu.core_type = #tpu.core_type<tc>, window_params = [{transform_indices = @transform_0, window_bounds = array<i64: 32, 32>}, {transform_indices = @transform_1, window_bounds = array<i64: 32, 32>}, {transform_indices = @transform_2, window_bounds = array<i64: 1, 32>}, {transform_indices = @transform_3, window_bounds = array<i64: 32, 32>}]} {
    %c0_i32 = arith.constant 0 : i32
    %0 = arith.cmpi eq, %arg2, %c0_i32 : i32
    %1 = arith.extui %0 : i1 to i32
    %c0_i32_0 = arith.constant 0 : i32
    %2 = arith.cmpi ne, %1, %c0_i32_0 : i32
    scf.if %2 {
      %cst_10 = arith.constant 0.000000e+00 : f32
      %14 = vector.broadcast %cst_10 : f32 to vector<32x32xf32>
      %c0_11 = arith.constant 0 : index
      %c0_12 = arith.constant 0 : index
      %15 = vector.load %arg7[%c0_11, %c0_12] : memref<32x32xf32, #tpu.memory_space<vmem>>, vector<32x32xf32>
      tpu.vector_store %arg7[%c0_11, %c0_12], %14 {strides = array<i32>} : memref<32x32xf32, #tpu.memory_space<vmem>>, vector<32x32xf32>,
    } else {
    }
    %c0 = arith.constant 0 : index
    %c0_1 = arith.constant 0 : index
    %3 = vector.load %arg3[%c0, %c0_1] : memref<32x32xf32, #tpu.memory_space<vmem>>, vector<32x32xf32>
    %c0_2 = arith.constant 0 : index
    %c0_3 = arith.constant 0 : index
    %4 = vector.load %arg7[%c0_2, %c0_3] : memref<32x32xf32, #tpu.memory_space<vmem>>, vector<32x32xf32>
    %5 = arith.truncf %3 : vector<32x32xf32> to vector<32x32xbf16>
    %c0_4 = arith.constant 0 : index
    %c0_5 = arith.constant 0 : index
    %6 = vector.load %arg4[%c0_4, %c0_5] : memref<32x32xf32, #tpu.memory_space<vmem>>, vector<32x32xf32>
    %7 = arith.truncf %6 : vector<32x32xf32> to vector<32x32xbf16>
    %cst = arith.constant dense<0.000000e+00> : vector<32x32xf32>
    %8 = tpu.matmul %5, %7, %cst {dimension_numbers = #tpu.dot_dimension_numbers<[1], [0], [0], [1], [0, 0, 1, 1], [], []>} : vector<32x32xbf16>, vector<32x32xbf16>, vector<32x32xf32> -> vector<32x32xf32>
    %9 = arith.addf %4, %8 : vector<32x32xf32>
    %c0_6 = arith.constant 0 : index
    %c0_7 = arith.constant 0 : index
    %10 = vector.load %arg7[%c0_6, %c0_7] : memref<32x32xf32, #tpu.memory_space<vmem>>, vector<32x32xf32>
    tpu.vector_store %arg7[%c0_6, %c0_7], %9 {strides = array<i32>} : memref<32x32xf32, #tpu.memory_space<vmem>>, vector<32x32xf32>,
    %c0_i32_8 = arith.constant 0 : i32
    %11 = arith.cmpi eq, %arg2, %c0_i32_8 : i32
    %12 = arith.extui %11 : i1 to i32
    %c0_i32_9 = arith.constant 0 : i32
    %13 = arith.cmpi ne, %12, %c0_i32_9 : i32
    scf.if %13 {
      %c0_10 = arith.constant 0 : index
      %c0_11 = arith.constant 0 : index
      %14 = vector.load %arg7[%c0_10, %c0_11] : memref<32x32xf32, #tpu.memory_space<vmem>>, vector<32x32xf32>
      %c0_12 = arith.constant 0 : index
      %c0_13 = arith.constant 0 : index
      %15 = vector.load %arg5[%c0_12, %c0_13] : memref<1x32xf32, #tpu.memory_space<vmem>>, vector<1x32xf32>
      %16 = vector.broadcast %15 : vector<1x32xf32> to vector<32x32xf32>
      %17 = arith.addf %14, %16 : vector<32x32xf32>
      %c0_14 = arith.constant 0 : index
      %c0_15 = arith.constant 0 : index
      %18 = vector.load %arg6[%c0_14, %c0_15] : memref<32x32xf32, #tpu.memory_space<vmem>>, vector<32x32xf32>
      tpu.vector_store %arg6[%c0_14, %c0_15], %17 {strides = array<i32>} : memref<32x32xf32, #tpu.memory_space<vmem>>, vector<32x32xf32>,
    } else {
    }
    return
  }
  func.func @transform_0(%arg0: i32, %arg1: i32, %arg2: i32) -> (i32, i32) {
    %c0_i32 = arith.constant 0 : i32
    return %arg0, %arg2 : i32, i32
  }
  func.func @transform_1(%arg0: i32, %arg1: i32, %arg2: i32) -> (i32, i32) {
    %c0_i32 = arith.constant 0 : i32
    return %arg2, %arg1 : i32, i32
  }
  func.func @transform_2(%arg0: i32, %arg1: i32, %arg2: i32) -> (i32, i32) {
    %c0_i32 = arith.constant 0 : i32
    %c0_i32_0 = arith.constant 0 : i32
    return %c0_i32, %arg1 : i32, i32
  }
  func.func @transform_3(%arg0: i32, %arg1: i32, %arg2: i32) -> (i32, i32) {
    %c0_i32 = arith.constant 0 : i32
    return %arg0, %arg1 : i32, i32
  }
}

module attributes {stable_mosaic.version = 11 : i64} {
  func.func @_flash_attn_kernel(%arg0: i32, %arg1: i32, %arg2: i32, %arg3: memref<1x16x32xf32, #tpu.memory_space<vmem>>, %arg4: memref<1x4x64xf32, #tpu.memory_space<vmem>>, %arg5: memref<1x16x32xf32, #tpu.memory_space<vmem>>, %arg6: memref<2x16x1xf32, #tpu.memory_space<vmem>>, %arg7: memref<2x16x1xf32, #tpu.memory_space<vmem>>, %arg8: memref<2x16x16xf32, #tpu.memory_space<vmem>>) attributes {dimension_semantics = [#tpu.dimension_semantics<parallel>, #tpu.dimension_semantics<parallel>, #tpu.dimension_semantics<arbitrary>], iteration_bounds = array<i64: 2, 1, 1>, scalar_prefetch = 0 : i64, scratch_operands = 3 : i64, tpu.core_type = #tpu.core_type<tc>, window_params = [{transform_indices = @transform_0, window_bounds = array<i64: 1, 16, 32>}, {transform_indices = @transform_1, window_bounds = array<i64: 1, 4, 64>}, {transform_indices = @transform_2, window_bounds = array<i64: 1, 16, 32>}]} {
    %c0_i32 = arith.constant 0 : i32
    %0 = arith.cmpi eq, %arg2, %c0_i32 : i32
    %1 = arith.extui %0 : i1 to i32
    %c0_i32_0 = arith.constant 0 : i32
    %2 = arith.cmpi ne, %1, %c0_i32_0 : i32
    scf.if %2 {
      %cst_52 = arith.constant 0xFF800000 : f32
      %92 = vector.broadcast %cst_52 : f32 to vector<2x16x1xf32>
      %c0_53 = arith.constant 0 : index
      %c0_54 = arith.constant 0 : index
      %c0_55 = arith.constant 0 : index
      %93 = vector.load %arg6[%c0_53, %c0_54, %c0_55] : memref<2x16x1xf32, #tpu.memory_space<vmem>>, vector<2x16x1xf32>
      tpu.vector_store %arg6[%c0_53, %c0_54, %c0_55], %92 {strides = array<i32>} : memref<2x16x1xf32, #tpu.memory_space<vmem>>, vector<2x16x1xf32>,
      %cst_56 = arith.constant 0.000000e+00 : f32
      %94 = vector.broadcast %cst_56 : f32 to vector<2x16x1xf32>
      %c0_57 = arith.constant 0 : index
      %c0_58 = arith.constant 0 : index
      %c0_59 = arith.constant 0 : index
      %95 = vector.load %arg7[%c0_57, %c0_58, %c0_59] : memref<2x16x1xf32, #tpu.memory_space<vmem>>, vector<2x16x1xf32>
      tpu.vector_store %arg7[%c0_57, %c0_58, %c0_59], %94 {strides = array<i32>} : memref<2x16x1xf32, #tpu.memory_space<vmem>>, vector<2x16x1xf32>,
      %cst_60 = arith.constant 0.000000e+00 : f32
      %96 = vector.broadcast %cst_60 : f32 to vector<2x16x16xf32>
      %c0_61 = arith.constant 0 : index
      %c0_62 = arith.constant 0 : index
      %c0_63 = arith.constant 0 : index
      %97 = vector.load %arg8[%c0_61, %c0_62, %c0_63] : memref<2x16x16xf32, #tpu.memory_space<vmem>>, vector<2x16x16xf32>
      tpu.vector_store %arg8[%c0_61, %c0_62, %c0_63], %96 {strides = array<i32>} : memref<2x16x16xf32, #tpu.memory_space<vmem>>, vector<2x16x16xf32>,
    } else {
    }
    %c0 = arith.constant 0 : index
    %c0_1 = arith.constant 0 : index
    %c0_2 = arith.constant 0 : index
    %3 = vector.load %arg3[%c0, %c0_1, %c0_2] : memref<1x16x32xf32, #tpu.memory_space<vmem>>, vector<1x16x32xf32>
    %4 = vector.shape_cast %3 : vector<1x16x32xf32> to vector<16x32xf32>
    %c0_3 = arith.constant 0 : index
    %c0_4 = arith.constant 0 : index
    %c0_5 = arith.constant 0 : index
    %5 = vector.load %arg4[%c0_3, %c0_4, %c0_5] : memref<1x4x64xf32, #tpu.memory_space<vmem>>, vector<1x4x64xf32>
    %6 = vector.shape_cast %5 : vector<1x4x64xf32> to vector<4x64xf32>
    %7 = vector.extract_strided_slice %4 {offsets = [0, 0], sizes = [16, 16], strides = [1, 1]} : vector<16x32xf32> to vector<16x16xf32>
    %8 = arith.truncf %7 : vector<16x16xf32> to vector<16x16xbf16>
    %9 = vector.extract_strided_slice %6 {offsets = [0, 0], sizes = [4, 16], strides = [1, 1]} : vector<4x64xf32> to vector<4x16xf32>
    %10 = arith.truncf %9 : vector<4x16xf32> to vector<4x16xbf16>
    %11 = vector.extract_strided_slice %6 {offsets = [0, 32], sizes = [4, 16], strides = [1, 1]} : vector<4x64xf32> to vector<4x16xf32>
    %12 = arith.truncf %11 : vector<4x16xf32> to vector<4x16xbf16>
    %cst = arith.constant dense<0.000000e+00> : vector<16x4xf32>
    %13 = tpu.matmul %8, %10, %cst {dimension_numbers = #tpu.dot_dimension_numbers<[1], [1], [0], [0], [0, 0, 1, 0], [], []>} : vector<16x16xbf16>, vector<4x16xbf16>, vector<16x4xf32> -> vector<16x4xf32>
    %cst_6 = arith.constant 2.500000e-01 : f32
    %14 = vector.broadcast %cst_6 : f32 to vector<16x4xf32>
    %15 = arith.mulf %13, %14 : vector<16x4xf32>
    %c0_7 = arith.constant 0 : index
    %c0_8 = arith.constant 0 : index
    %c0_9 = arith.constant 0 : index
    %16 = vector.load %arg6[%c0_7, %c0_8, %c0_9] : memref<2x16x1xf32, #tpu.memory_space<vmem>>, vector<1x16x1xf32>
    %17 = vector.shape_cast %16 : vector<1x16x1xf32> to vector<16x1xf32>
    %cst_10 = arith.constant dense<0xFF800000> : vector<16xf32>
    %18 = vector.multi_reduction <maximumf>, %15, %cst_10 [1] : vector<16x4xf32> to vector<16xf32>
    %19 = vector.shape_cast %18 : vector<16xf32> to vector<16x1xf32>
    %20 = arith.maximumf %17, %19 : vector<16x1xf32>
    %21 = arith.subf %17, %20 : vector<16x1xf32>
    %22 = math.exp %21 : vector<16x1xf32>
    %23 = vector.broadcast %20 : vector<16x1xf32> to vector<16x4xf32>
    %24 = arith.subf %15, %23 : vector<16x4xf32>
    %25 = math.exp %24 : vector<16x4xf32>
    %c0_11 = arith.constant 0 : index
    %c0_12 = arith.constant 0 : index
    %c0_13 = arith.constant 0 : index
    %26 = vector.load %arg7[%c0_11, %c0_12, %c0_13] : memref<2x16x1xf32, #tpu.memory_space<vmem>>, vector<1x16x1xf32>
    %27 = vector.shape_cast %26 : vector<1x16x1xf32> to vector<16x1xf32>
    %28 = arith.mulf %22, %27 : vector<16x1xf32>
    %cst_14 = arith.constant dense<0.000000e+00> : vector<16xf32>
    %29 = vector.multi_reduction <add>, %25, %cst_14 [1] : vector<16x4xf32> to vector<16xf32>
    %30 = vector.shape_cast %29 : vector<16xf32> to vector<16x1xf32>
    %31 = arith.addf %28, %30 : vector<16x1xf32>
    %c0_15 = arith.constant 0 : index
    %c0_16 = arith.constant 0 : index
    %c0_17 = arith.constant 0 : index
    %32 = vector.load %arg7[%c0_15, %c0_16, %c0_17] : memref<2x16x1xf32, #tpu.memory_space<vmem>>, vector<1x16x1xf32>
    %33 = vector.shape_cast %32 : vector<1x16x1xf32> to vector<16x1xf32>
    %34 = vector.shape_cast %31 : vector<16x1xf32> to vector<1x16x1xf32>
    tpu.vector_store %arg7[%c0_15, %c0_16, %c0_17], %34 {strides = array<i32>} : memref<2x16x1xf32, #tpu.memory_space<vmem>>, vector<1x16x1xf32>,
    %c0_18 = arith.constant 0 : index
    %c0_19 = arith.constant 0 : index
    %c0_20 = arith.constant 0 : index
    %35 = vector.load %arg8[%c0_18, %c0_19, %c0_20] : memref<2x16x16xf32, #tpu.memory_space<vmem>>, vector<1x16x16xf32>
    %36 = vector.shape_cast %35 : vector<1x16x16xf32> to vector<16x16xf32>
    %37 = vector.broadcast %22 : vector<16x1xf32> to vector<16x16xf32>
    %38 = arith.mulf %37, %36 : vector<16x16xf32>
    %39 = arith.truncf %25 : vector<16x4xf32> to vector<16x4xbf16>
    %cst_21 = arith.constant dense<0.000000e+00> : vector<16x16xf32>
    %40 = tpu.matmul %39, %12, %cst_21 {dimension_numbers = #tpu.dot_dimension_numbers<[1], [0], [0], [1], [0, 0, 1, 1], [], []>} : vector<16x4xbf16>, vector<4x16xbf16>, vector<16x16xf32> -> vector<16x16xf32>
    %41 = arith.addf %38, %40 : vector<16x16xf32>
    %c0_22 = arith.constant 0 : index
    %c0_23 = arith.constant 0 : index
    %c0_24 = arith.constant 0 : index
    %42 = vector.load %arg8[%c0_22, %c0_23, %c0_24] : memref<2x16x16xf32, #tpu.memory_space<vmem>>, vector<1x16x16xf32>
    %43 = vector.shape_cast %42 : vector<1x16x16xf32> to vector<16x16xf32>
    %44 = vector.shape_cast %41 : vector<16x16xf32> to vector<1x16x16xf32>
    tpu.vector_store %arg8[%c0_22, %c0_23, %c0_24], %44 {strides = array<i32>} : memref<2x16x16xf32, #tpu.memory_space<vmem>>, vector<1x16x16xf32>,
    %c0_25 = arith.constant 0 : index
    %c0_26 = arith.constant 0 : index
    %c0_27 = arith.constant 0 : index
    %45 = vector.load %arg6[%c0_25, %c0_26, %c0_27] : memref<2x16x1xf32, #tpu.memory_space<vmem>>, vector<1x16x1xf32>
    %46 = vector.shape_cast %45 : vector<1x16x1xf32> to vector<16x1xf32>
    %47 = vector.shape_cast %20 : vector<16x1xf32> to vector<1x16x1xf32>
    tpu.vector_store %arg6[%c0_25, %c0_26, %c0_27], %47 {strides = array<i32>} : memref<2x16x1xf32, #tpu.memory_space<vmem>>, vector<1x16x1xf32>,
    %48 = vector.extract_strided_slice %4 {offsets = [0, 16], sizes = [16, 16], strides = [1, 1]} : vector<16x32xf32> to vector<16x16xf32>
    %49 = arith.truncf %48 : vector<16x16xf32> to vector<16x16xbf16>
    %50 = vector.extract_strided_slice %6 {offsets = [0, 16], sizes = [4, 16], strides = [1, 1]} : vector<4x64xf32> to vector<4x16xf32>
    %51 = arith.truncf %50 : vector<4x16xf32> to vector<4x16xbf16>
    %52 = vector.extract_strided_slice %6 {offsets = [0, 48], sizes = [4, 16], strides = [1, 1]} : vector<4x64xf32> to vector<4x16xf32>
    %53 = arith.truncf %52 : vector<4x16xf32> to vector<4x16xbf16>
    %cst_28 = arith.constant dense<0.000000e+00> : vector<16x4xf32>
    %54 = tpu.matmul %49, %51, %cst_28 {dimension_numbers = #tpu.dot_dimension_numbers<[1], [1], [0], [0], [0, 0, 1, 0], [], []>} : vector<16x16xbf16>, vector<4x16xbf16>, vector<16x4xf32> -> vector<16x4xf32>
    %cst_29 = arith.constant 2.500000e-01 : f32
    %55 = vector.broadcast %cst_29 : f32 to vector<16x4xf32>
    %56 = arith.mulf %54, %55 : vector<16x4xf32>
    %c1 = arith.constant 1 : index
    %c0_30 = arith.constant 0 : index
    %c0_31 = arith.constant 0 : index
    %57 = vector.load %arg6[%c1, %c0_30, %c0_31] : memref<2x16x1xf32, #tpu.memory_space<vmem>>, vector<1x16x1xf32>
    %58 = vector.shape_cast %57 : vector<1x16x1xf32> to vector<16x1xf32>
    %cst_32 = arith.constant dense<0xFF800000> : vector<16xf32>
    %59 = vector.multi_reduction <maximumf>, %56, %cst_32 [1] : vector<16x4xf32> to vector<16xf32>
    %60 = vector.shape_cast %59 : vector<16xf32> to vector<16x1xf32>
    %61 = arith.maximumf %58, %60 : vector<16x1xf32>
    %62 = arith.subf %58, %61 : vector<16x1xf32>
    %63 = math.exp %62 : vector<16x1xf32>
    %64 = vector.broadcast %61 : vector<16x1xf32> to vector<16x4xf32>
    %65 = arith.subf %56, %64 : vector<16x4xf32>
    %66 = math.exp %65 : vector<16x4xf32>
    %c1_33 = arith.constant 1 : index
    %c0_34 = arith.constant 0 : index
    %c0_35 = arith.constant 0 : index
    %67 = vector.load %arg7[%c1_33, %c0_34, %c0_35] : memref<2x16x1xf32, #tpu.memory_space<vmem>>, vector<1x16x1xf32>
    %68 = vector.shape_cast %67 : vector<1x16x1xf32> to vector<16x1xf32>
    %69 = arith.mulf %63, %68 : vector<16x1xf32>
    %cst_36 = arith.constant dense<0.000000e+00> : vector<16xf32>
    %70 = vector.multi_reduction <add>, %66, %cst_36 [1] : vector<16x4xf32> to vector<16xf32>
    %71 = vector.shape_cast %70 : vector<16xf32> to vector<16x1xf32>
    %72 = arith.addf %69, %71 : vector<16x1xf32>
    %c1_37 = arith.constant 1 : index
    %c0_38 = arith.constant 0 : index
    %c0_39 = arith.constant 0 : index
    %73 = vector.load %arg7[%c1_37, %c0_38, %c0_39] : memref<2x16x1xf32, #tpu.memory_space<vmem>>, vector<1x16x1xf32>
    %74 = vector.shape_cast %73 : vector<1x16x1xf32> to vector<16x1xf32>
    %75 = vector.shape_cast %72 : vector<16x1xf32> to vector<1x16x1xf32>
    tpu.vector_store %arg7[%c1_37, %c0_38, %c0_39], %75 {strides = array<i32>} : memref<2x16x1xf32, #tpu.memory_space<vmem>>, vector<1x16x1xf32>,
    %c1_40 = arith.constant 1 : index
    %c0_41 = arith.constant 0 : index
    %c0_42 = arith.constant 0 : index
    %76 = vector.load %arg8[%c1_40, %c0_41, %c0_42] : memref<2x16x16xf32, #tpu.memory_space<vmem>>, vector<1x16x16xf32>
    %77 = vector.shape_cast %76 : vector<1x16x16xf32> to vector<16x16xf32>
    %78 = vector.broadcast %63 : vector<16x1xf32> to vector<16x16xf32>
    %79 = arith.mulf %78, %77 : vector<16x16xf32>
    %80 = arith.truncf %66 : vector<16x4xf32> to vector<16x4xbf16>
    %cst_43 = arith.constant dense<0.000000e+00> : vector<16x16xf32>
    %81 = tpu.matmul %80, %53, %cst_43 {dimension_numbers = #tpu.dot_dimension_numbers<[1], [0], [0], [1], [0, 0, 1, 1], [], []>} : vector<16x4xbf16>, vector<4x16xbf16>, vector<16x16xf32> -> vector<16x16xf32>
    %82 = arith.addf %79, %81 : vector<16x16xf32>
    %c1_44 = arith.constant 1 : index
    %c0_45 = arith.constant 0 : index
    %c0_46 = arith.constant 0 : index
    %83 = vector.load %arg8[%c1_44, %c0_45, %c0_46] : memref<2x16x16xf32, #tpu.memory_space<vmem>>, vector<1x16x16xf32>
    %84 = vector.shape_cast %83 : vector<1x16x16xf32> to vector<16x16xf32>
    %85 = vector.shape_cast %82 : vector<16x16xf32> to vector<1x16x16xf32>
    tpu.vector_store %arg8[%c1_44, %c0_45, %c0_46], %85 {strides = array<i32>} : memref<2x16x16xf32, #tpu.memory_space<vmem>>, vector<1x16x16xf32>,
    %c1_47 = arith.constant 1 : index
    %c0_48 = arith.constant 0 : index
    %c0_49 = arith.constant 0 : index
    %86 = vector.load %arg6[%c1_47, %c0_48, %c0_49] : memref<2x16x1xf32, #tpu.memory_space<vmem>>, vector<1x16x1xf32>
    %87 = vector.shape_cast %86 : vector<1x16x1xf32> to vector<16x1xf32>
    %88 = vector.shape_cast %61 : vector<16x1xf32> to vector<1x16x1xf32>
    tpu.vector_store %arg6[%c1_47, %c0_48, %c0_49], %88 {strides = array<i32>} : memref<2x16x1xf32, #tpu.memory_space<vmem>>, vector<1x16x1xf32>,
    %c0_i32_50 = arith.constant 0 : i32
    %89 = arith.cmpi eq, %arg2, %c0_i32_50 : i32
    %90 = arith.extui %89 : i1 to i32
    %c0_i32_51 = arith.constant 0 : i32
    %91 = arith.cmpi ne, %90, %c0_i32_51 : i32
    scf.if %91 {
      %c0_52 = arith.constant 0 : index
      %c0_53 = arith.constant 0 : index
      %c0_54 = arith.constant 0 : index
      %92 = vector.load %arg7[%c0_52, %c0_53, %c0_54] : memref<2x16x1xf32, #tpu.memory_space<vmem>>, vector<1x16x1xf32>
      %93 = vector.shape_cast %92 : vector<1x16x1xf32> to vector<16x1xf32>
      %94 = tpu.reciprocal %93 {approx = true} : vector<16x1xf32> -> vector<16x1xf32>
      %c0_55 = arith.constant 0 : index
      %c0_56 = arith.constant 0 : index
      %c0_57 = arith.constant 0 : index
      %95 = vector.load %arg8[%c0_55, %c0_56, %c0_57] : memref<2x16x16xf32, #tpu.memory_space<vmem>>, vector<1x16x16xf32>
      %96 = vector.shape_cast %95 : vector<1x16x16xf32> to vector<16x16xf32>
      %97 = vector.broadcast %94 : vector<16x1xf32> to vector<16x16xf32>
      %98 = arith.mulf %96, %97 : vector<16x16xf32>
      %c1_58 = arith.constant 1 : index
      %c0_59 = arith.constant 0 : index
      %c0_60 = arith.constant 0 : index
      %99 = vector.load %arg7[%c1_58, %c0_59, %c0_60] : memref<2x16x1xf32, #tpu.memory_space<vmem>>, vector<1x16x1xf32>
      %100 = vector.shape_cast %99 : vector<1x16x1xf32> to vector<16x1xf32>
      %101 = tpu.reciprocal %100 {approx = true} : vector<16x1xf32> -> vector<16x1xf32>
      %c1_61 = arith.constant 1 : index
      %c0_62 = arith.constant 0 : index
      %c0_63 = arith.constant 0 : index
      %102 = vector.load %arg8[%c1_61, %c0_62, %c0_63] : memref<2x16x16xf32, #tpu.memory_space<vmem>>, vector<1x16x16xf32>
      %103 = vector.shape_cast %102 : vector<1x16x16xf32> to vector<16x16xf32>
      %104 = vector.broadcast %101 : vector<16x1xf32> to vector<16x16xf32>
      %105 = arith.mulf %103, %104 : vector<16x16xf32>
      %106 = tpu.concatenate %98, %105 in 1 : vector<16x16xf32>, vector<16x16xf32> -> vector<16x32xf32>
      %c0_64 = arith.constant 0 : index
      %c0_65 = arith.constant 0 : index
      %c0_66 = arith.constant 0 : index
      %107 = vector.load %arg5[%c0_64, %c0_65, %c0_66] : memref<1x16x32xf32, #tpu.memory_space<vmem>>, vector<1x16x32xf32>
      %108 = vector.shape_cast %107 : vector<1x16x32xf32> to vector<16x32xf32>
      %109 = vector.shape_cast %106 : vector<16x32xf32> to vector<1x16x32xf32>
      tpu.vector_store %arg5[%c0_64, %c0_65, %c0_66], %109 {strides = array<i32>} : memref<1x16x32xf32, #tpu.memory_space<vmem>>, vector<1x16x32xf32>,
    } else {
    }
    return
  }
  func.func @transform_0(%arg0: i32, %arg1: i32, %arg2: i32) -> (i32, i32, i32) {
    %c0_i32 = arith.constant 0 : i32
    %c0_i32_0 = arith.constant 0 : i32
    return %arg0, %arg1, %c0_i32 : i32, i32, i32
  }
  func.func @transform_1(%arg0: i32, %arg1: i32, %arg2: i32) -> (i32, i32, i32) {
    %c0_i32 = arith.constant 0 : i32
    %c0_i32_0 = arith.constant 0 : i32
    return %arg0, %arg2, %c0_i32 : i32, i32, i32
  }
  func.func @transform_2(%arg0: i32, %arg1: i32, %arg2: i32) -> (i32, i32, i32) {
    %c0_i32 = arith.constant 0 : i32
    %c0_i32_0 = arith.constant 0 : i32
    return %arg0, %arg1, %c0_i32 : i32, i32, i32
  }
}

module attributes {stable_mosaic.version = 11 : i64} {
  func.func @_fused_matmul_kernel(%arg0: i32, %arg1: i32, %arg2: i32, %arg3: memref<32x32xf32, #tpu.memory_space<vmem>>, %arg4: memref<32x128xf32, #tpu.memory_space<vmem>>, %arg5: memref<1x128xf32, #tpu.memory_space<vmem>>, %arg6: memref<1x32xf32, #tpu.memory_space<vmem>>, %arg7: memref<1x32xf32, #tpu.memory_space<vmem>>, %arg8: memref<32x128xf32, #tpu.memory_space<vmem>>, %arg9: memref<32x128xf32, #tpu.memory_space<vmem>>) attributes {dimension_semantics = [#tpu.dimension_semantics<parallel>, #tpu.dimension_semantics<parallel>, #tpu.dimension_semantics<arbitrary>], iteration_bounds = array<i64: 1, 1, 1>, scalar_prefetch = 0 : i64, scratch_operands = 1 : i64, tpu.core_type = #tpu.core_type<tc>, window_params = [{transform_indices = @transform_0, window_bounds = array<i64: 32, 32>}, {transform_indices = @transform_1, window_bounds = array<i64: 32, 128>}, {transform_indices = @transform_2, window_bounds = array<i64: 1, 128>}, {pipeline_mode = #tpu.pipeline_mode<synchronous>, transform_indices = @transform_3, window_bounds = array<i64: 1, 32>}, {pipeline_mode = #tpu.pipeline_mode<synchronous>, transform_indices = @transform_4, window_bounds = array<i64: 1, 32>}, {transform_indices = @transform_5, window_bounds = array<i64: 32, 128>}]} {
    %c0_i32 = arith.constant 0 : i32
    %0 = arith.cmpi eq, %arg2, %c0_i32 : i32
    %1 = arith.extui %0 : i1 to i32
    %c0_i32_0 = arith.constant 0 : i32
    %2 = arith.cmpi ne, %1, %c0_i32_0 : i32
    scf.if %2 {
      %cst_19 = arith.constant 0.000000e+00 : f32
      %36 = vector.broadcast %cst_19 : f32 to vector<32x128xf32>
      %c0_20 = arith.constant 0 : index
      %c0_21 = arith.constant 0 : index
      %37 = vector.load %arg9[%c0_20, %c0_21] : memref<32x128xf32, #tpu.memory_space<vmem>>, vector<32x128xf32>
      tpu.vector_store %arg9[%c0_20, %c0_21], %36 {strides = array<i32>} : memref<32x128xf32, #tpu.memory_space<vmem>>, vector<32x128xf32>,
    } else {
    }
    %c0 = arith.constant 0 : index
    %c0_1 = arith.constant 0 : index
    %3 = vector.load %arg3[%c0, %c0_1] : memref<32x32xf32, #tpu.memory_space<vmem>>, vector<32x32xf32>
    %cst = arith.constant dense<0.000000e+00> : vector<32xf32>
    %4 = vector.multi_reduction <add>, %3, %cst [1] : vector<32x32xf32> to vector<32xf32>
    %5 = vector.shape_cast %4 : vector<32xf32> to vector<32x1xf32>
    %cst_2 = arith.constant 3.200000e+01 : f32
    %6 = vector.broadcast %cst_2 : f32 to vector<32x1xf32>
    %7 = arith.divf %5, %6 : vector<32x1xf32>
    %8 = vector.broadcast %7 : vector<32x1xf32> to vector<32x32xf32>
    %9 = arith.subf %3, %8 : vector<32x32xf32>
    %10 = arith.mulf %9, %9 : vector<32x32xf32>
    %cst_3 = arith.constant dense<0.000000e+00> : vector<32xf32>
    %11 = vector.multi_reduction <add>, %10, %cst_3 [1] : vector<32x32xf32> to vector<32xf32>
    %12 = vector.shape_cast %11 : vector<32xf32> to vector<32x1xf32>
    %cst_4 = arith.constant 3.200000e+01 : f32
    %13 = vector.broadcast %cst_4 : f32 to vector<32x1xf32>
    %14 = arith.divf %12, %13 : vector<32x1xf32>
    %cst_5 = arith.constant 9.99999997E-7 : f32
    %15 = vector.broadcast %cst_5 : f32 to vector<32x1xf32>
    %16 = arith.addf %14, %15 : vector<32x1xf32>
    %17 = math.rsqrt %16 : vector<32x1xf32>
    %18 = vector.broadcast %17 : vector<32x1xf32> to vector<32x32xf32>
    %19 = arith.mulf %9, %18 : vector<32x32xf32>
    %c0_6 = arith.constant 0 : index
    %c0_7 = arith.constant 0 : index
    %20 = vector.load %arg6[%c0_6, %c0_7] : memref<1x32xf32, #tpu.memory_space<vmem>>, vector<1x32xf32>
    %21 = vector.broadcast %20 : vector<1x32xf32> to vector<32x32xf32>
    %22 = arith.mulf %19, %21 : vector<32x32xf32>
    %c0_8 = arith.constant 0 : index
    %c0_9 = arith.constant 0 : index
    %23 = vector.load %arg7[%c0_8, %c0_9] : memref<1x32xf32, #tpu.memory_space<vmem>>, vector<1x32xf32>
    %24 = vector.broadcast %23 : vector<1x32xf32> to vector<32x32xf32>
    %25 = arith.addf %22, %24 : vector<32x32xf32>
    %c0_10 = arith.constant 0 : index
    %c0_11 = arith.constant 0 : index
    %26 = vector.load %arg9[%c0_10, %c0_11] : memref<32x128xf32, #tpu.memory_space<vmem>>, vector<32x128xf32>
    %27 = arith.truncf %25 : vector<32x32xf32> to vector<32x32xbf16>
    %c0_12 = arith.constant 0 : index
    %c0_13 = arith.constant 0 : index
    %28 = vector.load %arg4[%c0_12, %c0_13] : memref<32x128xf32, #tpu.memory_space<vmem>>, vector<32x128xf32>
    %29 = arith.truncf %28 : vector<32x128xf32> to vector<32x128xbf16>
    %cst_14 = arith.constant dense<0.000000e+00> : vector<32x128xf32>
    %30 = tpu.matmul %27, %29, %cst_14 {dimension_numbers = #tpu.dot_dimension_numbers<[1], [0], [0], [1], [0, 0, 1, 1], [], []>} : vector<32x32xbf16>, vector<32x128xbf16>, vector<32x128xf32> -> vector<32x128xf32>
    %31 = arith.addf %26, %30 : vector<32x128xf32>
    %c0_15 = arith.constant 0 : index
    %c0_16 = arith.constant 0 : index
    %32 = vector.load %arg9[%c0_15, %c0_16] : memref<32x128xf32, #tpu.memory_space<vmem>>, vector<32x128xf32>
    tpu.vector_store %arg9[%c0_15, %c0_16], %31 {strides = array<i32>} : memref<32x128xf32, #tpu.memory_space<vmem>>, vector<32x128xf32>,
    %c0_i32_17 = arith.constant 0 : i32
    %33 = arith.cmpi eq, %arg2, %c0_i32_17 : i32
    %34 = arith.extui %33 : i1 to i32
    %c0_i32_18 = arith.constant 0 : i32
    %35 = arith.cmpi ne, %34, %c0_i32_18 : i32
    scf.if %35 {
      %c0_19 = arith.constant 0 : index
      %c0_20 = arith.constant 0 : index
      %36 = vector.load %arg9[%c0_19, %c0_20] : memref<32x128xf32, #tpu.memory_space<vmem>>, vector<32x128xf32>
      %c0_21 = arith.constant 0 : index
      %c0_22 = arith.constant 0 : index
      %37 = vector.load %arg5[%c0_21, %c0_22] : memref<1x128xf32, #tpu.memory_space<vmem>>, vector<1x128xf32>
      %38 = vector.broadcast %37 : vector<1x128xf32> to vector<32x128xf32>
      %39 = arith.addf %36, %38 : vector<32x128xf32>
      %c0_23 = arith.constant 0 : index
      %c0_24 = arith.constant 0 : index
      %40 = vector.load %arg8[%c0_23, %c0_24] : memref<32x128xf32, #tpu.memory_space<vmem>>, vector<32x128xf32>
      tpu.vector_store %arg8[%c0_23, %c0_24], %39 {strides = array<i32>} : memref<32x128xf32, #tpu.memory_space<vmem>>, vector<32x128xf32>,
    } else {
    }
    return
  }
  func.func @transform_0(%arg0: i32, %arg1: i32, %arg2: i32) -> (i32, i32) {
    %c0_i32 = arith.constant 0 : i32
    return %arg0, %arg2 : i32, i32
  }
  func.func @transform_1(%arg0: i32, %arg1: i32, %arg2: i32) -> (i32, i32) {
    %c0_i32 = arith.constant 0 : i32
    return %arg2, %arg1 : i32, i32
  }
  func.func @transform_2(%arg0: i32, %arg1: i32, %arg2: i32) -> (i32, i32) {
    %c0_i32 = arith.constant 0 : i32
    %c0_i32_0 = arith.constant 0 : i32
    return %c0_i32, %arg1 : i32, i32
  }
  func.func @transform_3(%arg0: i32, %arg1: i32, %arg2: i32) -> (i32, i32) {
    %c0_i32 = arith.constant 0 : i32
    %c0_i32_0 = arith.constant 0 : i32
    %c0_i32_1 = arith.constant 0 : i32
    return %c0_i32, %c0_i32_0 : i32, i32
  }
  func.func @transform_4(%arg0: i32, %arg1: i32, %arg2: i32) -> (i32, i32) {
    %c0_i32 = arith.constant 0 : i32
    %c0_i32_0 = arith.constant 0 : i32
    %c0_i32_1 = arith.constant 0 : i32
    return %c0_i32, %c0_i32_0 : i32, i32
  }
  func.func @transform_5(%arg0: i32, %arg1: i32, %arg2: i32) -> (i32, i32) {
    %c0_i32 = arith.constant 0 : i32
    return %arg0, %arg1 : i32, i32
  }
}

module attributes {stable_mosaic.version = 11 : i64} {
  func.func @_fused_matmul_kernel(%arg0: i32, %arg1: i32, %arg2: i32, %arg3: memref<32x32xf32, #tpu.memory_space<vmem>>, %arg4: memref<32x32xf32, #tpu.memory_space<vmem>>, %arg5: memref<1x32xf32, #tpu.memory_space<vmem>>, %arg6: memref<32x32xf32, #tpu.memory_space<vmem>>, %arg7: memref<32x32xf32, #tpu.memory_space<vmem>>, %arg8: memref<32x32xf32, #tpu.memory_space<vmem>>) attributes {dimension_semantics = [#tpu.dimension_semantics<parallel>, #tpu.dimension_semantics<parallel>, #tpu.dimension_semantics<arbitrary>], iteration_bounds = array<i64: 1, 1, 1>, scalar_prefetch = 0 : i64, scratch_operands = 1 : i64, tpu.core_type = #tpu.core_type<tc>, window_params = [{transform_indices = @transform_0, window_bounds = array<i64: 32, 32>}, {transform_indices = @transform_1, window_bounds = array<i64: 32, 32>}, {transform_indices = @transform_2, window_bounds = array<i64: 1, 32>}, {transform_indices = @transform_3, window_bounds = array<i64: 32, 32>}, {transform_indices = @transform_4, window_bounds = array<i64: 32, 32>}]} {
    %c0_i32 = arith.constant 0 : i32
    %0 = arith.cmpi eq, %arg2, %c0_i32 : i32
    %1 = arith.extui %0 : i1 to i32
    %c0_i32_0 = arith.constant 0 : i32
    %2 = arith.cmpi ne, %1, %c0_i32_0 : i32
    scf.if %2 {
      %cst_10 = arith.constant 0.000000e+00 : f32
      %14 = vector.broadcast %cst_10 : f32 to vector<32x32xf32>
      %c0_11 = arith.constant 0 : index
      %c0_12 = arith.constant 0 : index
      %15 = vector.load %arg8[%c0_11, %c0_12] : memref<32x32xf32, #tpu.memory_space<vmem>>, vector<32x32xf32>
      tpu.vector_store %arg8[%c0_11, %c0_12], %14 {strides = array<i32>} : memref<32x32xf32, #tpu.memory_space<vmem>>, vector<32x32xf32>,
    } else {
    }
    %c0 = arith.constant 0 : index
    %c0_1 = arith.constant 0 : index
    %3 = vector.load %arg3[%c0, %c0_1] : memref<32x32xf32, #tpu.memory_space<vmem>>, vector<32x32xf32>
    %c0_2 = arith.constant 0 : index
    %c0_3 = arith.constant 0 : index
    %4 = vector.load %arg8[%c0_2, %c0_3] : memref<32x32xf32, #tpu.memory_space<vmem>>, vector<32x32xf32>
    %5 = arith.truncf %3 : vector<32x32xf32> to vector<32x32xbf16>
    %c0_4 = arith.constant 0 : index
    %c0_5 = arith.constant 0 : index
    %6 = vector.load %arg4[%c0_4, %c0_5] : memref<32x32xf32, #tpu.memory_space<vmem>>, vector<32x32xf32>
    %7 = arith.truncf %6 : vector<32x32xf32> to vector<32x32xbf16>
    %cst = arith.constant dense<0.000000e+00> : vector<32x32xf32>
    %8 = tpu.matmul %5, %7, %cst {dimension_numbers = #tpu.dot_dimension_numbers<[1], [0], [0], [1], [0, 0, 1, 1], [], []>} : vector<32x32xbf16>, vector<32x32xbf16>, vector<32x32xf32> -> vector<32x32xf32>
    %9 = arith.addf %4, %8 : vector<32x32xf32>
    %c0_6 = arith.constant 0 : index
    %c0_7 = arith.constant 0 : index
    %10 = vector.load %arg8[%c0_6, %c0_7] : memref<32x32xf32, #tpu.memory_space<vmem>>, vector<32x32xf32>
    tpu.vector_store %arg8[%c0_6, %c0_7], %9 {strides = array<i32>} : memref<32x32xf32, #tpu.memory_space<vmem>>, vector<32x32xf32>,
    %c0_i32_8 = arith.constant 0 : i32
    %11 = arith.cmpi eq, %arg2, %c0_i32_8 : i32
    %12 = arith.extui %11 : i1 to i32
    %c0_i32_9 = arith.constant 0 : i32
    %13 = arith.cmpi ne, %12, %c0_i32_9 : i32
    scf.if %13 {
      %c0_10 = arith.constant 0 : index
      %c0_11 = arith.constant 0 : index
      %14 = vector.load %arg8[%c0_10, %c0_11] : memref<32x32xf32, #tpu.memory_space<vmem>>, vector<32x32xf32>
      %c0_12 = arith.constant 0 : index
      %c0_13 = arith.constant 0 : index
      %15 = vector.load %arg5[%c0_12, %c0_13] : memref<1x32xf32, #tpu.memory_space<vmem>>, vector<1x32xf32>
      %16 = vector.broadcast %15 : vector<1x32xf32> to vector<32x32xf32>
      %17 = arith.addf %14, %16 : vector<32x32xf32>
      %c0_14 = arith.constant 0 : index
      %c0_15 = arith.constant 0 : index
      %18 = vector.load %arg6[%c0_14, %c0_15] : memref<32x32xf32, #tpu.memory_space<vmem>>, vector<32x32xf32>
      %19 = arith.addf %17, %18 : vector<32x32xf32>
      %c0_16 = arith.constant 0 : index
      %c0_17 = arith.constant 0 : index
      %20 = vector.load %arg7[%c0_16, %c0_17] : memref<32x32xf32, #tpu.memory_space<vmem>>, vector<32x32xf32>
      tpu.vector_store %arg7[%c0_16, %c0_17], %19 {strides = array<i32>} : memref<32x32xf32, #tpu.memory_space<vmem>>, vector<32x32xf32>,
    } else {
    }
    return
  }
  func.func @transform_0(%arg0: i32, %arg1: i32, %arg2: i32) -> (i32, i32) {
    %c0_i32 = arith.constant 0 : i32
    return %arg0, %arg2 : i32, i32
  }
  func.func @transform_1(%arg0: i32, %arg1: i32, %arg2: i32) -> (i32, i32) {
    %c0_i32 = arith.constant 0 : i32
    return %arg2, %arg1 : i32, i32
  }
  func.func @transform_2(%arg0: i32, %arg1: i32, %arg2: i32) -> (i32, i32) {
    %c0_i32 = arith.constant 0 : i32
    %c0_i32_0 = arith.constant 0 : i32
    return %c0_i32, %arg1 : i32, i32
  }
  func.func @transform_3(%arg0: i32, %arg1: i32, %arg2: i32) -> (i32, i32) {
    %c0_i32 = arith.constant 0 : i32
    return %arg0, %arg1 : i32, i32
  }
  func.func @transform_4(%arg0: i32, %arg1: i32, %arg2: i32) -> (i32, i32) {
    %c0_i32 = arith.constant 0 : i32
    return %arg0, %arg1 : i32, i32
  }
}

module attributes {stable_mosaic.version = 11 : i64} {
  func.func @_fused_matmul_kernel(%arg0: i32, %arg1: i32, %arg2: i32, %arg3: memref<32x128xf32, #tpu.memory_space<vmem>>, %arg4: memref<128x32xf32, #tpu.memory_space<vmem>>, %arg5: memref<1x32xf32, #tpu.memory_space<vmem>>, %arg6: memref<32x32xf32, #tpu.memory_space<vmem>>, %arg7: memref<32x32xf32, #tpu.memory_space<vmem>>, %arg8: memref<32x32xf32, #tpu.memory_space<vmem>>) attributes {dimension_semantics = [#tpu.dimension_semantics<parallel>, #tpu.dimension_semantics<parallel>, #tpu.dimension_semantics<arbitrary>], iteration_bounds = array<i64: 1, 1, 1>, scalar_prefetch = 0 : i64, scratch_operands = 1 : i64, tpu.core_type = #tpu.core_type<tc>, window_params = [{transform_indices = @transform_0, window_bounds = array<i64: 32, 128>}, {transform_indices = @transform_1, window_bounds = array<i64: 128, 32>}, {transform_indices = @transform_2, window_bounds = array<i64: 1, 32>}, {transform_indices = @transform_3, window_bounds = array<i64: 32, 32>}, {transform_indices = @transform_4, window_bounds = array<i64: 32, 32>}]} {
    %c0_i32 = arith.constant 0 : i32
    %0 = arith.cmpi eq, %arg2, %c0_i32 : i32
    %1 = arith.extui %0 : i1 to i32
    %c0_i32_0 = arith.constant 0 : i32
    %2 = arith.cmpi ne, %1, %c0_i32_0 : i32
    scf.if %2 {
      %cst_10 = arith.constant 0.000000e+00 : f32
      %14 = vector.broadcast %cst_10 : f32 to vector<32x32xf32>
      %c0_11 = arith.constant 0 : index
      %c0_12 = arith.constant 0 : index
      %15 = vector.load %arg8[%c0_11, %c0_12] : memref<32x32xf32, #tpu.memory_space<vmem>>, vector<32x32xf32>
      tpu.vector_store %arg8[%c0_11, %c0_12], %14 {strides = array<i32>} : memref<32x32xf32, #tpu.memory_space<vmem>>, vector<32x32xf32>,
    } else {
    }
    %c0 = arith.constant 0 : index
    %c0_1 = arith.constant 0 : index
    %3 = vector.load %arg3[%c0, %c0_1] : memref<32x128xf32, #tpu.memory_space<vmem>>, vector<32x128xf32>
    %c0_2 = arith.constant 0 : index
    %c0_3 = arith.constant 0 : index
    %4 = vector.load %arg8[%c0_2, %c0_3] : memref<32x32xf32, #tpu.memory_space<vmem>>, vector<32x32xf32>
    %5 = arith.truncf %3 : vector<32x128xf32> to vector<32x128xbf16>
    %c0_4 = arith.constant 0 : index
    %c0_5 = arith.constant 0 : index
    %6 = vector.load %arg4[%c0_4, %c0_5] : memref<128x32xf32, #tpu.memory_space<vmem>>, vector<128x32xf32>
    %7 = arith.truncf %6 : vector<128x32xf32> to vector<128x32xbf16>
    %cst = arith.constant dense<0.000000e+00> : vector<32x32xf32>
    %8 = tpu.matmul %5, %7, %cst {dimension_numbers = #tpu.dot_dimension_numbers<[1], [0], [0], [1], [0, 0, 1, 1], [], []>} : vector<32x128xbf16>, vector<128x32xbf16>, vector<32x32xf32> -> vector<32x32xf32>
    %9 = arith.addf %4, %8 : vector<32x32xf32>
    %c0_6 = arith.constant 0 : index
    %c0_7 = arith.constant 0 : index
    %10 = vector.load %arg8[%c0_6, %c0_7] : memref<32x32xf32, #tpu.memory_space<vmem>>, vector<32x32xf32>
    tpu.vector_store %arg8[%c0_6, %c0_7], %9 {strides = array<i32>} : memref<32x32xf32, #tpu.memory_space<vmem>>, vector<32x32xf32>,
    %c0_i32_8 = arith.constant 0 : i32
    %11 = arith.cmpi eq, %arg2, %c0_i32_8 : i32
    %12 = arith.extui %11 : i1 to i32
    %c0_i32_9 = arith.constant 0 : i32
    %13 = arith.cmpi ne, %12, %c0_i32_9 : i32
    scf.if %13 {
      %c0_10 = arith.constant 0 : index
      %c0_11 = arith.constant 0 : index
      %14 = vector.load %arg8[%c0_10, %c0_11] : memref<32x32xf32, #tpu.memory_space<vmem>>, vector<32x32xf32>
      %c0_12 = arith.constant 0 : index
      %c0_13 = arith.constant 0 : index
      %15 = vector.load %arg5[%c0_12, %c0_13] : memref<1x32xf32, #tpu.memory_space<vmem>>, vector<1x32xf32>
      %16 = vector.broadcast %15 : vector<1x32xf32> to vector<32x32xf32>
      %17 = arith.addf %14, %16 : vector<32x32xf32>
      %c0_14 = arith.constant 0 : index
      %c0_15 = arith.constant 0 : index
      %18 = vector.load %arg6[%c0_14, %c0_15] : memref<32x32xf32, #tpu.memory_space<vmem>>, vector<32x32xf32>
      %19 = arith.addf %17, %18 : vector<32x32xf32>
      %c0_16 = arith.constant 0 : index
      %c0_17 = arith.constant 0 : index
      %20 = vector.load %arg7[%c0_16, %c0_17] : memref<32x32xf32, #tpu.memory_space<vmem>>, vector<32x32xf32>
      tpu.vector_store %arg7[%c0_16, %c0_17], %19 {strides = array<i32>} : memref<32x32xf32, #tpu.memory_space<vmem>>, vector<32x32xf32>,
    } else {
    }
    return
  }
  func.func @transform_0(%arg0: i32, %arg1: i32, %arg2: i32) -> (i32, i32) {
    %c0_i32 = arith.constant 0 : i32
    return %arg0, %arg2 : i32, i32
  }
  func.func @transform_1(%arg0: i32, %arg1: i32, %arg2: i32) -> (i32, i32) {
    %c0_i32 = arith.constant 0 : i32
    return %arg2, %arg1 : i32, i32
  }
  func.func @transform_2(%arg0: i32, %arg1: i32, %arg2: i32) -> (i32, i32) {
    %c0_i32 = arith.constant 0 : i32
    %c0_i32_0 = arith.constant 0 : i32
    return %c0_i32, %arg1 : i32, i32
  }
  func.func @transform_3(%arg0: i32, %arg1: i32, %arg2: i32) -> (i32, i32) {
    %c0_i32 = arith.constant 0 : i32
    return %arg0, %arg1 : i32, i32
  }
  func.func @transform_4(%arg0: i32, %arg1: i32, %arg2: i32) -> (i32, i32) {
    %c0_i32 = arith.constant 0 : i32
    return %arg0, %arg1 : i32, i32
  }
}

module attributes {stable_mosaic.version = 11 : i64} {
  func.func @_layernorm_kernel(%arg0: i32, %arg1: memref<32x32xf32, #tpu.memory_space<vmem>>, %arg2: memref<1x32xf32, #tpu.memory_space<vmem>>, %arg3: memref<1x32xf32, #tpu.memory_space<vmem>>, %arg4: memref<32x32xf32, #tpu.memory_space<vmem>>) attributes {dimension_semantics = [#tpu.dimension_semantics<parallel>], iteration_bounds = array<i64: 1>, scalar_prefetch = 0 : i64, scratch_operands = 0 : i64, tpu.core_type = #tpu.core_type<tc>, window_params = [{transform_indices = @transform_0, window_bounds = array<i64: 32, 32>}, {pipeline_mode = #tpu.pipeline_mode<synchronous>, transform_indices = @transform_1, window_bounds = array<i64: 1, 32>}, {pipeline_mode = #tpu.pipeline_mode<synchronous>, transform_indices = @transform_2, window_bounds = array<i64: 1, 32>}, {transform_indices = @transform_3, window_bounds = array<i64: 32, 32>}]} {
    %c0 = arith.constant 0 : index
    %c0_0 = arith.constant 0 : index
    %0 = vector.load %arg1[%c0, %c0_0] : memref<32x32xf32, #tpu.memory_space<vmem>>, vector<32x32xf32>
    %cst = arith.constant dense<0.000000e+00> : vector<32xf32>
    %1 = vector.multi_reduction <add>, %0, %cst [1] : vector<32x32xf32> to vector<32xf32>
    %2 = vector.shape_cast %1 : vector<32xf32> to vector<32x1xf32>
    %cst_1 = arith.constant 3.200000e+01 : f32
    %3 = vector.broadcast %cst_1 : f32 to vector<32x1xf32>
    %4 = arith.divf %2, %3 : vector<32x1xf32>
    %5 = vector.broadcast %4 : vector<32x1xf32> to vector<32x32xf32>
    %6 = arith.subf %0, %5 : vector<32x32xf32>
    %7 = arith.mulf %6, %6 : vector<32x32xf32>
    %cst_2 = arith.constant dense<0.000000e+00> : vector<32xf32>
    %8 = vector.multi_reduction <add>, %7, %cst_2 [1] : vector<32x32xf32> to vector<32xf32>
    %9 = vector.shape_cast %8 : vector<32xf32> to vector<32x1xf32>
    %cst_3 = arith.constant 3.200000e+01 : f32
    %10 = vector.broadcast %cst_3 : f32 to vector<32x1xf32>
    %11 = arith.divf %9, %10 : vector<32x1xf32>
    %cst_4 = arith.constant 9.99999974E-6 : f32
    %12 = vector.broadcast %cst_4 : f32 to vector<32x1xf32>
    %13 = arith.addf %11, %12 : vector<32x1xf32>
    %14 = math.rsqrt %13 : vector<32x1xf32>
    %15 = vector.broadcast %14 : vector<32x1xf32> to vector<32x32xf32>
    %16 = arith.mulf %6, %15 : vector<32x32xf32>
    %c0_5 = arith.constant 0 : index
    %c0_6 = arith.constant 0 : index
    %17 = vector.load %arg2[%c0_5, %c0_6] : memref<1x32xf32, #tpu.memory_space<vmem>>, vector<1x32xf32>
    %18 = vector.broadcast %17 : vector<1x32xf32> to vector<32x32xf32>
    %19 = arith.mulf %16, %18 : vector<32x32xf32>
    %c0_7 = arith.constant 0 : index
    %c0_8 = arith.constant 0 : index
    %20 = vector.load %arg3[%c0_7, %c0_8] : memref<1x32xf32, #tpu.memory_space<vmem>>, vector<1x32xf32>
    %21 = vector.broadcast %20 : vector<1x32xf32> to vector<32x32xf32>
    %22 = arith.addf %19, %21 : vector<32x32xf32>
    %c0_9 = arith.constant 0 : index
    %c0_10 = arith.constant 0 : index
    %23 = vector.load %arg4[%c0_9, %c0_10] : memref<32x32xf32, #tpu.memory_space<vmem>>, vector<32x32xf32>
    tpu.vector_store %arg4[%c0_9, %c0_10], %22 {strides = array<i32>} : memref<32x32xf32, #tpu.memory_space<vmem>>, vector<32x32xf32>,
    return
  }
  func.func @transform_0(%arg0: i32) -> (i32, i32) {
    %c0_i32 = arith.constant 0 : i32
    %c0_i32_0 = arith.constant 0 : i32
    return %arg0, %c0_i32 : i32, i32
  }
  func.func @transform_1(%arg0: i32) -> (i32, i32) {
    %c0_i32 = arith.constant 0 : i32
    %c0_i32_0 = arith.constant 0 : i32
    %c0_i32_1 = arith.constant 0 : i32
    return %c0_i32, %c0_i32_0 : i32, i32
  }
  func.func @transform_2(%arg0: i32) -> (i32, i32) {
    %c0_i32 = arith.constant 0 : i32
    %c0_i32_0 = arith.constant 0 : i32
    %c0_i32_1 = arith.constant 0 : i32
    return %c0_i32, %c0_i32_0 : i32, i32
  }
  func.func @transform_3(%arg0: i32) -> (i32, i32) {
    %c0_i32 = arith.constant 0 : i32
    %c0_i32_0 = arith.constant 0 : i32
    return %arg0, %c0_i32 : i32, i32
  }
}

module attributes {stable_mosaic.version = 11 : i64} {
  func.func @_dwconv3_gelu_kernel(%arg0: i32, %arg1: i32, %arg2: memref<1x6x6x128xf32, #tpu.memory_space<vmem>>, %arg3: memref<9x128xf32, #tpu.memory_space<vmem>>, %arg4: memref<1x128xf32, #tpu.memory_space<vmem>>, %arg5: memref<1x4x4x128xf32, #tpu.memory_space<vmem>>) attributes {dimension_semantics = [#tpu.dimension_semantics<parallel>, #tpu.dimension_semantics<parallel>], iteration_bounds = array<i64: 2, 1>, scalar_prefetch = 0 : i64, scratch_operands = 0 : i64, tpu.core_type = #tpu.core_type<tc>, window_params = [{transform_indices = @transform_0, window_bounds = array<i64: 1, 6, 6, 128>}, {transform_indices = @transform_1, window_bounds = array<i64: 9, 128>}, {transform_indices = @transform_2, window_bounds = array<i64: 1, 128>}, {transform_indices = @transform_3, window_bounds = array<i64: 1, 4, 4, 128>}]} {
    %c0 = arith.constant 0 : index
    %c0_0 = arith.constant 0 : index
    %c0_1 = arith.constant 0 : index
    %c0_2 = arith.constant 0 : index
    %0 = vector.load %arg2[%c0, %c0_0, %c0_1, %c0_2] : memref<1x6x6x128xf32, #tpu.memory_space<vmem>>, vector<1x6x6x128xf32>
    %1 = vector.shape_cast %0 : vector<1x6x6x128xf32> to vector<6x6x128xf32>
    %c0_3 = arith.constant 0 : index
    %c0_4 = arith.constant 0 : index
    %2 = vector.load %arg3[%c0_3, %c0_4] : memref<9x128xf32, #tpu.memory_space<vmem>>, vector<9x128xf32>
    %c0_5 = arith.constant 0 : index
    %c0_6 = arith.constant 0 : index
    %3 = vector.load %arg4[%c0_5, %c0_6] : memref<1x128xf32, #tpu.memory_space<vmem>>, vector<1x128xf32>
    %4 = vector.shape_cast %3 : vector<1x128xf32> to vector<1x1x128xf32>
    %5 = vector.extract_strided_slice %1 {offsets = [0, 0, 0], sizes = [4, 4, 128], strides = [1, 1, 1]} : vector<6x6x128xf32> to vector<4x4x128xf32>
    %6 = vector.extract_strided_slice %2 {offsets = [0, 0], sizes = [1, 128], strides = [1, 1]} : vector<9x128xf32> to vector<1x128xf32>
    %7 = vector.shape_cast %6 : vector<1x128xf32> to vector<128xf32>
    %8 = vector.shape_cast %7 : vector<128xf32> to vector<1x1x128xf32>
    %9 = vector.broadcast %8 : vector<1x1x128xf32> to vector<4x4x128xf32>
    %10 = arith.mulf %5, %9 : vector<4x4x128xf32>
    %11 = vector.extract_strided_slice %1 {offsets = [0, 1, 0], sizes = [4, 4, 128], strides = [1, 1, 1]} : vector<6x6x128xf32> to vector<4x4x128xf32>
    %12 = vector.extract_strided_slice %2 {offsets = [1, 0], sizes = [1, 128], strides = [1, 1]} : vector<9x128xf32> to vector<1x128xf32>
    %13 = vector.shape_cast %12 : vector<1x128xf32> to vector<128xf32>
    %14 = vector.shape_cast %13 : vector<128xf32> to vector<1x1x128xf32>
    %15 = vector.broadcast %14 : vector<1x1x128xf32> to vector<4x4x128xf32>
    %16 = arith.mulf %11, %15 : vector<4x4x128xf32>
    %17 = arith.addf %10, %16 : vector<4x4x128xf32>
    %18 = vector.extract_strided_slice %1 {offsets = [0, 2, 0], sizes = [4, 4, 128], strides = [1, 1, 1]} : vector<6x6x128xf32> to vector<4x4x128xf32>
    %19 = vector.extract_strided_slice %2 {offsets = [2, 0], sizes = [1, 128], strides = [1, 1]} : vector<9x128xf32> to vector<1x128xf32>
    %20 = vector.shape_cast %19 : vector<1x128xf32> to vector<128xf32>
    %21 = vector.shape_cast %20 : vector<128xf32> to vector<1x1x128xf32>
    %22 = vector.broadcast %21 : vector<1x1x128xf32> to vector<4x4x128xf32>
    %23 = arith.mulf %18, %22 : vector<4x4x128xf32>
    %24 = arith.addf %17, %23 : vector<4x4x128xf32>
    %25 = vector.extract_strided_slice %1 {offsets = [1, 0, 0], sizes = [4, 4, 128], strides = [1, 1, 1]} : vector<6x6x128xf32> to vector<4x4x128xf32>
    %26 = vector.extract_strided_slice %2 {offsets = [3, 0], sizes = [1, 128], strides = [1, 1]} : vector<9x128xf32> to vector<1x128xf32>
    %27 = vector.shape_cast %26 : vector<1x128xf32> to vector<128xf32>
    %28 = vector.shape_cast %27 : vector<128xf32> to vector<1x1x128xf32>
    %29 = vector.broadcast %28 : vector<1x1x128xf32> to vector<4x4x128xf32>
    %30 = arith.mulf %25, %29 : vector<4x4x128xf32>
    %31 = arith.addf %24, %30 : vector<4x4x128xf32>
    %32 = vector.extract_strided_slice %1 {offsets = [1, 1, 0], sizes = [4, 4, 128], strides = [1, 1, 1]} : vector<6x6x128xf32> to vector<4x4x128xf32>
    %33 = vector.extract_strided_slice %2 {offsets = [4, 0], sizes = [1, 128], strides = [1, 1]} : vector<9x128xf32> to vector<1x128xf32>
    %34 = vector.shape_cast %33 : vector<1x128xf32> to vector<128xf32>
    %35 = vector.shape_cast %34 : vector<128xf32> to vector<1x1x128xf32>
    %36 = vector.broadcast %35 : vector<1x1x128xf32> to vector<4x4x128xf32>
    %37 = arith.mulf %32, %36 : vector<4x4x128xf32>
    %38 = arith.addf %31, %37 : vector<4x4x128xf32>
    %39 = vector.extract_strided_slice %1 {offsets = [1, 2, 0], sizes = [4, 4, 128], strides = [1, 1, 1]} : vector<6x6x128xf32> to vector<4x4x128xf32>
    %40 = vector.extract_strided_slice %2 {offsets = [5, 0], sizes = [1, 128], strides = [1, 1]} : vector<9x128xf32> to vector<1x128xf32>
    %41 = vector.shape_cast %40 : vector<1x128xf32> to vector<128xf32>
    %42 = vector.shape_cast %41 : vector<128xf32> to vector<1x1x128xf32>
    %43 = vector.broadcast %42 : vector<1x1x128xf32> to vector<4x4x128xf32>
    %44 = arith.mulf %39, %43 : vector<4x4x128xf32>
    %45 = arith.addf %38, %44 : vector<4x4x128xf32>
    %46 = vector.extract_strided_slice %1 {offsets = [2, 0, 0], sizes = [4, 4, 128], strides = [1, 1, 1]} : vector<6x6x128xf32> to vector<4x4x128xf32>
    %47 = vector.extract_strided_slice %2 {offsets = [6, 0], sizes = [1, 128], strides = [1, 1]} : vector<9x128xf32> to vector<1x128xf32>
    %48 = vector.shape_cast %47 : vector<1x128xf32> to vector<128xf32>
    %49 = vector.shape_cast %48 : vector<128xf32> to vector<1x1x128xf32>
    %50 = vector.broadcast %49 : vector<1x1x128xf32> to vector<4x4x128xf32>
    %51 = arith.mulf %46, %50 : vector<4x4x128xf32>
    %52 = arith.addf %45, %51 : vector<4x4x128xf32>
    %53 = vector.extract_strided_slice %1 {offsets = [2, 1, 0], sizes = [4, 4, 128], strides = [1, 1, 1]} : vector<6x6x128xf32> to vector<4x4x128xf32>
    %54 = vector.extract_strided_slice %2 {offsets = [7, 0], sizes = [1, 128], strides = [1, 1]} : vector<9x128xf32> to vector<1x128xf32>
    %55 = vector.shape_cast %54 : vector<1x128xf32> to vector<128xf32>
    %56 = vector.shape_cast %55 : vector<128xf32> to vector<1x1x128xf32>
    %57 = vector.broadcast %56 : vector<1x1x128xf32> to vector<4x4x128xf32>
    %58 = arith.mulf %53, %57 : vector<4x4x128xf32>
    %59 = arith.addf %52, %58 : vector<4x4x128xf32>
    %60 = vector.extract_strided_slice %1 {offsets = [2, 2, 0], sizes = [4, 4, 128], strides = [1, 1, 1]} : vector<6x6x128xf32> to vector<4x4x128xf32>
    %61 = vector.extract_strided_slice %2 {offsets = [8, 0], sizes = [1, 128], strides = [1, 1]} : vector<9x128xf32> to vector<1x128xf32>
    %62 = vector.shape_cast %61 : vector<1x128xf32> to vector<128xf32>
    %63 = vector.shape_cast %62 : vector<128xf32> to vector<1x1x128xf32>
    %64 = vector.broadcast %63 : vector<1x1x128xf32> to vector<4x4x128xf32>
    %65 = arith.mulf %60, %64 : vector<4x4x128xf32>
    %66 = arith.addf %59, %65 : vector<4x4x128xf32>
    %67 = vector.broadcast %4 : vector<1x1x128xf32> to vector<4x4x128xf32>
    %68 = arith.addf %66, %67 : vector<4x4x128xf32>
    %69 = arith.mulf %68, %68 : vector<4x4x128xf32>
    %70 = arith.mulf %68, %69 : vector<4x4x128xf32>
    %cst = arith.constant 4.471500e-02 : f32
    %71 = vector.broadcast %cst : f32 to vector<4x4x128xf32>
    %72 = arith.mulf %71, %70 : vector<4x4x128xf32>
    %73 = arith.addf %68, %72 : vector<4x4x128xf32>
    %cst_7 = arith.constant 0.797884583 : f32
    %74 = vector.broadcast %cst_7 : f32 to vector<4x4x128xf32>
    %75 = arith.mulf %74, %73 : vector<4x4x128xf32>
    %76 = math.tanh %75 : vector<4x4x128xf32>
    %cst_8 = arith.constant 1.000000e+00 : f32
    %77 = vector.broadcast %cst_8 : f32 to vector<4x4x128xf32>
    %78 = arith.addf %77, %76 : vector<4x4x128xf32>
    %cst_9 = arith.constant 5.000000e-01 : f32
    %79 = vector.broadcast %cst_9 : f32 to vector<4x4x128xf32>
    %80 = arith.mulf %79, %78 : vector<4x4x128xf32>
    %81 = arith.mulf %68, %80 : vector<4x4x128xf32>
    %c0_10 = arith.constant 0 : index
    %c0_11 = arith.constant 0 : index
    %c0_12 = arith.constant 0 : index
    %c0_13 = arith.constant 0 : index
    %82 = vector.load %arg5[%c0_10, %c0_11, %c0_12, %c0_13] : memref<1x4x4x128xf32, #tpu.memory_space<vmem>>, vector<1x4x4x128xf32>
    %83 = vector.shape_cast %82 : vector<1x4x4x128xf32> to vector<4x4x128xf32>
    %84 = vector.shape_cast %81 : vector<4x4x128xf32> to vector<1x4x4x128xf32>
    tpu.vector_store %arg5[%c0_10, %c0_11, %c0_12, %c0_13], %84 {strides = array<i32>} : memref<1x4x4x128xf32, #tpu.memory_space<vmem>>, vector<1x4x4x128xf32>,
    return
  }
  func.func @transform_0(%arg0: i32, %arg1: i32) -> (i32, i32, i32, i32) {
    %c0_i32 = arith.constant 0 : i32
    %c0_i32_0 = arith.constant 0 : i32
    %c0_i32_1 = arith.constant 0 : i32
    return %arg0, %c0_i32, %c0_i32_0, %arg1 : i32, i32, i32, i32
  }
  func.func @transform_1(%arg0: i32, %arg1: i32) -> (i32, i32) {
    %c0_i32 = arith.constant 0 : i32
    %c0_i32_0 = arith.constant 0 : i32
    return %c0_i32, %arg1 : i32, i32
  }
  func.func @transform_2(%arg0: i32, %arg1: i32) -> (i32, i32) {
    %c0_i32 = arith.constant 0 : i32
    %c0_i32_0 = arith.constant 0 : i32
    return %c0_i32, %arg1 : i32, i32
  }
  func.func @transform_3(%arg0: i32, %arg1: i32) -> (i32, i32, i32, i32) {
    %c0_i32 = arith.constant 0 : i32
    %c0_i32_0 = arith.constant 0 : i32
    %c0_i32_1 = arith.constant 0 : i32
    return %arg0, %c0_i32, %c0_i32_0, %arg1 : i32, i32, i32, i32
  }
}

module attributes {stable_mosaic.version = 11 : i64} {
  func.func @_fused_matmul_kernel(%arg0: i32, %arg1: i32, %arg2: i32, %arg3: memref<8x288xf32, #tpu.memory_space<vmem>>, %arg4: memref<288x64xf32, #tpu.memory_space<vmem>>, %arg5: memref<1x64xf32, #tpu.memory_space<vmem>>, %arg6: memref<1x64xf32, #tpu.memory_space<vmem>>, %arg7: memref<1x64xf32, #tpu.memory_space<vmem>>, %arg8: memref<8x64xf32, #tpu.memory_space<vmem>>, %arg9: memref<8x64xf32, #tpu.memory_space<vmem>>) attributes {dimension_semantics = [#tpu.dimension_semantics<parallel>, #tpu.dimension_semantics<parallel>, #tpu.dimension_semantics<arbitrary>], iteration_bounds = array<i64: 1, 1, 1>, scalar_prefetch = 0 : i64, scratch_operands = 1 : i64, tpu.core_type = #tpu.core_type<tc>, window_params = [{transform_indices = @transform_0, window_bounds = array<i64: 8, 288>}, {transform_indices = @transform_1, window_bounds = array<i64: 288, 64>}, {transform_indices = @transform_2, window_bounds = array<i64: 1, 64>}, {transform_indices = @transform_3, window_bounds = array<i64: 1, 64>}, {transform_indices = @transform_4, window_bounds = array<i64: 1, 64>}, {transform_indices = @transform_5, window_bounds = array<i64: 8, 64>}]} {
    %c0_i32 = arith.constant 0 : i32
    %0 = arith.cmpi eq, %arg2, %c0_i32 : i32
    %1 = arith.extui %0 : i1 to i32
    %c0_i32_0 = arith.constant 0 : i32
    %2 = arith.cmpi ne, %1, %c0_i32_0 : i32
    scf.if %2 {
      %cst_10 = arith.constant 0.000000e+00 : f32
      %14 = vector.broadcast %cst_10 : f32 to vector<8x64xf32>
      %c0_11 = arith.constant 0 : index
      %c0_12 = arith.constant 0 : index
      %15 = vector.load %arg9[%c0_11, %c0_12] : memref<8x64xf32, #tpu.memory_space<vmem>>, vector<8x64xf32>
      tpu.vector_store %arg9[%c0_11, %c0_12], %14 {strides = array<i32>} : memref<8x64xf32, #tpu.memory_space<vmem>>, vector<8x64xf32>,
    } else {
    }
    %c0 = arith.constant 0 : index
    %c0_1 = arith.constant 0 : index
    %3 = vector.load %arg3[%c0, %c0_1] : memref<8x288xf32, #tpu.memory_space<vmem>>, vector<8x288xf32>
    %c0_2 = arith.constant 0 : index
    %c0_3 = arith.constant 0 : index
    %4 = vector.load %arg9[%c0_2, %c0_3] : memref<8x64xf32, #tpu.memory_space<vmem>>, vector<8x64xf32>
    %5 = arith.truncf %3 : vector<8x288xf32> to vector<8x288xbf16>
    %c0_4 = arith.constant 0 : index
    %c0_5 = arith.constant 0 : index
    %6 = vector.load %arg4[%c0_4, %c0_5] : memref<288x64xf32, #tpu.memory_space<vmem>>, vector<288x64xf32>
    %7 = arith.truncf %6 : vector<288x64xf32> to vector<288x64xbf16>
    %cst = arith.constant dense<0.000000e+00> : vector<8x64xf32>
    %8 = tpu.matmul %5, %7, %cst {dimension_numbers = #tpu.dot_dimension_numbers<[1], [0], [0], [1], [0, 0, 1, 1], [], []>} : vector<8x288xbf16>, vector<288x64xbf16>, vector<8x64xf32> -> vector<8x64xf32>
    %9 = arith.addf %4, %8 : vector<8x64xf32>
    %c0_6 = arith.constant 0 : index
    %c0_7 = arith.constant 0 : index
    %10 = vector.load %arg9[%c0_6, %c0_7] : memref<8x64xf32, #tpu.memory_space<vmem>>, vector<8x64xf32>
    tpu.vector_store %arg9[%c0_6, %c0_7], %9 {strides = array<i32>} : memref<8x64xf32, #tpu.memory_space<vmem>>, vector<8x64xf32>,
    %c0_i32_8 = arith.constant 0 : i32
    %11 = arith.cmpi eq, %arg2, %c0_i32_8 : i32
    %12 = arith.extui %11 : i1 to i32
    %c0_i32_9 = arith.constant 0 : i32
    %13 = arith.cmpi ne, %12, %c0_i32_9 : i32
    scf.if %13 {
      %c0_10 = arith.constant 0 : index
      %c0_11 = arith.constant 0 : index
      %14 = vector.load %arg9[%c0_10, %c0_11] : memref<8x64xf32, #tpu.memory_space<vmem>>, vector<8x64xf32>
      %c0_12 = arith.constant 0 : index
      %c0_13 = arith.constant 0 : index
      %15 = vector.load %arg5[%c0_12, %c0_13] : memref<1x64xf32, #tpu.memory_space<vmem>>, vector<1x64xf32>
      %16 = vector.broadcast %15 : vector<1x64xf32> to vector<8x64xf32>
      %17 = arith.addf %14, %16 : vector<8x64xf32>
      %cst_14 = arith.constant dense<0.000000e+00> : vector<8xf32>
      %18 = vector.multi_reduction <add>, %17, %cst_14 [1] : vector<8x64xf32> to vector<8xf32>
      %19 = vector.shape_cast %18 : vector<8xf32> to vector<8x1xf32>
      %cst_15 = arith.constant 6.400000e+01 : f32
      %20 = vector.broadcast %cst_15 : f32 to vector<8x1xf32>
      %21 = arith.divf %19, %20 : vector<8x1xf32>
      %22 = vector.broadcast %21 : vector<8x1xf32> to vector<8x64xf32>
      %23 = arith.subf %17, %22 : vector<8x64xf32>
      %24 = arith.mulf %23, %23 : vector<8x64xf32>
      %cst_16 = arith.constant dense<0.000000e+00> : vector<8xf32>
      %25 = vector.multi_reduction <add>, %24, %cst_16 [1] : vector<8x64xf32> to vector<8xf32>
      %26 = vector.shape_cast %25 : vector<8xf32> to vector<8x1xf32>
      %cst_17 = arith.constant 6.400000e+01 : f32
      %27 = vector.broadcast %cst_17 : f32 to vector<8x1xf32>
      %28 = arith.divf %26, %27 : vector<8x1xf32>
      %cst_18 = arith.constant 9.99999997E-7 : f32
      %29 = vector.broadcast %cst_18 : f32 to vector<8x1xf32>
      %30 = arith.addf %28, %29 : vector<8x1xf32>
      %31 = math.rsqrt %30 : vector<8x1xf32>
      %32 = vector.broadcast %31 : vector<8x1xf32> to vector<8x64xf32>
      %33 = arith.mulf %23, %32 : vector<8x64xf32>
      %c0_19 = arith.constant 0 : index
      %c0_20 = arith.constant 0 : index
      %34 = vector.load %arg6[%c0_19, %c0_20] : memref<1x64xf32, #tpu.memory_space<vmem>>, vector<1x64xf32>
      %35 = vector.broadcast %34 : vector<1x64xf32> to vector<8x64xf32>
      %36 = arith.mulf %33, %35 : vector<8x64xf32>
      %c0_21 = arith.constant 0 : index
      %c0_22 = arith.constant 0 : index
      %37 = vector.load %arg7[%c0_21, %c0_22] : memref<1x64xf32, #tpu.memory_space<vmem>>, vector<1x64xf32>
      %38 = vector.broadcast %37 : vector<1x64xf32> to vector<8x64xf32>
      %39 = arith.addf %36, %38 : vector<8x64xf32>
      %c0_23 = arith.constant 0 : index
      %c0_24 = arith.constant 0 : index
      %40 = vector.load %arg8[%c0_23, %c0_24] : memref<8x64xf32, #tpu.memory_space<vmem>>, vector<8x64xf32>
      tpu.vector_store %arg8[%c0_23, %c0_24], %39 {strides = array<i32>} : memref<8x64xf32, #tpu.memory_space<vmem>>, vector<8x64xf32>,
    } else {
    }
    return
  }
  func.func @transform_0(%arg0: i32, %arg1: i32, %arg2: i32) -> (i32, i32) {
    %c0_i32 = arith.constant 0 : i32
    return %arg0, %arg2 : i32, i32
  }
  func.func @transform_1(%arg0: i32, %arg1: i32, %arg2: i32) -> (i32, i32) {
    %c0_i32 = arith.constant 0 : i32
    return %arg2, %arg1 : i32, i32
  }
  func.func @transform_2(%arg0: i32, %arg1: i32, %arg2: i32) -> (i32, i32) {
    %c0_i32 = arith.constant 0 : i32
    %c0_i32_0 = arith.constant 0 : i32
    return %c0_i32, %arg1 : i32, i32
  }
  func.func @transform_3(%arg0: i32, %arg1: i32, %arg2: i32) -> (i32, i32) {
    %c0_i32 = arith.constant 0 : i32
    %c0_i32_0 = arith.constant 0 : i32
    return %c0_i32, %arg1 : i32, i32
  }
  func.func @transform_4(%arg0: i32, %arg1: i32, %arg2: i32) -> (i32, i32) {
    %c0_i32 = arith.constant 0 : i32
    %c0_i32_0 = arith.constant 0 : i32
    return %c0_i32, %arg1 : i32, i32
  }
  func.func @transform_5(%arg0: i32, %arg1: i32, %arg2: i32) -> (i32, i32) {
    %c0_i32 = arith.constant 0 : i32
    return %arg0, %arg1 : i32, i32
  }
}

module attributes {stable_mosaic.version = 11 : i64} {
  func.func @_fused_matmul_kernel(%arg0: i32, %arg1: i32, %arg2: i32, %arg3: memref<8x64xf32, #tpu.memory_space<vmem>>, %arg4: memref<64x192xf32, #tpu.memory_space<vmem>>, %arg5: memref<1x192xf32, #tpu.memory_space<vmem>>, %arg6: memref<1x64xf32, #tpu.memory_space<vmem>>, %arg7: memref<1x64xf32, #tpu.memory_space<vmem>>, %arg8: memref<8x192xf32, #tpu.memory_space<vmem>>, %arg9: memref<8x192xf32, #tpu.memory_space<vmem>>) attributes {dimension_semantics = [#tpu.dimension_semantics<parallel>, #tpu.dimension_semantics<parallel>, #tpu.dimension_semantics<arbitrary>], iteration_bounds = array<i64: 1, 1, 1>, scalar_prefetch = 0 : i64, scratch_operands = 1 : i64, tpu.core_type = #tpu.core_type<tc>, window_params = [{transform_indices = @transform_0, window_bounds = array<i64: 8, 64>}, {transform_indices = @transform_1, window_bounds = array<i64: 64, 192>}, {transform_indices = @transform_2, window_bounds = array<i64: 1, 192>}, {pipeline_mode = #tpu.pipeline_mode<synchronous>, transform_indices = @transform_3, window_bounds = array<i64: 1, 64>}, {pipeline_mode = #tpu.pipeline_mode<synchronous>, transform_indices = @transform_4, window_bounds = array<i64: 1, 64>}, {transform_indices = @transform_5, window_bounds = array<i64: 8, 192>}]} {
    %c0_i32 = arith.constant 0 : i32
    %0 = arith.cmpi eq, %arg2, %c0_i32 : i32
    %1 = arith.extui %0 : i1 to i32
    %c0_i32_0 = arith.constant 0 : i32
    %2 = arith.cmpi ne, %1, %c0_i32_0 : i32
    scf.if %2 {
      %cst_19 = arith.constant 0.000000e+00 : f32
      %36 = vector.broadcast %cst_19 : f32 to vector<8x192xf32>
      %c0_20 = arith.constant 0 : index
      %c0_21 = arith.constant 0 : index
      %37 = vector.load %arg9[%c0_20, %c0_21] : memref<8x192xf32, #tpu.memory_space<vmem>>, vector<8x192xf32>
      tpu.vector_store %arg9[%c0_20, %c0_21], %36 {strides = array<i32>} : memref<8x192xf32, #tpu.memory_space<vmem>>, vector<8x192xf32>,
    } else {
    }
    %c0 = arith.constant 0 : index
    %c0_1 = arith.constant 0 : index
    %3 = vector.load %arg3[%c0, %c0_1] : memref<8x64xf32, #tpu.memory_space<vmem>>, vector<8x64xf32>
    %cst = arith.constant dense<0.000000e+00> : vector<8xf32>
    %4 = vector.multi_reduction <add>, %3, %cst [1] : vector<8x64xf32> to vector<8xf32>
    %5 = vector.shape_cast %4 : vector<8xf32> to vector<8x1xf32>
    %cst_2 = arith.constant 6.400000e+01 : f32
    %6 = vector.broadcast %cst_2 : f32 to vector<8x1xf32>
    %7 = arith.divf %5, %6 : vector<8x1xf32>
    %8 = vector.broadcast %7 : vector<8x1xf32> to vector<8x64xf32>
    %9 = arith.subf %3, %8 : vector<8x64xf32>
    %10 = arith.mulf %9, %9 : vector<8x64xf32>
    %cst_3 = arith.constant dense<0.000000e+00> : vector<8xf32>
    %11 = vector.multi_reduction <add>, %10, %cst_3 [1] : vector<8x64xf32> to vector<8xf32>
    %12 = vector.shape_cast %11 : vector<8xf32> to vector<8x1xf32>
    %cst_4 = arith.constant 6.400000e+01 : f32
    %13 = vector.broadcast %cst_4 : f32 to vector<8x1xf32>
    %14 = arith.divf %12, %13 : vector<8x1xf32>
    %cst_5 = arith.constant 9.99999997E-7 : f32
    %15 = vector.broadcast %cst_5 : f32 to vector<8x1xf32>
    %16 = arith.addf %14, %15 : vector<8x1xf32>
    %17 = math.rsqrt %16 : vector<8x1xf32>
    %18 = vector.broadcast %17 : vector<8x1xf32> to vector<8x64xf32>
    %19 = arith.mulf %9, %18 : vector<8x64xf32>
    %c0_6 = arith.constant 0 : index
    %c0_7 = arith.constant 0 : index
    %20 = vector.load %arg6[%c0_6, %c0_7] : memref<1x64xf32, #tpu.memory_space<vmem>>, vector<1x64xf32>
    %21 = vector.broadcast %20 : vector<1x64xf32> to vector<8x64xf32>
    %22 = arith.mulf %19, %21 : vector<8x64xf32>
    %c0_8 = arith.constant 0 : index
    %c0_9 = arith.constant 0 : index
    %23 = vector.load %arg7[%c0_8, %c0_9] : memref<1x64xf32, #tpu.memory_space<vmem>>, vector<1x64xf32>
    %24 = vector.broadcast %23 : vector<1x64xf32> to vector<8x64xf32>
    %25 = arith.addf %22, %24 : vector<8x64xf32>
    %c0_10 = arith.constant 0 : index
    %c0_11 = arith.constant 0 : index
    %26 = vector.load %arg9[%c0_10, %c0_11] : memref<8x192xf32, #tpu.memory_space<vmem>>, vector<8x192xf32>
    %27 = arith.truncf %25 : vector<8x64xf32> to vector<8x64xbf16>
    %c0_12 = arith.constant 0 : index
    %c0_13 = arith.constant 0 : index
    %28 = vector.load %arg4[%c0_12, %c0_13] : memref<64x192xf32, #tpu.memory_space<vmem>>, vector<64x192xf32>
    %29 = arith.truncf %28 : vector<64x192xf32> to vector<64x192xbf16>
    %cst_14 = arith.constant dense<0.000000e+00> : vector<8x192xf32>
    %30 = tpu.matmul %27, %29, %cst_14 {dimension_numbers = #tpu.dot_dimension_numbers<[1], [0], [0], [1], [0, 0, 1, 1], [], []>} : vector<8x64xbf16>, vector<64x192xbf16>, vector<8x192xf32> -> vector<8x192xf32>
    %31 = arith.addf %26, %30 : vector<8x192xf32>
    %c0_15 = arith.constant 0 : index
    %c0_16 = arith.constant 0 : index
    %32 = vector.load %arg9[%c0_15, %c0_16] : memref<8x192xf32, #tpu.memory_space<vmem>>, vector<8x192xf32>
    tpu.vector_store %arg9[%c0_15, %c0_16], %31 {strides = array<i32>} : memref<8x192xf32, #tpu.memory_space<vmem>>, vector<8x192xf32>,
    %c0_i32_17 = arith.constant 0 : i32
    %33 = arith.cmpi eq, %arg2, %c0_i32_17 : i32
    %34 = arith.extui %33 : i1 to i32
    %c0_i32_18 = arith.constant 0 : i32
    %35 = arith.cmpi ne, %34, %c0_i32_18 : i32
    scf.if %35 {
      %c0_19 = arith.constant 0 : index
      %c0_20 = arith.constant 0 : index
      %36 = vector.load %arg9[%c0_19, %c0_20] : memref<8x192xf32, #tpu.memory_space<vmem>>, vector<8x192xf32>
      %c0_21 = arith.constant 0 : index
      %c0_22 = arith.constant 0 : index
      %37 = vector.load %arg5[%c0_21, %c0_22] : memref<1x192xf32, #tpu.memory_space<vmem>>, vector<1x192xf32>
      %38 = vector.broadcast %37 : vector<1x192xf32> to vector<8x192xf32>
      %39 = arith.addf %36, %38 : vector<8x192xf32>
      %c0_23 = arith.constant 0 : index
      %c0_24 = arith.constant 0 : index
      %40 = vector.load %arg8[%c0_23, %c0_24] : memref<8x192xf32, #tpu.memory_space<vmem>>, vector<8x192xf32>
      tpu.vector_store %arg8[%c0_23, %c0_24], %39 {strides = array<i32>} : memref<8x192xf32, #tpu.memory_space<vmem>>, vector<8x192xf32>,
    } else {
    }
    return
  }
  func.func @transform_0(%arg0: i32, %arg1: i32, %arg2: i32) -> (i32, i32) {
    %c0_i32 = arith.constant 0 : i32
    return %arg0, %arg2 : i32, i32
  }
  func.func @transform_1(%arg0: i32, %arg1: i32, %arg2: i32) -> (i32, i32) {
    %c0_i32 = arith.constant 0 : i32
    return %arg2, %arg1 : i32, i32
  }
  func.func @transform_2(%arg0: i32, %arg1: i32, %arg2: i32) -> (i32, i32) {
    %c0_i32 = arith.constant 0 : i32
    %c0_i32_0 = arith.constant 0 : i32
    return %c0_i32, %arg1 : i32, i32
  }
  func.func @transform_3(%arg0: i32, %arg1: i32, %arg2: i32) -> (i32, i32) {
    %c0_i32 = arith.constant 0 : i32
    %c0_i32_0 = arith.constant 0 : i32
    %c0_i32_1 = arith.constant 0 : i32
    return %c0_i32, %c0_i32_0 : i32, i32
  }
  func.func @transform_4(%arg0: i32, %arg1: i32, %arg2: i32) -> (i32, i32) {
    %c0_i32 = arith.constant 0 : i32
    %c0_i32_0 = arith.constant 0 : i32
    %c0_i32_1 = arith.constant 0 : i32
    return %c0_i32, %c0_i32_0 : i32, i32
  }
  func.func @transform_5(%arg0: i32, %arg1: i32, %arg2: i32) -> (i32, i32) {
    %c0_i32 = arith.constant 0 : i32
    return %arg0, %arg1 : i32, i32
  }
}

module attributes {stable_mosaic.version = 11 : i64} {
  func.func @_fused_matmul_kernel(%arg0: i32, %arg1: i32, %arg2: i32, %arg3: memref<8x64xf32, #tpu.memory_space<vmem>>, %arg4: memref<64x64xf32, #tpu.memory_space<vmem>>, %arg5: memref<1x64xf32, #tpu.memory_space<vmem>>, %arg6: memref<8x64xf32, #tpu.memory_space<vmem>>, %arg7: memref<8x64xf32, #tpu.memory_space<vmem>>, %arg8: memref<8x64xf32, #tpu.memory_space<vmem>>) attributes {dimension_semantics = [#tpu.dimension_semantics<parallel>, #tpu.dimension_semantics<parallel>, #tpu.dimension_semantics<arbitrary>], iteration_bounds = array<i64: 1, 1, 1>, scalar_prefetch = 0 : i64, scratch_operands = 1 : i64, tpu.core_type = #tpu.core_type<tc>, window_params = [{transform_indices = @transform_0, window_bounds = array<i64: 8, 64>}, {transform_indices = @transform_1, window_bounds = array<i64: 64, 64>}, {transform_indices = @transform_2, window_bounds = array<i64: 1, 64>}, {transform_indices = @transform_3, window_bounds = array<i64: 8, 64>}, {transform_indices = @transform_4, window_bounds = array<i64: 8, 64>}]} {
    %c0_i32 = arith.constant 0 : i32
    %0 = arith.cmpi eq, %arg2, %c0_i32 : i32
    %1 = arith.extui %0 : i1 to i32
    %c0_i32_0 = arith.constant 0 : i32
    %2 = arith.cmpi ne, %1, %c0_i32_0 : i32
    scf.if %2 {
      %cst_10 = arith.constant 0.000000e+00 : f32
      %14 = vector.broadcast %cst_10 : f32 to vector<8x64xf32>
      %c0_11 = arith.constant 0 : index
      %c0_12 = arith.constant 0 : index
      %15 = vector.load %arg8[%c0_11, %c0_12] : memref<8x64xf32, #tpu.memory_space<vmem>>, vector<8x64xf32>
      tpu.vector_store %arg8[%c0_11, %c0_12], %14 {strides = array<i32>} : memref<8x64xf32, #tpu.memory_space<vmem>>, vector<8x64xf32>,
    } else {
    }
    %c0 = arith.constant 0 : index
    %c0_1 = arith.constant 0 : index
    %3 = vector.load %arg3[%c0, %c0_1] : memref<8x64xf32, #tpu.memory_space<vmem>>, vector<8x64xf32>
    %c0_2 = arith.constant 0 : index
    %c0_3 = arith.constant 0 : index
    %4 = vector.load %arg8[%c0_2, %c0_3] : memref<8x64xf32, #tpu.memory_space<vmem>>, vector<8x64xf32>
    %5 = arith.truncf %3 : vector<8x64xf32> to vector<8x64xbf16>
    %c0_4 = arith.constant 0 : index
    %c0_5 = arith.constant 0 : index
    %6 = vector.load %arg4[%c0_4, %c0_5] : memref<64x64xf32, #tpu.memory_space<vmem>>, vector<64x64xf32>
    %7 = arith.truncf %6 : vector<64x64xf32> to vector<64x64xbf16>
    %cst = arith.constant dense<0.000000e+00> : vector<8x64xf32>
    %8 = tpu.matmul %5, %7, %cst {dimension_numbers = #tpu.dot_dimension_numbers<[1], [0], [0], [1], [0, 0, 1, 1], [], []>} : vector<8x64xbf16>, vector<64x64xbf16>, vector<8x64xf32> -> vector<8x64xf32>
    %9 = arith.addf %4, %8 : vector<8x64xf32>
    %c0_6 = arith.constant 0 : index
    %c0_7 = arith.constant 0 : index
    %10 = vector.load %arg8[%c0_6, %c0_7] : memref<8x64xf32, #tpu.memory_space<vmem>>, vector<8x64xf32>
    tpu.vector_store %arg8[%c0_6, %c0_7], %9 {strides = array<i32>} : memref<8x64xf32, #tpu.memory_space<vmem>>, vector<8x64xf32>,
    %c0_i32_8 = arith.constant 0 : i32
    %11 = arith.cmpi eq, %arg2, %c0_i32_8 : i32
    %12 = arith.extui %11 : i1 to i32
    %c0_i32_9 = arith.constant 0 : i32
    %13 = arith.cmpi ne, %12, %c0_i32_9 : i32
    scf.if %13 {
      %c0_10 = arith.constant 0 : index
      %c0_11 = arith.constant 0 : index
      %14 = vector.load %arg8[%c0_10, %c0_11] : memref<8x64xf32, #tpu.memory_space<vmem>>, vector<8x64xf32>
      %c0_12 = arith.constant 0 : index
      %c0_13 = arith.constant 0 : index
      %15 = vector.load %arg5[%c0_12, %c0_13] : memref<1x64xf32, #tpu.memory_space<vmem>>, vector<1x64xf32>
      %16 = vector.broadcast %15 : vector<1x64xf32> to vector<8x64xf32>
      %17 = arith.addf %14, %16 : vector<8x64xf32>
      %c0_14 = arith.constant 0 : index
      %c0_15 = arith.constant 0 : index
      %18 = vector.load %arg6[%c0_14, %c0_15] : memref<8x64xf32, #tpu.memory_space<vmem>>, vector<8x64xf32>
      %19 = arith.addf %17, %18 : vector<8x64xf32>
      %c0_16 = arith.constant 0 : index
      %c0_17 = arith.constant 0 : index
      %20 = vector.load %arg7[%c0_16, %c0_17] : memref<8x64xf32, #tpu.memory_space<vmem>>, vector<8x64xf32>
      tpu.vector_store %arg7[%c0_16, %c0_17], %19 {strides = array<i32>} : memref<8x64xf32, #tpu.memory_space<vmem>>, vector<8x64xf32>,
    } else {
    }
    return
  }
  func.func @transform_0(%arg0: i32, %arg1: i32, %arg2: i32) -> (i32, i32) {
    %c0_i32 = arith.constant 0 : i32
    return %arg0, %arg2 : i32, i32
  }
  func.func @transform_1(%arg0: i32, %arg1: i32, %arg2: i32) -> (i32, i32) {
    %c0_i32 = arith.constant 0 : i32
    return %arg2, %arg1 : i32, i32
  }
  func.func @transform_2(%arg0: i32, %arg1: i32, %arg2: i32) -> (i32, i32) {
    %c0_i32 = arith.constant 0 : i32
    %c0_i32_0 = arith.constant 0 : i32
    return %c0_i32, %arg1 : i32, i32
  }
  func.func @transform_3(%arg0: i32, %arg1: i32, %arg2: i32) -> (i32, i32) {
    %c0_i32 = arith.constant 0 : i32
    return %arg0, %arg1 : i32, i32
  }
  func.func @transform_4(%arg0: i32, %arg1: i32, %arg2: i32) -> (i32, i32) {
    %c0_i32 = arith.constant 0 : i32
    return %arg0, %arg1 : i32, i32
  }
}

module attributes {stable_mosaic.version = 11 : i64} {
  func.func @_flash_attn_kernel(%arg0: i32, %arg1: i32, %arg2: i32, %arg3: memref<1x4x64xf32, #tpu.memory_space<vmem>>, %arg4: memref<1x4x128xf32, #tpu.memory_space<vmem>>, %arg5: memref<1x4x64xf32, #tpu.memory_space<vmem>>, %arg6: memref<2x4x1xf32, #tpu.memory_space<vmem>>, %arg7: memref<2x4x1xf32, #tpu.memory_space<vmem>>, %arg8: memref<2x4x32xf32, #tpu.memory_space<vmem>>) attributes {dimension_semantics = [#tpu.dimension_semantics<parallel>, #tpu.dimension_semantics<parallel>, #tpu.dimension_semantics<arbitrary>], iteration_bounds = array<i64: 2, 1, 1>, scalar_prefetch = 0 : i64, scratch_operands = 3 : i64, tpu.core_type = #tpu.core_type<tc>, window_params = [{transform_indices = @transform_0, window_bounds = array<i64: 1, 4, 64>}, {transform_indices = @transform_1, window_bounds = array<i64: 1, 4, 128>}, {transform_indices = @transform_2, window_bounds = array<i64: 1, 4, 64>}]} {
    %c0_i32 = arith.constant 0 : i32
    %0 = arith.cmpi eq, %arg2, %c0_i32 : i32
    %1 = arith.extui %0 : i1 to i32
    %c0_i32_0 = arith.constant 0 : i32
    %2 = arith.cmpi ne, %1, %c0_i32_0 : i32
    scf.if %2 {
      %cst_52 = arith.constant 0xFF800000 : f32
      %92 = vector.broadcast %cst_52 : f32 to vector<2x4x1xf32>
      %c0_53 = arith.constant 0 : index
      %c0_54 = arith.constant 0 : index
      %c0_55 = arith.constant 0 : index
      %93 = vector.load %arg6[%c0_53, %c0_54, %c0_55] : memref<2x4x1xf32, #tpu.memory_space<vmem>>, vector<2x4x1xf32>
      tpu.vector_store %arg6[%c0_53, %c0_54, %c0_55], %92 {strides = array<i32>} : memref<2x4x1xf32, #tpu.memory_space<vmem>>, vector<2x4x1xf32>,
      %cst_56 = arith.constant 0.000000e+00 : f32
      %94 = vector.broadcast %cst_56 : f32 to vector<2x4x1xf32>
      %c0_57 = arith.constant 0 : index
      %c0_58 = arith.constant 0 : index
      %c0_59 = arith.constant 0 : index
      %95 = vector.load %arg7[%c0_57, %c0_58, %c0_59] : memref<2x4x1xf32, #tpu.memory_space<vmem>>, vector<2x4x1xf32>
      tpu.vector_store %arg7[%c0_57, %c0_58, %c0_59], %94 {strides = array<i32>} : memref<2x4x1xf32, #tpu.memory_space<vmem>>, vector<2x4x1xf32>,
      %cst_60 = arith.constant 0.000000e+00 : f32
      %96 = vector.broadcast %cst_60 : f32 to vector<2x4x32xf32>
      %c0_61 = arith.constant 0 : index
      %c0_62 = arith.constant 0 : index
      %c0_63 = arith.constant 0 : index
      %97 = vector.load %arg8[%c0_61, %c0_62, %c0_63] : memref<2x4x32xf32, #tpu.memory_space<vmem>>, vector<2x4x32xf32>
      tpu.vector_store %arg8[%c0_61, %c0_62, %c0_63], %96 {strides = array<i32>} : memref<2x4x32xf32, #tpu.memory_space<vmem>>, vector<2x4x32xf32>,
    } else {
    }
    %c0 = arith.constant 0 : index
    %c0_1 = arith.constant 0 : index
    %c0_2 = arith.constant 0 : index
    %3 = vector.load %arg3[%c0, %c0_1, %c0_2] : memref<1x4x64xf32, #tpu.memory_space<vmem>>, vector<1x4x64xf32>
    %4 = vector.shape_cast %3 : vector<1x4x64xf32> to vector<4x64xf32>
    %c0_3 = arith.constant 0 : index
    %c0_4 = arith.constant 0 : index
    %c0_5 = arith.constant 0 : index
    %5 = vector.load %arg4[%c0_3, %c0_4, %c0_5] : memref<1x4x128xf32, #tpu.memory_space<vmem>>, vector<1x4x128xf32>
    %6 = vector.shape_cast %5 : vector<1x4x128xf32> to vector<4x128xf32>
    %7 = vector.extract_strided_slice %4 {offsets = [0, 0], sizes = [4, 32], strides = [1, 1]} : vector<4x64xf32> to vector<4x32xf32>
    %8 = arith.truncf %7 : vector<4x32xf32> to vector<4x32xbf16>
    %9 = vector.extract_strided_slice %6 {offsets = [0, 0], sizes = [4, 32], strides = [1, 1]} : vector<4x128xf32> to vector<4x32xf32>
    %10 = arith.truncf %9 : vector<4x32xf32> to vector<4x32xbf16>
    %11 = vector.extract_strided_slice %6 {offsets = [0, 64], sizes = [4, 32], strides = [1, 1]} : vector<4x128xf32> to vector<4x32xf32>
    %12 = arith.truncf %11 : vector<4x32xf32> to vector<4x32xbf16>
    %cst = arith.constant dense<0.000000e+00> : vector<4x4xf32>
    %13 = tpu.matmul %8, %10, %cst {dimension_numbers = #tpu.dot_dimension_numbers<[1], [1], [0], [0], [0, 0, 1, 0], [], []>} : vector<4x32xbf16>, vector<4x32xbf16>, vector<4x4xf32> -> vector<4x4xf32>
    %cst_6 = arith.constant 0.176776692 : f32
    %14 = vector.broadcast %cst_6 : f32 to vector<4x4xf32>
    %15 = arith.mulf %13, %14 : vector<4x4xf32>
    %c0_7 = arith.constant 0 : index
    %c0_8 = arith.constant 0 : index
    %c0_9 = arith.constant 0 : index
    %16 = vector.load %arg6[%c0_7, %c0_8, %c0_9] : memref<2x4x1xf32, #tpu.memory_space<vmem>>, vector<1x4x1xf32>
    %17 = vector.shape_cast %16 : vector<1x4x1xf32> to vector<4x1xf32>
    %cst_10 = arith.constant dense<0xFF800000> : vector<4xf32>
    %18 = vector.multi_reduction <maximumf>, %15, %cst_10 [1] : vector<4x4xf32> to vector<4xf32>
    %19 = vector.shape_cast %18 : vector<4xf32> to vector<4x1xf32>
    %20 = arith.maximumf %17, %19 : vector<4x1xf32>
    %21 = arith.subf %17, %20 : vector<4x1xf32>
    %22 = math.exp %21 : vector<4x1xf32>
    %23 = vector.broadcast %20 : vector<4x1xf32> to vector<4x4xf32>
    %24 = arith.subf %15, %23 : vector<4x4xf32>
    %25 = math.exp %24 : vector<4x4xf32>
    %c0_11 = arith.constant 0 : index
    %c0_12 = arith.constant 0 : index
    %c0_13 = arith.constant 0 : index
    %26 = vector.load %arg7[%c0_11, %c0_12, %c0_13] : memref<2x4x1xf32, #tpu.memory_space<vmem>>, vector<1x4x1xf32>
    %27 = vector.shape_cast %26 : vector<1x4x1xf32> to vector<4x1xf32>
    %28 = arith.mulf %22, %27 : vector<4x1xf32>
    %cst_14 = arith.constant dense<0.000000e+00> : vector<4xf32>
    %29 = vector.multi_reduction <add>, %25, %cst_14 [1] : vector<4x4xf32> to vector<4xf32>
    %30 = vector.shape_cast %29 : vector<4xf32> to vector<4x1xf32>
    %31 = arith.addf %28, %30 : vector<4x1xf32>
    %c0_15 = arith.constant 0 : index
    %c0_16 = arith.constant 0 : index
    %c0_17 = arith.constant 0 : index
    %32 = vector.load %arg7[%c0_15, %c0_16, %c0_17] : memref<2x4x1xf32, #tpu.memory_space<vmem>>, vector<1x4x1xf32>
    %33 = vector.shape_cast %32 : vector<1x4x1xf32> to vector<4x1xf32>
    %34 = vector.shape_cast %31 : vector<4x1xf32> to vector<1x4x1xf32>
    tpu.vector_store %arg7[%c0_15, %c0_16, %c0_17], %34 {strides = array<i32>} : memref<2x4x1xf32, #tpu.memory_space<vmem>>, vector<1x4x1xf32>,
    %c0_18 = arith.constant 0 : index
    %c0_19 = arith.constant 0 : index
    %c0_20 = arith.constant 0 : index
    %35 = vector.load %arg8[%c0_18, %c0_19, %c0_20] : memref<2x4x32xf32, #tpu.memory_space<vmem>>, vector<1x4x32xf32>
    %36 = vector.shape_cast %35 : vector<1x4x32xf32> to vector<4x32xf32>
    %37 = vector.broadcast %22 : vector<4x1xf32> to vector<4x32xf32>
    %38 = arith.mulf %37, %36 : vector<4x32xf32>
    %39 = arith.truncf %25 : vector<4x4xf32> to vector<4x4xbf16>
    %cst_21 = arith.constant dense<0.000000e+00> : vector<4x32xf32>
    %40 = tpu.matmul %39, %12, %cst_21 {dimension_numbers = #tpu.dot_dimension_numbers<[1], [0], [0], [1], [0, 0, 1, 1], [], []>} : vector<4x4xbf16>, vector<4x32xbf16>, vector<4x32xf32> -> vector<4x32xf32>
    %41 = arith.addf %38, %40 : vector<4x32xf32>
    %c0_22 = arith.constant 0 : index
    %c0_23 = arith.constant 0 : index
    %c0_24 = arith.constant 0 : index
    %42 = vector.load %arg8[%c0_22, %c0_23, %c0_24] : memref<2x4x32xf32, #tpu.memory_space<vmem>>, vector<1x4x32xf32>
    %43 = vector.shape_cast %42 : vector<1x4x32xf32> to vector<4x32xf32>
    %44 = vector.shape_cast %41 : vector<4x32xf32> to vector<1x4x32xf32>
    tpu.vector_store %arg8[%c0_22, %c0_23, %c0_24], %44 {strides = array<i32>} : memref<2x4x32xf32, #tpu.memory_space<vmem>>, vector<1x4x32xf32>,
    %c0_25 = arith.constant 0 : index
    %c0_26 = arith.constant 0 : index
    %c0_27 = arith.constant 0 : index
    %45 = vector.load %arg6[%c0_25, %c0_26, %c0_27] : memref<2x4x1xf32, #tpu.memory_space<vmem>>, vector<1x4x1xf32>
    %46 = vector.shape_cast %45 : vector<1x4x1xf32> to vector<4x1xf32>
    %47 = vector.shape_cast %20 : vector<4x1xf32> to vector<1x4x1xf32>
    tpu.vector_store %arg6[%c0_25, %c0_26, %c0_27], %47 {strides = array<i32>} : memref<2x4x1xf32, #tpu.memory_space<vmem>>, vector<1x4x1xf32>,
    %48 = vector.extract_strided_slice %4 {offsets = [0, 32], sizes = [4, 32], strides = [1, 1]} : vector<4x64xf32> to vector<4x32xf32>
    %49 = arith.truncf %48 : vector<4x32xf32> to vector<4x32xbf16>
    %50 = vector.extract_strided_slice %6 {offsets = [0, 32], sizes = [4, 32], strides = [1, 1]} : vector<4x128xf32> to vector<4x32xf32>
    %51 = arith.truncf %50 : vector<4x32xf32> to vector<4x32xbf16>
    %52 = vector.extract_strided_slice %6 {offsets = [0, 96], sizes = [4, 32], strides = [1, 1]} : vector<4x128xf32> to vector<4x32xf32>
    %53 = arith.truncf %52 : vector<4x32xf32> to vector<4x32xbf16>
    %cst_28 = arith.constant dense<0.000000e+00> : vector<4x4xf32>
    %54 = tpu.matmul %49, %51, %cst_28 {dimension_numbers = #tpu.dot_dimension_numbers<[1], [1], [0], [0], [0, 0, 1, 0], [], []>} : vector<4x32xbf16>, vector<4x32xbf16>, vector<4x4xf32> -> vector<4x4xf32>
    %cst_29 = arith.constant 0.176776692 : f32
    %55 = vector.broadcast %cst_29 : f32 to vector<4x4xf32>
    %56 = arith.mulf %54, %55 : vector<4x4xf32>
    %c1 = arith.constant 1 : index
    %c0_30 = arith.constant 0 : index
    %c0_31 = arith.constant 0 : index
    %57 = vector.load %arg6[%c1, %c0_30, %c0_31] : memref<2x4x1xf32, #tpu.memory_space<vmem>>, vector<1x4x1xf32>
    %58 = vector.shape_cast %57 : vector<1x4x1xf32> to vector<4x1xf32>
    %cst_32 = arith.constant dense<0xFF800000> : vector<4xf32>
    %59 = vector.multi_reduction <maximumf>, %56, %cst_32 [1] : vector<4x4xf32> to vector<4xf32>
    %60 = vector.shape_cast %59 : vector<4xf32> to vector<4x1xf32>
    %61 = arith.maximumf %58, %60 : vector<4x1xf32>
    %62 = arith.subf %58, %61 : vector<4x1xf32>
    %63 = math.exp %62 : vector<4x1xf32>
    %64 = vector.broadcast %61 : vector<4x1xf32> to vector<4x4xf32>
    %65 = arith.subf %56, %64 : vector<4x4xf32>
    %66 = math.exp %65 : vector<4x4xf32>
    %c1_33 = arith.constant 1 : index
    %c0_34 = arith.constant 0 : index
    %c0_35 = arith.constant 0 : index
    %67 = vector.load %arg7[%c1_33, %c0_34, %c0_35] : memref<2x4x1xf32, #tpu.memory_space<vmem>>, vector<1x4x1xf32>
    %68 = vector.shape_cast %67 : vector<1x4x1xf32> to vector<4x1xf32>
    %69 = arith.mulf %63, %68 : vector<4x1xf32>
    %cst_36 = arith.constant dense<0.000000e+00> : vector<4xf32>
    %70 = vector.multi_reduction <add>, %66, %cst_36 [1] : vector<4x4xf32> to vector<4xf32>
    %71 = vector.shape_cast %70 : vector<4xf32> to vector<4x1xf32>
    %72 = arith.addf %69, %71 : vector<4x1xf32>
    %c1_37 = arith.constant 1 : index
    %c0_38 = arith.constant 0 : index
    %c0_39 = arith.constant 0 : index
    %73 = vector.load %arg7[%c1_37, %c0_38, %c0_39] : memref<2x4x1xf32, #tpu.memory_space<vmem>>, vector<1x4x1xf32>
    %74 = vector.shape_cast %73 : vector<1x4x1xf32> to vector<4x1xf32>
    %75 = vector.shape_cast %72 : vector<4x1xf32> to vector<1x4x1xf32>
    tpu.vector_store %arg7[%c1_37, %c0_38, %c0_39], %75 {strides = array<i32>} : memref<2x4x1xf32, #tpu.memory_space<vmem>>, vector<1x4x1xf32>,
    %c1_40 = arith.constant 1 : index
    %c0_41 = arith.constant 0 : index
    %c0_42 = arith.constant 0 : index
    %76 = vector.load %arg8[%c1_40, %c0_41, %c0_42] : memref<2x4x32xf32, #tpu.memory_space<vmem>>, vector<1x4x32xf32>
    %77 = vector.shape_cast %76 : vector<1x4x32xf32> to vector<4x32xf32>
    %78 = vector.broadcast %63 : vector<4x1xf32> to vector<4x32xf32>
    %79 = arith.mulf %78, %77 : vector<4x32xf32>
    %80 = arith.truncf %66 : vector<4x4xf32> to vector<4x4xbf16>
    %cst_43 = arith.constant dense<0.000000e+00> : vector<4x32xf32>
    %81 = tpu.matmul %80, %53, %cst_43 {dimension_numbers = #tpu.dot_dimension_numbers<[1], [0], [0], [1], [0, 0, 1, 1], [], []>} : vector<4x4xbf16>, vector<4x32xbf16>, vector<4x32xf32> -> vector<4x32xf32>
    %82 = arith.addf %79, %81 : vector<4x32xf32>
    %c1_44 = arith.constant 1 : index
    %c0_45 = arith.constant 0 : index
    %c0_46 = arith.constant 0 : index
    %83 = vector.load %arg8[%c1_44, %c0_45, %c0_46] : memref<2x4x32xf32, #tpu.memory_space<vmem>>, vector<1x4x32xf32>
    %84 = vector.shape_cast %83 : vector<1x4x32xf32> to vector<4x32xf32>
    %85 = vector.shape_cast %82 : vector<4x32xf32> to vector<1x4x32xf32>
    tpu.vector_store %arg8[%c1_44, %c0_45, %c0_46], %85 {strides = array<i32>} : memref<2x4x32xf32, #tpu.memory_space<vmem>>, vector<1x4x32xf32>,
    %c1_47 = arith.constant 1 : index
    %c0_48 = arith.constant 0 : index
    %c0_49 = arith.constant 0 : index
    %86 = vector.load %arg6[%c1_47, %c0_48, %c0_49] : memref<2x4x1xf32, #tpu.memory_space<vmem>>, vector<1x4x1xf32>
    %87 = vector.shape_cast %86 : vector<1x4x1xf32> to vector<4x1xf32>
    %88 = vector.shape_cast %61 : vector<4x1xf32> to vector<1x4x1xf32>
    tpu.vector_store %arg6[%c1_47, %c0_48, %c0_49], %88 {strides = array<i32>} : memref<2x4x1xf32, #tpu.memory_space<vmem>>, vector<1x4x1xf32>,
    %c0_i32_50 = arith.constant 0 : i32
    %89 = arith.cmpi eq, %arg2, %c0_i32_50 : i32
    %90 = arith.extui %89 : i1 to i32
    %c0_i32_51 = arith.constant 0 : i32
    %91 = arith.cmpi ne, %90, %c0_i32_51 : i32
    scf.if %91 {
      %c0_52 = arith.constant 0 : index
      %c0_53 = arith.constant 0 : index
      %c0_54 = arith.constant 0 : index
      %92 = vector.load %arg7[%c0_52, %c0_53, %c0_54] : memref<2x4x1xf32, #tpu.memory_space<vmem>>, vector<1x4x1xf32>
      %93 = vector.shape_cast %92 : vector<1x4x1xf32> to vector<4x1xf32>
      %94 = tpu.reciprocal %93 {approx = true} : vector<4x1xf32> -> vector<4x1xf32>
      %c0_55 = arith.constant 0 : index
      %c0_56 = arith.constant 0 : index
      %c0_57 = arith.constant 0 : index
      %95 = vector.load %arg8[%c0_55, %c0_56, %c0_57] : memref<2x4x32xf32, #tpu.memory_space<vmem>>, vector<1x4x32xf32>
      %96 = vector.shape_cast %95 : vector<1x4x32xf32> to vector<4x32xf32>
      %97 = vector.broadcast %94 : vector<4x1xf32> to vector<4x32xf32>
      %98 = arith.mulf %96, %97 : vector<4x32xf32>
      %c1_58 = arith.constant 1 : index
      %c0_59 = arith.constant 0 : index
      %c0_60 = arith.constant 0 : index
      %99 = vector.load %arg7[%c1_58, %c0_59, %c0_60] : memref<2x4x1xf32, #tpu.memory_space<vmem>>, vector<1x4x1xf32>
      %100 = vector.shape_cast %99 : vector<1x4x1xf32> to vector<4x1xf32>
      %101 = tpu.reciprocal %100 {approx = true} : vector<4x1xf32> -> vector<4x1xf32>
      %c1_61 = arith.constant 1 : index
      %c0_62 = arith.constant 0 : index
      %c0_63 = arith.constant 0 : index
      %102 = vector.load %arg8[%c1_61, %c0_62, %c0_63] : memref<2x4x32xf32, #tpu.memory_space<vmem>>, vector<1x4x32xf32>
      %103 = vector.shape_cast %102 : vector<1x4x32xf32> to vector<4x32xf32>
      %104 = vector.broadcast %101 : vector<4x1xf32> to vector<4x32xf32>
      %105 = arith.mulf %103, %104 : vector<4x32xf32>
      %106 = tpu.concatenate %98, %105 in 1 : vector<4x32xf32>, vector<4x32xf32> -> vector<4x64xf32>
      %c0_64 = arith.constant 0 : index
      %c0_65 = arith.constant 0 : index
      %c0_66 = arith.constant 0 : index
      %107 = vector.load %arg5[%c0_64, %c0_65, %c0_66] : memref<1x4x64xf32, #tpu.memory_space<vmem>>, vector<1x4x64xf32>
      %108 = vector.shape_cast %107 : vector<1x4x64xf32> to vector<4x64xf32>
      %109 = vector.shape_cast %106 : vector<4x64xf32> to vector<1x4x64xf32>
      tpu.vector_store %arg5[%c0_64, %c0_65, %c0_66], %109 {strides = array<i32>} : memref<1x4x64xf32, #tpu.memory_space<vmem>>, vector<1x4x64xf32>,
    } else {
    }
    return
  }
  func.func @transform_0(%arg0: i32, %arg1: i32, %arg2: i32) -> (i32, i32, i32) {
    %c0_i32 = arith.constant 0 : i32
    %c0_i32_0 = arith.constant 0 : i32
    return %arg0, %arg1, %c0_i32 : i32, i32, i32
  }
  func.func @transform_1(%arg0: i32, %arg1: i32, %arg2: i32) -> (i32, i32, i32) {
    %c0_i32 = arith.constant 0 : i32
    %c0_i32_0 = arith.constant 0 : i32
    return %arg0, %arg2, %c0_i32 : i32, i32, i32
  }
  func.func @transform_2(%arg0: i32, %arg1: i32, %arg2: i32) -> (i32, i32, i32) {
    %c0_i32 = arith.constant 0 : i32
    %c0_i32_0 = arith.constant 0 : i32
    return %arg0, %arg1, %c0_i32 : i32, i32, i32
  }
}

module attributes {stable_mosaic.version = 11 : i64} {
  func.func @_fused_matmul_kernel(%arg0: i32, %arg1: i32, %arg2: i32, %arg3: memref<8x64xf32, #tpu.memory_space<vmem>>, %arg4: memref<64x256xf32, #tpu.memory_space<vmem>>, %arg5: memref<1x256xf32, #tpu.memory_space<vmem>>, %arg6: memref<1x64xf32, #tpu.memory_space<vmem>>, %arg7: memref<1x64xf32, #tpu.memory_space<vmem>>, %arg8: memref<8x256xf32, #tpu.memory_space<vmem>>, %arg9: memref<8x256xf32, #tpu.memory_space<vmem>>) attributes {dimension_semantics = [#tpu.dimension_semantics<parallel>, #tpu.dimension_semantics<parallel>, #tpu.dimension_semantics<arbitrary>], iteration_bounds = array<i64: 1, 1, 1>, scalar_prefetch = 0 : i64, scratch_operands = 1 : i64, tpu.core_type = #tpu.core_type<tc>, window_params = [{transform_indices = @transform_0, window_bounds = array<i64: 8, 64>}, {transform_indices = @transform_1, window_bounds = array<i64: 64, 256>}, {transform_indices = @transform_2, window_bounds = array<i64: 1, 256>}, {pipeline_mode = #tpu.pipeline_mode<synchronous>, transform_indices = @transform_3, window_bounds = array<i64: 1, 64>}, {pipeline_mode = #tpu.pipeline_mode<synchronous>, transform_indices = @transform_4, window_bounds = array<i64: 1, 64>}, {transform_indices = @transform_5, window_bounds = array<i64: 8, 256>}]} {
    %c0_i32 = arith.constant 0 : i32
    %0 = arith.cmpi eq, %arg2, %c0_i32 : i32
    %1 = arith.extui %0 : i1 to i32
    %c0_i32_0 = arith.constant 0 : i32
    %2 = arith.cmpi ne, %1, %c0_i32_0 : i32
    scf.if %2 {
      %cst_19 = arith.constant 0.000000e+00 : f32
      %36 = vector.broadcast %cst_19 : f32 to vector<8x256xf32>
      %c0_20 = arith.constant 0 : index
      %c0_21 = arith.constant 0 : index
      %37 = vector.load %arg9[%c0_20, %c0_21] : memref<8x256xf32, #tpu.memory_space<vmem>>, vector<8x256xf32>
      tpu.vector_store %arg9[%c0_20, %c0_21], %36 {strides = array<i32>} : memref<8x256xf32, #tpu.memory_space<vmem>>, vector<8x256xf32>,
    } else {
    }
    %c0 = arith.constant 0 : index
    %c0_1 = arith.constant 0 : index
    %3 = vector.load %arg3[%c0, %c0_1] : memref<8x64xf32, #tpu.memory_space<vmem>>, vector<8x64xf32>
    %cst = arith.constant dense<0.000000e+00> : vector<8xf32>
    %4 = vector.multi_reduction <add>, %3, %cst [1] : vector<8x64xf32> to vector<8xf32>
    %5 = vector.shape_cast %4 : vector<8xf32> to vector<8x1xf32>
    %cst_2 = arith.constant 6.400000e+01 : f32
    %6 = vector.broadcast %cst_2 : f32 to vector<8x1xf32>
    %7 = arith.divf %5, %6 : vector<8x1xf32>
    %8 = vector.broadcast %7 : vector<8x1xf32> to vector<8x64xf32>
    %9 = arith.subf %3, %8 : vector<8x64xf32>
    %10 = arith.mulf %9, %9 : vector<8x64xf32>
    %cst_3 = arith.constant dense<0.000000e+00> : vector<8xf32>
    %11 = vector.multi_reduction <add>, %10, %cst_3 [1] : vector<8x64xf32> to vector<8xf32>
    %12 = vector.shape_cast %11 : vector<8xf32> to vector<8x1xf32>
    %cst_4 = arith.constant 6.400000e+01 : f32
    %13 = vector.broadcast %cst_4 : f32 to vector<8x1xf32>
    %14 = arith.divf %12, %13 : vector<8x1xf32>
    %cst_5 = arith.constant 9.99999997E-7 : f32
    %15 = vector.broadcast %cst_5 : f32 to vector<8x1xf32>
    %16 = arith.addf %14, %15 : vector<8x1xf32>
    %17 = math.rsqrt %16 : vector<8x1xf32>
    %18 = vector.broadcast %17 : vector<8x1xf32> to vector<8x64xf32>
    %19 = arith.mulf %9, %18 : vector<8x64xf32>
    %c0_6 = arith.constant 0 : index
    %c0_7 = arith.constant 0 : index
    %20 = vector.load %arg6[%c0_6, %c0_7] : memref<1x64xf32, #tpu.memory_space<vmem>>, vector<1x64xf32>
    %21 = vector.broadcast %20 : vector<1x64xf32> to vector<8x64xf32>
    %22 = arith.mulf %19, %21 : vector<8x64xf32>
    %c0_8 = arith.constant 0 : index
    %c0_9 = arith.constant 0 : index
    %23 = vector.load %arg7[%c0_8, %c0_9] : memref<1x64xf32, #tpu.memory_space<vmem>>, vector<1x64xf32>
    %24 = vector.broadcast %23 : vector<1x64xf32> to vector<8x64xf32>
    %25 = arith.addf %22, %24 : vector<8x64xf32>
    %c0_10 = arith.constant 0 : index
    %c0_11 = arith.constant 0 : index
    %26 = vector.load %arg9[%c0_10, %c0_11] : memref<8x256xf32, #tpu.memory_space<vmem>>, vector<8x256xf32>
    %27 = arith.truncf %25 : vector<8x64xf32> to vector<8x64xbf16>
    %c0_12 = arith.constant 0 : index
    %c0_13 = arith.constant 0 : index
    %28 = vector.load %arg4[%c0_12, %c0_13] : memref<64x256xf32, #tpu.memory_space<vmem>>, vector<64x256xf32>
    %29 = arith.truncf %28 : vector<64x256xf32> to vector<64x256xbf16>
    %cst_14 = arith.constant dense<0.000000e+00> : vector<8x256xf32>
    %30 = tpu.matmul %27, %29, %cst_14 {dimension_numbers = #tpu.dot_dimension_numbers<[1], [0], [0], [1], [0, 0, 1, 1], [], []>} : vector<8x64xbf16>, vector<64x256xbf16>, vector<8x256xf32> -> vector<8x256xf32>
    %31 = arith.addf %26, %30 : vector<8x256xf32>
    %c0_15 = arith.constant 0 : index
    %c0_16 = arith.constant 0 : index
    %32 = vector.load %arg9[%c0_15, %c0_16] : memref<8x256xf32, #tpu.memory_space<vmem>>, vector<8x256xf32>
    tpu.vector_store %arg9[%c0_15, %c0_16], %31 {strides = array<i32>} : memref<8x256xf32, #tpu.memory_space<vmem>>, vector<8x256xf32>,
    %c0_i32_17 = arith.constant 0 : i32
    %33 = arith.cmpi eq, %arg2, %c0_i32_17 : i32
    %34 = arith.extui %33 : i1 to i32
    %c0_i32_18 = arith.constant 0 : i32
    %35 = arith.cmpi ne, %34, %c0_i32_18 : i32
    scf.if %35 {
      %c0_19 = arith.constant 0 : index
      %c0_20 = arith.constant 0 : index
      %36 = vector.load %arg9[%c0_19, %c0_20] : memref<8x256xf32, #tpu.memory_space<vmem>>, vector<8x256xf32>
      %c0_21 = arith.constant 0 : index
      %c0_22 = arith.constant 0 : index
      %37 = vector.load %arg5[%c0_21, %c0_22] : memref<1x256xf32, #tpu.memory_space<vmem>>, vector<1x256xf32>
      %38 = vector.broadcast %37 : vector<1x256xf32> to vector<8x256xf32>
      %39 = arith.addf %36, %38 : vector<8x256xf32>
      %c0_23 = arith.constant 0 : index
      %c0_24 = arith.constant 0 : index
      %40 = vector.load %arg8[%c0_23, %c0_24] : memref<8x256xf32, #tpu.memory_space<vmem>>, vector<8x256xf32>
      tpu.vector_store %arg8[%c0_23, %c0_24], %39 {strides = array<i32>} : memref<8x256xf32, #tpu.memory_space<vmem>>, vector<8x256xf32>,
    } else {
    }
    return
  }
  func.func @transform_0(%arg0: i32, %arg1: i32, %arg2: i32) -> (i32, i32) {
    %c0_i32 = arith.constant 0 : i32
    return %arg0, %arg2 : i32, i32
  }
  func.func @transform_1(%arg0: i32, %arg1: i32, %arg2: i32) -> (i32, i32) {
    %c0_i32 = arith.constant 0 : i32
    return %arg2, %arg1 : i32, i32
  }
  func.func @transform_2(%arg0: i32, %arg1: i32, %arg2: i32) -> (i32, i32) {
    %c0_i32 = arith.constant 0 : i32
    %c0_i32_0 = arith.constant 0 : i32
    return %c0_i32, %arg1 : i32, i32
  }
  func.func @transform_3(%arg0: i32, %arg1: i32, %arg2: i32) -> (i32, i32) {
    %c0_i32 = arith.constant 0 : i32
    %c0_i32_0 = arith.constant 0 : i32
    %c0_i32_1 = arith.constant 0 : i32
    return %c0_i32, %c0_i32_0 : i32, i32
  }
  func.func @transform_4(%arg0: i32, %arg1: i32, %arg2: i32) -> (i32, i32) {
    %c0_i32 = arith.constant 0 : i32
    %c0_i32_0 = arith.constant 0 : i32
    %c0_i32_1 = arith.constant 0 : i32
    return %c0_i32, %c0_i32_0 : i32, i32
  }
  func.func @transform_5(%arg0: i32, %arg1: i32, %arg2: i32) -> (i32, i32) {
    %c0_i32 = arith.constant 0 : i32
    return %arg0, %arg1 : i32, i32
  }
}

module attributes {stable_mosaic.version = 11 : i64} {
  func.func @_dwconv3_gelu_kernel(%arg0: i32, %arg1: i32, %arg2: memref<1x4x4x256xf32, #tpu.memory_space<vmem>>, %arg3: memref<9x256xf32, #tpu.memory_space<vmem>>, %arg4: memref<1x256xf32, #tpu.memory_space<vmem>>, %arg5: memref<1x2x2x256xf32, #tpu.memory_space<vmem>>) attributes {dimension_semantics = [#tpu.dimension_semantics<parallel>, #tpu.dimension_semantics<parallel>], iteration_bounds = array<i64: 2, 1>, scalar_prefetch = 0 : i64, scratch_operands = 0 : i64, tpu.core_type = #tpu.core_type<tc>, window_params = [{transform_indices = @transform_0, window_bounds = array<i64: 1, 4, 4, 256>}, {transform_indices = @transform_1, window_bounds = array<i64: 9, 256>}, {transform_indices = @transform_2, window_bounds = array<i64: 1, 256>}, {transform_indices = @transform_3, window_bounds = array<i64: 1, 2, 2, 256>}]} {
    %c0 = arith.constant 0 : index
    %c0_0 = arith.constant 0 : index
    %c0_1 = arith.constant 0 : index
    %c0_2 = arith.constant 0 : index
    %0 = vector.load %arg2[%c0, %c0_0, %c0_1, %c0_2] : memref<1x4x4x256xf32, #tpu.memory_space<vmem>>, vector<1x4x4x256xf32>
    %1 = vector.shape_cast %0 : vector<1x4x4x256xf32> to vector<4x4x256xf32>
    %c0_3 = arith.constant 0 : index
    %c0_4 = arith.constant 0 : index
    %2 = vector.load %arg3[%c0_3, %c0_4] : memref<9x256xf32, #tpu.memory_space<vmem>>, vector<9x256xf32>
    %c0_5 = arith.constant 0 : index
    %c0_6 = arith.constant 0 : index
    %3 = vector.load %arg4[%c0_5, %c0_6] : memref<1x256xf32, #tpu.memory_space<vmem>>, vector<1x256xf32>
    %4 = vector.shape_cast %3 : vector<1x256xf32> to vector<1x1x256xf32>
    %5 = vector.extract_strided_slice %1 {offsets = [0, 0, 0], sizes = [2, 2, 256], strides = [1, 1, 1]} : vector<4x4x256xf32> to vector<2x2x256xf32>
    %6 = vector.extract_strided_slice %2 {offsets = [0, 0], sizes = [1, 256], strides = [1, 1]} : vector<9x256xf32> to vector<1x256xf32>
    %7 = vector.shape_cast %6 : vector<1x256xf32> to vector<256xf32>
    %8 = vector.shape_cast %7 : vector<256xf32> to vector<1x1x256xf32>
    %9 = vector.broadcast %8 : vector<1x1x256xf32> to vector<2x2x256xf32>
    %10 = arith.mulf %5, %9 : vector<2x2x256xf32>
    %11 = vector.extract_strided_slice %1 {offsets = [0, 1, 0], sizes = [2, 2, 256], strides = [1, 1, 1]} : vector<4x4x256xf32> to vector<2x2x256xf32>
    %12 = vector.extract_strided_slice %2 {offsets = [1, 0], sizes = [1, 256], strides = [1, 1]} : vector<9x256xf32> to vector<1x256xf32>
    %13 = vector.shape_cast %12 : vector<1x256xf32> to vector<256xf32>
    %14 = vector.shape_cast %13 : vector<256xf32> to vector<1x1x256xf32>
    %15 = vector.broadcast %14 : vector<1x1x256xf32> to vector<2x2x256xf32>
    %16 = arith.mulf %11, %15 : vector<2x2x256xf32>
    %17 = arith.addf %10, %16 : vector<2x2x256xf32>
    %18 = vector.extract_strided_slice %1 {offsets = [0, 2, 0], sizes = [2, 2, 256], strides = [1, 1, 1]} : vector<4x4x256xf32> to vector<2x2x256xf32>
    %19 = vector.extract_strided_slice %2 {offsets = [2, 0], sizes = [1, 256], strides = [1, 1]} : vector<9x256xf32> to vector<1x256xf32>
    %20 = vector.shape_cast %19 : vector<1x256xf32> to vector<256xf32>
    %21 = vector.shape_cast %20 : vector<256xf32> to vector<1x1x256xf32>
    %22 = vector.broadcast %21 : vector<1x1x256xf32> to vector<2x2x256xf32>
    %23 = arith.mulf %18, %22 : vector<2x2x256xf32>
    %24 = arith.addf %17, %23 : vector<2x2x256xf32>
    %25 = vector.extract_strided_slice %1 {offsets = [1, 0, 0], sizes = [2, 2, 256], strides = [1, 1, 1]} : vector<4x4x256xf32> to vector<2x2x256xf32>
    %26 = vector.extract_strided_slice %2 {offsets = [3, 0], sizes = [1, 256], strides = [1, 1]} : vector<9x256xf32> to vector<1x256xf32>
    %27 = vector.shape_cast %26 : vector<1x256xf32> to vector<256xf32>
    %28 = vector.shape_cast %27 : vector<256xf32> to vector<1x1x256xf32>
    %29 = vector.broadcast %28 : vector<1x1x256xf32> to vector<2x2x256xf32>
    %30 = arith.mulf %25, %29 : vector<2x2x256xf32>
    %31 = arith.addf %24, %30 : vector<2x2x256xf32>
    %32 = vector.extract_strided_slice %1 {offsets = [1, 1, 0], sizes = [2, 2, 256], strides = [1, 1, 1]} : vector<4x4x256xf32> to vector<2x2x256xf32>
    %33 = vector.extract_strided_slice %2 {offsets = [4, 0], sizes = [1, 256], strides = [1, 1]} : vector<9x256xf32> to vector<1x256xf32>
    %34 = vector.shape_cast %33 : vector<1x256xf32> to vector<256xf32>
    %35 = vector.shape_cast %34 : vector<256xf32> to vector<1x1x256xf32>
    %36 = vector.broadcast %35 : vector<1x1x256xf32> to vector<2x2x256xf32>
    %37 = arith.mulf %32, %36 : vector<2x2x256xf32>
    %38 = arith.addf %31, %37 : vector<2x2x256xf32>
    %39 = vector.extract_strided_slice %1 {offsets = [1, 2, 0], sizes = [2, 2, 256], strides = [1, 1, 1]} : vector<4x4x256xf32> to vector<2x2x256xf32>
    %40 = vector.extract_strided_slice %2 {offsets = [5, 0], sizes = [1, 256], strides = [1, 1]} : vector<9x256xf32> to vector<1x256xf32>
    %41 = vector.shape_cast %40 : vector<1x256xf32> to vector<256xf32>
    %42 = vector.shape_cast %41 : vector<256xf32> to vector<1x1x256xf32>
    %43 = vector.broadcast %42 : vector<1x1x256xf32> to vector<2x2x256xf32>
    %44 = arith.mulf %39, %43 : vector<2x2x256xf32>
    %45 = arith.addf %38, %44 : vector<2x2x256xf32>
    %46 = vector.extract_strided_slice %1 {offsets = [2, 0, 0], sizes = [2, 2, 256], strides = [1, 1, 1]} : vector<4x4x256xf32> to vector<2x2x256xf32>
    %47 = vector.extract_strided_slice %2 {offsets = [6, 0], sizes = [1, 256], strides = [1, 1]} : vector<9x256xf32> to vector<1x256xf32>
    %48 = vector.shape_cast %47 : vector<1x256xf32> to vector<256xf32>
    %49 = vector.shape_cast %48 : vector<256xf32> to vector<1x1x256xf32>
    %50 = vector.broadcast %49 : vector<1x1x256xf32> to vector<2x2x256xf32>
    %51 = arith.mulf %46, %50 : vector<2x2x256xf32>
    %52 = arith.addf %45, %51 : vector<2x2x256xf32>
    %53 = vector.extract_strided_slice %1 {offsets = [2, 1, 0], sizes = [2, 2, 256], strides = [1, 1, 1]} : vector<4x4x256xf32> to vector<2x2x256xf32>
    %54 = vector.extract_strided_slice %2 {offsets = [7, 0], sizes = [1, 256], strides = [1, 1]} : vector<9x256xf32> to vector<1x256xf32>
    %55 = vector.shape_cast %54 : vector<1x256xf32> to vector<256xf32>
    %56 = vector.shape_cast %55 : vector<256xf32> to vector<1x1x256xf32>
    %57 = vector.broadcast %56 : vector<1x1x256xf32> to vector<2x2x256xf32>
    %58 = arith.mulf %53, %57 : vector<2x2x256xf32>
    %59 = arith.addf %52, %58 : vector<2x2x256xf32>
    %60 = vector.extract_strided_slice %1 {offsets = [2, 2, 0], sizes = [2, 2, 256], strides = [1, 1, 1]} : vector<4x4x256xf32> to vector<2x2x256xf32>
    %61 = vector.extract_strided_slice %2 {offsets = [8, 0], sizes = [1, 256], strides = [1, 1]} : vector<9x256xf32> to vector<1x256xf32>
    %62 = vector.shape_cast %61 : vector<1x256xf32> to vector<256xf32>
    %63 = vector.shape_cast %62 : vector<256xf32> to vector<1x1x256xf32>
    %64 = vector.broadcast %63 : vector<1x1x256xf32> to vector<2x2x256xf32>
    %65 = arith.mulf %60, %64 : vector<2x2x256xf32>
    %66 = arith.addf %59, %65 : vector<2x2x256xf32>
    %67 = vector.broadcast %4 : vector<1x1x256xf32> to vector<2x2x256xf32>
    %68 = arith.addf %66, %67 : vector<2x2x256xf32>
    %69 = arith.mulf %68, %68 : vector<2x2x256xf32>
    %70 = arith.mulf %68, %69 : vector<2x2x256xf32>
    %cst = arith.constant 4.471500e-02 : f32
    %71 = vector.broadcast %cst : f32 to vector<2x2x256xf32>
    %72 = arith.mulf %71, %70 : vector<2x2x256xf32>
    %73 = arith.addf %68, %72 : vector<2x2x256xf32>
    %cst_7 = arith.constant 0.797884583 : f32
    %74 = vector.broadcast %cst_7 : f32 to vector<2x2x256xf32>
    %75 = arith.mulf %74, %73 : vector<2x2x256xf32>
    %76 = math.tanh %75 : vector<2x2x256xf32>
    %cst_8 = arith.constant 1.000000e+00 : f32
    %77 = vector.broadcast %cst_8 : f32 to vector<2x2x256xf32>
    %78 = arith.addf %77, %76 : vector<2x2x256xf32>
    %cst_9 = arith.constant 5.000000e-01 : f32
    %79 = vector.broadcast %cst_9 : f32 to vector<2x2x256xf32>
    %80 = arith.mulf %79, %78 : vector<2x2x256xf32>
    %81 = arith.mulf %68, %80 : vector<2x2x256xf32>
    %c0_10 = arith.constant 0 : index
    %c0_11 = arith.constant 0 : index
    %c0_12 = arith.constant 0 : index
    %c0_13 = arith.constant 0 : index
    %82 = vector.load %arg5[%c0_10, %c0_11, %c0_12, %c0_13] : memref<1x2x2x256xf32, #tpu.memory_space<vmem>>, vector<1x2x2x256xf32>
    %83 = vector.shape_cast %82 : vector<1x2x2x256xf32> to vector<2x2x256xf32>
    %84 = vector.shape_cast %81 : vector<2x2x256xf32> to vector<1x2x2x256xf32>
    tpu.vector_store %arg5[%c0_10, %c0_11, %c0_12, %c0_13], %84 {strides = array<i32>} : memref<1x2x2x256xf32, #tpu.memory_space<vmem>>, vector<1x2x2x256xf32>,
    return
  }
  func.func @transform_0(%arg0: i32, %arg1: i32) -> (i32, i32, i32, i32) {
    %c0_i32 = arith.constant 0 : i32
    %c0_i32_0 = arith.constant 0 : i32
    %c0_i32_1 = arith.constant 0 : i32
    return %arg0, %c0_i32, %c0_i32_0, %arg1 : i32, i32, i32, i32
  }
  func.func @transform_1(%arg0: i32, %arg1: i32) -> (i32, i32) {
    %c0_i32 = arith.constant 0 : i32
    %c0_i32_0 = arith.constant 0 : i32
    return %c0_i32, %arg1 : i32, i32
  }
  func.func @transform_2(%arg0: i32, %arg1: i32) -> (i32, i32) {
    %c0_i32 = arith.constant 0 : i32
    %c0_i32_0 = arith.constant 0 : i32
    return %c0_i32, %arg1 : i32, i32
  }
  func.func @transform_3(%arg0: i32, %arg1: i32) -> (i32, i32, i32, i32) {
    %c0_i32 = arith.constant 0 : i32
    %c0_i32_0 = arith.constant 0 : i32
    %c0_i32_1 = arith.constant 0 : i32
    return %arg0, %c0_i32, %c0_i32_0, %arg1 : i32, i32, i32, i32
  }
}

module attributes {stable_mosaic.version = 11 : i64} {
  func.func @_fused_matmul_kernel(%arg0: i32, %arg1: i32, %arg2: i32, %arg3: memref<8x256xf32, #tpu.memory_space<vmem>>, %arg4: memref<256x64xf32, #tpu.memory_space<vmem>>, %arg5: memref<1x64xf32, #tpu.memory_space<vmem>>, %arg6: memref<8x64xf32, #tpu.memory_space<vmem>>, %arg7: memref<8x64xf32, #tpu.memory_space<vmem>>, %arg8: memref<8x64xf32, #tpu.memory_space<vmem>>) attributes {dimension_semantics = [#tpu.dimension_semantics<parallel>, #tpu.dimension_semantics<parallel>, #tpu.dimension_semantics<arbitrary>], iteration_bounds = array<i64: 1, 1, 1>, scalar_prefetch = 0 : i64, scratch_operands = 1 : i64, tpu.core_type = #tpu.core_type<tc>, window_params = [{transform_indices = @transform_0, window_bounds = array<i64: 8, 256>}, {transform_indices = @transform_1, window_bounds = array<i64: 256, 64>}, {transform_indices = @transform_2, window_bounds = array<i64: 1, 64>}, {transform_indices = @transform_3, window_bounds = array<i64: 8, 64>}, {transform_indices = @transform_4, window_bounds = array<i64: 8, 64>}]} {
    %c0_i32 = arith.constant 0 : i32
    %0 = arith.cmpi eq, %arg2, %c0_i32 : i32
    %1 = arith.extui %0 : i1 to i32
    %c0_i32_0 = arith.constant 0 : i32
    %2 = arith.cmpi ne, %1, %c0_i32_0 : i32
    scf.if %2 {
      %cst_10 = arith.constant 0.000000e+00 : f32
      %14 = vector.broadcast %cst_10 : f32 to vector<8x64xf32>
      %c0_11 = arith.constant 0 : index
      %c0_12 = arith.constant 0 : index
      %15 = vector.load %arg8[%c0_11, %c0_12] : memref<8x64xf32, #tpu.memory_space<vmem>>, vector<8x64xf32>
      tpu.vector_store %arg8[%c0_11, %c0_12], %14 {strides = array<i32>} : memref<8x64xf32, #tpu.memory_space<vmem>>, vector<8x64xf32>,
    } else {
    }
    %c0 = arith.constant 0 : index
    %c0_1 = arith.constant 0 : index
    %3 = vector.load %arg3[%c0, %c0_1] : memref<8x256xf32, #tpu.memory_space<vmem>>, vector<8x256xf32>
    %c0_2 = arith.constant 0 : index
    %c0_3 = arith.constant 0 : index
    %4 = vector.load %arg8[%c0_2, %c0_3] : memref<8x64xf32, #tpu.memory_space<vmem>>, vector<8x64xf32>
    %5 = arith.truncf %3 : vector<8x256xf32> to vector<8x256xbf16>
    %c0_4 = arith.constant 0 : index
    %c0_5 = arith.constant 0 : index
    %6 = vector.load %arg4[%c0_4, %c0_5] : memref<256x64xf32, #tpu.memory_space<vmem>>, vector<256x64xf32>
    %7 = arith.truncf %6 : vector<256x64xf32> to vector<256x64xbf16>
    %cst = arith.constant dense<0.000000e+00> : vector<8x64xf32>
    %8 = tpu.matmul %5, %7, %cst {dimension_numbers = #tpu.dot_dimension_numbers<[1], [0], [0], [1], [0, 0, 1, 1], [], []>} : vector<8x256xbf16>, vector<256x64xbf16>, vector<8x64xf32> -> vector<8x64xf32>
    %9 = arith.addf %4, %8 : vector<8x64xf32>
    %c0_6 = arith.constant 0 : index
    %c0_7 = arith.constant 0 : index
    %10 = vector.load %arg8[%c0_6, %c0_7] : memref<8x64xf32, #tpu.memory_space<vmem>>, vector<8x64xf32>
    tpu.vector_store %arg8[%c0_6, %c0_7], %9 {strides = array<i32>} : memref<8x64xf32, #tpu.memory_space<vmem>>, vector<8x64xf32>,
    %c0_i32_8 = arith.constant 0 : i32
    %11 = arith.cmpi eq, %arg2, %c0_i32_8 : i32
    %12 = arith.extui %11 : i1 to i32
    %c0_i32_9 = arith.constant 0 : i32
    %13 = arith.cmpi ne, %12, %c0_i32_9 : i32
    scf.if %13 {
      %c0_10 = arith.constant 0 : index
      %c0_11 = arith.constant 0 : index
      %14 = vector.load %arg8[%c0_10, %c0_11] : memref<8x64xf32, #tpu.memory_space<vmem>>, vector<8x64xf32>
      %c0_12 = arith.constant 0 : index
      %c0_13 = arith.constant 0 : index
      %15 = vector.load %arg5[%c0_12, %c0_13] : memref<1x64xf32, #tpu.memory_space<vmem>>, vector<1x64xf32>
      %16 = vector.broadcast %15 : vector<1x64xf32> to vector<8x64xf32>
      %17 = arith.addf %14, %16 : vector<8x64xf32>
      %c0_14 = arith.constant 0 : index
      %c0_15 = arith.constant 0 : index
      %18 = vector.load %arg6[%c0_14, %c0_15] : memref<8x64xf32, #tpu.memory_space<vmem>>, vector<8x64xf32>
      %19 = arith.addf %17, %18 : vector<8x64xf32>
      %c0_16 = arith.constant 0 : index
      %c0_17 = arith.constant 0 : index
      %20 = vector.load %arg7[%c0_16, %c0_17] : memref<8x64xf32, #tpu.memory_space<vmem>>, vector<8x64xf32>
      tpu.vector_store %arg7[%c0_16, %c0_17], %19 {strides = array<i32>} : memref<8x64xf32, #tpu.memory_space<vmem>>, vector<8x64xf32>,
    } else {
    }
    return
  }
  func.func @transform_0(%arg0: i32, %arg1: i32, %arg2: i32) -> (i32, i32) {
    %c0_i32 = arith.constant 0 : i32
    return %arg0, %arg2 : i32, i32
  }
  func.func @transform_1(%arg0: i32, %arg1: i32, %arg2: i32) -> (i32, i32) {
    %c0_i32 = arith.constant 0 : i32
    return %arg2, %arg1 : i32, i32
  }
  func.func @transform_2(%arg0: i32, %arg1: i32, %arg2: i32) -> (i32, i32) {
    %c0_i32 = arith.constant 0 : i32
    %c0_i32_0 = arith.constant 0 : i32
    return %c0_i32, %arg1 : i32, i32
  }
  func.func @transform_3(%arg0: i32, %arg1: i32, %arg2: i32) -> (i32, i32) {
    %c0_i32 = arith.constant 0 : i32
    return %arg0, %arg1 : i32, i32
  }
  func.func @transform_4(%arg0: i32, %arg1: i32, %arg2: i32) -> (i32, i32) {
    %c0_i32 = arith.constant 0 : i32
    return %arg0, %arg1 : i32, i32
  }
}

module attributes {stable_mosaic.version = 11 : i64} {
  func.func @_layernorm_kernel(%arg0: i32, %arg1: memref<8x64xf32, #tpu.memory_space<vmem>>, %arg2: memref<1x64xf32, #tpu.memory_space<vmem>>, %arg3: memref<1x64xf32, #tpu.memory_space<vmem>>, %arg4: memref<8x64xf32, #tpu.memory_space<vmem>>) attributes {dimension_semantics = [#tpu.dimension_semantics<parallel>], iteration_bounds = array<i64: 1>, scalar_prefetch = 0 : i64, scratch_operands = 0 : i64, tpu.core_type = #tpu.core_type<tc>, window_params = [{transform_indices = @transform_0, window_bounds = array<i64: 8, 64>}, {pipeline_mode = #tpu.pipeline_mode<synchronous>, transform_indices = @transform_1, window_bounds = array<i64: 1, 64>}, {pipeline_mode = #tpu.pipeline_mode<synchronous>, transform_indices = @transform_2, window_bounds = array<i64: 1, 64>}, {transform_indices = @transform_3, window_bounds = array<i64: 8, 64>}]} {
    %c0 = arith.constant 0 : index
    %c0_0 = arith.constant 0 : index
    %0 = vector.load %arg1[%c0, %c0_0] : memref<8x64xf32, #tpu.memory_space<vmem>>, vector<8x64xf32>
    %cst = arith.constant dense<0.000000e+00> : vector<8xf32>
    %1 = vector.multi_reduction <add>, %0, %cst [1] : vector<8x64xf32> to vector<8xf32>
    %2 = vector.shape_cast %1 : vector<8xf32> to vector<8x1xf32>
    %cst_1 = arith.constant 6.400000e+01 : f32
    %3 = vector.broadcast %cst_1 : f32 to vector<8x1xf32>
    %4 = arith.divf %2, %3 : vector<8x1xf32>
    %5 = vector.broadcast %4 : vector<8x1xf32> to vector<8x64xf32>
    %6 = arith.subf %0, %5 : vector<8x64xf32>
    %7 = arith.mulf %6, %6 : vector<8x64xf32>
    %cst_2 = arith.constant dense<0.000000e+00> : vector<8xf32>
    %8 = vector.multi_reduction <add>, %7, %cst_2 [1] : vector<8x64xf32> to vector<8xf32>
    %9 = vector.shape_cast %8 : vector<8xf32> to vector<8x1xf32>
    %cst_3 = arith.constant 6.400000e+01 : f32
    %10 = vector.broadcast %cst_3 : f32 to vector<8x1xf32>
    %11 = arith.divf %9, %10 : vector<8x1xf32>
    %cst_4 = arith.constant 9.99999974E-6 : f32
    %12 = vector.broadcast %cst_4 : f32 to vector<8x1xf32>
    %13 = arith.addf %11, %12 : vector<8x1xf32>
    %14 = math.rsqrt %13 : vector<8x1xf32>
    %15 = vector.broadcast %14 : vector<8x1xf32> to vector<8x64xf32>
    %16 = arith.mulf %6, %15 : vector<8x64xf32>
    %c0_5 = arith.constant 0 : index
    %c0_6 = arith.constant 0 : index
    %17 = vector.load %arg2[%c0_5, %c0_6] : memref<1x64xf32, #tpu.memory_space<vmem>>, vector<1x64xf32>
    %18 = vector.broadcast %17 : vector<1x64xf32> to vector<8x64xf32>
    %19 = arith.mulf %16, %18 : vector<8x64xf32>
    %c0_7 = arith.constant 0 : index
    %c0_8 = arith.constant 0 : index
    %20 = vector.load %arg3[%c0_7, %c0_8] : memref<1x64xf32, #tpu.memory_space<vmem>>, vector<1x64xf32>
    %21 = vector.broadcast %20 : vector<1x64xf32> to vector<8x64xf32>
    %22 = arith.addf %19, %21 : vector<8x64xf32>
    %c0_9 = arith.constant 0 : index
    %c0_10 = arith.constant 0 : index
    %23 = vector.load %arg4[%c0_9, %c0_10] : memref<8x64xf32, #tpu.memory_space<vmem>>, vector<8x64xf32>
    tpu.vector_store %arg4[%c0_9, %c0_10], %22 {strides = array<i32>} : memref<8x64xf32, #tpu.memory_space<vmem>>, vector<8x64xf32>,
    return
  }
  func.func @transform_0(%arg0: i32) -> (i32, i32) {
    %c0_i32 = arith.constant 0 : i32
    %c0_i32_0 = arith.constant 0 : i32
    return %arg0, %c0_i32 : i32, i32
  }
  func.func @transform_1(%arg0: i32) -> (i32, i32) {
    %c0_i32 = arith.constant 0 : i32
    %c0_i32_0 = arith.constant 0 : i32
    %c0_i32_1 = arith.constant 0 : i32
    return %c0_i32, %c0_i32_0 : i32, i32
  }
  func.func @transform_2(%arg0: i32) -> (i32, i32) {
    %c0_i32 = arith.constant 0 : i32
    %c0_i32_0 = arith.constant 0 : i32
    %c0_i32_1 = arith.constant 0 : i32
    return %c0_i32, %c0_i32_0 : i32, i32
  }
  func.func @transform_3(%arg0: i32) -> (i32, i32) {
    %c0_i32 = arith.constant 0 : i32
    %c0_i32_0 = arith.constant 0 : i32
    return %arg0, %c0_i32 : i32, i32
  }
}

</mosaic_0001>

<bundles_post_ra>
// kernel: fwd.34
= control target key start
LH: loop header
LB: loop body
LE: loop exit
PB: predicated region body
PF: predicated region fallthrough
CT: control target
= control target key end

     0   :  { %vm25_vm0 = vcmask 261120   ;;  %v295_v0 = vmov 0   ;;  %v296_v6 = vmov 0.0   ;;  %vm84_vm1 = vcmask 556032   ;;  %s493_s1 = inlined_call_operand.vmem [shape: f32[196,32], index: 1, kind: input, shape index: {}]   ;;  %s494_s0 = inlined_call_operand.vmem [shape: f32[32,196], index: 0, kind: input, shape index: {}]   ;;  %s495_s2 = inlined_call_operand.vmem [shape: f32[1,32], index: 2, kind: input, shape index: {}]   ;;  %s496_s3 = inlined_call_operand.vmem [shape: f32[1,32], index: 3, kind: input, shape index: {}]   ;;  %s497_s4 = inlined_call_operand.vmem [shape: f32[1,32], index: 4, kind: input, shape index: {}]   ;;  %s498_s5 = inlined_call_operand.vmem [shape: f32[32,32], index: 5, kind: output, shape index: {}]  }
   0x1   :  { %95 = vmatprep.subr.bf16.mxu0 %v295_v0  ;;  %259 = vmatprep.subr.bf16.mxu1 %v295_v0  ;;  %v46_v1 = vld [vmem:[%s493_s1] sm:$0xff]  ;;  %v47_v2 = vld [vmem:[%s493_s1 + $0x8] sm:$0xff]  ;;  %v48_v3 = vld [vmem:[%s493_s1 + $0x10] sm:$0xff]  ;;  %26 = vst.msk [vmem:[#allocation2] sm:$0xff] %vm25_vm0, %v296_v6  ;;  %vm91_vm2 = vcmask 1041408  }
   0x2   :  { %v71_v4 = vpack.c.bf16 %v47_v2, %v46_v1  ;;  %v49_v5 = vld [vmem:[%s493_s1 + $0x18] sm:$0xff]  ;;  %27 = vst.msk [vmem:[#allocation2 + $0x8] sm:$0xff] %vm25_vm0, %v296_v6  ;;  %28 = vst.msk [vmem:[#allocation2 + $0x10] sm:$0xff] %vm25_vm0, %v296_v6  ;;  %v50_v8 = vld [vmem:[%s493_s1 + $0x20] sm:$0xff] }
   0x3   :  { %29 = vst.msk [vmem:[#allocation2 + $0x18] sm:$0xff] %vm25_vm0, %v296_v6  ;;  %v72_v7 = vpack.c.bf16 %v49_v5, %v48_v3  ;;  %v51_v9 = vld [vmem:[%s493_s1 + $0x28] sm:$0xff]  ;;  %v52_v11 = vld [vmem:[%s493_s1 + $0x30] sm:$0xff]  ;;  %v53_v12 = vld [vmem:[%s493_s1 + $0x38] sm:$0xff] }
   0x4   :  { %96 = vmatpush1.bf16.msra.mxu0 %v71_v4  ;;  %272 = vmatpush1.bf16.msra.mxu1 %v71_v4  ;;  %v73_v10 = vpack.c.bf16 %v51_v9, %v50_v8  ;;  %v31_v13 = vld [vmem:[%s494_s0 + $0x8] sm:$0xff]  ;;  %v33_v14 = vld [vmem:[%s494_s0 + $0x18] sm:$0xff]  ;;  %v74_v19 = vpack.c.bf16 %v53_v12, %v52_v11  ;;  %v54_v20 = vld [vmem:[%s493_s1 + $0x40] sm:$0xff] }
   0x5   :  { %97 = vmatprep.subr.bf16.mxu0 %v295_v0  ;;  %260 = vmatprep.subr.bf16.mxu1 %v295_v0  ;;  %v43_v15 = vpack.c.bf16 %v33_v14, %v31_v13  ;;  %v35_v16 = vld [vmem:[%s494_s0 + $0x28] sm:$0xff]  ;;  %v37_v17 = vld [vmem:[%s494_s0 + $0x38] sm:$0xff]  ;;  %v56_v23 = vld [vmem:[%s493_s1 + $0x50] sm:$0xff] }
   0x6   :  { %v45_v18 = vpack.c.bf16 %v37_v17, %v35_v16  ;;  %v55_v21 = vld [vmem:[%s493_s1 + $0x48] sm:$0xff]  ;;  %v57_v24 = vld [vmem:[%s493_s1 + $0x58] sm:$0xff]  ;;  %v58_v26 = vld [vmem:[%s493_s1 + $0x60] sm:$0xff] }
   0x7   :  { %254 = vmatprep.mubr.msk.bf16.mxu0 %vm84_vm1, %v43_v15  ;;  %v75_v22 = vpack.c.bf16 %v55_v21, %v54_v20  ;;  %v76_v25 = vpack.c.bf16 %v57_v24, %v56_v23  ;;  %v59_v27 = vld [vmem:[%s493_s1 + $0x68] sm:$0xff]  ;;  %v60_v29 = vld [vmem:[%s493_s1 + $0x70] sm:$0xff]  ;;  %v61_v30 = vld [vmem:[%s493_s1 + $0x78] sm:$0xff] }
   0x8   :  { %98 = vmatpush1.bf16.msra.mxu0 %v72_v7  ;;  %273 = vmatpush1.bf16.msra.mxu1 %v72_v7  ;;  %v77_v28 = vpack.c.bf16 %v59_v27, %v58_v26  ;;  %v78_v31 = vpack.c.bf16 %v61_v30, %v60_v29  ;;  %v62_v32 = vld [vmem:[%s493_s1 + $0x80] sm:$0xff]  ;;  %v63_v33 = vld [vmem:[%s493_s1 + $0x88] sm:$0xff]  ;;  %v64_v35 = vld [vmem:[%s493_s1 + $0x90] sm:$0xff] }
   0x9   :  { %99 = vmatprep.subr.bf16.mxu0 %v295_v0  ;;  %261 = vmatprep.subr.bf16.mxu1 %v295_v0  ;;  %v79_v34 = vpack.c.bf16 %v63_v33, %v62_v32  ;;  %v65_v36 = vld [vmem:[%s493_s1 + $0x98] sm:$0xff]  ;;  %v66_v38 = vld [vmem:[%s493_s1 + $0xa0] sm:$0xff]  ;;  %v67_v39 = vld [vmem:[%s493_s1 + $0xa8] sm:$0xff] }
   0xa   :  { %255 = vmatprep.mubr.msk.bf16.mxu1 %vm84_vm1, %v45_v18  ;;  %v80_v37 = vpack.c.bf16 %v65_v36, %v64_v35  ;;  %v81_v40 = vpack.c.bf16 %v67_v39, %v66_v38  ;;  %v68_v41 = vld [vmem:[%s493_s1 + $0xb0] sm:$0xff]  ;;  %v69_v42 = vld [vmem:[%s493_s1 + $0xb8] sm:$0xff]  ;;  %v70_v43 = vld [vmem:[%s493_s1 + $0xc0] sm:$0xf] }
   0xb   :  { %v82_v44 = vpack.c.bf16 %v69_v42, %v68_v41  ;;  %v83_v45 = vpack.c.bf16 %v70_v43, %v70_v43  ;;  %v30_v46 = vld [vmem:[%s494_s0] sm:$0xff]  ;;  %v32_v47 = vld [vmem:[%s494_s0 + $0x10] sm:$0xff]  ;;  %v39_v57 = vld [vmem:[#allocation2 + $0x8] sm:$0xff] }
   0xc   :  { %100 = vmatpush1.bf16.msra.mxu0 %v73_v10  ;;  %274 = vmatpush1.bf16.msra.mxu1 %v73_v10  ;;  %v34_v48 = vld [vmem:[%s494_s0 + $0x20] sm:$0xff]  ;;  %v36_v49 = vld [vmem:[%s494_s0 + $0x30] sm:$0xff]  ;;  %v42_v51 = vpack.c.bf16 %v32_v47, %v30_v46  ;;  %v41_v58 = vld [vmem:[#allocation2 + $0x18] sm:$0xff] }
   0xd   :  { %101 = vmatprep.subr.bf16.mxu0 %v295_v0  ;;  %262 = vmatprep.subr.bf16.mxu1 %v295_v0  ;;  %v93_v50 = vsel %vm91_vm2, %v83_v45, 0  ;;  %v44_v52 = vpack.c.bf16 %v36_v49, %v34_v48  ;;  %v38_v53 = vld [vmem:[#allocation2] sm:$0xff]  ;;  %v40_v54 = vld [vmem:[#allocation2 + $0x10] sm:$0xff] }
   0xe   :  { %v256_v5 = vld [vmem:[%s495_s2] ss:$0 sm:$0xff] }
  0x10   :  { %102 = vmatpush1.bf16.msra.mxu0 %v74_v19  ;;  %275 = vmatpush1.bf16.msra.mxu1 %v74_v19 }
  0x11   :  { %103 = vmatprep.subr.bf16.mxu0 %v295_v0  ;;  %263 = vmatprep.subr.bf16.mxu1 %v295_v0 }
  0x14   :  { %104 = vmatpush1.bf16.msra.mxu0 %v75_v22  ;;  %276 = vmatpush1.bf16.msra.mxu1 %v75_v22 }
  0x15   :  { %105 = vmatprep.subr.bf16.mxu0 %v295_v0  ;;  %264 = vmatprep.subr.bf16.mxu1 %v295_v0 }
  0x18   :  { %106 = vmatpush1.bf16.msra.mxu0 %v76_v25  ;;  %277 = vmatpush1.bf16.msra.mxu1 %v76_v25 }
  0x19   :  { %107 = vmatprep.subr.bf16.mxu0 %v295_v0  ;;  %265 = vmatprep.subr.bf16.mxu1 %v295_v0 }
  0x1c   :  { %108 = vmatpush1.bf16.msra.mxu0 %v77_v28  ;;  %278 = vmatpush1.bf16.msra.mxu1 %v77_v28 }
  0x1d   :  { %109 = vmatprep.subr.bf16.mxu0 %v295_v0  ;;  %266 = vmatprep.subr.bf16.mxu1 %v295_v0 }
  0x20   :  { %110 = vmatpush1.bf16.msra.mxu0 %v78_v31  ;;  %279 = vmatpush1.bf16.msra.mxu1 %v78_v31 }
  0x21   :  { %111 = vmatprep.subr.bf16.mxu0 %v295_v0  ;;  %267 = vmatprep.subr.bf16.mxu1 %v295_v0 }
  0x24   :  { %112 = vmatpush1.bf16.msra.mxu0 %v79_v34  ;;  %280 = vmatpush1.bf16.msra.mxu1 %v79_v34 }
  0x25   :  { %113 = vmatprep.subr.bf16.mxu0 %v295_v0  ;;  %268 = vmatprep.subr.bf16.mxu1 %v295_v0 }
  0x28   :  { %114 = vmatpush1.bf16.msra.mxu0 %v80_v37  ;;  %281 = vmatpush1.bf16.msra.mxu1 %v80_v37 }
  0x29   :  { %115 = vmatprep.subr.bf16.mxu0 %v295_v0  ;;  %269 = vmatprep.subr.bf16.mxu1 %v295_v0 }
  0x2c   :  { %116 = vmatpush1.bf16.msra.mxu0 %v81_v40  ;;  %282 = vmatpush1.bf16.msra.mxu1 %v81_v40 }
  0x2d   :  { %117 = vmatprep.subr.bf16.mxu0 %v295_v0  ;;  %270 = vmatprep.subr.bf16.mxu1 %v295_v0 }
  0x30   :  { %118 = vmatpush1.bf16.msra.mxu0 %v82_v44  ;;  %283 = vmatpush1.bf16.msra.mxu1 %v82_v44 }
  0x31   :  { %119 = vmatprep.subr.bf16.mxu0 %v295_v0  ;;  %271 = vmatprep.subr.bf16.mxu1 %v295_v0 }
  0x34   :  { %120 = vmatpush1.bf16.msra.mxu0 %v93_v50  ;;  %284 = vmatpush1.bf16.msra.mxu1 %v93_v50 }
  0x37   :  { %128 = vmatmul.mubr.bf16.vlgmr.msra.gmra.mrb[0].mxu0 %v42_v51  ;;  %136 = vmatmul.mubr.bf16.vlgmr.msra.gmra.mrb[0].mxu1 %v44_v52  ;;  %v257_v51 = vld [vmem:[%s496_s3] ss:$0 sm:$0xff] }
 0x10a   :  { %v129_v55 = vpop.f32.mrb[0].mxu0  ;;  %v137_v56 = vpop.f32.mrb[0].mxu1 }
 0x10b   :  { %v144_v59 = vadd.f32 %v129_v55, %v38_v53  ;;  %v146_v60 = vadd.f32 %v137_v56, %v40_v54  ;;  %v131_v61 = vpop.f32.mrb[1].mxu0  ;;  %v139_v62 = vpop.f32.mrb[1].mxu1  ;;  %v258_v53 = vld [vmem:[%s497_s4] ss:$0 sm:$0xff] }
 0x10c   :  { %v132_v63 = vpop.f32.mrb[2].mxu0  ;;  %v140_v1 = vpop.f32.mrb[2].mxu1 }
 0x10d   :  { %149 = vst.msk [vmem:[#allocation2] sm:$0xff] %vm25_vm0, %v144_v59  ;;  %151 = vst.msk [vmem:[#allocation2 + $0x10] sm:$0xff] %vm25_vm0, %v146_v60  ;;  %v145_v0 = vadd.f32 %v132_v63, %v39_v57  ;;  %v134_v2 = vpop.f32.mrb[3].mxu0  ;;  %v147_v3 = vadd.f32 %v140_v1, %v41_v58  ;;  %v142_v4 = vpop.f32.mrb[3].mxu1 }
 0x10f   :  { %150 = vst.msk [vmem:[#allocation2 + $0x8] sm:$0xff] %vm25_vm0, %v145_v0  ;;  %152 = vst.msk [vmem:[#allocation2 + $0x18] sm:$0xff] %vm25_vm0, %v147_v3 }
 0x114   :  { %v158_v6 = vld [vmem:[#allocation2 + $0x10] sm:$0xff]  ;;  %v156_v7 = vld [vmem:[#allocation2] sm:$0xff] }
 0x115   :  { %v169_v8 = vadd.f32 %v256_v5, %v158_v6  ;;  %v167_v9 = vadd.f32 %v256_v5, %v156_v7 }
 0x116   :  { %v159_v10 = vld [vmem:[#allocation2 + $0x18] sm:$0xff]  ;;  %v157_v11 = vld [vmem:[#allocation2 + $0x8] sm:$0xff] }
 0x117   :  { %v177_v12 = vsel %vm25_vm0, %v169_v8, 0.0  ;;  %v171_v13 = vsel %vm25_vm0, %v167_v9, 0.0  ;;  %v170_v14 = vadd.f32 %v256_v5, %v159_v10  ;;  %v168_v15 = vadd.f32 %v256_v5, %v157_v11 }
 0x118   :  { %178 = vadd.xlane.f32.xlu1 %v177_v12  ;;  %172 = vadd.xlane.f32.xlu0 %v171_v13 }
 0x119   :  { %v180_v16 = vsel %vm25_vm0, %v170_v14, 0.0  ;;  %v174_v17 = vsel %vm25_vm0, %v168_v15, 0.0 }
 0x11c   :  { %181 = vadd.xlane.f32.xlu1 %v180_v16  ;;  %175 = vadd.xlane.f32.xlu0 %v174_v17 }
 0x1a5   :  { %v179_v18 = vpop.xlane.xlu1 %178  ;;  %v173_v19 = vpop.xlane.xlu0 %172 }
 0x1a6   :  { %v186_v20 = vmul.f32 0.03125, %v179_v18  ;;  %v184_v21 = vmul.f32 0.03125, %v173_v19 }
 0x1a8   :  { %v190_v22 = vsub.f32 %v169_v8, %v186_v20  ;;  %v188_v23 = vsub.f32 %v167_v9, %v184_v21 }
 0x1a9   :  { %v182_v24 = vpop.xlane.xlu1 %181  ;;  %v176_v25 = vpop.xlane.xlu0 %175 }
 0x1aa   :  { %v187_v26 = vmul.f32 0.03125, %v182_v24  ;;  %v185_v27 = vmul.f32 0.03125, %v176_v25  ;;  %v192_v28 = vmul.f32 %v188_v23, %v188_v23  ;;  %v194_v32 = vmul.f32 %v190_v22, %v190_v22 }
 0x1ac   :  { %v191_v29 = vsub.f32 %v170_v14, %v187_v26  ;;  %v189_v30 = vsub.f32 %v168_v15, %v185_v27  ;;  %v196_v31 = vsel %vm25_vm0, %v192_v28, 0.0  ;;  %v202_v34 = vsel %vm25_vm0, %v194_v32, 0.0 }
 0x1ad   :  { %197 = vadd.xlane.f32.xlu0 %v196_v31 }
 0x1ae   :  { %v193_v33 = vmul.f32 %v189_v30, %v189_v30  ;;  %v195_v36 = vmul.f32 %v191_v29, %v191_v29 }
 0x1b0   :  { %v199_v35 = vsel %vm25_vm0, %v193_v33, 0.0  ;;  %v205_v37 = vsel %vm25_vm0, %v195_v36, 0.0 }
 0x1b1   :  { %203 = vadd.xlane.f32.xlu0 %v202_v34  ;;  %200 = vadd.xlane.f32.xlu1 %v199_v35 }
 0x1b5   :  { %206 = vadd.xlane.f32.xlu1 %v205_v37 }
 0x23a   :  { %v198_v38 = vpop.xlane.xlu0 %197 }
 0x23b   :  { %v208_v39 = vmul.f32 0.03125, %v198_v38 }
 0x23d   :  { %v212_v40 = vadd.f32 1e-06, %v208_v39 }
 0x23e   :  { %v201_v41 = vpop.xlane.xlu1 %200  ;;  %v204_v42 = vpop.xlane.xlu0 %203 }
 0x23f   :  { %287 = vrsqrt.f32 %v212_v40  ;;  %v209_v43 = vmul.f32 0.03125, %v201_v41  ;;  %v210_v44 = vmul.f32 0.03125, %v204_v42 }
 0x241   :  { %v213_v45 = vadd.f32 1e-06, %v209_v43  ;;  %v214_v46 = vadd.f32 1e-06, %v210_v44 }
 0x242   :  { %v207_v47 = vpop.xlane.xlu1 %206 }
 0x243   :  { %289 = vrsqrt.f32 %v213_v45  ;;  %v211_v48 = vmul.f32 0.03125, %v207_v47 }
 0x244   :  { %291 = vrsqrt.f32 %v214_v46 }
 0x245   :  { %v215_v49 = vadd.f32 1e-06, %v211_v48 }
 0x247   :  { %293 = vrsqrt.f32 %v215_v49 }
 0x249   :  { %v288_v50 = vpop.eup %287 }
 0x24a   :  { %v220_v52 = vmul.f32 %v288_v50, %v188_v23 }
 0x24c   :  { %v231_v54 = vmul.f32 %v257_v51, %v220_v52 }
 0x24d   :  { %v290_v55 = vpop.eup %289 }
 0x24e   :  { %v292_v56 = vpop.eup %291  ;;  %v242_v57 = vadd.f32 %v258_v53, %v231_v54  ;;  %v221_v58 = vmul.f32 %v290_v55, %v189_v30 }
 0x24f   :  { %v222_v59 = vmul.f32 %v292_v56, %v190_v22 }
 0x250   :  { %246 = vst.msk [vmem:[%s498_s5] sm:$0xff] %vm25_vm0, %v242_v57  ;;  %v232_v60 = vmul.f32 %v257_v51, %v221_v58 }
 0x251   :  { %v294_v61 = vpop.eup %293  ;;  %v233_v62 = vmul.f32 %v257_v51, %v222_v59 }
 0x252   :  { %v243_v63 = vadd.f32 %v258_v53, %v232_v60  ;;  %v223_v1 = vmul.f32 %v294_v61, %v191_v29 }
 0x253   :  { %v244_v0 = vadd.f32 %v258_v53, %v233_v62 }
 0x254   :  { %247 = vst.msk [vmem:[%s498_s5 + $0x8] sm:$0xff] %vm25_vm0, %v243_v63  ;;  %v234_v2 = vmul.f32 %v257_v51, %v223_v1 }
 0x255   :  { %248 = vst.msk [vmem:[%s498_s5 + $0x10] sm:$0xff] %vm25_vm0, %v244_v0 }
 0x256   :  { %v245_v3 = vadd.f32 %v258_v53, %v234_v2 }
 0x258   :  { %249 = vst.msk [vmem:[%s498_s5 + $0x18] sm:$0xff] %vm25_vm0, %v245_v3 }

// kernel: fwd.35
= control target key start
LH: loop header
LB: loop body
LE: loop exit
PB: predicated region body
PF: predicated region fallthrough
CT: control target
= control target key end

     0   :  { %vm18_vm0 = vcmask 261120   ;;  %s174_s0 = inlined_call_operand.vmem [shape: f32[32,32], index: 0, kind: input, shape index: {}]   ;;  %s175_s1 = inlined_call_operand.vmem [shape: f32[1,32], index: 1, kind: input, shape index: {}]   ;;  %s176_s2 = inlined_call_operand.vmem [shape: f32[1,32], index: 2, kind: input, shape index: {}]   ;;  %s177_s3 = inlined_call_operand.vmem [shape: f32[32,32], index: 3, kind: output, shape index: {}]  }
   0x1   :  { %v14_v0 = vld [vmem:[%s174_s0] sm:$0xff]  ;;  %v16_v1 = vld [vmem:[%s174_s0 + $0x10] sm:$0xff]  ;;  %v15_v2 = vld [vmem:[%s174_s0 + $0x8] sm:$0xff] }
   0x2   :  { %v19_v3 = vsel %vm18_vm0, %v14_v0, 0.0  ;;  %v25_v4 = vsel %vm18_vm0, %v16_v1, 0.0  ;;  %v17_v5 = vld [vmem:[%s174_s0 + $0x18] sm:$0xff]  ;;  %v22_v6 = vsel %vm18_vm0, %v15_v2, 0.0  ;;  %v102_v41 = vld [vmem:[%s175_s1] ss:$0 sm:$0xff] }
   0x3   :  { %20 = vadd.xlane.f32.xlu0 %v19_v3  ;;  %26 = vadd.xlane.f32.xlu1 %v25_v4  ;;  %v28_v7 = vsel %vm18_vm0, %v17_v5, 0.0  ;;  %v103_v43 = vld [vmem:[%s176_s2] ss:$0 sm:$0xff] }
   0x7   :  { %23 = vadd.xlane.f32.xlu0 %v22_v6  ;;  %29 = vadd.xlane.f32.xlu1 %v28_v7 }
  0x90   :  { %v21_v8 = vpop.xlane.xlu0 %20  ;;  %v27_v9 = vpop.xlane.xlu1 %26 }
  0x91   :  { %v32_v10 = vmul.f32 0.03125, %v21_v8  ;;  %v34_v11 = vmul.f32 0.03125, %v27_v9 }
  0x93   :  { %v36_v12 = vsub.f32 %v14_v0, %v32_v10  ;;  %v38_v13 = vsub.f32 %v16_v1, %v34_v11 }
  0x94   :  { %v24_v14 = vpop.xlane.xlu0 %23  ;;  %v30_v15 = vpop.xlane.xlu1 %29 }
  0x95   :  { %v33_v16 = vmul.f32 0.03125, %v24_v14  ;;  %v35_v17 = vmul.f32 0.03125, %v30_v15  ;;  %v40_v18 = vmul.f32 %v36_v12, %v36_v12  ;;  %v42_v19 = vmul.f32 %v38_v13, %v38_v13 }
  0x97   :  { %v37_v20 = vsub.f32 %v15_v2, %v33_v16  ;;  %v39_v21 = vsub.f32 %v17_v5, %v35_v17  ;;  %v44_v22 = vsel %vm18_vm0, %v40_v18, 0.0  ;;  %v50_v23 = vsel %vm18_vm0, %v42_v19, 0.0 }
  0x98   :  { %45 = vadd.xlane.f32.xlu0 %v44_v22 }
  0x99   :  { %v41_v24 = vmul.f32 %v37_v20, %v37_v20  ;;  %v43_v25 = vmul.f32 %v39_v21, %v39_v21 }
  0x9b   :  { %v47_v26 = vsel %vm18_vm0, %v41_v24, 0.0  ;;  %v53_v27 = vsel %vm18_vm0, %v43_v25, 0.0 }
  0x9c   :  { %51 = vadd.xlane.f32.xlu0 %v50_v23  ;;  %48 = vadd.xlane.f32.xlu1 %v47_v26 }
  0xa0   :  { %54 = vadd.xlane.f32.xlu1 %v53_v27 }
 0x125   :  { %v46_v28 = vpop.xlane.xlu0 %45 }
 0x126   :  { %v56_v29 = vmul.f32 0.03125, %v46_v28 }
 0x128   :  { %v60_v30 = vadd.f32 1e-06, %v56_v29 }
 0x129   :  { %v49_v31 = vpop.xlane.xlu1 %48  ;;  %v52_v32 = vpop.xlane.xlu0 %51 }
 0x12a   :  { %104 = vrsqrt.f32 %v60_v30  ;;  %v57_v33 = vmul.f32 0.03125, %v49_v31  ;;  %v58_v34 = vmul.f32 0.03125, %v52_v32 }
 0x12c   :  { %v61_v35 = vadd.f32 1e-06, %v57_v33  ;;  %v62_v36 = vadd.f32 1e-06, %v58_v34 }
 0x12d   :  { %v55_v37 = vpop.xlane.xlu1 %54 }
 0x12e   :  { %106 = vrsqrt.f32 %v61_v35  ;;  %v59_v38 = vmul.f32 0.03125, %v55_v37 }
 0x12f   :  { %108 = vrsqrt.f32 %v62_v36 }
 0x130   :  { %v63_v39 = vadd.f32 1e-06, %v59_v38 }
 0x132   :  { %110 = vrsqrt.f32 %v63_v39 }
 0x134   :  { %v105_v40 = vpop.eup %104 }
 0x135   :  { %v68_v42 = vmul.f32 %v105_v40, %v36_v12 }
 0x137   :  { %v79_v44 = vmul.f32 %v102_v41, %v68_v42 }
 0x138   :  { %v107_v45 = vpop.eup %106 }
 0x139   :  { %v109_v46 = vpop.eup %108  ;;  %v90_v47 = vadd.f32 %v103_v43, %v79_v44  ;;  %v69_v48 = vmul.f32 %v107_v45, %v37_v20 }
 0x13a   :  { %v70_v49 = vmul.f32 %v109_v46, %v38_v13 }
 0x13b   :  { %94 = vst.msk [vmem:[%s177_s3] sm:$0xff] %vm18_vm0, %v90_v47  ;;  %v80_v50 = vmul.f32 %v102_v41, %v69_v48 }
 0x13c   :  { %v111_v51 = vpop.eup %110  ;;  %v81_v52 = vmul.f32 %v102_v41, %v70_v49 }
 0x13d   :  { %v91_v53 = vadd.f32 %v103_v43, %v80_v50  ;;  %v71_v54 = vmul.f32 %v111_v51, %v39_v21 }
 0x13e   :  { %v92_v55 = vadd.f32 %v103_v43, %v81_v52 }
 0x13f   :  { %95 = vst.msk [vmem:[%s177_s3 + $0x8] sm:$0xff] %vm18_vm0, %v91_v53  ;;  %v82_v56 = vmul.f32 %v102_v41, %v71_v54 }
 0x140   :  { %96 = vst.msk [vmem:[%s177_s3 + $0x10] sm:$0xff] %vm18_vm0, %v92_v55 }
 0x141   :  { %v93_v57 = vadd.f32 %v103_v43, %v82_v56 }
 0x143   :  { %97 = vst.msk [vmem:[%s177_s3 + $0x18] sm:$0xff] %vm18_vm0, %v93_v57 }

// kernel: fwd.37
= control target key start
LH: loop header
LB: loop body
LE: loop exit
PB: predicated region body
PF: predicated region fallthrough
CT: control target
= control target key end

     0   :  { %vm25_vm0 = vcmask 261120   ;;  %v180_v0 = vmov 0.0   ;;  %vm181_vm1 = vmmov 0   ;;  %s280_s1 = inlined_call_operand.vmem [shape: f32[128,32], index: 1, kind: input, shape index: {}]   ;;  %s281_s0 = inlined_call_operand.vmem [shape: f32[8,128], index: 0, kind: input, shape index: {}]   ;;  %s282_s2 = inlined_call_operand.vmem [shape: f32[1,32], index: 2, kind: input, shape index: {}]   ;;  %s283_s3 = inlined_call_operand.vmem [shape: f32[1,32], index: 3, kind: input, shape index: {}]   ;;  %s284_s4 = inlined_call_operand.vmem [shape: f32[1,32], index: 4, kind: input, shape index: {}]   ;;  %s285_s5 = inlined_call_operand.vmem [shape: f32[8,32], index: 5, kind: output, shape index: {}]  }
   0x1   :  { %156 = vmatprep.subr.bf16.mxu0 %v180_v0  ;;  %v30_v1 = vld [vmem:[%s280_s1] sm:$0xff]  ;;  %v31_v2 = vld [vmem:[%s280_s1 + $0x8] sm:$0xff]  ;;  %v32_v3 = vld [vmem:[%s280_s1 + $0x10] sm:$0xff]  ;;  %172 = vmatprep.mubr.msk.bf16.mxu0 %vm181_vm1, %v180_v0  ;;  %26 = vst.msk [vmem:[#allocation2] sm:$0xff] %vm25_vm0, %v180_v0 }
   0x2   :  { %v46_v4 = vpack.c.bf16 %v31_v2, %v30_v1  ;;  %v33_v5 = vld [vmem:[%s280_s1 + $0x18] sm:$0xff]  ;;  %v34_v7 = vld [vmem:[%s280_s1 + $0x20] sm:$0xff]  ;;  %v35_v8 = vld [vmem:[%s280_s1 + $0x28] sm:$0xff] }
   0x3   :  { %v47_v6 = vpack.c.bf16 %v33_v5, %v32_v3  ;;  %v48_v9 = vpack.c.bf16 %v35_v8, %v34_v7  ;;  %v36_v10 = vld [vmem:[%s280_s1 + $0x30] sm:$0xff]  ;;  %v37_v11 = vld [vmem:[%s280_s1 + $0x38] sm:$0xff]  ;;  %v38_v13 = vld [vmem:[%s280_s1 + $0x40] sm:$0xff] }
   0x4   :  { %157 = vmatpush3.bf16.msra.mxu0 %v46_v4  ;;  %v49_v12 = vpack.c.bf16 %v37_v11, %v36_v10  ;;  %v39_v14 = vld [vmem:[%s280_s1 + $0x48] sm:$0xff]  ;;  %v40_v16 = vld [vmem:[%s280_s1 + $0x50] sm:$0xff]  ;;  %v41_v17 = vld [vmem:[%s280_s1 + $0x58] sm:$0xff] }
   0x5   :  { %158 = vmatprep.subr.bf16.mxu0 %v180_v0  ;;  %v50_v15 = vpack.c.bf16 %v39_v14, %v38_v13  ;;  %v51_v18 = vpack.c.bf16 %v41_v17, %v40_v16  ;;  %v42_v19 = vld [vmem:[%s280_s1 + $0x60] sm:$0xff]  ;;  %v43_v20 = vld [vmem:[%s280_s1 + $0x68] sm:$0xff]  ;;  %v44_v22 = vld [vmem:[%s280_s1 + $0x70] sm:$0xff] }
   0x6   :  { %v52_v21 = vpack.c.bf16 %v43_v20, %v42_v19  ;;  %v45_v23 = vld [vmem:[%s280_s1 + $0x78] sm:$0xff]  ;;  %v27_v25 = vld [vmem:[%s281_s0] sm:$0xff] }
   0x7   :  { %v53_v24 = vpack.c.bf16 %v45_v23, %v44_v22  ;;  %v29_v26 = vpack.c.bf16 %v27_v25, %v27_v25  ;;  %v144_v33 = vld [vmem:[%s282_s2] ss:$0 sm:$0xff] }
   0x8   :  { %159 = vmatpush3.bf16.msra.mxu0 %v47_v6  ;;  %v28_v27 = vld [vmem:[#allocation2] sm:$0xff] }
   0x9   :  { %160 = vmatprep.subr.bf16.mxu0 %v180_v0  ;;  %v145_v46 = vld [vmem:[%s283_s3] ss:$0 sm:$0xff] }
   0xa   :  { %v146_v48 = vld [vmem:[%s284_s4] ss:$0 sm:$0xff] }
   0xc   :  { %161 = vmatpush3.bf16.msra.mxu0 %v48_v9 }
   0xd   :  { %162 = vmatprep.subr.bf16.mxu0 %v180_v0 }
  0x10   :  { %163 = vmatpush3.bf16.msra.mxu0 %v49_v12 }
  0x11   :  { %164 = vmatprep.subr.bf16.mxu0 %v180_v0 }
  0x14   :  { %165 = vmatpush3.bf16.msra.mxu0 %v50_v15 }
  0x15   :  { %166 = vmatprep.subr.bf16.mxu0 %v180_v0 }
  0x18   :  { %167 = vmatpush3.bf16.msra.mxu0 %v51_v18 }
  0x19   :  { %168 = vmatprep.subr.bf16.mxu0 %v180_v0 }
  0x1c   :  { %169 = vmatpush3.bf16.msra.mxu0 %v52_v21 }
  0x1d   :  { %170 = vmatprep.subr.bf16.mxu0 %v180_v0 }
  0x20   :  { %171 = vmatpush3.bf16.msra.mxu0 %v53_v24 }
  0x23   :  { %173 = vmatmul.mubr.bf16.vlgmr.msra.gmra.mrb[0].mxu0 %v29_v26 }
  0xf6   :  { %v88_v28 = vpop.f32.mrb[0].mxu0 }
  0xf7   :  { %v94_v29 = vadd.f32 %v88_v28, %v28_v27  ;;  %v174_v30 = vpop.f32.mrb[1].mxu0 }
  0xf8   :  { %v91_v31 = vpop.f32.mrb[2].mxu0 }
  0xf9   :  { %96 = vst.msk [vmem:[#allocation2] sm:$0xff] %vm25_vm0, %v94_v29  ;;  %v175_v32 = vpop.f32.mrb[3].mxu0 }
 0x100   :  { %v100_v34 = vld [vmem:[#allocation2] sm:$0xff] }
 0x101   :  { %v108_v35 = vadd.f32 %v144_v33, %v100_v34 }
 0x103   :  { %v109_v36 = vsel %vm25_vm0, %v108_v35, 0.0 }
 0x104   :  { %110 = vadd.xlane.f32.xlu0 %v109_v36 }
 0x191   :  { %v111_v37 = vpop.xlane.xlu0 %110 }
 0x192   :  { %v113_v38 = vmul.f32 0.03125, %v111_v37 }
 0x194   :  { %v114_v39 = vsub.f32 %v108_v35, %v113_v38 }
 0x196   :  { %v115_v40 = vmul.f32 %v114_v39, %v114_v39 }
 0x198   :  { %v116_v41 = vsel %vm25_vm0, %v115_v40, 0.0 }
 0x199   :  { %117 = vadd.xlane.f32.xlu0 %v116_v41 }
 0x226   :  { %v118_v42 = vpop.xlane.xlu0 %117 }
 0x227   :  { %v119_v43 = vmul.f32 0.03125, %v118_v42 }
 0x229   :  { %v120_v44 = vadd.f32 1e-06, %v119_v43 }
 0x22b   :  { %178 = vrsqrt.f32 %v120_v44 }
 0x235   :  { %v179_v45 = vpop.eup %178 }
 0x236   :  { %v122_v47 = vmul.f32 %v179_v45, %v114_v39 }
 0x238   :  { %v130_v49 = vmul.f32 %v145_v46, %v122_v47 }
 0x23a   :  { %v138_v50 = vadd.f32 %v146_v48, %v130_v49 }
 0x23c   :  { %139 = vst.msk [vmem:[%s285_s5] sm:$0xff] %vm25_vm0, %v138_v50 }

// kernel: fwd.38
= control target key start
LH: loop header
LB: loop body
LE: loop exit
PB: predicated region body
PF: predicated region fallthrough
CT: control target
= control target key end

     0   :  { %vm19_vm0 = vcmask 523264   ;;  %v109_v0 = vmov 0.0   ;;  %vm110_vm1 = vmmov 0   ;;  %vm30_vm2 = vcmask 261120   ;;  %s155_s1 = inlined_call_operand.vmem [shape: f32[32,64], index: 1, kind: input, shape index: {}]   ;;  %s156_s0 = inlined_call_operand.vmem [shape: f32[8,32], index: 0, kind: input, shape index: {}]   ;;  %s157_s2 = inlined_call_operand.vmem [shape: f32[1,64], index: 2, kind: input, shape index: {}]   ;;  %s158_s3 = inlined_call_operand.vmem [shape: f32[8,64], index: 3, kind: output, shape index: {}]  }
   0x1   :  { %20 = vst.msk [vmem:[#allocation2] sm:$0xff] %vm19_vm0, %v109_v0  ;;  %99 = vmatprep.subr.bf16.mxu0 %v109_v0  ;;  %v24_v1 = vld [vmem:[%s155_s1] sm:$0xff]  ;;  %v25_v2 = vld [vmem:[%s155_s1 + $0x8] sm:$0xff]  ;;  %v26_v3 = vld [vmem:[%s155_s1 + $0x10] sm:$0xff]  ;;  %103 = vmatprep.mubr.msk.bf16.mxu0 %vm110_vm1, %v109_v0 }
   0x2   :  { %v28_v4 = vpack.c.bf16 %v25_v2, %v24_v1  ;;  %v27_v5 = vld [vmem:[%s155_s1 + $0x18] sm:$0xff]  ;;  %v21_v7 = vld [vmem:[%s156_s0] sm:$0xff] }
   0x3   :  { %v29_v6 = vpack.c.bf16 %v27_v5, %v26_v3  ;;  %v23_v8 = vpack.c.bf16 %v21_v7, %v21_v7  ;;  %v95_v15 = vld [vmem:[%s157_s2] ss:$0 sm:$0xff] }
   0x4   :  { %100 = vmatpush3.bf16.msra.mxu0 %v28_v4 }
   0x5   :  { %101 = vmatprep.subr.bf16.mxu0 %v109_v0 }
   0x8   :  { %102 = vmatpush3.bf16.msra.mxu0 %v29_v6  ;;  %v22_v9 = vld [vmem:[#allocation2] sm:$0xff] }
   0xb   :  { %104 = vmatmul.mubr.msk.bf16.vlgmr.msra.gmra.mrb[0].mxu0 %vm30_vm2, %v23_v8 }
  0xde   :  { %v68_v10 = vpop.f32.mrb[0].mxu0 }
  0xdf   :  { %v74_v11 = vadd.f32 %v68_v10, %v22_v9  ;;  %v105_v12 = vpop.f32.mrb[1].mxu0 }
  0xe0   :  { %v71_v13 = vpop.f32.mrb[2].mxu0 }
  0xe1   :  { %76 = vst.msk [vmem:[#allocation2] sm:$0xff] %vm19_vm0, %v74_v11  ;;  %v106_v14 = vpop.f32.mrb[3].mxu0 }
  0xe8   :  { %v80_v16 = vld [vmem:[#allocation2] sm:$0xff] }
  0xe9   :  { %v88_v17 = vadd.f32 %v95_v15, %v80_v16 }
  0xeb   :  { %89 = vst.msk [vmem:[%s158_s3] sm:$0xff] %vm19_vm0, %v88_v17 }

// kernel: fwd.36
= control target key start
LH: loop header
LB: loop body
LE: loop exit
PB: predicated region body
PF: predicated region fallthrough
CT: control target
= control target key end

     0   :  { %vm19_vm0 = vcmask 261120   ;;  %v146_v3 = vmov 0.0   ;;  %s220_s1 = inlined_call_operand.vmem [shape: f32[32,32], index: 1, kind: input, shape index: {}]   ;;  %s221_s0 = inlined_call_operand.vmem [shape: f32[32,32], index: 0, kind: input, shape index: {}]   ;;  %s222_s2 = inlined_call_operand.vmem [shape: f32[1,32], index: 2, kind: input, shape index: {}]   ;;  %s223_s3 = inlined_call_operand.vmem [shape: f32[32,32], index: 3, kind: output, shape index: {}]  }
   0x1   :  { %v34_v0 = vld [vmem:[%s220_s1] sm:$0xff]  ;;  %v35_v1 = vld [vmem:[%s220_s1 + $0x8] sm:$0xff]  ;;  %v36_v2 = vld [vmem:[%s220_s1 + $0x10] sm:$0xff]  ;;  %22 = vst.msk [vmem:[#allocation2 + $0x10] sm:$0xff] %vm19_vm0, %v146_v3 }
   0x2   :  { %20 = vst.msk [vmem:[#allocation2] sm:$0xff] %vm19_vm0, %v146_v3  ;;  %21 = vst.msk [vmem:[#allocation2 + $0x8] sm:$0xff] %vm19_vm0, %v146_v3  ;;  %v38_v4 = vpack.c.bf16 %v35_v1, %v34_v0  ;;  %v37_v5 = vld [vmem:[%s220_s1 + $0x18] sm:$0xff]  ;;  %v24_v6 = vld [vmem:[%s221_s0] sm:$0xff] }
   0x3   :  { %23 = vst.msk [vmem:[#allocation2 + $0x18] sm:$0xff] %vm19_vm0, %v146_v3  ;;  %v25_v7 = vld [vmem:[%s221_s0 + $0x8] sm:$0xff]  ;;  %v39_v8 = vpack.c.bf16 %v37_v5, %v36_v2  ;;  %v26_v10 = vld [vmem:[%s221_s0 + $0x10] sm:$0xff]  ;;  %v27_v11 = vld [vmem:[%s221_s0 + $0x18] sm:$0xff] }
   0x4   :  { %v32_v9 = vpack.c.bf16 %v25_v7, %v24_v6  ;;  %137 = vmatprep.subr.bf16.mxu0 %v38_v4  ;;  %v33_v12 = vpack.c.bf16 %v27_v11, %v26_v10  ;;  %v132_v25 = vld [vmem:[%s222_s2] ss:$0 sm:$0xff] }
   0x5   :  { %138 = vmatpush3.bf16.msra.mxu0 %v38_v4 }
   0x6   :  { %141 = vmatprep.mubr.msk.bf16.mxu0 %vm19_vm0, %v32_v9  ;;  %139 = vmatprep.subr.bf16.mxu0 %v39_v8 }
   0x8   :  { %v30_v13 = vld [vmem:[#allocation2 + $0x10] sm:$0xff] }
   0x9   :  { %140 = vmatpush3.bf16.msra.mxu0 %v39_v8  ;;  %v28_v14 = vld [vmem:[#allocation2] sm:$0xff]  ;;  %v29_v19 = vld [vmem:[#allocation2 + $0x8] sm:$0xff] }
   0xa   :  { %v31_v16 = vld [vmem:[#allocation2 + $0x18] sm:$0xff] }
   0xc   :  { %142 = vmatmul.mubr.msk.bf16.vlgmr.msra.gmra.mrb[0].mxu0 %vm19_vm0, %v33_v12 }
  0xdf   :  { %v143_v15 = vpop.f32.mrb[0].mxu0 }
  0xe0   :  { %v98_v17 = vadd.f32 %v143_v15, %v30_v13  ;;  %v81_v18 = vpop.f32.mrb[1].mxu0 }
  0xe1   :  { %v96_v20 = vadd.f32 %v81_v18, %v28_v14  ;;  %v144_v21 = vpop.f32.mrb[2].mxu0 }
  0xe2   :  { %102 = vst.msk [vmem:[#allocation2 + $0x10] sm:$0xff] %vm19_vm0, %v98_v17  ;;  %v99_v22 = vadd.f32 %v144_v21, %v31_v16  ;;  %v84_v23 = vpop.f32.mrb[3].mxu0 }
  0xe3   :  { %100 = vst.msk [vmem:[#allocation2] sm:$0xff] %vm19_vm0, %v96_v20  ;;  %v97_v24 = vadd.f32 %v84_v23, %v29_v19 }
  0xe4   :  { %103 = vst.msk [vmem:[#allocation2 + $0x18] sm:$0xff] %vm19_vm0, %v99_v22 }
  0xe5   :  { %101 = vst.msk [vmem:[#allocation2 + $0x8] sm:$0xff] %vm19_vm0, %v97_v24 }
  0xe9   :  { %v109_v26 = vld [vmem:[#allocation2 + $0x10] sm:$0xff] }
  0xea   :  { %v120_v27 = vadd.f32 %v132_v25, %v109_v26  ;;  %v107_v28 = vld [vmem:[#allocation2] sm:$0xff] }
  0xeb   :  { %v118_v29 = vadd.f32 %v132_v25, %v107_v28  ;;  %v110_v30 = vld [vmem:[#allocation2 + $0x18] sm:$0xff] }
  0xec   :  { %124 = vst.msk [vmem:[%s223_s3 + $0x10] sm:$0xff] %vm19_vm0, %v120_v27  ;;  %v121_v31 = vadd.f32 %v132_v25, %v110_v30  ;;  %v108_v32 = vld [vmem:[#allocation2 + $0x8] sm:$0xff] }
  0xed   :  { %122 = vst.msk [vmem:[%s223_s3] sm:$0xff] %vm19_vm0, %v118_v29  ;;  %v119_v33 = vadd.f32 %v132_v25, %v108_v32 }
  0xee   :  { %125 = vst.msk [vmem:[%s223_s3 + $0x18] sm:$0xff] %vm19_vm0, %v121_v31 }
  0xef   :  { %123 = vst.msk [vmem:[%s223_s3 + $0x8] sm:$0xff] %vm19_vm0, %v119_v33 }

// kernel: fwd.41
= control target key start
LH: loop header
LB: loop body
LE: loop exit
PB: predicated region body
PF: predicated region fallthrough
CT: control target
= control target key end

     0   :  { %vm33_vm0 = vcmask 261120   ;;  %s320_s0 = inlined_call_operand.vmem [shape: f32[32,32], index: 0, kind: input, shape index: {}]   ;;  %s321_s1 = inlined_call_operand.vmem [shape: f32[32,128], index: 1, kind: input, shape index: {}]   ;;  %s322_s3 = inlined_call_operand.vmem [shape: f32[1,32], index: 3, kind: input, shape index: {}]   ;;  %s323_s4 = inlined_call_operand.vmem [shape: f32[1,32], index: 4, kind: input, shape index: {}]   ;;  %s324_s2 = inlined_call_operand.vmem [shape: f32[1,128], index: 2, kind: input, shape index: {}]   ;;  %s325_s5 = inlined_call_operand.vmem [shape: f32[32,128], index: 5, kind: output, shape index: {}]  }
   0x1   :  { %v29_v0 = vld [vmem:[%s320_s0] sm:$0xff]  ;;  %v31_v1 = vld [vmem:[%s320_s0 + $0x10] sm:$0xff]  ;;  %v30_v2 = vld [vmem:[%s320_s0 + $0x8] sm:$0xff] }
   0x2   :  { %v34_v3 = vsel %vm33_vm0, %v29_v0, 0.0  ;;  %v40_v4 = vsel %vm33_vm0, %v31_v1, 0.0  ;;  %v32_v5 = vld [vmem:[%s320_s0 + $0x18] sm:$0xff]  ;;  %v37_v6 = vsel %vm33_vm0, %v30_v2, 0.0  ;;  %v115_v28 = vld [vmem:[%s321_s1] sm:$0xff]  ;;  %v116_v29 = vld [vmem:[%s321_s1 + $0x8] sm:$0xff] }
   0x3   :  { %35 = vadd.xlane.f32.xlu0 %v34_v3  ;;  %41 = vadd.xlane.f32.xlu1 %v40_v4  ;;  %v43_v7 = vsel %vm33_vm0, %v32_v5, 0.0  ;;  %v119_v30 = vpack.c.bf16 %v116_v29, %v115_v28  ;;  %v117_v31 = vld [vmem:[%s321_s1 + $0x10] sm:$0xff]  ;;  %v118_v32 = vld [vmem:[%s321_s1 + $0x18] sm:$0xff]  ;;  %v210_v48 = vld [vmem:[%s322_s3] ss:$0 sm:$0xff] }
   0x4   :  { %v120_v33 = vpack.c.bf16 %v118_v32, %v117_v31  ;;  %v211_v54 = vld [vmem:[%s323_s4] ss:$0 sm:$0xff] }
   0x5   :  { %219 = vmatprep.subr.bf16.mxu0 %v119_v30 }
   0x6   :  { %220 = vmatpush3.bf16.msra.mxu0 %v119_v30 }
   0x7   :  { %38 = vadd.xlane.f32.xlu0 %v37_v6  ;;  %44 = vadd.xlane.f32.xlu1 %v43_v7 }
   0x8   :  { %221 = vmatprep.subr.bf16.mxu0 %v120_v33 }
   0xa   :  { %222 = vmatpush3.bf16.msra.mxu0 %v120_v33 }
  0x90   :  { %v36_v8 = vpop.xlane.xlu0 %35  ;;  %v42_v9 = vpop.xlane.xlu1 %41 }
  0x91   :  { %v47_v10 = vmul.f32 0.03125, %v36_v8  ;;  %v49_v11 = vmul.f32 0.03125, %v42_v9 }
  0x93   :  { %v51_v12 = vsub.f32 %v29_v0, %v47_v10  ;;  %v53_v13 = vsub.f32 %v31_v1, %v49_v11 }
  0x94   :  { %v39_v14 = vpop.xlane.xlu0 %38  ;;  %v45_v15 = vpop.xlane.xlu1 %44 }
  0x95   :  { %v48_v16 = vmul.f32 0.03125, %v39_v14  ;;  %v50_v17 = vmul.f32 0.03125, %v45_v15  ;;  %v55_v18 = vmul.f32 %v51_v12, %v51_v12  ;;  %v57_v19 = vmul.f32 %v53_v13, %v53_v13 }
  0x97   :  { %v52_v20 = vsub.f32 %v30_v2, %v48_v16  ;;  %v54_v21 = vsub.f32 %v32_v5, %v50_v17  ;;  %v59_v22 = vsel %vm33_vm0, %v55_v18, 0.0  ;;  %v65_v23 = vsel %vm33_vm0, %v57_v19, 0.0  ;;  %v214_v2 = vld [vmem:[%s324_s2] ss:$0 sm:$0xff] }
  0x98   :  { %60 = vadd.xlane.f32.xlu0 %v59_v22 }
  0x99   :  { %v56_v24 = vmul.f32 %v52_v20, %v52_v20  ;;  %v58_v25 = vmul.f32 %v54_v21, %v54_v21 }
  0x9b   :  { %v62_v26 = vsel %vm33_vm0, %v56_v24, 0.0  ;;  %v68_v27 = vsel %vm33_vm0, %v58_v25, 0.0 }
  0x9c   :  { %66 = vadd.xlane.f32.xlu0 %v65_v23  ;;  %63 = vadd.xlane.f32.xlu1 %v62_v26 }
  0xa0   :  { %69 = vadd.xlane.f32.xlu1 %v68_v27 }
 0x125   :  { %v61_v34 = vpop.xlane.xlu0 %60 }
 0x126   :  { %v71_v35 = vmul.f32 0.03125, %v61_v34 }
 0x128   :  { %v75_v36 = vadd.f32 1e-06, %v71_v35 }
 0x129   :  { %v64_v37 = vpop.xlane.xlu1 %63  ;;  %v67_v38 = vpop.xlane.xlu0 %66 }
 0x12a   :  { %227 = vrsqrt.f32 %v75_v36  ;;  %v72_v39 = vmul.f32 0.03125, %v64_v37  ;;  %v73_v40 = vmul.f32 0.03125, %v67_v38 }
 0x12c   :  { %v76_v41 = vadd.f32 1e-06, %v72_v39  ;;  %v77_v42 = vadd.f32 1e-06, %v73_v40 }
 0x12d   :  { %v70_v43 = vpop.xlane.xlu1 %69 }
 0x12e   :  { %229 = vrsqrt.f32 %v76_v41  ;;  %v74_v44 = vmul.f32 0.03125, %v70_v43 }
 0x12f   :  { %231 = vrsqrt.f32 %v77_v42 }
 0x130   :  { %v78_v45 = vadd.f32 1e-06, %v74_v44 }
 0x132   :  { %233 = vrsqrt.f32 %v78_v45 }
 0x134   :  { %v228_v46 = vpop.eup %227 }
 0x135   :  { %v83_v47 = vmul.f32 %v228_v46, %v51_v12 }
 0x137   :  { %v94_v52 = vmul.f32 %v210_v48, %v83_v47 }
 0x138   :  { %v230_v49 = vpop.eup %229 }
 0x139   :  { %v232_v50 = vpop.eup %231  ;;  %v84_v51 = vmul.f32 %v230_v49, %v52_v20  ;;  %v105_v58 = vadd.f32 %v211_v54, %v94_v52 }
 0x13a   :  { %v85_v53 = vmul.f32 %v232_v50, %v53_v13 }
 0x13b   :  { %v95_v55 = vmul.f32 %v210_v48, %v84_v51 }
 0x13c   :  { %v234_v56 = vpop.eup %233  ;;  %v96_v60 = vmul.f32 %v210_v48, %v85_v53 }
 0x13d   :  { %v86_v57 = vmul.f32 %v234_v56, %v54_v21  ;;  %v106_v59 = vadd.f32 %v211_v54, %v95_v55 }
 0x13e   :  { %v107_v63 = vadd.f32 %v211_v54, %v96_v60 }
 0x13f   :  { %v113_v61 = vpack.c.bf16 %v106_v59, %v105_v58  ;;  %v97_v62 = vmul.f32 %v210_v48, %v86_v57 }
 0x141   :  { %223 = vmatprep.mubr.msk.bf16.mxu0 %vm33_vm0, %v113_v61  ;;  %v108_v0 = vadd.f32 %v211_v54, %v97_v62 }
 0x143   :  { %v114_v1 = vpack.c.bf16 %v108_v0, %v107_v63 }
 0x145   :  { %224 = vmatmul.mubr.msk.bf16.vlgmr.msra.gmra.mrb[0].mxu0 %vm33_vm0, %v114_v1 }
 0x218   :  { %v225_v3 = vpop.f32.mrb[0].mxu0 }
 0x219   :  { %v200_v4 = vadd.f32 %v225_v3, %v214_v2  ;;  %v161_v5 = vpop.f32.mrb[1].mxu0 }
 0x21a   :  { %v198_v6 = vadd.f32 %v214_v2, %v161_v5  ;;  %v226_v7 = vpop.f32.mrb[2].mxu0 }
 0x21b   :  { %204 = vst [vmem:[%s325_s5 + $0x10] sm:$0xff] %v200_v4  ;;  %v201_v8 = vadd.f32 %v226_v7, %v214_v2  ;;  %v164_v9 = vpop.f32.mrb[3].mxu0 }
 0x21c   :  { %202 = vst [vmem:[%s325_s5] sm:$0xff] %v198_v6  ;;  %v199_v10 = vadd.f32 %v214_v2, %v164_v9 }
 0x21d   :  { %205 = vst [vmem:[%s325_s5 + $0x18] sm:$0xff] %v201_v8 }
 0x21e   :  { %203 = vst [vmem:[%s325_s5 + $0x8] sm:$0xff] %v199_v10 }

// kernel: fwd.40
= control target key start
LH: loop header
LB: loop body
LE: loop exit
PB: predicated region body
PF: predicated region fallthrough
CT: control target
= control target key end

     0   :  { %vm22_vm0 = vcmask 261120   ;;  %v157_v3 = vmov 0.0   ;;  %s248_s1 = inlined_call_operand.vmem [shape: f32[32,32], index: 1, kind: input, shape index: {}]   ;;  %s249_s0 = inlined_call_operand.vmem [shape: f32[32,32], index: 0, kind: input, shape index: {}]   ;;  %s250_s2 = inlined_call_operand.vmem [shape: f32[1,32], index: 2, kind: input, shape index: {}]   ;;  %s251_s3 = inlined_call_operand.vmem [shape: f32[32,32], index: 3, kind: input, shape index: {}]   ;;  %s252_s4 = inlined_call_operand.vmem [shape: f32[32,32], index: 4, kind: output, shape index: {}]  }
   0x1   :  { %v37_v0 = vld [vmem:[%s248_s1] sm:$0xff]  ;;  %v38_v1 = vld [vmem:[%s248_s1 + $0x8] sm:$0xff]  ;;  %v39_v2 = vld [vmem:[%s248_s1 + $0x10] sm:$0xff]  ;;  %25 = vst.msk [vmem:[#allocation2 + $0x10] sm:$0xff] %vm22_vm0, %v157_v3 }
   0x2   :  { %23 = vst.msk [vmem:[#allocation2] sm:$0xff] %vm22_vm0, %v157_v3  ;;  %24 = vst.msk [vmem:[#allocation2 + $0x8] sm:$0xff] %vm22_vm0, %v157_v3  ;;  %v41_v4 = vpack.c.bf16 %v38_v1, %v37_v0  ;;  %v40_v5 = vld [vmem:[%s248_s1 + $0x18] sm:$0xff]  ;;  %v27_v6 = vld [vmem:[%s249_s0] sm:$0xff] }
   0x3   :  { %26 = vst.msk [vmem:[#allocation2 + $0x18] sm:$0xff] %vm22_vm0, %v157_v3  ;;  %v28_v7 = vld [vmem:[%s249_s0 + $0x8] sm:$0xff]  ;;  %v42_v8 = vpack.c.bf16 %v40_v5, %v39_v2  ;;  %v29_v10 = vld [vmem:[%s249_s0 + $0x10] sm:$0xff]  ;;  %v30_v11 = vld [vmem:[%s249_s0 + $0x18] sm:$0xff] }
   0x4   :  { %v35_v9 = vpack.c.bf16 %v28_v7, %v27_v6  ;;  %148 = vmatprep.subr.bf16.mxu0 %v41_v4  ;;  %v36_v12 = vpack.c.bf16 %v30_v11, %v29_v10  ;;  %v143_v25 = vld [vmem:[%s250_s2] ss:$0 sm:$0xff]  ;;  %v127_v27 = vld [vmem:[%s251_s3 + $0x10] sm:$0xff]  ;;  %v128_v33 = vld [vmem:[%s251_s3 + $0x18] sm:$0xff] }
   0x5   :  { %149 = vmatpush3.bf16.msra.mxu0 %v41_v4  ;;  %v125_v30 = vld [vmem:[%s251_s3] sm:$0xff]  ;;  %v126_v37 = vld [vmem:[%s251_s3 + $0x8] sm:$0xff] }
   0x6   :  { %152 = vmatprep.mubr.msk.bf16.mxu0 %vm22_vm0, %v35_v9  ;;  %150 = vmatprep.subr.bf16.mxu0 %v42_v8 }
   0x8   :  { %v33_v13 = vld [vmem:[#allocation2 + $0x10] sm:$0xff] }
   0x9   :  { %151 = vmatpush3.bf16.msra.mxu0 %v42_v8  ;;  %v31_v14 = vld [vmem:[#allocation2] sm:$0xff]  ;;  %v32_v19 = vld [vmem:[#allocation2 + $0x8] sm:$0xff] }
   0xa   :  { %v34_v16 = vld [vmem:[#allocation2 + $0x18] sm:$0xff] }
   0xc   :  { %153 = vmatmul.mubr.msk.bf16.vlgmr.msra.gmra.mrb[0].mxu0 %vm22_vm0, %v36_v12 }
  0xdf   :  { %v154_v15 = vpop.f32.mrb[0].mxu0 }
  0xe0   :  { %v101_v17 = vadd.f32 %v154_v15, %v33_v13  ;;  %v84_v18 = vpop.f32.mrb[1].mxu0 }
  0xe1   :  { %v99_v20 = vadd.f32 %v84_v18, %v31_v14  ;;  %v155_v21 = vpop.f32.mrb[2].mxu0 }
  0xe2   :  { %105 = vst.msk [vmem:[#allocation2 + $0x10] sm:$0xff] %vm22_vm0, %v101_v17  ;;  %v102_v22 = vadd.f32 %v155_v21, %v34_v16  ;;  %v87_v23 = vpop.f32.mrb[3].mxu0 }
  0xe3   :  { %103 = vst.msk [vmem:[#allocation2] sm:$0xff] %vm22_vm0, %v99_v20  ;;  %v100_v24 = vadd.f32 %v87_v23, %v32_v19 }
  0xe4   :  { %106 = vst.msk [vmem:[#allocation2 + $0x18] sm:$0xff] %vm22_vm0, %v102_v22 }
  0xe5   :  { %104 = vst.msk [vmem:[#allocation2 + $0x8] sm:$0xff] %vm22_vm0, %v100_v24 }
  0xe9   :  { %v112_v26 = vld [vmem:[#allocation2 + $0x10] sm:$0xff] }
  0xea   :  { %v123_v28 = vadd.f32 %v143_v25, %v112_v26  ;;  %v110_v29 = vld [vmem:[#allocation2] sm:$0xff] }
  0xeb   :  { %v121_v31 = vadd.f32 %v143_v25, %v110_v29  ;;  %v113_v32 = vld [vmem:[#allocation2 + $0x18] sm:$0xff] }
  0xec   :  { %v131_v34 = vadd.f32 %v127_v27, %v123_v28  ;;  %v124_v35 = vadd.f32 %v143_v25, %v113_v32  ;;  %v111_v36 = vld [vmem:[#allocation2 + $0x8] sm:$0xff] }
  0xed   :  { %v129_v38 = vadd.f32 %v125_v30, %v121_v31  ;;  %v122_v39 = vadd.f32 %v143_v25, %v111_v36 }
  0xee   :  { %135 = vst.msk [vmem:[%s252_s4 + $0x10] sm:$0xff] %vm22_vm0, %v131_v34  ;;  %v132_v40 = vadd.f32 %v128_v33, %v124_v35 }
  0xef   :  { %133 = vst.msk [vmem:[%s252_s4] sm:$0xff] %vm22_vm0, %v129_v38  ;;  %v130_v41 = vadd.f32 %v126_v37, %v122_v39 }
  0xf0   :  { %136 = vst.msk [vmem:[%s252_s4 + $0x18] sm:$0xff] %vm22_vm0, %v132_v40 }
  0xf1   :  { %134 = vst.msk [vmem:[%s252_s4 + $0x8] sm:$0xff] %vm22_vm0, %v130_v41 }

// kernel: fwd.39
= control target key start
LH: loop header
LB: loop body
LE: loop exit
PB: predicated region body
PF: predicated region fallthrough
CT: control target
= control target key end

     0   :  { %s897_s9 = smov 0   ;;  %s899_s10 = smov 0   ;;  %s1039_s0 = inlined_call_operand.vmem [shape: f32[2,16,32], index: 0, kind: input, shape index: {}]   ;;  %s1040_s1 = inlined_call_operand.vmem [shape: f32[2,4,64], index: 1, kind: input, shape index: {}]   ;;  %s1041_s2 = inlined_call_operand.vmem [shape: f32[2,16,32], index: 2, kind: output, shape index: {}]  }
   0x1   :  { %s901_s11 = smov 0  }
   0x2 LB: > { %s31_s12 = sadd.s32 1, %s868_s10  ;;  %p746_p0 = scmp.ge.s32.totalorder %s872_s11, 1  ;;  %s872_s11 = sphi %s901_s11, %s12_s11   ;;  %s868_s10 = sphi %s899_s10, %s1043_s10   ;;  %s864_s9 = sphi %s897_s9, %s1042_s9  }
   0x3   : > { %p33_p1 = scmp.ge.s32.totalorder %s31_s12, 2  ;;  %p154_p2 = scmp.lt.s32.totalorder %s872_s11, 3 }
   0x5   : > { %s1045_s12 = smov (%p33_p1, %s31_s12), 0  ;;  %p155_p3 = pnand %p746_p0, %p154_p2 }
   0x6   : > { %p192_p4 = scmp.lt.s32.totalorder (!%p155_p3), %s864_s9, 1  ;;  %vm232_vm0 = vcmask (!%p155_p3), 130048   ;;  %v874_v0 = vmov (!%p155_p3), 0.0   ;;  %vm875_vm1 = vmmov (!%p155_p3), 0   ;;  %vm223_vm2 = vcmask (!%p155_p3), 7168   ;;  %s878_s21 = smov (!%p155_p3), 96  }
   0x7   : > { %158 = sbr.rel (%p155_p3) target bundleno = 1459 (0x5b3), region = 28  ;;  %768 = vmatprep.subr.bf16.mxu0 (!%p155_p3), %v874_v0  ;;  %233 = vst.msk [vmem:[#allocation4] sm:$0xff] (!%p155_p3), %vm232_vm0, %v874_v0  ;;  %234 = vst.msk [vmem:[#allocation4 + $0x8] sm:$0xff] (!%p155_p3), %vm232_vm0, %v874_v0  ;;  %770 = vmatprep.mubr.msk.bf16.mxu0 (!%p155_p3), %vm875_vm1, %v874_v0  ;;  %v876_v7 = vmov (!%p155_p3), -inf   ;;  %vm294_vm3 = vcmask (!%p155_p3), 31744   ;;  %v877_v16 = vmov (!%p155_p3), 0  }
   0x8   : > { %235 = vst.msk [vmem:[#allocation4 + $0x10] sm:$0xff] (!%p155_p3), %vm232_vm0, %v874_v0  ;;  %236 = vst.msk [vmem:[#allocation4 + $0x18] sm:$0xff] (!%p155_p3), %vm232_vm0, %v874_v0  ;;  %774 = vmatprep.subr.bf16.mxu1 (!%p155_p3), %v874_v0  ;;  %776 = vmatprep.mubr.msk.bf16.mxu1 (!%p155_p3), %vm875_vm1, %v874_v0  ;;  %s879_s22 = smov (!%p155_p3), 112   ;;  %vm361_vm4 = vcmask (!%p155_p3), 1041408   ;;  %s880_s23 = smov (!%p155_p3), 80   ;;  %vm634_vm5 = vcmask (!%p155_p3), 261120  }
   0x9   : > { %224 = vst.msk [vmem:[#allocation2] sm:$0xff] (!%p155_p3), %vm223_vm2, %v876_v7  ;;  %225 = vst.msk [vmem:[#allocation2 + $0x8] sm:$0xff] (!%p155_p3), %vm223_vm2, %v876_v7  ;;  %824 = vset.pattern.permute.xlu1 (!%p155_p3), %v877_v16  ;;  %825 = vset.pattern.permute.xlu0 (!%p155_p3), %v877_v16  ;;  %s881_s24 = smov (!%p155_p3), 16  }
   0xa   : > { %226 = vst.msk [vmem:[#allocation2 + $0x10] sm:$0xff] (!%p155_p3), %vm223_vm2, %v876_v7  ;;  %227 = vst.msk [vmem:[#allocation2 + $0x18] sm:$0xff] (!%p155_p3), %vm223_vm2, %v876_v7 }
   0xb   : > { %228 = vst.msk [vmem:[#allocation3] sm:$0xff] (!%p155_p3), %vm223_vm2, %v874_v0  ;;  %229 = vst.msk [vmem:[#allocation3 + $0x8] sm:$0xff] (!%p155_p3), %vm223_vm2, %v874_v0 }
   0xc   : > { %230 = vst.msk [vmem:[#allocation3 + $0x10] sm:$0xff] (!%p155_p3), %vm223_vm2, %v874_v0  ;;  %231 = vst.msk [vmem:[#allocation3 + $0x18] sm:$0xff] (!%p155_p3), %vm223_vm2, %v874_v0 }
   0xe   : > { %s1047_s9 = smov (!%p192_p4, %s864_s9), 1 }
   0xf   : > { %s749_s13 = sshll.u32 %s1047_s9, 2  ;;  %s758_s14 = sshll.u32 %s1047_s9, 4 }
  0x10   : > { %s207_s17 = scalar_lea.vmem %s1040_s1, %s749_s13  ;;  %s199_s20 = scalar_lea.vmem %s1039_s0, %s758_s14  ;;  %v964_v17 = vld [vmem:[#allocation2] sm:$0xff]  ;;  %v969_v20 = vld [vmem:[#allocation2 + $0x8] sm:$0xff] }
  0x11   : > { %v239_v1 = vld [vmem:[%s207_s17] sm:$0xf]  ;;  %v238_v5 = vld [vmem:[%s199_s20 + $0x8] sm:$0xff]  ;;  %v467_v51 = vld [vmem:[#allocation2 + $0x10] sm:$0xff]  ;;  %s216_s27 = scalar_lea.vmem %s1041_s2, %s758_s14 }
  0x12   : > { %v936_v2 = vpack.c.bf16 %v239_v1, %v239_v1  ;;  %v237_v4 = vld [vmem:[%s199_s20] sm:$0xff]  ;;  %v468_v53 = vld [vmem:[#allocation2 + $0x18] sm:$0xff] }
  0x13   : > { %v240_v6 = vpack.c.bf16 %v238_v5, %v237_v4  ;;  %v500_v16 = vld [vmem:[#allocation3 + $0x10] sm:$0xff] }
  0x14   : > { %v247_v3 = vsel %vm232_vm0, %v936_v2, 0 }
  0x15   : > { %769 = vmatpush3.bf16.xpose.msra.mxu0 %v247_v3 }
  0x16   : > { %786 = vmatprep.subr.bf16.mxu0 %v874_v0 }
  0x1c   : > { %771 = vmatmul.mubr.msk.bf16.vlgmr.msra.gmra.mrb[0].mxu0 %vm232_vm0, %v240_v6 }
  0x1d   : > { %788 = vmatprep.mubr.msk.bf16.mxu0 %vm875_vm1, %v874_v0 }
  0xef   : > { %v283_v8 = vpop.f32.mrb[0].mxu0 }
  0xf0   : > { %v290_v9 = vmul.f32 0.25, %v283_v8  ;;  %v772_v10 = vpop.f32.mrb[1].mxu0 }
  0xf1   : > { %v286_v11 = vpop.f32.mrb[2].mxu0 }
  0xf2   : > { %v291_v12 = vmul.f32 0.25, %v286_v11  ;;  %v773_v13 = vpop.f32.mrb[3].mxu0  ;;  %v295_v14 = vsel %vm294_vm3, %v290_v9, -inf }
  0xf3   : > { %296 = vmax.xlane.f32.xlu0 %v295_v14 }
  0xf4   : > { %v298_v15 = vsel %vm294_vm3, %v291_v12, -inf }
  0xf7   : > { %299 = vmax.xlane.f32.xlu0 %v298_v15 }
 0x10d   : > { %356 = vrot.lane.b32.xlu0 %v936_v2, %s878_s21 }
 0x180   : > { %v297_v18 = vpop.xlane.xlu0 %296 }
 0x181   : > { %v967_v19 = vmax.f32 %v964_v17, %v297_v18  ;;  %v501_v18 = vld [vmem:[#allocation3 + $0x18] sm:$0xff] }
 0x183   : > { %v303_v21 = vsub.f32 %v964_v17, %v967_v19  ;;  %410 = vst.msk [vmem:[#allocation2] sm:$0xff] %vm223_vm2, %v967_v19  ;;  %311 = vperm.xlu1 %824, %v967_v19  }
 0x184   : > { %v300_v22 = vpop.xlane.xlu0 %299 }
 0x185   : > { %v977_v23 = vmax.f32 %v969_v20, %v300_v22  ;;  %v305_v14 = vmul.f32 1.442695, %v303_v21 }
 0x187   : > { %v304_v24 = vsub.f32 %v969_v20, %v977_v23  ;;  %411 = vst.msk [vmem:[#allocation2 + $0x8] sm:$0xff] %vm223_vm2, %v977_v23  ;;  %316 = vperm.xlu1 %824, %v977_v23  }
 0x188   : > { %v357_v25 = vpop.permute.xlu0 %356 }
 0x189   : > { %v363_v26 = vsel %vm361_vm4, %v357_v25, 0  ;;  %v307_v15 = vmul.f32 1.442695, %v304_v24 }
 0x18a   : > { %775 = vmatpush3.bf16.msra.mxu1 %v363_v26 }
 0x18b   : > { %415 = vrot.lane.b32.xlu1 %v936_v2, %s879_s22  ;;  %780 = vmatprep.subr.bf16.mxu1 %v874_v0 }
 0x18f   : > { %413 = vrot.lane.b32.xlu1 %v240_v6, %s879_s22 }
 0x202   : > { %v312_v27 = vpop.permute.xlu1 %311 }
 0x203   : > { %v319_v28 = vsub.f32 %v290_v9, %v312_v27  ;;  %v325_v27 = vld [vmem:[#allocation3] sm:$0xff] }
 0x205   : > { %v321_v29 = vmul.f32 1.442695, %v319_v28 }
 0x206   : > { %v317_v30 = vpop.permute.xlu1 %316 }
 0x207   : > { %v320_v31 = vsub.f32 %v291_v12, %v317_v30  ;;  %826 = vpow2.f32 %v321_v29 }
 0x209   : > { %v323_v32 = vmul.f32 1.442695, %v320_v31 }
 0x20a   : > { %v416_v33 = vpop.permute.xlu1 %415 }
 0x20b   : > { %828 = vpow2.f32 %v323_v32  ;;  %v421_v36 = vsel %vm232_vm0, %v416_v33, 0  ;;  %v326_v32 = vld [vmem:[#allocation3 + $0x8] sm:$0xff] }
 0x20e   : > { %v414_v38 = vpop.permute.xlu1 %413 }
 0x211   : > { %v827_v34 = vpop.eup %826 }
 0x212   : > { %v329_v8 = vsel %vm294_vm3, %v827_v34, 0.0 }
 0x215   : > { %v829_v35 = vpop.eup %828 }
 0x216   : > { %v354_v37 = vpack.c.bf16 %v829_v35, %v827_v34  ;;  %v332_v9 = vsel %vm294_vm3, %v829_v35, 0.0 }
 0x218   : > { %777 = vmatmul.mubr.msk.bf16.vlgmr.msra.gmra.mrb[0].mxu1 %vm294_vm3, %v354_v37 }
 0x219   : > { %781 = vmatpush3.bf16.xpose.msra.mxu1 %v421_v36  ;;  %782 = vmatprep.mubr.msk.bf16.mxu1 %vm875_vm1, %v874_v0 }
 0x220   : > { %783 = vmatmul.mubr.msk.bf16.vlgmr.msra.gmra.mrb[4].mxu1 %vm232_vm0, %v414_v38 }
 0x2eb   : > { %v992_v39 = vpop.f32.mrb[0].mxu1 }
 0x2ec   : > { %v778_v40 = vpop.f32.mrb[1].mxu1 }
 0x2ed   : > { %v994_v41 = vpop.f32.mrb[2].mxu1 }
 0x2ee   : > { %v779_v42 = vpop.f32.mrb[3].mxu1 }
 0x2f3   : > { %v457_v43 = vpop.f32.mrb[4].mxu1 }
 0x2f4   : > { %v464_v44 = vmul.f32 0.25, %v457_v43  ;;  %v784_v45 = vpop.f32.mrb[5].mxu1 }
 0x2f5   : > { %v460_v46 = vpop.f32.mrb[6].mxu1  ;;  %v515_v45 = vld [vmem:[#allocation4 + $0x10] sm:$0xff] }
 0x2f6   : > { %v465_v47 = vmul.f32 0.25, %v460_v46  ;;  %v785_v48 = vpop.f32.mrb[7].mxu1  ;;  %v469_v49 = vsel %vm294_vm3, %v464_v44, -inf  ;;  %v516_v46 = vld [vmem:[#allocation4 + $0x18] sm:$0xff] }
 0x2f7   : > { %470 = vmax.xlane.f32.xlu1 %v469_v49 }
 0x2f8   : > { %v472_v50 = vsel %vm294_vm3, %v465_v47, -inf }
 0x2f9   : > { %473 = vmax.xlane.f32.xlu0 %v472_v50 }
 0x384   : > { %v471_v52 = vpop.xlane.xlu1 %470 }
 0x385   : > { %v475_v54 = vmax.f32 %v467_v51, %v471_v52 }
 0x386   : > { %v474_v55 = vpop.xlane.xlu0 %473 }
 0x387   : > { %v477_v56 = vsub.f32 %v467_v51, %v475_v54  ;;  %583 = vst.msk [vmem:[#allocation2 + $0x10] sm:$0xff] %vm223_vm2, %v475_v54  ;;  %v476_v57 = vmax.f32 %v468_v53, %v474_v55  ;;  %485 = vperm.xlu1 %824, %v475_v54  }
 0x389   : > { %v478_v58 = vsub.f32 %v468_v53, %v476_v57  ;;  %584 = vst.msk [vmem:[#allocation2 + $0x18] sm:$0xff] %vm223_vm2, %v476_v57  ;;  %490 = vperm.xlu0 %825, %v476_v57   ;;  %v479_v10 = vmul.f32 1.442695, %v477_v56 }
 0x38b   : > { %530 = vrot.lane.b32.xlu1 %v936_v2, %s880_s23  ;;  %v481_v11 = vmul.f32 1.442695, %v478_v58 }
 0x406   : > { %v486_v59 = vpop.permute.xlu1 %485 }
 0x407   : > { %v493_v60 = vsub.f32 %v464_v44, %v486_v59 }
 0x408   : > { %v491_v61 = vpop.permute.xlu0 %490 }
 0x409   : > { %v495_v62 = vmul.f32 1.442695, %v493_v60  ;;  %v494_v63 = vsub.f32 %v465_v47, %v491_v61 }
 0x40a   : > { %v531_v0 = vpop.permute.xlu1 %530 }
 0x40b   : > { %830 = vpow2.f32 %v495_v62  ;;  %v497_v1 = vmul.f32 1.442695, %v494_v63  ;;  %v536_v3 = vsel %vm361_vm4, %v531_v0, 0  ;;  %v340_v62 = vld [vmem:[#allocation4] sm:$0xff] }
 0x40c   : > { %787 = vmatpush3.bf16.msra.mxu0 %v536_v3 }
 0x40d   : > { %832 = vpow2.f32 %v497_v1  ;;  %v341_v1 = vld [vmem:[#allocation4 + $0x8] sm:$0xff] }
 0x40e   : > { %834 = vpow2.f32 %v479_v10 }
 0x40f   : > { %836 = vpow2.f32 %v481_v11 }
 0x410   : > { %838 = vpow2.f32 %v305_v14 }
 0x411   : > { %840 = vpow2.f32 %v307_v15 }
 0x415   : > { %v831_v4 = vpop.eup %830 }
 0x416   : > { %v504_v5 = vsel %vm294_vm3, %v831_v4, 0.0 }
 0x417   : > { %v833_v6 = vpop.eup %832  ;;  %505 = vadd.xlane.f32.xlu1 %v504_v5 }
 0x418   : > { %v507_v7 = vsel %vm294_vm3, %v833_v6, 0.0  ;;  %v529_v2 = vpack.c.bf16 %v833_v6, %v831_v4  ;;  %v835_v12 = vpop.eup %834 }
 0x419   : > { %508 = vadd.xlane.f32.xlu0 %v507_v7  ;;  %v837_v13 = vpop.eup %836  ;;  %v502_v22 = vmul.f32 %v835_v12, %v500_v16 }
 0x41a   : > { %789 = vmatmul.mubr.msk.bf16.vlgmr.msra.gmra.mrb[4].mxu0 %vm294_vm3, %v529_v2  ;;  %v839_v25 = vpop.eup %838  ;;  %v503_v29 = vmul.f32 %v837_v13, %v501_v18 }
 0x41b   : > { %330 = vadd.xlane.f32.xlu1 %v329_v8  ;;  %v327_v17 = vmul.f32 %v839_v25, %v325_v27  ;;  %v841_v19 = vpop.eup %840 }
 0x41c   : > { %v328_v23 = vmul.f32 %v841_v19, %v326_v32 }
 0x41f   : > { %333 = vadd.xlane.f32.xlu1 %v332_v9 }
 0x430   : > { %519 = vperm.xlu1 %824, %v835_v12  }
 0x434   : > { %524 = vperm.xlu1 %824, %v837_v13  }
 0x4a4   : > { %v506_v26 = vpop.xlane.xlu1 %505 }
 0x4a5   : > { %v510_v28 = vadd.f32 %v506_v26, %v502_v22 }
 0x4a6   : > { %v509_v30 = vpop.xlane.xlu0 %508 }
 0x4a7   : > { %512 = vst.msk [vmem:[#allocation3 + $0x10] sm:$0xff] %vm223_vm2, %v510_v28  ;;  %v511_v31 = vadd.f32 %v509_v30, %v503_v29 }
 0x4a8   : > { %v331_v21 = vpop.xlane.xlu1 %330 }
 0x4a9   : > { %513 = vst.msk [vmem:[#allocation3 + $0x18] sm:$0xff] %vm223_vm2, %v511_v31  ;;  %v335_v20 = vadd.f32 %v331_v21, %v327_v17 }
 0x4ab   : > { %338 = vst.msk [vmem:[#allocation3] sm:$0xff] %vm223_vm2, %v335_v20 }
 0x4ac   : > { %v334_v24 = vpop.xlane.xlu1 %333 }
 0x4ad   : > { %v336_v33 = vadd.f32 %v334_v24, %v328_v23 }
 0x4ae   : > { %v606_v34 = vld [vmem:[#allocation3 + $0x10] sm:$0xff] }
 0x4af   : > { %339 = vst.msk [vmem:[#allocation3 + $0x8] sm:$0xff] %vm223_vm2, %v336_v33  ;;  %842 = vrcp.f32 %v606_v34 }
 0x4b0   : > { %v607_v35 = vld [vmem:[#allocation3 + $0x18] sm:$0xff]  ;;  %v520_v44 = vpop.permute.xlu1 %519 }
 0x4b1   : > { %844 = vrcp.f32 %v607_v35  ;;  %v527_v48 = vmul.f32 %v520_v44, %v515_v45 }
 0x4b2   : > { %v588_v37 = vld [vmem:[#allocation3] sm:$0xff] }
 0x4b3   : > { %846 = vrcp.f32 %v588_v37 }
 0x4b4   : > { %v525_v47 = vpop.permute.xlu1 %524 }
 0x4b5   : > { %v528_v50 = vmul.f32 %v525_v47, %v516_v46 }
 0x4b6   : > { %v589_v40 = vld [vmem:[#allocation3 + $0x8] sm:$0xff] }
 0x4b7   : > { %848 = vrcp.f32 %v589_v40 }
 0x4b9   : > { %v843_v36 = vpop.eup %842 }
 0x4ba   : > { %614 = vperm.xlu0 %825, %v843_v36  }
 0x4bb   : > { %v845_v38 = vpop.eup %844 }
 0x4bc   : > { %619 = vperm.xlu1 %824, %v845_v38  }
 0x4bd   : > { %v847_v42 = vpop.eup %846 }
 0x4c0   : > { %344 = vperm.xlu1 %824, %v839_v25  }
 0x4c1   : > { %v849_v43 = vpop.eup %848 }
 0x4c4   : > { %349 = vperm.xlu1 %824, %v841_v19  }
 0x4c8   : > { %596 = vperm.xlu1 %824, %v847_v42  }
 0x4cc   : > { %601 = vperm.xlu1 %824, %v849_v43  }
 0x4ed   : > { %v572_v49 = vpop.f32.mrb[4].mxu0 }
 0x4ee   : > { %v579_v51 = vadd.f32 %v572_v49, %v527_v48  ;;  %v790_v52 = vpop.f32.mrb[5].mxu0 }
 0x4ef   : > { %v575_v53 = vpop.f32.mrb[6].mxu0 }
 0x4f0   : > { %581 = vst.msk [vmem:[#allocation4 + $0x10] sm:$0xff] %vm232_vm0, %v579_v51  ;;  %v580_v54 = vadd.f32 %v575_v53, %v528_v50  ;;  %v791_v55 = vpop.f32.mrb[7].mxu0 }
 0x4f2   : > { %582 = vst.msk [vmem:[#allocation4 + $0x18] sm:$0xff] %vm232_vm0, %v580_v54 }
 0x4f7   : > { %v610_v57 = vld [vmem:[#allocation4 + $0x10] sm:$0xff] }
 0x4f9   : > { %v611_v60 = vld [vmem:[#allocation4 + $0x18] sm:$0xff] }
 0x539   : > { %v615_v56 = vpop.permute.xlu0 %614 }
 0x53a   : > { %v622_v58 = vmul.f32 %v615_v56, %v610_v57 }
 0x53b   : > { %v620_v59 = vpop.permute.xlu1 %619 }
 0x53c   : > { %v623_v61 = vmul.f32 %v620_v59, %v611_v60  ;;  %626 = vrot.lane.b32.xlu0 %v622_v58, %s881_s24 }
 0x53e   : > { %628 = vrot.lane.b32.xlu1 %v623_v61, %s881_s24 }
 0x53f   : > { %v345_v63 = vpop.permute.xlu1 %344 }
 0x540   : > { %v352_v0 = vmul.f32 %v345_v63, %v340_v62 }
 0x542   : > { %v406_v3 = vadd.f32 %v992_v39, %v352_v0 }
 0x543   : > { %v350_v4 = vpop.permute.xlu1 %349 }
 0x544   : > { %408 = vst.msk [vmem:[#allocation4] sm:$0xff] %vm232_vm0, %v406_v3  ;;  %v353_v5 = vmul.f32 %v350_v4, %v341_v1 }
 0x546   : > { %v407_v6 = vadd.f32 %v994_v41, %v353_v5 }
 0x547   : > { %v597_v7 = vpop.permute.xlu1 %596 }
 0x548   : > { %409 = vst.msk [vmem:[#allocation4 + $0x8] sm:$0xff] %vm232_vm0, %v407_v6 }
 0x54b   : > { %v592_v2 = vld [vmem:[#allocation4] sm:$0xff]  ;;  %v602_v9 = vpop.permute.xlu1 %601 }
 0x54c   : > { %v604_v10 = vmul.f32 %v597_v7, %v592_v2 }
 0x54f   : > { %v593_v8 = vld [vmem:[#allocation4 + $0x8] sm:$0xff] }
 0x550   : > { %v605_v11 = vmul.f32 %v602_v9, %v593_v8 }
 0x5ae   : > { %v627_v39 = vpop.permute.xlu0 %626 }
 0x5af   : > { %v632_v12 = vsel %vm232_vm0, %v604_v10, %v627_v39 }
 0x5b0   : > { %635 = vst.msk [vmem:[%s216_s27] sm:$0xff] %vm634_vm5, %v632_v12  ;;  %v629_v13 = vpop.permute.xlu1 %628 }
 0x5b1   : > { %v633_v41 = vsel %vm232_vm0, %v605_v11, %v629_v13 }
 0x5b2   : > { %636 = vst.msk [vmem:[%s216_s27 + $0x8] sm:$0xff] %vm634_vm5, %v633_v41 }
 0x5b3 PF: > { %s12_s11 = sadd.s32 1, %s872_s11   ;;  %s1042_s9 = smov %s868_s10 }
 0x5b4   : > { %p9_p5 = scmp.ge.s32.totalorder %s12_s11, 4   ;;  %s1043_s10 = smov %s1045_s12 }
 0x5b6   :  { %11 = sbr.rel (!%p9_p5) target bundleno = 2 (0x2), region = 72 }

// kernel: fwd.53
= control target key start
LH: loop header
LB: loop body
LE: loop exit
PB: predicated region body
PF: predicated region fallthrough
CT: control target
= control target key end

     0   :  { %vm18_vm0 = vcmask 261120   ;;  %s174_s0 = inlined_call_operand.vmem [shape: f32[32,32], index: 0, kind: input, shape index: {}]   ;;  %s175_s1 = inlined_call_operand.vmem [shape: f32[1,32], index: 1, kind: input, shape index: {}]   ;;  %s176_s2 = inlined_call_operand.vmem [shape: f32[1,32], index: 2, kind: input, shape index: {}]   ;;  %s177_s3 = inlined_call_operand.vmem [shape: f32[32,32], index: 3, kind: output, shape index: {}]  }
   0x1   :  { %v14_v0 = vld [vmem:[%s174_s0] sm:$0xff]  ;;  %v16_v1 = vld [vmem:[%s174_s0 + $0x10] sm:$0xff]  ;;  %v15_v2 = vld [vmem:[%s174_s0 + $0x8] sm:$0xff] }
   0x2   :  { %v19_v3 = vsel %vm18_vm0, %v14_v0, 0.0  ;;  %v25_v4 = vsel %vm18_vm0, %v16_v1, 0.0  ;;  %v17_v5 = vld [vmem:[%s174_s0 + $0x18] sm:$0xff]  ;;  %v22_v6 = vsel %vm18_vm0, %v15_v2, 0.0  ;;  %v102_v41 = vld [vmem:[%s175_s1] ss:$0 sm:$0xff] }
   0x3   :  { %20 = vadd.xlane.f32.xlu0 %v19_v3  ;;  %26 = vadd.xlane.f32.xlu1 %v25_v4  ;;  %v28_v7 = vsel %vm18_vm0, %v17_v5, 0.0  ;;  %v103_v43 = vld [vmem:[%s176_s2] ss:$0 sm:$0xff] }
   0x7   :  { %23 = vadd.xlane.f32.xlu0 %v22_v6  ;;  %29 = vadd.xlane.f32.xlu1 %v28_v7 }
  0x90   :  { %v21_v8 = vpop.xlane.xlu0 %20  ;;  %v27_v9 = vpop.xlane.xlu1 %26 }
  0x91   :  { %v32_v10 = vmul.f32 0.03125, %v21_v8  ;;  %v34_v11 = vmul.f32 0.03125, %v27_v9 }
  0x93   :  { %v36_v12 = vsub.f32 %v14_v0, %v32_v10  ;;  %v38_v13 = vsub.f32 %v16_v1, %v34_v11 }
  0x94   :  { %v24_v14 = vpop.xlane.xlu0 %23  ;;  %v30_v15 = vpop.xlane.xlu1 %29 }
  0x95   :  { %v33_v16 = vmul.f32 0.03125, %v24_v14  ;;  %v35_v17 = vmul.f32 0.03125, %v30_v15  ;;  %v40_v18 = vmul.f32 %v36_v12, %v36_v12  ;;  %v42_v19 = vmul.f32 %v38_v13, %v38_v13 }
  0x97   :  { %v37_v20 = vsub.f32 %v15_v2, %v33_v16  ;;  %v39_v21 = vsub.f32 %v17_v5, %v35_v17  ;;  %v44_v22 = vsel %vm18_vm0, %v40_v18, 0.0  ;;  %v50_v23 = vsel %vm18_vm0, %v42_v19, 0.0 }
  0x98   :  { %45 = vadd.xlane.f32.xlu0 %v44_v22 }
  0x99   :  { %v41_v24 = vmul.f32 %v37_v20, %v37_v20  ;;  %v43_v25 = vmul.f32 %v39_v21, %v39_v21 }
  0x9b   :  { %v47_v26 = vsel %vm18_vm0, %v41_v24, 0.0  ;;  %v53_v27 = vsel %vm18_vm0, %v43_v25, 0.0 }
  0x9c   :  { %51 = vadd.xlane.f32.xlu0 %v50_v23  ;;  %48 = vadd.xlane.f32.xlu1 %v47_v26 }
  0xa0   :  { %54 = vadd.xlane.f32.xlu1 %v53_v27 }
 0x125   :  { %v46_v28 = vpop.xlane.xlu0 %45 }
 0x126   :  { %v56_v29 = vmul.f32 0.03125, %v46_v28 }
 0x128   :  { %v60_v30 = vadd.f32 1e-05, %v56_v29 }
 0x129   :  { %v49_v31 = vpop.xlane.xlu1 %48  ;;  %v52_v32 = vpop.xlane.xlu0 %51 }
 0x12a   :  { %104 = vrsqrt.f32 %v60_v30  ;;  %v57_v33 = vmul.f32 0.03125, %v49_v31  ;;  %v58_v34 = vmul.f32 0.03125, %v52_v32 }
 0x12c   :  { %v61_v35 = vadd.f32 1e-05, %v57_v33  ;;  %v62_v36 = vadd.f32 1e-05, %v58_v34 }
 0x12d   :  { %v55_v37 = vpop.xlane.xlu1 %54 }
 0x12e   :  { %106 = vrsqrt.f32 %v61_v35  ;;  %v59_v38 = vmul.f32 0.03125, %v55_v37 }
 0x12f   :  { %108 = vrsqrt.f32 %v62_v36 }
 0x130   :  { %v63_v39 = vadd.f32 1e-05, %v59_v38 }
 0x132   :  { %110 = vrsqrt.f32 %v63_v39 }
 0x134   :  { %v105_v40 = vpop.eup %104 }
 0x135   :  { %v68_v42 = vmul.f32 %v105_v40, %v36_v12 }
 0x137   :  { %v79_v44 = vmul.f32 %v102_v41, %v68_v42 }
 0x138   :  { %v107_v45 = vpop.eup %106 }
 0x139   :  { %v109_v46 = vpop.eup %108  ;;  %v90_v47 = vadd.f32 %v103_v43, %v79_v44  ;;  %v69_v48 = vmul.f32 %v107_v45, %v37_v20 }
 0x13a   :  { %v70_v49 = vmul.f32 %v109_v46, %v38_v13 }
 0x13b   :  { %94 = vst.msk [vmem:[%s177_s3] sm:$0xff] %vm18_vm0, %v90_v47  ;;  %v80_v50 = vmul.f32 %v102_v41, %v69_v48 }
 0x13c   :  { %v111_v51 = vpop.eup %110  ;;  %v81_v52 = vmul.f32 %v102_v41, %v70_v49 }
 0x13d   :  { %v91_v53 = vadd.f32 %v103_v43, %v80_v50  ;;  %v71_v54 = vmul.f32 %v111_v51, %v39_v21 }
 0x13e   :  { %v92_v55 = vadd.f32 %v103_v43, %v81_v52 }
 0x13f   :  { %95 = vst.msk [vmem:[%s177_s3 + $0x8] sm:$0xff] %vm18_vm0, %v91_v53  ;;  %v82_v56 = vmul.f32 %v102_v41, %v71_v54 }
 0x140   :  { %96 = vst.msk [vmem:[%s177_s3 + $0x10] sm:$0xff] %vm18_vm0, %v92_v55 }
 0x141   :  { %v93_v57 = vadd.f32 %v103_v43, %v82_v56 }
 0x143   :  { %97 = vst.msk [vmem:[%s177_s3 + $0x18] sm:$0xff] %vm18_vm0, %v93_v57 }

// kernel: fwd.43
= control target key start
LH: loop header
LB: loop body
LE: loop exit
PB: predicated region body
PF: predicated region fallthrough
CT: control target
= control target key end

     0   :  { %vm22_vm0 = vcmask 261120   ;;  %v185_v3 = vmov 0.0   ;;  %s310_s1 = inlined_call_operand.vmem [shape: f32[128,32], index: 1, kind: input, shape index: {}]   ;;  %s311_s0 = inlined_call_operand.vmem [shape: f32[32,128], index: 0, kind: input, shape index: {}]   ;;  %s312_s2 = inlined_call_operand.vmem [shape: f32[1,32], index: 2, kind: input, shape index: {}]   ;;  %s313_s3 = inlined_call_operand.vmem [shape: f32[32,32], index: 3, kind: input, shape index: {}]   ;;  %s314_s4 = inlined_call_operand.vmem [shape: f32[32,32], index: 4, kind: output, shape index: {}]  }
   0x1   :  { %v37_v0 = vld [vmem:[%s310_s1] sm:$0xff]  ;;  %v38_v1 = vld [vmem:[%s310_s1 + $0x8] sm:$0xff]  ;;  %v39_v2 = vld [vmem:[%s310_s1 + $0x10] sm:$0xff]  ;;  %25 = vst.msk [vmem:[#allocation2 + $0x10] sm:$0xff] %vm22_vm0, %v185_v3 }
   0x2   :  { %23 = vst.msk [vmem:[#allocation2] sm:$0xff] %vm22_vm0, %v185_v3  ;;  %24 = vst.msk [vmem:[#allocation2 + $0x8] sm:$0xff] %vm22_vm0, %v185_v3  ;;  %v53_v4 = vpack.c.bf16 %v38_v1, %v37_v0  ;;  %v40_v5 = vld [vmem:[%s310_s1 + $0x18] sm:$0xff]  ;;  %v41_v7 = vld [vmem:[%s310_s1 + $0x20] sm:$0xff] }
   0x3   :  { %26 = vst.msk [vmem:[#allocation2 + $0x18] sm:$0xff] %vm22_vm0, %v185_v3  ;;  %v54_v6 = vpack.c.bf16 %v40_v5, %v39_v2  ;;  %v42_v8 = vld [vmem:[%s310_s1 + $0x28] sm:$0xff]  ;;  %v27_v10 = vld [vmem:[%s311_s0] sm:$0xff]  ;;  %v43_v12 = vld [vmem:[%s310_s1 + $0x30] sm:$0xff] }
   0x4   :  { %164 = vmatprep.subr.bf16.mxu0 %v53_v4  ;;  %v55_v9 = vpack.c.bf16 %v42_v8, %v41_v7  ;;  %v28_v11 = vld [vmem:[%s311_s0 + $0x8] sm:$0xff]  ;;  %v44_v13 = vld [vmem:[%s310_s1 + $0x38] sm:$0xff]  ;;  %v45_v16 = vld [vmem:[%s310_s1 + $0x40] sm:$0xff] }
   0x5   :  { %165 = vmatpush3.bf16.msra.mxu0 %v53_v4  ;;  %v35_v14 = vpack.c.bf16 %v28_v11, %v27_v10  ;;  %v56_v15 = vpack.c.bf16 %v44_v13, %v43_v12  ;;  %v46_v17 = vld [vmem:[%s310_s1 + $0x48] sm:$0xff]  ;;  %v47_v19 = vld [vmem:[%s310_s1 + $0x50] sm:$0xff]  ;;  %v48_v20 = vld [vmem:[%s310_s1 + $0x58] sm:$0xff] }
   0x6   :  { %166 = vmatprep.subr.bf16.mxu0 %v54_v6  ;;  %v57_v18 = vpack.c.bf16 %v46_v17, %v45_v16  ;;  %v58_v21 = vpack.c.bf16 %v48_v20, %v47_v19  ;;  %v49_v22 = vld [vmem:[%s310_s1 + $0x60] sm:$0xff]  ;;  %v50_v23 = vld [vmem:[%s310_s1 + $0x68] sm:$0xff]  ;;  %v51_v25 = vld [vmem:[%s310_s1 + $0x70] sm:$0xff] }
   0x7   :  { %180 = vmatprep.mubr.bf16.mxu0 %v35_v14  ;;  %v59_v24 = vpack.c.bf16 %v50_v23, %v49_v22  ;;  %v52_v26 = vld [vmem:[%s310_s1 + $0x78] sm:$0xff]  ;;  %v29_v28 = vld [vmem:[%s311_s0 + $0x10] sm:$0xff]  ;;  %v153_v43 = vld [vmem:[%s312_s2] ss:$0 sm:$0xff] }
   0x8   :  { %v60_v27 = vpack.c.bf16 %v52_v26, %v51_v25  ;;  %v30_v29 = vld [vmem:[%s311_s0 + $0x18] sm:$0xff]  ;;  %v33_v31 = vld [vmem:[#allocation2 + $0x10] sm:$0xff]  ;;  %v137_v48 = vld [vmem:[%s313_s3] sm:$0xff] }
   0x9   :  { %167 = vmatpush3.bf16.msra.mxu0 %v54_v6  ;;  %v36_v30 = vpack.c.bf16 %v30_v29, %v29_v28  ;;  %v31_v32 = vld [vmem:[#allocation2] sm:$0xff]  ;;  %v32_v37 = vld [vmem:[#allocation2 + $0x8] sm:$0xff]  ;;  %v139_v45 = vld [vmem:[%s313_s3 + $0x10] sm:$0xff] }
   0xa   :  { %168 = vmatprep.subr.bf16.mxu0 %v55_v9  ;;  %v34_v34 = vld [vmem:[#allocation2 + $0x18] sm:$0xff]  ;;  %v138_v55 = vld [vmem:[%s313_s3 + $0x8] sm:$0xff] }
   0xb   :  { %v140_v51 = vld [vmem:[%s313_s3 + $0x18] sm:$0xff] }
   0xd   :  { %169 = vmatpush3.bf16.msra.mxu0 %v55_v9 }
   0xe   :  { %170 = vmatprep.subr.bf16.mxu0 %v56_v15 }
  0x11   :  { %171 = vmatpush3.bf16.msra.mxu0 %v56_v15 }
  0x12   :  { %172 = vmatprep.subr.bf16.mxu0 %v57_v18 }
  0x15   :  { %173 = vmatpush3.bf16.msra.mxu0 %v57_v18 }
  0x16   :  { %174 = vmatprep.subr.bf16.mxu0 %v58_v21 }
  0x19   :  { %175 = vmatpush3.bf16.msra.mxu0 %v58_v21 }
  0x1a   :  { %176 = vmatprep.subr.bf16.mxu0 %v59_v24 }
  0x1d   :  { %177 = vmatpush3.bf16.msra.mxu0 %v59_v24 }
  0x1e   :  { %178 = vmatprep.subr.bf16.mxu0 %v60_v27 }
  0x21   :  { %179 = vmatpush3.bf16.msra.mxu0 %v60_v27 }
  0x24   :  { %181 = vmatmul.mubr.bf16.vlgmr.msra.gmra.mrb[0].mxu0 %v36_v30 }
  0xf7   :  { %v182_v33 = vpop.f32.mrb[0].mxu0 }
  0xf8   :  { %v112_v35 = vadd.f32 %v182_v33, %v33_v31  ;;  %v95_v36 = vpop.f32.mrb[1].mxu0 }
  0xf9   :  { %v110_v38 = vadd.f32 %v95_v36, %v31_v32  ;;  %v183_v39 = vpop.f32.mrb[2].mxu0 }
  0xfa   :  { %117 = vst.msk [vmem:[#allocation2 + $0x10] sm:$0xff] %vm22_vm0, %v112_v35  ;;  %v113_v40 = vadd.f32 %v183_v39, %v34_v34  ;;  %v98_v41 = vpop.f32.mrb[3].mxu0 }
  0xfb   :  { %115 = vst.msk [vmem:[#allocation2] sm:$0xff] %vm22_vm0, %v110_v38  ;;  %v111_v42 = vadd.f32 %v98_v41, %v32_v37 }
  0xfc   :  { %118 = vst.msk [vmem:[#allocation2 + $0x18] sm:$0xff] %vm22_vm0, %v113_v40 }
  0xfd   :  { %116 = vst.msk [vmem:[#allocation2 + $0x8] sm:$0xff] %vm22_vm0, %v111_v42 }
 0x101   :  { %v124_v44 = vld [vmem:[#allocation2 + $0x10] sm:$0xff] }
 0x102   :  { %v135_v46 = vadd.f32 %v153_v43, %v124_v44  ;;  %v122_v47 = vld [vmem:[#allocation2] sm:$0xff] }
 0x103   :  { %v133_v49 = vadd.f32 %v153_v43, %v122_v47  ;;  %v125_v50 = vld [vmem:[#allocation2 + $0x18] sm:$0xff] }
 0x104   :  { %v143_v52 = vadd.f32 %v139_v45, %v135_v46  ;;  %v136_v53 = vadd.f32 %v153_v43, %v125_v50  ;;  %v123_v54 = vld [vmem:[#allocation2 + $0x8] sm:$0xff] }
 0x105   :  { %v141_v56 = vadd.f32 %v137_v48, %v133_v49  ;;  %v134_v57 = vadd.f32 %v153_v43, %v123_v54 }
 0x106   :  { %147 = vst.msk [vmem:[%s314_s4 + $0x10] sm:$0xff] %vm22_vm0, %v143_v52  ;;  %v144_v58 = vadd.f32 %v140_v51, %v136_v53 }
 0x107   :  { %145 = vst.msk [vmem:[%s314_s4] sm:$0xff] %vm22_vm0, %v141_v56  ;;  %v142_v59 = vadd.f32 %v138_v55, %v134_v57 }
 0x108   :  { %148 = vst.msk [vmem:[%s314_s4 + $0x18] sm:$0xff] %vm22_vm0, %v144_v58 }
 0x109   :  { %146 = vst.msk [vmem:[%s314_s4 + $0x8] sm:$0xff] %vm22_vm0, %v142_v59 }

// kernel: fwd.42
= control target key start
LH: loop header
LB: loop body
LE: loop exit
PB: predicated region body
PF: predicated region fallthrough
CT: control target
= control target key end

     0   :  { %s671_s12 = smov 0   ;;  %s673_s13 = smov 0   ;;  %s779_s0 = inlined_call_operand.vmem [shape: f32[2,6,6,128], index: 0, kind: input, shape index: {}]   ;;  %s780_s1 = inlined_call_operand.vmem [shape: f32[9,128], index: 1, kind: input, shape index: {}]   ;;  %s781_s2 = inlined_call_operand.vmem [shape: f32[1,128], index: 2, kind: input, shape index: {}]   ;;  %s782_s3 = inlined_call_operand.vmem [shape: f32[2,4,4,128], index: 3, kind: output, shape index: {}]  }
   0x1   :  { %s675_s14 = smov 0  }
   0x2 LB: > { %s25_s15 = sadd.s32 1, %s645_s13  ;;  %p585_p0 = scmp.ge.s32.totalorder %s649_s14, 1  ;;  %s649_s14 = sphi %s675_s14, %s13_s14   ;;  %s645_s13 = sphi %s673_s13, %s784_s13   ;;  %s641_s12 = sphi %s671_s12, %s783_s12  }
   0x3   : > { %p27_p1 = scmp.ge.s32.totalorder %s25_s15, 2  ;;  %p173_p2 = scmp.lt.s32.totalorder %s649_s14, 3 }
   0x5   : > { %s786_s15 = smov (%p27_p1, %s25_s15), 0  ;;  %p174_p3 = pnand %p585_p0, %p173_p2 }
   0x6   : > { %p210_p4 = scmp.lt.s32.totalorder (!%p174_p3), %s641_s12, 1  ;;  %v242_v0 = vlaneseq (!%p174_p3)  ;;  %v239_v2 = vld [vmem:[%s780_s1] sm:$0xff] (!%p174_p3)  ;;  %v728_v28 = vld [vmem:[%s780_s1 + $0x8] ss:$0 sm:$0xff] (!%p174_p3) }
   0x7   : > { %177 = sbr.rel (%p174_p3) target bundleno = 81 (0x51), region = 32 }
   0x8   : > { %v243_v1 = vshrl.u32 (!%p174_p3), %v242_v0, 7 }
   0xa   : > { %v244_v3 = vsub.s32 (!%p174_p3), 0, %v243_v1  ;;  %v252_v4 = vsub.s32 (!%p174_p3), 1, %v243_v1  ;;  %v276_v5 = vsub.s32 (!%p174_p3), 2, %v243_v1  ;;  %v300_v6 = vsub.s32 (!%p174_p3), 3, %v243_v1 }
   0xb   : > { %v312_v7 = vsub.s32 (!%p174_p3), 4, %v243_v1  ;;  %v336_v8 = vsub.s32 (!%p174_p3), 5, %v243_v1  ;;  %v360_v9 = vsub.s32 (!%p174_p3), 6, %v243_v1  ;;  %v372_v10 = vsub.s32 (!%p174_p3), 7, %v243_v1 }
   0xc   : > { %v700_v11 = vrot.slane (!%p174_p3), %v239_v2, %v244_v3  ;;  %v702_v12 = vrot.slane (!%p174_p3), %v239_v2, %v252_v4  ;;  %v704_v13 = vrot.slane (!%p174_p3), %v239_v2, %v276_v5  ;;  %v708_v16 = vrot.slane (!%p174_p3), %v239_v2, %v300_v6 }
   0xd   : > { %v710_v17 = vrot.slane (!%p174_p3), %v239_v2, %v312_v7  ;;  %v712_v18 = vrot.slane (!%p174_p3), %v239_v2, %v336_v8  ;;  %v714_v19 = vrot.slane (!%p174_p3), %v239_v2, %v372_v10  ;;  %v722_v26 = vrot.slane (!%p174_p3), %v239_v2, %v360_v9 }
   0xe   : > { %s788_s12 = smov (!%p210_p4, %s641_s12), 1 }
   0xf   : > { %s594_s18 = smul.u32 48, %s788_s12  ;;  %s593_s26 = sshll.u32 %s788_s12, 4 }
  0x10   : > { %s232_s29 = scalar_lea.vmem %s782_s3, %s593_s26 }
  0x11   : > { %s698_s21 = scalar_lea.vmem %s779_s0, %s594_s18 }
  0x12   : > { %v233_v14 = vld [vmem:[%s698_s21] sm:$0x3f]  ;;  %v234_v15 = vld [vmem:[%s698_s21 + $0x8] sm:$0x3f]  ;;  %v235_v27 = vld [vmem:[%s698_s21 + $0x10] sm:$0x3f] }
  0x13   : > { %v246_v20 = vmul.f32 %v700_v11, %v233_v14  ;;  %v247_v21 = vmul.f32 %v700_v11, %v234_v15  ;;  %v254_v22 = vmul.f32 %v702_v12, %v233_v14  ;;  %v255_v23 = vmul.f32 %v702_v12, %v234_v15  ;;  %v236_v42 = vld [vmem:[%s698_s21 + $0x18] sm:$0x3f]  ;;  %v237_v3 = vld [vmem:[%s698_s21 + $0x20] sm:$0x3f] }
  0x14   : > { %v278_v24 = vmul.f32 %v704_v13, %v233_v14  ;;  %v314_v25 = vmul.f32 %v710_v17, %v234_v15  ;;  %v338_v32 = vmul.f32 %v712_v18, %v234_v15  ;;  %v374_v33 = vmul.f32 %v714_v19, %v235_v27 }
  0x15   : > { %v262_v29 = vrot.slane %v254_v22, 1  ;;  %v263_v30 = vrot.slane %v255_v23, 1  ;;  %v302_v35 = vmul.f32 %v708_v16, %v234_v15  ;;  %v279_v37 = vmul.f32 %v704_v13, %v234_v15 }
  0x16   : > { %v286_v31 = vrot.slane %v278_v24, 2  ;;  %v322_v38 = vrot.slane %v314_v25, 1  ;;  %v362_v39 = vmul.f32 %v722_v26, %v235_v27  ;;  %v398_v40 = vmul.f32 %v728_v28, %v235_v27 }
  0x17   : > { %v270_v34 = vadd.f32 %v262_v29, %v246_v20  ;;  %v271_v36 = vadd.f32 %v263_v30, %v247_v21  ;;  %v315_v41 = vmul.f32 %v710_v17, %v235_v27  ;;  %v287_v44 = vrot.slane %v279_v37, 2 }
  0x18   : > { %v303_v45 = vmul.f32 %v708_v16, %v235_v27  ;;  %v339_v46 = vmul.f32 %v712_v18, %v235_v27  ;;  %v346_v47 = vrot.slane %v338_v32, 2  ;;  %v382_v48 = vrot.slane %v374_v33, 1 }
  0x19   : > { %v294_v43 = vadd.f32 %v286_v31, %v270_v34  ;;  %v323_v49 = vrot.slane %v315_v41, 1  ;;  %v375_v50 = vmul.f32 %v714_v19, %v236_v42  ;;  %v295_v52 = vadd.f32 %v287_v44, %v271_v36 }
  0x1a   : > { %v248_v53 = vmul.f32 %v700_v11, %v235_v27  ;;  %v256_v54 = vmul.f32 %v702_v12, %v235_v27  ;;  %v406_v55 = vrot.slane %v398_v40, 2  ;;  %v399_v56 = vmul.f32 %v728_v28, %v236_v42 }
  0x1b   : > { %v306_v51 = vadd.f32 %v302_v35, %v294_v43  ;;  %v280_v57 = vmul.f32 %v704_v13, %v235_v27  ;;  %v316_v58 = vmul.f32 %v710_v17, %v236_v42  ;;  %v307_v60 = vadd.f32 %v303_v45, %v295_v52 }
  0x1c   : > { %v347_v61 = vrot.slane %v339_v46, 2  ;;  %v264_v62 = vrot.slane %v256_v54, 1  ;;  %v363_v63 = vmul.f32 %v722_v26, %v236_v42  ;;  %v383_v0 = vrot.slane %v375_v50, 1 }
  0x1d   : > { %v330_v59 = vadd.f32 %v322_v38, %v306_v51  ;;  %v288_v1 = vrot.slane %v280_v57, 2  ;;  %v340_v2 = vmul.f32 %v712_v18, %v236_v42  ;;  %v331_v5 = vadd.f32 %v323_v49, %v307_v60  ;;  %v238_v38 = vld [vmem:[%s698_s21 + $0x28] sm:$0x3f] }
  0x1e   : > { %v272_v6 = vadd.f32 %v264_v62, %v248_v53  ;;  %v304_v7 = vmul.f32 %v708_v16, %v236_v42  ;;  %v407_v8 = vrot.slane %v399_v56, 2  ;;  %v324_v9 = vrot.slane %v316_v58, 1 }
  0x1f   : > { %v354_v4 = vadd.f32 %v346_v47, %v330_v59  ;;  %v249_v10 = vmul.f32 %v700_v11, %v236_v42  ;;  %v257_v14 = vmul.f32 %v702_v12, %v236_v42  ;;  %v355_v20 = vadd.f32 %v347_v61, %v331_v5  ;;  %v590_v11 = vld [vmem:[%s781_s2] ss:$0 sm:$0xff] }
  0x20   : > { %v296_v21 = vadd.f32 %v288_v1, %v272_v6  ;;  %v281_v22 = vmul.f32 %v704_v13, %v236_v42  ;;  %v348_v23 = vrot.slane %v340_v2, 2  ;;  %v376_v24 = vmul.f32 %v714_v19, %v237_v3 }
  0x21   : > { %v366_v15 = vadd.f32 %v362_v39, %v354_v4  ;;  %v265_v25 = vrot.slane %v257_v14, 1  ;;  %v317_v27 = vmul.f32 %v710_v17, %v237_v3  ;;  %v367_v30 = vadd.f32 %v363_v63, %v355_v20 }
  0x22   : > { %v308_v31 = vadd.f32 %v304_v7, %v296_v21  ;;  %v289_v32 = vrot.slane %v281_v22, 2  ;;  %v364_v12 = vmul.f32 %v722_v26, %v237_v3  ;;  %v305_v13 = vmul.f32 %v708_v16, %v237_v3 }
  0x23   : > { %v390_v29 = vadd.f32 %v382_v48, %v366_v15  ;;  %v273_v33 = vadd.f32 %v265_v25, %v249_v10  ;;  %v341_v34 = vmul.f32 %v712_v18, %v237_v3  ;;  %v391_v36 = vadd.f32 %v383_v0, %v367_v30 }
  0x24   : > { %v332_v37 = vadd.f32 %v324_v9, %v308_v31  ;;  %v400_v17 = vmul.f32 %v728_v28, %v237_v3  ;;  %v325_v40 = vrot.slane %v317_v27, 1  ;;  %v384_v44 = vrot.slane %v376_v24, 1 }
  0x25   : > { %v414_v35 = vadd.f32 %v406_v55, %v390_v29  ;;  %v297_v39 = vadd.f32 %v289_v32, %v273_v33  ;;  %v415_v42 = vadd.f32 %v407_v8, %v391_v36  ;;  %v349_v46 = vrot.slane %v341_v34, 2 }
  0x26   : > { %v356_v43 = vadd.f32 %v348_v23, %v332_v37  ;;  %v377_v47 = vmul.f32 %v714_v19, %v238_v38  ;;  %v408_v18 = vrot.slane %v400_v17, 2  ;;  %v365_v51 = vmul.f32 %v722_v26, %v238_v38 }
  0x27   : > { %v424_v41 = vadd.f32 %v590_v11, %v414_v35  ;;  %v309_v45 = vadd.f32 %v305_v13, %v297_v39  ;;  %v425_v16 = vadd.f32 %v590_v11, %v415_v42  ;;  %v401_v52 = vmul.f32 %v728_v28, %v238_v38 }
  0x28   : > { %v368_v49 = vadd.f32 %v364_v12, %v356_v43  ;;  %v385_v57 = vrot.slane %v377_v47, 1 }
  0x29   : > { %v428_v48 = vmul.f32 %v424_v41, %v424_v41  ;;  %v333_v50 = vadd.f32 %v325_v40, %v309_v45  ;;  %v429_v54 = vmul.f32 %v425_v16, %v425_v16  ;;  %v409_v62 = vrot.slane %v401_v52, 2 }
  0x2a   : > { %v392_v55 = vadd.f32 %v384_v44, %v368_v49 }
  0x2b   : > { %v432_v53 = vmul.f32 %v428_v48, %v424_v41  ;;  %v357_v56 = vadd.f32 %v349_v46, %v333_v50  ;;  %v433_v59 = vmul.f32 %v429_v54, %v425_v16 }
  0x2c   : > { %v416_v60 = vadd.f32 %v408_v18, %v392_v55 }
  0x2d   : > { %v436_v58 = vmul.f32 0.044715, %v432_v53  ;;  %v369_v61 = vadd.f32 %v365_v51, %v357_v56  ;;  %v437_v63 = vmul.f32 0.044715, %v433_v59 }
  0x2e   : > { %v426_v0 = vadd.f32 %v590_v11, %v416_v60 }
  0x2f   : > { %v440_v19 = vadd.f32 %v436_v58, %v424_v41  ;;  %v393_v1 = vadd.f32 %v385_v57, %v369_v61  ;;  %v441_v3 = vadd.f32 %v437_v63, %v425_v16 }
  0x30   : > { %v430_v4 = vmul.f32 %v426_v0, %v426_v0 }
  0x31   : > { %v444_v2 = vmul.f32 0.7978846, %v440_v19  ;;  %v417_v26 = vadd.f32 %v409_v62, %v393_v1  ;;  %v445_v28 = vmul.f32 0.7978846, %v441_v3 }
  0x32   : > { %v434_v5 = vmul.f32 %v430_v4, %v426_v0 }
  0x33   : > { %619 = vtanh.f32 %v444_v2  ;;  %v427_v6 = vadd.f32 %v590_v11, %v417_v26 }
  0x34   : > { %621 = vtanh.f32 %v445_v28  ;;  %v438_v7 = vmul.f32 0.044715, %v434_v5 }
  0x35   : > { %v431_v8 = vmul.f32 %v427_v6, %v427_v6 }
  0x36   : > { %v442_v9 = vadd.f32 %v438_v7, %v426_v0 }
  0x37   : > { %v435_v10 = vmul.f32 %v431_v8, %v427_v6 }
  0x38   : > { %v446_v14 = vmul.f32 0.7978846, %v442_v9 }
  0x39   : > { %v439_v15 = vmul.f32 0.044715, %v435_v10 }
  0x3a   : > { %623 = vtanh.f32 %v446_v14 }
  0x3b   : > { %v443_v20 = vadd.f32 %v439_v15, %v427_v6 }
  0x3d   : > { %v620_v21 = vpop.eup %619  ;;  %v447_v23 = vmul.f32 0.7978846, %v443_v20 }
  0x3e   : > { %v452_v22 = vadd.f32 1.0, %v620_v21  ;;  %v622_v24 = vpop.eup %621 }
  0x3f   : > { %v453_v27 = vadd.f32 1.0, %v622_v24  ;;  %625 = vtanh.f32 %v447_v23 }
  0x40   : > { %v456_v25 = vmul.f32 0.5, %v452_v22 }
  0x41   : > { %v457_v30 = vmul.f32 0.5, %v453_v27 }
  0x42   : > { %v460_v29 = vmul.f32 %v456_v25, %v424_v41 }
  0x43   : > { %v461_v31 = vmul.f32 %v457_v30, %v425_v16 }
  0x44   : > { %464 = vst [vmem:[%s232_s29] sm:$0xf] %v460_v29  ;;  %v624_v32 = vpop.eup %623 }
  0x45   : > { %465 = vst [vmem:[%s232_s29 + $0x4] sm:$0xf] %v461_v31  ;;  %v454_v11 = vadd.f32 1.0, %v624_v32 }
  0x47   : > { %v458_v12 = vmul.f32 0.5, %v454_v11 }
  0x49   : > { %v626_v33 = vpop.eup %625  ;;  %v462_v13 = vmul.f32 %v458_v12, %v426_v0 }
  0x4a   : > { %v455_v34 = vadd.f32 1.0, %v626_v33 }
  0x4b   : > { %466 = vst [vmem:[%s232_s29 + $0x8] sm:$0xf] %v462_v13 }
  0x4c   : > { %v459_v35 = vmul.f32 0.5, %v455_v34 }
  0x4e   : > { %v463_v36 = vmul.f32 %v459_v35, %v427_v6 }
  0x50   : > { %467 = vst [vmem:[%s232_s29 + $0xc] sm:$0xf] %v463_v36 }
  0x51 PF: > { %s13_s14 = sadd.s32 1, %s649_s14   ;;  %s783_s12 = smov %s645_s13 }
  0x52   : > { %p10_p5 = scmp.ge.s32.totalorder %s13_s14, 4   ;;  %s784_s13 = smov %s786_s15 }
  0x54   :  { %12 = sbr.rel (!%p10_p5) target bundleno = 2 (0x2), region = 68 }

// kernel: fwd.54
= control target key start
LH: loop header
LB: loop body
LE: loop exit
PB: predicated region body
PF: predicated region fallthrough
CT: control target
= control target key end

     0   :  { %v263_v3 = vmov 0.0   ;;  %vm264_vm0 = vmmov 0   ;;  %vm88_vm1 = vcmask 261120   ;;  %vm25_vm2 = vcmask 523264   ;;  %s433_s1 = inlined_call_operand.vmem [shape: f32[288,64], index: 1, kind: input, shape index: {}]   ;;  %s434_s0 = inlined_call_operand.vmem [shape: f32[8,288], index: 0, kind: input, shape index: {}]   ;;  %s435_s2 = inlined_call_operand.vmem [shape: f32[1,64], index: 2, kind: input, shape index: {}]   ;;  %s436_s3 = inlined_call_operand.vmem [shape: f32[1,64], index: 3, kind: input, shape index: {}]   ;;  %s437_s4 = inlined_call_operand.vmem [shape: f32[1,64], index: 4, kind: input, shape index: {}]   ;;  %s438_s5 = inlined_call_operand.vmem [shape: f32[8,64], index: 5, kind: output, shape index: {}]  }
   0x1   :  { %v50_v0 = vld [vmem:[%s433_s1 + $0x80] sm:$0xff]  ;;  %v51_v1 = vld [vmem:[%s433_s1 + $0x88] sm:$0xff]  ;;  %251 = vmatprep.subr.bf16.mxu1 %v263_v3  ;;  %255 = vmatprep.mubr.msk.bf16.mxu1 %vm264_vm0, %v263_v3  ;;  %v52_v6 = vld [vmem:[%s433_s1 + $0x90] sm:$0xff]  ;;  %26 = vst.msk [vmem:[#allocation2] sm:$0xff] %vm25_vm2, %v263_v3 }
   0x2   :  { %v34_v2 = vld [vmem:[%s433_s1] sm:$0xff]  ;;  %v78_v4 = vpack.c.bf16 %v51_v1, %v50_v0  ;;  %v35_v5 = vld [vmem:[%s433_s1 + $0x8] sm:$0xff]  ;;  %v53_v7 = vld [vmem:[%s433_s1 + $0x98] sm:$0xff] }
   0x3   :  { %v70_v8 = vpack.c.bf16 %v35_v5, %v34_v2  ;;  %v79_v9 = vpack.c.bf16 %v53_v7, %v52_v6  ;;  %v36_v10 = vld [vmem:[%s433_s1 + $0x10] sm:$0xff]  ;;  %v37_v11 = vld [vmem:[%s433_s1 + $0x18] sm:$0xff]  ;;  %v54_v12 = vld [vmem:[%s433_s1 + $0xa0] sm:$0xff] }
   0x4   :  { %226 = vmatprep.subr.bf16.mxu0 %v78_v4  ;;  %v55_v13 = vld [vmem:[%s433_s1 + $0xa8] sm:$0xff]  ;;  %v71_v14 = vpack.c.bf16 %v37_v11, %v36_v10  ;;  %v38_v16 = vld [vmem:[%s433_s1 + $0x20] sm:$0xff]  ;;  %v56_v18 = vld [vmem:[%s433_s1 + $0xb0] sm:$0xff] }
   0x5   :  { %227 = vmatpush3.bf16.msra.mxu0 %v70_v8  ;;  %v80_v15 = vpack.c.bf16 %v55_v13, %v54_v12  ;;  %v39_v17 = vld [vmem:[%s433_s1 + $0x28] sm:$0xff]  ;;  %v57_v19 = vld [vmem:[%s433_s1 + $0xb8] sm:$0xff]  ;;  %v40_v21 = vld [vmem:[%s433_s1 + $0x30] sm:$0xff] }
   0x6   :  { %228 = vmatprep.subr.bf16.mxu0 %v79_v9  ;;  %v72_v20 = vpack.c.bf16 %v39_v17, %v38_v16  ;;  %v81_v22 = vpack.c.bf16 %v57_v19, %v56_v18  ;;  %v41_v23 = vld [vmem:[%s433_s1 + $0x38] sm:$0xff]  ;;  %v66_v24 = vld [vmem:[%s433_s1 + $0x100] sm:$0xff]  ;;  %v67_v25 = vld [vmem:[%s433_s1 + $0x108] sm:$0xff] }
   0x7   :  { %v58_v26 = vld [vmem:[%s433_s1 + $0xc0] sm:$0xff]  ;;  %v59_v27 = vld [vmem:[%s433_s1 + $0xc8] sm:$0xff]  ;;  %v86_v28 = vpack.c.bf16 %v67_v25, %v66_v24  ;;  %v68_v29 = vld [vmem:[%s433_s1 + $0x110] sm:$0xff]  ;;  %v73_v31 = vpack.c.bf16 %v41_v23, %v40_v21 }
   0x8   :  { %v69_v30 = vld [vmem:[%s433_s1 + $0x118] sm:$0xff]  ;;  %v28_v33 = vld [vmem:[%s434_s0 + $0x8] sm:$0xff]  ;;  %v29_v34 = vld [vmem:[%s434_s0 + $0x10] sm:$0xff]  ;;  %v82_v35 = vpack.c.bf16 %v59_v27, %v58_v26 }
   0x9   :  { %229 = vmatpush3.bf16.msra.mxu0 %v71_v14  ;;  %252 = vmatpush3.bf16.msra.mxu1 %v86_v28  ;;  %v87_v32 = vpack.c.bf16 %v69_v30, %v68_v29  ;;  %v42_v36 = vld [vmem:[%s433_s1 + $0x40] sm:$0xff]  ;;  %v43_v37 = vld [vmem:[%s433_s1 + $0x48] sm:$0xff]  ;;  %v32_v38 = vpack.c.bf16 %v28_v33, %v28_v33  ;;  %v60_v39 = vld [vmem:[%s433_s1 + $0xd0] sm:$0xff]  ;;  %v33_v41 = vpack.c.bf16 %v29_v34, %v29_v34 }
   0xa   :  { %230 = vmatprep.subr.bf16.mxu0 %v80_v15  ;;  %253 = vmatprep.subr.bf16.mxu1 %v263_v3  ;;  %v61_v40 = vld [vmem:[%s433_s1 + $0xd8] sm:$0xff]  ;;  %v74_v42 = vpack.c.bf16 %v43_v37, %v42_v36  ;;  %v44_v44 = vld [vmem:[%s433_s1 + $0x50] sm:$0xff]  ;;  %v62_v46 = vld [vmem:[%s433_s1 + $0xe0] sm:$0xff] }
   0xb   :  { %124 = vmatprep.mubr.bf16.mxu0 %v32_v38  ;;  %v83_v43 = vpack.c.bf16 %v61_v40, %v60_v39  ;;  %v45_v45 = vld [vmem:[%s433_s1 + $0x58] sm:$0xff]  ;;  %v63_v47 = vld [vmem:[%s433_s1 + $0xe8] sm:$0xff]  ;;  %v46_v50 = vld [vmem:[%s433_s1 + $0x60] sm:$0xff] }
   0xc   :  { %v75_v48 = vpack.c.bf16 %v45_v45, %v44_v44  ;;  %v84_v49 = vpack.c.bf16 %v63_v47, %v62_v46  ;;  %v47_v51 = vld [vmem:[%s433_s1 + $0x68] sm:$0xff]  ;;  %v64_v52 = vld [vmem:[%s433_s1 + $0xf0] sm:$0xff]  ;;  %v65_v53 = vld [vmem:[%s433_s1 + $0xf8] sm:$0xff] }
   0xd   :  { %231 = vmatpush3.bf16.msra.mxu0 %v72_v20  ;;  %254 = vmatpush3.bf16.msra.mxu1 %v87_v32  ;;  %v76_v54 = vpack.c.bf16 %v47_v51, %v46_v50  ;;  %v85_v55 = vpack.c.bf16 %v65_v53, %v64_v52  ;;  %v48_v56 = vld [vmem:[%s433_s1 + $0x70] sm:$0xff]  ;;  %v49_v57 = vld [vmem:[%s433_s1 + $0x78] sm:$0xff]  ;;  %v27_v59 = vld [vmem:[%s434_s0] sm:$0xff] }
   0xe   :  { %232 = vmatprep.subr.bf16.mxu0 %v81_v22  ;;  %v77_v58 = vpack.c.bf16 %v49_v57, %v48_v56  ;;  %v31_v60 = vpack.c.bf16 %v27_v59, %v27_v59  ;;  %v30_v6 = vld [vmem:[#allocation2] sm:$0xff] }
   0xf   :  { %v223_v10 = vld [vmem:[%s435_s2] ss:$0 sm:$0xff] }
  0x10   :  { %256 = vmatmul.mubr.msk.bf16.vlgmr.msra.gmra.mrb[0].mxu1 %vm88_vm1, %v33_v41  ;;  %v224_v22 = vld [vmem:[%s436_s3] ss:$0 sm:$0xff] }
  0x11   :  { %233 = vmatpush3.bf16.msra.mxu0 %v73_v31  ;;  %v225_v24 = vld [vmem:[%s437_s4] ss:$0 sm:$0xff] }
  0x12   :  { %234 = vmatprep.subr.bf16.mxu0 %v82_v35 }
  0x15   :  { %235 = vmatpush3.bf16.msra.mxu0 %v74_v42 }
  0x16   :  { %236 = vmatprep.subr.bf16.mxu0 %v83_v43 }
  0x19   :  { %237 = vmatpush3.bf16.msra.mxu0 %v75_v48 }
  0x1a   :  { %238 = vmatprep.subr.bf16.mxu0 %v84_v49 }
  0x1d   :  { %239 = vmatpush3.bf16.msra.mxu0 %v76_v54 }
  0x1e   :  { %240 = vmatprep.subr.bf16.mxu0 %v85_v55 }
  0x21   :  { %241 = vmatpush3.bf16.msra.mxu0 %v77_v58 }
  0x24   :  { %125 = vmatmul.mubr.bf16.vlgmr.msra.gmra.mrb[0].mxu0 %v31_v60 }
  0xe3   :  { %v166_v61 = vpop.f32.mrb[0].mxu1 }
  0xe4   :  { %v257_v62 = vpop.f32.mrb[1].mxu1 }
  0xe5   :  { %v169_v63 = vpop.f32.mrb[2].mxu1 }
  0xe6   :  { %v258_v0 = vpop.f32.mrb[3].mxu1 }
  0xf7   :  { %v242_v1 = vpop.f32.mrb[0].mxu0 }
  0xf8   :  { %v243_v2 = vpop.f32.mrb[1].mxu0 }
  0xf9   :  { %v244_v4 = vadd.f32 %v243_v2, %v242_v1  ;;  %v245_v5 = vpop.f32.mrb[2].mxu0 }
  0xfa   :  { %v246_v7 = vpop.f32.mrb[3].mxu0 }
  0xfb   :  { %v167_v8 = vadd.f32 %v244_v4, %v166_v61 }
  0xfd   :  { %v172_v9 = vadd.f32 %v167_v8, %v30_v6 }
  0xff   :  { %174 = vst.msk [vmem:[#allocation2] sm:$0xff] %vm25_vm2, %v172_v9 }
 0x106   :  { %v178_v11 = vld [vmem:[#allocation2] sm:$0xff] }
 0x107   :  { %v186_v3 = vadd.f32 %v223_v10, %v178_v11 }
 0x109   :  { %v187_v12 = vsel %vm25_vm2, %v186_v3, 0.0 }
 0x10a   :  { %188 = vadd.xlane.f32.xlu0 %v187_v12 }
 0x197   :  { %v189_v13 = vpop.xlane.xlu0 %188 }
 0x198   :  { %v191_v14 = vmul.f32 0.015625, %v189_v13 }
 0x19a   :  { %v192_v15 = vsub.f32 %v186_v3, %v191_v14 }
 0x19c   :  { %v193_v16 = vmul.f32 %v192_v15, %v192_v15 }
 0x19e   :  { %v194_v17 = vsel %vm25_vm2, %v193_v16, 0.0 }
 0x19f   :  { %195 = vadd.xlane.f32.xlu0 %v194_v17 }
 0x22c   :  { %v196_v18 = vpop.xlane.xlu0 %195 }
 0x22d   :  { %v197_v19 = vmul.f32 0.015625, %v196_v18 }
 0x22f   :  { %v198_v20 = vadd.f32 1e-06, %v197_v19 }
 0x231   :  { %261 = vrsqrt.f32 %v198_v20 }
 0x23b   :  { %v262_v21 = vpop.eup %261 }
 0x23c   :  { %v200_v23 = vmul.f32 %v262_v21, %v192_v15 }
 0x23e   :  { %v208_v25 = vmul.f32 %v224_v22, %v200_v23 }
 0x240   :  { %v216_v26 = vadd.f32 %v225_v24, %v208_v25 }
 0x242   :  { %217 = vst.msk [vmem:[%s438_s5] sm:$0xff] %vm25_vm2, %v216_v26 }

// kernel: fwd.55
= control target key start
LH: loop header
LB: loop body
LE: loop exit
PB: predicated region body
PF: predicated region fallthrough
CT: control target
= control target key end

     0   :  { %vm26_vm0 = vcmask 523264   ;;  %v167_v30 = vmov 0   ;;  %v168_v32 = vmov 0.0   ;;  %v142_v43 = vlaneseq  ;;  %s271_s0 = inlined_call_operand.vmem [shape: f32[8,64], index: 0, kind: input, shape index: {}]   ;;  %s272_s1 = inlined_call_operand.vmem [shape: f32[64,192], index: 1, kind: input, shape index: {}]   ;;  %s273_s3 = inlined_call_operand.vmem [shape: f32[1,64], index: 3, kind: input, shape index: {}]   ;;  %s274_s4 = inlined_call_operand.vmem [shape: f32[1,64], index: 4, kind: input, shape index: {}]   ;;  %s275_s2 = inlined_call_operand.vmem [shape: f32[1,192], index: 2, kind: input, shape index: {}]   ;;  %s276_s5 = inlined_call_operand.vmem [shape: f32[8,192], index: 5, kind: output, shape index: {}]  }
   0x1   :  { %v28_v0 = vld [vmem:[%s271_s0] sm:$0xff]  ;;  %v64_v7 = vld [vmem:[%s272_s1 + $0x8] sm:$0xff]  ;;  %v66_v8 = vld [vmem:[%s272_s1 + $0x18] sm:$0xff]  ;;  %122 = vmatprep.mubr.bf16.mxu0 %v167_v30  ;;  %27 = vst.msk [vmem:[#allocation2 + $0x8] sm:$0xff] %vm26_vm0, %v168_v32 }
   0x2   :  { %v30_v1 = vsel %vm26_vm0, %v28_v0, 0.0  ;;  %v80_v9 = vpack.c.bf16 %v66_v8, %v64_v7  ;;  %v63_v10 = vld [vmem:[%s272_s1] sm:$0xff]  ;;  %v65_v11 = vld [vmem:[%s272_s1 + $0x10] sm:$0xff]  ;;  %v68_v13 = vld [vmem:[%s272_s1 + $0x28] sm:$0xff]  ;;  %v143_v44 = vshrl.u32 %v142_v43, 7 }
   0x3   :  { %31 = vadd.xlane.f32.xlu0 %v30_v1  ;;  %v79_v12 = vpack.c.bf16 %v65_v11, %v63_v10  ;;  %v70_v14 = vld [vmem:[%s272_s1 + $0x38] sm:$0xff]  ;;  %v67_v16 = vld [vmem:[%s272_s1 + $0x20] sm:$0xff]  ;;  %v69_v17 = vld [vmem:[%s272_s1 + $0x30] sm:$0xff] }
   0x4   :  { %90 = vmatprep.subr.bf16.mxu0 %v80_v9  ;;  %v82_v15 = vpack.c.bf16 %v70_v14, %v68_v13  ;;  %v81_v18 = vpack.c.bf16 %v69_v17, %v67_v16  ;;  %v72_v19 = vld [vmem:[%s272_s1 + $0x48] sm:$0xff]  ;;  %v74_v20 = vld [vmem:[%s272_s1 + $0x58] sm:$0xff]  ;;  %v71_v22 = vld [vmem:[%s272_s1 + $0x40] sm:$0xff]  ;;  %v144_v45 = vsub.s32 0, %v143_v44  ;;  %v148_v55 = vsub.s32 1, %v143_v44 }
   0x5   :  { %91 = vmatpush1.bf16.msra.mxu0 %v79_v12  ;;  %v84_v21 = vpack.c.bf16 %v74_v20, %v72_v19  ;;  %v73_v23 = vld [vmem:[%s272_s1 + $0x50] sm:$0xff]  ;;  %v76_v25 = vld [vmem:[%s272_s1 + $0x68] sm:$0xff]  ;;  %v78_v26 = vld [vmem:[%s272_s1 + $0x78] sm:$0xff] }
   0x6   :  { %92 = vmatprep.subr.bf16.mxu0 %v82_v15  ;;  %v83_v24 = vpack.c.bf16 %v73_v23, %v71_v22  ;;  %v75_v27 = vld [vmem:[%s272_s1 + $0x60] sm:$0xff]  ;;  %v86_v28 = vpack.c.bf16 %v78_v26, %v76_v25  ;;  %v77_v29 = vld [vmem:[%s272_s1 + $0x70] sm:$0xff] }
   0x7   :  { %v85_v31 = vpack.c.bf16 %v77_v29, %v75_v27  ;;  %v160_v37 = vld [vmem:[%s273_s3] ss:$0 sm:$0xff] }
   0x8   :  { %v161_v39 = vld [vmem:[%s274_s4] ss:$0 sm:$0xff]  ;;  %v61_v48 = vld [vmem:[#allocation2 + $0x8] sm:$0xff] }
   0x9   :  { %93 = vmatpush1.bf16.msra.mxu0 %v81_v18  ;;  %v140_v46 = vld [vmem:[%s275_s2] sm:$0x3] }
   0xa   :  { %94 = vmatprep.subr.bf16.mxu0 %v84_v21  ;;  %v145_v47 = vrot.slane %v140_v46, %v144_v45  ;;  %v149_v56 = vrot.slane %v140_v46, %v148_v55 }
   0xd   :  { %95 = vmatpush1.bf16.msra.mxu0 %v83_v24 }
   0xe   :  { %96 = vmatprep.subr.bf16.mxu0 %v86_v28 }
  0x11   :  { %97 = vmatpush1.bf16.msra.mxu0 %v85_v31 }
  0x90   :  { %v32_v2 = vpop.xlane.xlu0 %31 }
  0x91   :  { %v34_v3 = vmul.f32 0.015625, %v32_v2 }
  0x93   :  { %v35_v4 = vsub.f32 %v28_v0, %v34_v3 }
  0x95   :  { %v36_v5 = vmul.f32 %v35_v4, %v35_v4 }
  0x97   :  { %v37_v6 = vsel %vm26_vm0, %v36_v5, 0.0 }
  0x98   :  { %38 = vadd.xlane.f32.xlu0 %v37_v6 }
 0x125   :  { %v39_v33 = vpop.xlane.xlu0 %38 }
 0x126   :  { %v40_v34 = vmul.f32 0.015625, %v39_v33 }
 0x128   :  { %v41_v35 = vadd.f32 1e-06, %v40_v34 }
 0x12a   :  { %165 = vrsqrt.f32 %v41_v35 }
 0x134   :  { %v166_v36 = vpop.eup %165 }
 0x135   :  { %v43_v38 = vmul.f32 %v166_v36, %v35_v4 }
 0x137   :  { %v51_v40 = vmul.f32 %v160_v37, %v43_v38 }
 0x139   :  { %v59_v41 = vadd.f32 %v161_v39, %v51_v40 }
 0x13b   :  { %v62_v42 = vpack.c.bf16 %v59_v41, %v59_v41 }
 0x13d   :  { %162 = vmatmul.mubr.msk.bf16.vlgmr.msra.gmra.mrb[0].mxu0 %vm26_vm0, %v62_v42 }
 0x210   :  { %v124_v49 = vpop.f32.mrb[0].mxu0 }
 0x211   :  { %v126_v50 = vpop.f32.mrb[1].mxu0  ;;  %v152_v53 = vadd.f32 %v145_v47, %v124_v49 }
 0x212   :  { %v132_v51 = vadd.f32 %v126_v50, %v61_v48  ;;  %v128_v52 = vpop.f32.mrb[2].mxu0 }
 0x213   :  { %v129_v54 = vpop.f32.mrb[3].mxu0  ;;  %154 = vst [vmem:[%s276_s5] sm:$0xff] %v152_v53 }
 0x214   :  { %134 = vst.msk [vmem:[#allocation2 + $0x8] sm:$0xff] %vm26_vm0, %v132_v51 }
 0x21b   :  { %v139_v57 = vld [vmem:[#allocation2 + $0x8] sm:$0xff] }
 0x21c   :  { %v153_v58 = vadd.f32 %v149_v56, %v139_v57 }
 0x21e   :  { %155 = vst.msk [vmem:[%s276_s5 + $0x8] sm:$0xff] %vm26_vm0, %v153_v58 }

// kernel: fwd.57
= control target key start
LH: loop header
LB: loop body
LE: loop exit
PB: predicated region body
PF: predicated region fallthrough
CT: control target
= control target key end

     0   :  { %vm22_vm0 = vcmask 523264   ;;  %v125_v0 = vmov 0.0   ;;  %vm126_vm1 = vmmov 0   ;;  %s192_s1 = inlined_call_operand.vmem [shape: f32[64,64], index: 1, kind: input, shape index: {}]   ;;  %s193_s0 = inlined_call_operand.vmem [shape: f32[8,64], index: 0, kind: input, shape index: {}]   ;;  %s194_s2 = inlined_call_operand.vmem [shape: f32[1,64], index: 2, kind: input, shape index: {}]   ;;  %s195_s3 = inlined_call_operand.vmem [shape: f32[8,64], index: 3, kind: input, shape index: {}]   ;;  %s196_s4 = inlined_call_operand.vmem [shape: f32[8,64], index: 4, kind: output, shape index: {}]  }
   0x1   :  { %111 = vmatprep.subr.bf16.mxu0 %v125_v0  ;;  %v27_v1 = vld [vmem:[%s192_s1] sm:$0xff]  ;;  %v28_v2 = vld [vmem:[%s192_s1 + $0x8] sm:$0xff]  ;;  %v29_v3 = vld [vmem:[%s192_s1 + $0x10] sm:$0xff]  ;;  %119 = vmatprep.mubr.msk.bf16.mxu0 %vm126_vm1, %v125_v0  ;;  %23 = vst.msk [vmem:[#allocation2] sm:$0xff] %vm22_vm0, %v125_v0 }
   0x2   :  { %v35_v4 = vpack.c.bf16 %v28_v2, %v27_v1  ;;  %v30_v5 = vld [vmem:[%s192_s1 + $0x18] sm:$0xff]  ;;  %v31_v7 = vld [vmem:[%s192_s1 + $0x20] sm:$0xff]  ;;  %v32_v8 = vld [vmem:[%s192_s1 + $0x28] sm:$0xff] }
   0x3   :  { %v36_v6 = vpack.c.bf16 %v30_v5, %v29_v3  ;;  %v37_v9 = vpack.c.bf16 %v32_v8, %v31_v7  ;;  %v33_v10 = vld [vmem:[%s192_s1 + $0x30] sm:$0xff]  ;;  %v34_v11 = vld [vmem:[%s192_s1 + $0x38] sm:$0xff]  ;;  %v24_v13 = vld [vmem:[%s193_s0] sm:$0xff] }
   0x4   :  { %112 = vmatpush3.bf16.msra.mxu0 %v35_v4  ;;  %v38_v12 = vpack.c.bf16 %v34_v11, %v33_v10  ;;  %v26_v14 = vpack.c.bf16 %v24_v13, %v24_v13  ;;  %v105_v21 = vld [vmem:[%s194_s2] ss:$0 sm:$0xff] }
   0x5   :  { %113 = vmatprep.subr.bf16.mxu0 %v125_v0  ;;  %v97_v23 = vld [vmem:[%s195_s3] sm:$0xff] }
   0x8   :  { %114 = vmatpush3.bf16.msra.mxu0 %v36_v6  ;;  %v25_v15 = vld [vmem:[#allocation2] sm:$0xff] }
   0x9   :  { %115 = vmatprep.subr.bf16.mxu0 %v125_v0 }
   0xc   :  { %116 = vmatpush3.bf16.msra.mxu0 %v37_v9 }
   0xd   :  { %117 = vmatprep.subr.bf16.mxu0 %v125_v0 }
  0x10   :  { %118 = vmatpush3.bf16.msra.mxu0 %v38_v12 }
  0x13   :  { %120 = vmatmul.mubr.msk.bf16.vlgmr.msra.gmra.mrb[0].mxu0 %vm22_vm0, %v26_v14 }
  0xe6   :  { %v77_v16 = vpop.f32.mrb[0].mxu0 }
  0xe7   :  { %v83_v17 = vadd.f32 %v77_v16, %v25_v15  ;;  %v121_v18 = vpop.f32.mrb[1].mxu0 }
  0xe8   :  { %v80_v19 = vpop.f32.mrb[2].mxu0 }
  0xe9   :  { %84 = vst.msk [vmem:[#allocation2] sm:$0xff] %vm22_vm0, %v83_v17  ;;  %v122_v20 = vpop.f32.mrb[3].mxu0 }
  0xf0   :  { %v88_v22 = vld [vmem:[#allocation2] sm:$0xff] }
  0xf1   :  { %v96_v24 = vadd.f32 %v105_v21, %v88_v22 }
  0xf3   :  { %v98_v25 = vadd.f32 %v97_v23, %v96_v24 }
  0xf5   :  { %99 = vst.msk [vmem:[%s196_s4] sm:$0xff] %vm22_vm0, %v98_v25 }

// kernel: fwd.56
= control target key start
LH: loop header
LB: loop body
LE: loop exit
PB: predicated region body
PF: predicated region fallthrough
CT: control target
= control target key end

     0   :  { %s752_s9 = smov 0   ;;  %s754_s10 = smov 0   ;;  %s845_s0 = inlined_call_operand.vmem [shape: f32[2,4,64], index: 0, kind: input, shape index: {}]   ;;  %s846_s1 = inlined_call_operand.vmem [shape: f32[2,4,128], index: 1, kind: input, shape index: {}]   ;;  %s847_s2 = inlined_call_operand.vmem [shape: f32[2,4,64], index: 2, kind: output, shape index: {}]  }
   0x1   :  { %s756_s11 = smov 0  }
   0x2 LB: > { %s31_s12 = sadd.s32 1, %s724_s10  ;;  %p619_p0 = scmp.ge.s32.totalorder %s728_s11, 1  ;;  %s728_s11 = sphi %s756_s11, %s12_s11   ;;  %s724_s10 = sphi %s754_s10, %s849_s10   ;;  %s720_s9 = sphi %s752_s9, %s848_s9  }
   0x3   : > { %p33_p1 = scmp.ge.s32.totalorder %s31_s12, 2  ;;  %p151_p2 = scmp.lt.s32.totalorder %s728_s11, 3 }
   0x5   : > { %s851_s12 = smov (%p33_p1, %s31_s12), 0  ;;  %p152_p3 = pnand %p619_p0, %p151_p2 }
   0x6   : > { %p184_p4 = scmp.lt.s32.totalorder (!%p152_p3), %s720_s9, 1  ;;  %v730_v0 = vmov (!%p152_p3), 0.0   ;;  %vm731_vm0 = vmmov (!%p152_p3), 0   ;;  %vm222_vm1 = vcmask (!%p152_p3), 261120   ;;  %vm210_vm2 = vcmask (!%p152_p3), 3072   ;;  %s734_s20 = smov (!%p152_p3), 64  }
   0x7   : > { %155 = sbr.rel (%p152_p3) target bundleno = 1453 (0x5ad), region = 28  ;;  %637 = vmatprep.subr.bf16.mxu0 (!%p152_p3), %v730_v0  ;;  %639 = vmatprep.mubr.msk.bf16.mxu0 (!%p152_p3), %vm731_vm0, %v730_v0  ;;  %v732_v6 = vmov (!%p152_p3), -inf   ;;  %213 = vst.msk [vmem:[#allocation3] sm:$0xf] (!%p152_p3), %vm210_vm2, %v730_v0  ;;  %214 = vst.msk [vmem:[#allocation3 + $0x4] sm:$0xf] (!%p152_p3), %vm210_vm2, %v730_v0 }
   0x8   : > { %643 = vmatprep.subr.bf16.mxu1 (!%p152_p3), %v730_v0  ;;  %645 = vmatprep.mubr.msk.bf16.mxu1 (!%p152_p3), %vm731_vm0, %v730_v0  ;;  %211 = vst.msk [vmem:[#allocation2] sm:$0xf] (!%p152_p3), %vm210_vm2, %v732_v6  ;;  %212 = vst.msk [vmem:[#allocation2 + $0x4] sm:$0xf] (!%p152_p3), %vm210_vm2, %v732_v6  ;;  %vm271_vm3 = vcmask (!%p152_p3), 27648   ;;  %v733_v13 = vmov (!%p152_p3), 0  }
   0x9   : > { %692 = vset.pattern.permute.xlu0 (!%p152_p3), %v733_v13  ;;  %693 = vset.pattern.permute.xlu1 (!%p152_p3), %v733_v13  ;;  %s735_s21 = smov (!%p152_p3), 96   ;;  %vm310_vm4 = vcmask (!%p152_p3), 1041408   ;;  %vm306_vm5 = vcmask (!%p152_p3), 31744   ;;  %s736_s22 = smov (!%p152_p3), 32   ;;  %vm215_vm6 = vcmask (!%p152_p3), 257024   ;;  %vm521_vm7 = vcmask (!%p152_p3), 519168  }
   0xa   : > { %217 = vst.msk [vmem:[#allocation4 + $0x4] sm:$0xf] (!%p152_p3), %vm215_vm6, %v730_v0  ;;  %216 = vst.msk [vmem:[#allocation4] sm:$0xf] (!%p152_p3), %vm215_vm6, %v730_v0 }
   0xe   : > { %s853_s9 = smov (!%p184_p4, %s720_s9), 1  ;;  %v287_v47 = vld [vmem:[#allocation3] sm:$0xf]  ;;  %v428_v61 = vld [vmem:[#allocation3 + $0x4] sm:$0xf] }
   0xf   : > { %s776_s13 = sshll.u32 %s853_s9, 2  ;;  %v270_v14 = vld [vmem:[#allocation2] sm:$0xf]  ;;  %v411_v39 = vld [vmem:[#allocation2 + $0x4] sm:$0xf] }
  0x10   : > { %s197_s16 = scalar_lea.vmem %s846_s1, %s776_s13  ;;  %s190_s19 = scalar_lea.vmem %s845_s0, %s776_s13 }
  0x11   : > { %v219_v1 = vld [vmem:[%s197_s16] sm:$0xf]  ;;  %s204_s25 = scalar_lea.vmem %s847_s2, %s776_s13 }
  0x12   : > { %v782_v2 = vpack.c.bf16 %v219_v1, %v219_v1  ;;  %v218_v4 = vld [vmem:[%s190_s19] sm:$0xf] }
  0x13   : > { %v220_v5 = vpack.c.bf16 %v218_v4, %v218_v4 }
  0x14   : > { %v227_v3 = vsel %vm222_vm1, %v782_v2, 0  ;;  %304 = vrot.lane.b32.xlu1 %v782_v2, %s734_s20 }
  0x15   : > { %638 = vmatpush3.bf16.xpose.msra.mxu0 %v227_v3  ;;  %v295_v3 = vld [vmem:[#allocation4] sm:$0xf] }
  0x16   : > { %655 = vmatprep.subr.bf16.mxu0 %v730_v0 }
  0x18   : > { %361 = vrot.lane.b32.xlu1 %v782_v2, %s735_s21 }
  0x1c   : > { %640 = vmatmul.mubr.msk.bf16.vlgmr.msra.gmra.mrb[0].mxu0 %vm222_vm1, %v220_v5  ;;  %359 = vrot.lane.b32.xlu1 %v220_v5, %s735_s21 }
  0x1d   : > { %657 = vmatprep.mubr.msk.bf16.mxu0 %vm731_vm0, %v730_v0 }
  0x86   : > { %v305_v18 = vpop.permute.xlu1 %304 }
  0x87   : > { %v312_v19 = vsel %vm310_vm4, %v305_v18, 0 }
  0x88   : > { %644 = vmatpush3.bf16.msra.mxu1 %v312_v19 }
  0x89   : > { %649 = vmatprep.subr.bf16.mxu1 %v730_v0 }
  0x8a   : > { %v362_v23 = vpop.permute.xlu1 %361 }
  0x8b   : > { %v367_v25 = vsel %vm222_vm1, %v362_v23, 0 }
  0x8e   : > { %v360_v27 = vpop.permute.xlu1 %359 }
  0xef   : > { %v263_v7 = vpop.f32.mrb[0].mxu0 }
  0xf0   : > { %v269_v8 = vmul.f32 0.17677669, %v263_v7  ;;  %v641_v9 = vpop.f32.mrb[1].mxu0 }
  0xf1   : > { %v266_v10 = vpop.f32.mrb[2].mxu0 }
  0xf2   : > { %v642_v11 = vpop.f32.mrb[3].mxu0  ;;  %v272_v12 = vsel %vm271_vm3, %v269_v8, -inf }
  0xf3   : > { %273 = vmax.xlane.f32.xlu0 %v272_v12 }
 0x180   : > { %v274_v15 = vpop.xlane.xlu0 %273 }
 0x181   : > { %v275_v16 = vmax.f32 %v270_v14, %v274_v15 }
 0x183   : > { %v276_v17 = vsub.f32 %v270_v14, %v275_v16  ;;  %357 = vst.msk [vmem:[#allocation2] sm:$0xf] %vm210_vm2, %v275_v16  ;;  %281 = vperm.xlu0 %692, %v275_v16  }
 0x185   : > { %v277_v45 = vmul.f32 1.442695, %v276_v17 }
 0x202   : > { %v282_v20 = vpop.permute.xlu0 %281 }
 0x203   : > { %v284_v21 = vsub.f32 %v269_v8, %v282_v20  ;;  %v436_v8 = vld [vmem:[#allocation4 + $0x4] sm:$0xf] }
 0x205   : > { %v285_v22 = vmul.f32 1.442695, %v284_v21 }
 0x207   : > { %694 = vpow2.f32 %v285_v22 }
 0x208   : > { %696 = vpow2.f32 %v277_v45 }
 0x211   : > { %v695_v24 = vpop.eup %694 }
 0x212   : > { %v302_v26 = vpack.c.bf16 %v695_v24, %v695_v24  ;;  %v289_v38 = vsel %vm271_vm3, %v695_v24, 0.0  ;;  %v697_v46 = vpop.eup %696 }
 0x213   : > { %v288_v48 = vmul.f32 %v697_v46, %v287_v47 }
 0x214   : > { %646 = vmatmul.mubr.msk.bf16.vlgmr.msra.gmra.mrb[0].mxu1 %vm306_vm5, %v302_v26 }
 0x215   : > { %650 = vmatpush3.bf16.xpose.msra.mxu1 %v367_v25  ;;  %651 = vmatprep.mubr.msk.bf16.mxu1 %vm731_vm0, %v730_v0 }
 0x21c   : > { %652 = vmatmul.mubr.msk.bf16.vlgmr.msra.gmra.mrb[4].mxu1 %vm222_vm1, %v360_v27 }
 0x2e7   : > { %v811_v28 = vpop.f32.mrb[0].mxu1 }
 0x2e8   : > { %v647_v29 = vpop.f32.mrb[1].mxu1 }
 0x2e9   : > { %v351_v30 = vpop.f32.mrb[2].mxu1 }
 0x2ea   : > { %v648_v31 = vpop.f32.mrb[3].mxu1 }
 0x2ef   : > { %v403_v32 = vpop.f32.mrb[4].mxu1 }
 0x2f0   : > { %v409_v33 = vmul.f32 0.17677669, %v403_v32  ;;  %v653_v34 = vpop.f32.mrb[5].mxu1 }
 0x2f1   : > { %v406_v35 = vpop.f32.mrb[6].mxu1 }
 0x2f2   : > { %v654_v36 = vpop.f32.mrb[7].mxu1  ;;  %v412_v37 = vsel %vm271_vm3, %v409_v33, -inf }
 0x2f3   : > { %413 = vmax.xlane.f32.xlu1 %v412_v37 }
 0x304   : > { %444 = vrot.lane.b32.xlu1 %v782_v2, %s736_s22 }
 0x328   : > { %290 = vadd.xlane.f32.xlu1 %v289_v38 }
 0x380   : > { %v414_v40 = vpop.xlane.xlu1 %413 }
 0x381   : > { %v415_v41 = vmax.f32 %v411_v39, %v414_v40 }
 0x383   : > { %v416_v42 = vsub.f32 %v411_v39, %v415_v41  ;;  %494 = vst.msk [vmem:[#allocation2 + $0x4] sm:$0xf] %vm210_vm2, %v415_v41  ;;  %421 = vperm.xlu0 %692, %v415_v41  }
 0x384   : > { %v445_v43 = vpop.permute.xlu1 %444 }
 0x385   : > { %v450_v44 = vsel %vm310_vm4, %v445_v43, 0  ;;  %v417_v57 = vmul.f32 1.442695, %v416_v42 }
 0x386   : > { %656 = vmatpush3.bf16.msra.mxu0 %v450_v44 }
 0x3b5   : > { %v291_v49 = vpop.xlane.xlu1 %290 }
 0x3b6   : > { %v292_v50 = vadd.f32 %v291_v49, %v288_v48 }
 0x3b8   : > { %294 = vst.msk [vmem:[#allocation3] sm:$0xf] %vm210_vm2, %v292_v50 }
 0x3bf   : > { %v498_v58 = vld [vmem:[#allocation3] sm:$0xf] }
 0x402   : > { %v422_v51 = vpop.permute.xlu0 %421 }
 0x403   : > { %v424_v52 = vsub.f32 %v409_v33, %v422_v51 }
 0x405   : > { %v425_v53 = vmul.f32 1.442695, %v424_v52 }
 0x407   : > { %698 = vpow2.f32 %v425_v53 }
 0x408   : > { %700 = vpow2.f32 %v417_v57 }
 0x409   : > { %702 = vrcp.f32 %v498_v58 }
 0x411   : > { %v699_v54 = vpop.eup %698 }
 0x412   : > { %v430_v55 = vsel %vm271_vm3, %v699_v54, 0.0  ;;  %v443_v56 = vpack.c.bf16 %v699_v54, %v699_v54  ;;  %v701_v59 = vpop.eup %700 }
 0x413   : > { %431 = vadd.xlane.f32.xlu0 %v430_v55  ;;  %v703_v60 = vpop.eup %702  ;;  %v429_v62 = vmul.f32 %v701_v59, %v428_v61 }
 0x414   : > { %658 = vmatmul.mubr.msk.bf16.vlgmr.msra.gmra.mrb[4].mxu0 %vm306_vm5, %v443_v56 }
 0x429   : > { %439 = vperm.xlu0 %692, %v701_v59  }
 0x42d   : > { %298 = vperm.xlu0 %692, %v697_v46  }
 0x431   : > { %503 = vperm.xlu0 %692, %v703_v60  }
 0x4a0   : > { %v432_v63 = vpop.xlane.xlu0 %431 }
 0x4a1   : > { %v433_v1 = vadd.f32 %v432_v63, %v429_v62 }
 0x4a3   : > { %434 = vst.msk [vmem:[#allocation3 + $0x4] sm:$0xf] %vm210_vm2, %v433_v1 }
 0x4a8   : > { %v440_v2 = vpop.permute.xlu0 %439 }
 0x4a9   : > { %v442_v9 = vmul.f32 %v440_v2, %v436_v8 }
 0x4aa   : > { %v507_v4 = vld [vmem:[#allocation3 + $0x4] sm:$0xf] }
 0x4ab   : > { %704 = vrcp.f32 %v507_v4 }
 0x4ac   : > { %v299_v5 = vpop.permute.xlu0 %298 }
 0x4ad   : > { %v301_v6 = vmul.f32 %v299_v5, %v295_v3 }
 0x4af   : > { %v354_v0 = vadd.f32 %v811_v28, %v301_v6 }
 0x4b0   : > { %v504_v19 = vpop.permute.xlu0 %503 }
 0x4b1   : > { %356 = vst.msk [vmem:[#allocation4] sm:$0xf] %vm215_vm6, %v354_v0 }
 0x4b5   : > { %v705_v7 = vpop.eup %704 }
 0x4b6   : > { %512 = vperm.xlu1 %693, %v705_v7  }
 0x4b8   : > { %v500_v18 = vld [vmem:[#allocation4] sm:$0xf] }
 0x4b9   : > { %v506_v20 = vmul.f32 %v504_v19, %v500_v18 }
 0x4e7   : > { %v486_v10 = vpop.f32.mrb[4].mxu0 }
 0x4e8   : > { %v492_v11 = vadd.f32 %v486_v10, %v442_v9  ;;  %v659_v12 = vpop.f32.mrb[5].mxu0 }
 0x4e9   : > { %v489_v13 = vpop.f32.mrb[6].mxu0 }
 0x4ea   : > { %493 = vst.msk [vmem:[#allocation4 + $0x4] sm:$0xf] %vm215_vm6, %v492_v11  ;;  %v660_v14 = vpop.f32.mrb[7].mxu0 }
 0x4f1   : > { %v509_v16 = vld [vmem:[#allocation4 + $0x4] sm:$0xf] }
 0x535   : > { %v513_v15 = vpop.permute.xlu1 %512 }
 0x536   : > { %v515_v17 = vmul.f32 %v513_v15, %v509_v16 }
 0x538   : > { %517 = vrot.lane.b32.xlu0 %v515_v17, %s736_s22 }
 0x5aa   : > { %v518_v21 = vpop.permute.xlu0 %517 }
 0x5ab   : > { %v520_v22 = vsel %vm222_vm1, %v506_v20, %v518_v21 }
 0x5ac   : > { %522 = vst.msk [vmem:[%s204_s25] sm:$0xf] %vm521_vm7, %v520_v22 }
 0x5ad PF: > { %s12_s11 = sadd.s32 1, %s728_s11   ;;  %s848_s9 = smov %s724_s10 }
 0x5ae   : > { %p9_p5 = scmp.ge.s32.totalorder %s12_s11, 4   ;;  %s849_s10 = smov %s851_s12 }
 0x5b0   :  { %11 = sbr.rel (!%p9_p5) target bundleno = 2 (0x2), region = 72 }

// kernel: fwd.58
= control target key start
LH: loop header
LB: loop body
LE: loop exit
PB: predicated region body
PF: predicated region fallthrough
CT: control target
= control target key end

     0   :  { %vm28_vm0 = vcmask 523264   ;;  %v165_v30 = vmov 0   ;;  %v141_v42 = vlaneseq  ;;  %s265_s0 = inlined_call_operand.vmem [shape: f32[8,64], index: 0, kind: input, shape index: {}]   ;;  %s266_s1 = inlined_call_operand.vmem [shape: f32[64,256], index: 1, kind: input, shape index: {}]   ;;  %s267_s3 = inlined_call_operand.vmem [shape: f32[1,64], index: 3, kind: input, shape index: {}]   ;;  %s268_s4 = inlined_call_operand.vmem [shape: f32[1,64], index: 4, kind: input, shape index: {}]   ;;  %s269_s2 = inlined_call_operand.vmem [shape: f32[1,256], index: 2, kind: input, shape index: {}]   ;;  %s270_s5 = inlined_call_operand.vmem [shape: f32[8,256], index: 5, kind: output, shape index: {}]  }
   0x1   :  { %v27_v0 = vld [vmem:[%s265_s0] sm:$0xff]  ;;  %v63_v7 = vld [vmem:[%s266_s1 + $0x8] sm:$0xff]  ;;  %v65_v8 = vld [vmem:[%s266_s1 + $0x18] sm:$0xff]  ;;  %121 = vmatprep.mubr.bf16.mxu0 %v165_v30 }
   0x2   :  { %v29_v1 = vsel %vm28_vm0, %v27_v0, 0.0  ;;  %v79_v9 = vpack.c.bf16 %v65_v8, %v63_v7  ;;  %v62_v10 = vld [vmem:[%s266_s1] sm:$0xff]  ;;  %v64_v11 = vld [vmem:[%s266_s1 + $0x10] sm:$0xff]  ;;  %v67_v13 = vld [vmem:[%s266_s1 + $0x28] sm:$0xff]  ;;  %v142_v43 = vshrl.u32 %v141_v42, 7 }
   0x3   :  { %30 = vadd.xlane.f32.xlu0 %v29_v1  ;;  %v78_v12 = vpack.c.bf16 %v64_v11, %v62_v10  ;;  %v69_v14 = vld [vmem:[%s266_s1 + $0x38] sm:$0xff]  ;;  %v66_v16 = vld [vmem:[%s266_s1 + $0x20] sm:$0xff]  ;;  %v68_v17 = vld [vmem:[%s266_s1 + $0x30] sm:$0xff] }
   0x4   :  { %89 = vmatprep.subr.bf16.mxu0 %v79_v9  ;;  %v81_v15 = vpack.c.bf16 %v69_v14, %v67_v13  ;;  %v80_v18 = vpack.c.bf16 %v68_v17, %v66_v16  ;;  %v71_v19 = vld [vmem:[%s266_s1 + $0x48] sm:$0xff]  ;;  %v73_v20 = vld [vmem:[%s266_s1 + $0x58] sm:$0xff]  ;;  %v70_v22 = vld [vmem:[%s266_s1 + $0x40] sm:$0xff]  ;;  %v143_v44 = vsub.s32 0, %v142_v43  ;;  %v147_v46 = vsub.s32 1, %v142_v43 }
   0x5   :  { %90 = vmatpush1.bf16.msra.mxu0 %v78_v12  ;;  %v83_v21 = vpack.c.bf16 %v73_v20, %v71_v19  ;;  %v72_v23 = vld [vmem:[%s266_s1 + $0x50] sm:$0xff]  ;;  %v75_v25 = vld [vmem:[%s266_s1 + $0x68] sm:$0xff]  ;;  %v77_v26 = vld [vmem:[%s266_s1 + $0x78] sm:$0xff] }
   0x6   :  { %91 = vmatprep.subr.bf16.mxu0 %v81_v15  ;;  %v82_v24 = vpack.c.bf16 %v72_v23, %v70_v22  ;;  %v74_v27 = vld [vmem:[%s266_s1 + $0x60] sm:$0xff]  ;;  %v85_v28 = vpack.c.bf16 %v77_v26, %v75_v25  ;;  %v76_v29 = vld [vmem:[%s266_s1 + $0x70] sm:$0xff] }
   0x7   :  { %v84_v31 = vpack.c.bf16 %v76_v29, %v74_v27  ;;  %v159_v36 = vld [vmem:[%s267_s3] ss:$0 sm:$0xff] }
   0x8   :  { %v160_v38 = vld [vmem:[%s268_s4] ss:$0 sm:$0xff] }
   0x9   :  { %92 = vmatpush1.bf16.msra.mxu0 %v80_v18  ;;  %v139_v45 = vld [vmem:[%s269_s2] sm:$0x3] }
   0xa   :  { %93 = vmatprep.subr.bf16.mxu0 %v83_v21  ;;  %v144_v47 = vrot.slane %v139_v45, %v143_v44  ;;  %v148_v48 = vrot.slane %v139_v45, %v147_v46 }
   0xd   :  { %94 = vmatpush1.bf16.msra.mxu0 %v82_v24 }
   0xe   :  { %95 = vmatprep.subr.bf16.mxu0 %v85_v28 }
  0x11   :  { %96 = vmatpush1.bf16.msra.mxu0 %v84_v31 }
  0x90   :  { %v31_v2 = vpop.xlane.xlu0 %30 }
  0x91   :  { %v33_v3 = vmul.f32 0.015625, %v31_v2 }
  0x93   :  { %v34_v4 = vsub.f32 %v27_v0, %v33_v3 }
  0x95   :  { %v35_v5 = vmul.f32 %v34_v4, %v34_v4 }
  0x97   :  { %v36_v6 = vsel %vm28_vm0, %v35_v5, 0.0 }
  0x98   :  { %37 = vadd.xlane.f32.xlu0 %v36_v6 }
 0x125   :  { %v38_v32 = vpop.xlane.xlu0 %37 }
 0x126   :  { %v39_v33 = vmul.f32 0.015625, %v38_v32 }
 0x128   :  { %v40_v34 = vadd.f32 1e-06, %v39_v33 }
 0x12a   :  { %163 = vrsqrt.f32 %v40_v34 }
 0x134   :  { %v164_v35 = vpop.eup %163 }
 0x135   :  { %v42_v37 = vmul.f32 %v164_v35, %v34_v4 }
 0x137   :  { %v50_v39 = vmul.f32 %v159_v36, %v42_v37 }
 0x139   :  { %v58_v40 = vadd.f32 %v160_v38, %v50_v39 }
 0x13b   :  { %v61_v41 = vpack.c.bf16 %v58_v40, %v58_v40 }
 0x13d   :  { %161 = vmatmul.mubr.msk.bf16.vlgmr.msra.gmra.mrb[0].mxu0 %vm28_vm0, %v61_v41 }
 0x210   :  { %v123_v49 = vpop.f32.mrb[0].mxu0 }
 0x211   :  { %v151_v50 = vadd.f32 %v144_v47, %v123_v49  ;;  %v125_v51 = vpop.f32.mrb[1].mxu0 }
 0x212   :  { %v152_v52 = vadd.f32 %v148_v48, %v125_v51  ;;  %v127_v53 = vpop.f32.mrb[2].mxu0 }
 0x213   :  { %153 = vst [vmem:[%s270_s5] sm:$0xff] %v151_v50  ;;  %v128_v54 = vpop.f32.mrb[3].mxu0 }
 0x214   :  { %154 = vst [vmem:[%s270_s5 + $0x8] sm:$0xff] %v152_v52 }

// kernel: fwd.59
= control target key start
LH: loop header
LB: loop body
LE: loop exit
PB: predicated region body
PF: predicated region fallthrough
CT: control target
= control target key end

     0   :  { %s724_s12 = smov 0   ;;  %s726_s13 = smov 0   ;;  %s822_s0 = inlined_call_operand.vmem [shape: f32[2,4,4,256], index: 0, kind: input, shape index: {}]   ;;  %s823_s1 = inlined_call_operand.vmem [shape: f32[9,256], index: 1, kind: input, shape index: {}]   ;;  %s824_s2 = inlined_call_operand.vmem [shape: f32[1,256], index: 2, kind: input, shape index: {}]   ;;  %s825_s3 = inlined_call_operand.vmem [shape: f32[2,2,2,256], index: 3, kind: output, shape index: {}]  }
   0x1   :  { %s728_s14 = smov 0  }
   0x2 LB: > { %s25_s15 = sadd.s32 1, %s698_s13  ;;  %p627_p0 = scmp.ge.s32.totalorder %s702_s14, 1  ;;  %s702_s14 = sphi %s728_s14, %s13_s14   ;;  %s698_s13 = sphi %s726_s13, %s827_s13   ;;  %s694_s12 = sphi %s724_s12, %s826_s12  }
   0x3   : > { %p27_p1 = scmp.ge.s32.totalorder %s25_s15, 2  ;;  %p179_p2 = scmp.lt.s32.totalorder %s702_s14, 3 }
   0x5   : > { %s829_s15 = smov (%p27_p1, %s25_s15), 0  ;;  %p180_p3 = pnand %p627_p0, %p179_p2 }
   0x6   : > { %p221_p4 = scmp.lt.s32.totalorder (!%p180_p3), %s694_s12, 1  ;;  %v260_v0 = vlaneseq (!%p180_p3)  ;;  %v749_v2 = vld [vmem:[%s823_s1] sm:$0xff] (!%p180_p3)  ;;  %v754_v3 = vld [vmem:[%s823_s1 + $0x8] sm:$0xff] (!%p180_p3)  ;;  %v642_v11 = vld [vmem:[%s823_s1 + $0x10] ss:$0 sm:$0xff] (!%p180_p3) }
   0x7   : > { %183 = sbr.rel (%p180_p3) target bundleno = 69 (0x45), region = 32  ;;  %v643_v12 = vld [vmem:[%s823_s1 + $0x18] ss:$0 sm:$0xff] (!%p180_p3) }
   0x8   : > { %v744_v1 = vshrl.u32 (!%p180_p3), %v260_v0, 7  ;;  %v441_v30 = vcombine.low (!%p180_p3), %v642_v11, %v643_v12 }
   0xa   : > { %v758_v4 = vsub.s32 (!%p180_p3), 0, %v744_v1  ;;  %v761_v5 = vsub.s32 (!%p180_p3), 1, %v744_v1  ;;  %v301_v6 = vsub.s32 (!%p180_p3), 2, %v744_v1  ;;  %v326_v7 = vsub.s32 (!%p180_p3), 3, %v744_v1 }
   0xb   : > { %v342_v8 = vsub.s32 (!%p180_p3), 4, %v744_v1  ;;  %v367_v9 = vsub.s32 (!%p180_p3), 5, %v744_v1  ;;  %v392_v10 = vsub.s32 (!%p180_p3), 6, %v744_v1  ;;  %v408_v34 = vsub.s32 (!%p180_p3), 7, %v744_v1 }
   0xc   : > { %v263_v13 = vrot.slane (!%p180_p3), %v749_v2, %v758_v4  ;;  %v267_v14 = vrot.slane (!%p180_p3), %v754_v3, %v758_v4  ;;  %v277_v15 = vrot.slane (!%p180_p3), %v749_v2, %v761_v5  ;;  %v281_v16 = vrot.slane (!%p180_p3), %v754_v3, %v761_v5 }
   0xd   : > { %v302_v17 = vrot.slane (!%p180_p3), %v749_v2, %v301_v6  ;;  %v306_v18 = vrot.slane (!%p180_p3), %v754_v3, %v301_v6  ;;  %v327_v19 = vrot.slane (!%p180_p3), %v749_v2, %v326_v7  ;;  %v331_v20 = vrot.slane (!%p180_p3), %v754_v3, %v326_v7 }
   0xe   : > { %s831_s12 = smov (!%p221_p4, %s694_s12), 1  ;;  %v270_v21 = vcombine.low %v263_v13, %v267_v14  ;;  %v284_v22 = vcombine.low %v277_v15, %v281_v16  ;;  %v343_v23 = vrot.slane %v749_v2, %v342_v8  ;;  %v347_v24 = vrot.slane %v754_v3, %v342_v8 }
   0xf   : > { %s650_s20 = sshll.u32 %s831_s12, 5  ;;  %v309_v27 = vcombine.low %v302_v17, %v306_v18  ;;  %v368_v28 = vrot.slane %v749_v2, %v367_v9  ;;  %v372_v29 = vrot.slane %v754_v3, %v367_v9  ;;  %v334_v32 = vcombine.low %v327_v19, %v331_v20  ;;  %s651_s30 = sshll.u32 %s831_s12, 3 }
  0x10   : > { %s771_s23 = scalar_lea.vmem %s822_s0, %s650_s20  ;;  %v285_v31 = vrot.slane %v284_v22, 7  ;;  %v350_v33 = vcombine.low %v343_v23, %v347_v24  ;;  %v393_v43 = vrot.slane %v749_v2, %v392_v10  ;;  %v397_v47 = vrot.slane %v754_v3, %v392_v10  ;;  %v259_v10 = vld [vmem:[%s824_s2] sm:$0x3]  ;;  %s249_s6 = scalar_lea.vmem %s825_s3, %s651_s30 }
  0x11   : > { %v251_v25 = vld [vmem:[%s771_s23] sm:$0xff]  ;;  %v252_v26 = vld [vmem:[%s771_s23 + $0x8] sm:$0xff]  ;;  %v253_v35 = vld [vmem:[%s771_s23 + $0x10] sm:$0xff]  ;;  %v310_v38 = vrot.slane %v309_v27, 6  ;;  %v375_v39 = vcombine.low %v368_v28, %v372_v29  ;;  %v409_v63 = vrot.slane %v749_v2, %v408_v34  ;;  %v413_v6 = vrot.slane %v754_v3, %v408_v34 }
  0x12   : > { %v272_v36 = vmul.f32 %v270_v21, %v251_v25  ;;  %v273_v37 = vmul.f32 %v270_v21, %v252_v26  ;;  %v287_v40 = vmul.f32 %v285_v31, %v251_v25  ;;  %v288_v41 = vmul.f32 %v285_v31, %v252_v26  ;;  %v254_v8 = vld [vmem:[%s771_s23 + $0x18] sm:$0xff] }
  0x13   : > { %v351_v42 = vrot.slane %v350_v33, 7  ;;  %v312_v44 = vmul.f32 %v310_v38, %v251_v25  ;;  %v313_v45 = vmul.f32 %v310_v38, %v252_v26  ;;  %v376_v46 = vrot.slane %v375_v39, 6 }
  0x14   : > { %v632_v48 = vrot.slane %v287_v40, 9  ;;  %v633_v49 = vrot.slane %v288_v41, 9  ;;  %v336_v54 = vmul.f32 %v334_v32, %v252_v26  ;;  %v337_v58 = vmul.f32 %v334_v32, %v253_v35 }
  0x15   : > { %v353_v50 = vmul.f32 %v351_v42, %v252_v26  ;;  %v354_v51 = vmul.f32 %v351_v42, %v253_v35  ;;  %v634_v52 = vrot.slane %v312_v44, 10  ;;  %v635_v53 = vrot.slane %v313_v45, 10 }
  0x16   : > { %v378_v55 = vmul.f32 %v376_v46, %v252_v26  ;;  %v297_v56 = vadd.f32 %v632_v48, %v272_v36  ;;  %v298_v57 = vadd.f32 %v633_v49, %v273_v37  ;;  %v379_v59 = vmul.f32 %v376_v46, %v253_v35 }
  0x17   : > { %v636_v60 = vrot.slane %v353_v50, 9  ;;  %v637_v61 = vrot.slane %v354_v51, 9  ;;  %v400_v62 = vcombine.low %v393_v43, %v397_v47  ;;  %v442_v7 = vrot.slane %v441_v30, 6 }
  0x18   : > { %v322_v0 = vadd.f32 %v634_v52, %v297_v56  ;;  %v323_v1 = vadd.f32 %v635_v53, %v298_v57  ;;  %v638_v9 = vrot.slane %v378_v55, 10  ;;  %v639_v13 = vrot.slane %v379_v59, 10 }
  0x19   : > { %v416_v14 = vcombine.low %v409_v63, %v413_v6  ;;  %v402_v15 = vmul.f32 %v400_v62, %v253_v35  ;;  %v444_v16 = vmul.f32 %v442_v7, %v253_v35  ;;  %v445_v17 = vmul.f32 %v442_v7, %v254_v8 }
  0x1a   : > { %v338_v11 = vadd.f32 %v336_v54, %v322_v0  ;;  %v339_v12 = vadd.f32 %v337_v58, %v323_v1  ;;  %v403_v19 = vmul.f32 %v400_v62, %v254_v8  ;;  %v460_v3 = vrot.slane %v259_v10, %v758_v4 }
  0x1b   : > { %v417_v20 = vrot.slane %v416_v14, 7  ;;  %v464_v21 = vrot.slane %v259_v10, %v761_v5  ;;  %v644_v26 = vrot.slane %v444_v16, 10  ;;  %v645_v27 = vrot.slane %v445_v17, 10 }
  0x1c   : > { %v363_v18 = vadd.f32 %v636_v60, %v338_v11  ;;  %v364_v2 = vadd.f32 %v637_v61, %v339_v12 }
  0x1d   : > { %v419_v24 = vmul.f32 %v417_v20, %v253_v35  ;;  %v420_v25 = vmul.f32 %v417_v20, %v254_v8  ;;  %v465_v33 = vcombine.low %v460_v3, %v464_v21 }
  0x1e   : > { %v388_v22 = vadd.f32 %v638_v9, %v363_v18  ;;  %v389_v23 = vadd.f32 %v639_v13, %v364_v2 }
  0x1f   : > { %v640_v30 = vrot.slane %v419_v24, 9  ;;  %v641_v31 = vrot.slane %v420_v25, 9 }
  0x20   : > { %v404_v28 = vadd.f32 %v402_v15, %v388_v22  ;;  %v405_v29 = vadd.f32 %v403_v19, %v389_v23 }
  0x22   : > { %v429_v32 = vadd.f32 %v640_v30, %v404_v28  ;;  %v430_v34 = vadd.f32 %v641_v31, %v405_v29 }
  0x24   : > { %v454_v36 = vadd.f32 %v644_v26, %v429_v32  ;;  %v455_v37 = vadd.f32 %v645_v27, %v430_v34 }
  0x26   : > { %v467_v38 = vadd.f32 %v465_v33, %v454_v36  ;;  %v468_v4 = vadd.f32 %v465_v33, %v455_v37 }
  0x28   : > { %v469_v39 = vmul.f32 %v467_v38, %v467_v38  ;;  %v470_v5 = vmul.f32 %v468_v4, %v468_v4 }
  0x2a   : > { %v471_v40 = vmul.f32 %v469_v39, %v467_v38  ;;  %v472_v41 = vmul.f32 %v470_v5, %v468_v4 }
  0x2c   : > { %v473_v35 = vmul.f32 0.044715, %v471_v40  ;;  %v474_v42 = vmul.f32 0.044715, %v472_v41 }
  0x2e   : > { %v475_v43 = vadd.f32 %v473_v35, %v467_v38  ;;  %v476_v44 = vadd.f32 %v474_v42, %v468_v4 }
  0x30   : > { %v477_v45 = vmul.f32 0.7978846, %v475_v43  ;;  %v478_v46 = vmul.f32 0.7978846, %v476_v44 }
  0x32   : > { %676 = vtanh.f32 %v477_v45 }
  0x33   : > { %678 = vtanh.f32 %v478_v46 }
  0x3c   : > { %v677_v47 = vpop.eup %676 }
  0x3d   : > { %v679_v48 = vpop.eup %678  ;;  %v481_v49 = vadd.f32 1.0, %v677_v47 }
  0x3e   : > { %v482_v50 = vadd.f32 1.0, %v679_v48 }
  0x3f   : > { %v483_v51 = vmul.f32 0.5, %v481_v49 }
  0x40   : > { %v484_v52 = vmul.f32 0.5, %v482_v50 }
  0x41   : > { %v485_v53 = vmul.f32 %v483_v51, %v467_v38 }
  0x42   : > { %v486_v54 = vmul.f32 %v484_v52, %v468_v4 }
  0x43   : > { %646 = vst.sshfl [vmem:[%s249_s6] sm:$0x33 pattern:$0x76325410] %v485_v53 }
  0x44   : > { %647 = vst.sshfl [vmem:[%s249_s6 + $0x4] sm:$0x33 pattern:$0x76325410] %v486_v54 }
  0x45 PF: > { %s13_s14 = sadd.s32 1, %s702_s14   ;;  %s826_s12 = smov %s698_s13 }
  0x46   : > { %p10_p5 = scmp.ge.s32.totalorder %s13_s14, 4   ;;  %s827_s13 = smov %s829_s15 }
  0x48   :  { %12 = sbr.rel (!%p10_p5) target bundleno = 2 (0x2), region = 68 }

// kernel: fwd.60
= control target key start
LH: loop header
LB: loop body
LE: loop exit
PB: predicated region body
PF: predicated region fallthrough
CT: control target
= control target key end

     0   :  { %vm22_vm0 = vcmask 523264   ;;  %v163_v52 = vmov 0.0   ;;  %s303_s1 = inlined_call_operand.vmem [shape: f32[256,64], index: 1, kind: input, shape index: {}]   ;;  %s304_s0 = inlined_call_operand.vmem [shape: f32[8,256], index: 0, kind: input, shape index: {}]   ;;  %s305_s2 = inlined_call_operand.vmem [shape: f32[1,64], index: 2, kind: input, shape index: {}]   ;;  %s306_s3 = inlined_call_operand.vmem [shape: f32[8,64], index: 3, kind: input, shape index: {}]   ;;  %s307_s4 = inlined_call_operand.vmem [shape: f32[8,64], index: 4, kind: output, shape index: {}]  }
   0x1   :  { %v45_v0 = vld [vmem:[%s303_s1 + $0x80] sm:$0xff]  ;;  %v46_v1 = vld [vmem:[%s303_s1 + $0x88] sm:$0xff]  ;;  %v47_v5 = vld [vmem:[%s303_s1 + $0x90] sm:$0xff]  ;;  %23 = vst.msk [vmem:[#allocation2] sm:$0xff] %vm22_vm0, %v163_v52 }
   0x2   :  { %v29_v2 = vld [vmem:[%s303_s1] sm:$0xff]  ;;  %v69_v3 = vpack.c.bf16 %v46_v1, %v45_v0  ;;  %v30_v4 = vld [vmem:[%s303_s1 + $0x8] sm:$0xff]  ;;  %v48_v6 = vld [vmem:[%s303_s1 + $0x98] sm:$0xff] }
   0x3   :  { %v61_v7 = vpack.c.bf16 %v30_v4, %v29_v2  ;;  %v70_v8 = vpack.c.bf16 %v48_v6, %v47_v5  ;;  %v31_v9 = vld [vmem:[%s303_s1 + $0x10] sm:$0xff]  ;;  %v32_v10 = vld [vmem:[%s303_s1 + $0x18] sm:$0xff]  ;;  %v49_v11 = vld [vmem:[%s303_s1 + $0xa0] sm:$0xff] }
   0x4   :  { %140 = vmatprep.subr.bf16.mxu0 %v69_v3  ;;  %v50_v12 = vld [vmem:[%s303_s1 + $0xa8] sm:$0xff]  ;;  %v62_v13 = vpack.c.bf16 %v32_v10, %v31_v9  ;;  %v33_v15 = vld [vmem:[%s303_s1 + $0x20] sm:$0xff]  ;;  %v51_v17 = vld [vmem:[%s303_s1 + $0xb0] sm:$0xff] }
   0x5   :  { %141 = vmatpush3.bf16.msra.mxu0 %v61_v7  ;;  %v71_v14 = vpack.c.bf16 %v50_v12, %v49_v11  ;;  %v34_v16 = vld [vmem:[%s303_s1 + $0x28] sm:$0xff]  ;;  %v52_v18 = vld [vmem:[%s303_s1 + $0xb8] sm:$0xff]  ;;  %v35_v21 = vld [vmem:[%s303_s1 + $0x30] sm:$0xff] }
   0x6   :  { %142 = vmatprep.subr.bf16.mxu0 %v70_v8  ;;  %v63_v19 = vpack.c.bf16 %v34_v16, %v33_v15  ;;  %v72_v20 = vpack.c.bf16 %v52_v18, %v51_v17  ;;  %v36_v22 = vld [vmem:[%s303_s1 + $0x38] sm:$0xff]  ;;  %v53_v23 = vld [vmem:[%s303_s1 + $0xc0] sm:$0xff]  ;;  %v54_v24 = vld [vmem:[%s303_s1 + $0xc8] sm:$0xff] }
   0x7   :  { %v25_v25 = vld [vmem:[%s304_s0 + $0x8] sm:$0xff]  ;;  %v64_v26 = vpack.c.bf16 %v36_v22, %v35_v21  ;;  %v73_v28 = vpack.c.bf16 %v54_v24, %v53_v23  ;;  %v37_v29 = vld [vmem:[%s303_s1 + $0x40] sm:$0xff]  ;;  %v55_v31 = vld [vmem:[%s303_s1 + $0xd0] sm:$0xff] }
   0x8   :  { %v28_v27 = vpack.c.bf16 %v25_v25, %v25_v25  ;;  %v38_v30 = vld [vmem:[%s303_s1 + $0x48] sm:$0xff]  ;;  %v56_v32 = vld [vmem:[%s303_s1 + $0xd8] sm:$0xff]  ;;  %v39_v35 = vld [vmem:[%s303_s1 + $0x50] sm:$0xff] }
   0x9   :  { %143 = vmatpush3.bf16.msra.mxu0 %v62_v13  ;;  %v65_v33 = vpack.c.bf16 %v38_v30, %v37_v29  ;;  %v74_v34 = vpack.c.bf16 %v56_v32, %v55_v31  ;;  %v40_v36 = vld [vmem:[%s303_s1 + $0x58] sm:$0xff]  ;;  %v57_v37 = vld [vmem:[%s303_s1 + $0xe0] sm:$0xff]  ;;  %v58_v38 = vld [vmem:[%s303_s1 + $0xe8] sm:$0xff] }
   0xa   :  { %144 = vmatprep.subr.bf16.mxu0 %v71_v14  ;;  %109 = vmatprep.mubr.bf16.mxu0 %v28_v27  ;;  %v66_v39 = vpack.c.bf16 %v40_v36, %v39_v35  ;;  %v75_v40 = vpack.c.bf16 %v58_v38, %v57_v37  ;;  %v41_v41 = vld [vmem:[%s303_s1 + $0x60] sm:$0xff]  ;;  %v42_v42 = vld [vmem:[%s303_s1 + $0x68] sm:$0xff]  ;;  %v59_v43 = vld [vmem:[%s303_s1 + $0xf0] sm:$0xff] }
   0xb   :  { %v60_v44 = vld [vmem:[%s303_s1 + $0xf8] sm:$0xff]  ;;  %v67_v45 = vpack.c.bf16 %v42_v42, %v41_v41  ;;  %v43_v47 = vld [vmem:[%s303_s1 + $0x70] sm:$0xff]  ;;  %v24_v50 = vld [vmem:[%s304_s0] sm:$0xff] }
   0xc   :  { %v76_v46 = vpack.c.bf16 %v60_v44, %v59_v43  ;;  %v44_v48 = vld [vmem:[%s303_s1 + $0x78] sm:$0xff]  ;;  %v27_v51 = vpack.c.bf16 %v24_v50, %v24_v50  ;;  %v26_v54 = vld [vmem:[#allocation2] sm:$0xff] }
   0xd   :  { %145 = vmatpush3.bf16.msra.mxu0 %v63_v19  ;;  %v68_v49 = vpack.c.bf16 %v44_v48, %v43_v47  ;;  %v139_v60 = vld [vmem:[%s305_s2] ss:$0 sm:$0xff] }
   0xe   :  { %146 = vmatprep.subr.bf16.mxu0 %v72_v20  ;;  %v132_v62 = vld [vmem:[%s306_s3] sm:$0xff] }
  0x11   :  { %147 = vmatpush3.bf16.msra.mxu0 %v64_v26 }
  0x12   :  { %148 = vmatprep.subr.bf16.mxu0 %v73_v28 }
  0x15   :  { %149 = vmatpush3.bf16.msra.mxu0 %v65_v33 }
  0x16   :  { %150 = vmatprep.subr.bf16.mxu0 %v74_v34 }
  0x19   :  { %151 = vmatpush3.bf16.msra.mxu0 %v66_v39 }
  0x1a   :  { %152 = vmatprep.subr.bf16.mxu0 %v75_v40 }
  0x1d   :  { %153 = vmatpush3.bf16.msra.mxu0 %v67_v45 }
  0x1e   :  { %154 = vmatprep.subr.bf16.mxu0 %v76_v46 }
  0x21   :  { %155 = vmatpush3.bf16.msra.mxu0 %v68_v49 }
  0x24   :  { %110 = vmatmul.mubr.bf16.vlgmr.msra.gmra.mrb[0].mxu0 %v27_v51 }
  0xf7   :  { %v156_v53 = vpop.f32.mrb[0].mxu0 }
  0xf8   :  { %v157_v55 = vpop.f32.mrb[1].mxu0 }
  0xf9   :  { %v158_v56 = vadd.f32 %v157_v55, %v156_v53  ;;  %v159_v57 = vpop.f32.mrb[2].mxu0 }
  0xfa   :  { %v160_v58 = vpop.f32.mrb[3].mxu0 }
  0xfb   :  { %v117_v59 = vadd.f32 %v158_v56, %v26_v54 }
  0xfd   :  { %119 = vst.msk [vmem:[#allocation2] sm:$0xff] %vm22_vm0, %v117_v59 }
 0x104   :  { %v123_v61 = vld [vmem:[#allocation2] sm:$0xff] }
 0x105   :  { %v131_v63 = vadd.f32 %v139_v60, %v123_v61 }
 0x107   :  { %v133_v0 = vadd.f32 %v132_v62, %v131_v63 }
 0x109   :  { %134 = vst.msk [vmem:[%s307_s4] sm:$0xff] %vm22_vm0, %v133_v0 }

// kernel: fwd.67
= control target key start
LH: loop header
LB: loop body
LE: loop exit
PB: predicated region body
PF: predicated region fallthrough
CT: control target
= control target key end

     0   :  { %vm16_vm0 = vcmask 523264   ;;  %s136_s0 = inlined_call_operand.vmem [shape: f32[8,64], index: 0, kind: input, shape index: {}]   ;;  %s137_s1 = inlined_call_operand.vmem [shape: f32[1,64], index: 1, kind: input, shape index: {}]   ;;  %s138_s2 = inlined_call_operand.vmem [shape: f32[1,64], index: 2, kind: input, shape index: {}]   ;;  %s139_s3 = inlined_call_operand.hbm [shape: f32[8,64], index: 3, kind: output, shape index: {}]  }
   0x1   :  { %v15_v0 = vld [vmem:[%s136_s0] sm:$0xff] }
   0x2   :  { %8 = vsyncpa [#allocation3], 0  ;;  %v17_v1 = vsel %vm16_vm0, %v15_v0, 0.0  ;;  %v62_v11 = vld [vmem:[%s137_s1] ss:$0 sm:$0xff]  ;;  %s91_s17 = smov [#allocation2]  }
   0x3   :  { %18 = vadd.xlane.f32.xlu0 %v17_v1  ;;  %v63_v13 = vld [vmem:[%s138_s2] ss:$0 sm:$0xff]  ;;  %s54_s18 = sshll.u32 %s91_s17, 4  ;;  %s55_s18 = int_to_ptr.vmem [resolvable:$true] %s54_s18 }
   0x4   :  { %s67_s19 = scalar_lea.vmem %s55_s18, 128  ;;  %p72_p1 = scmp.lt.s32.totalorder %s55_s18, %s55_s18 }
   0x5   :  { %p68_p0 = scmp.ne.s32.totalorder %s55_s18, %s67_s19  ;;  %p73_p2 = scmp.lt.s32.totalorder %s67_s19, %s67_s19 }
   0x7   :  { %p74_p3 = por %p73_p2, %p72_p1 }
   0x9   :  { %p75_p4 = pnand %p74_p3, %p68_p0 }
  0x90   :  { %v19_v2 = vpop.xlane.xlu0 %18 }
  0x91   :  { %v21_v3 = vmul.f32 0.015625, %v19_v2 }
  0x93   :  { %v22_v4 = vsub.f32 %v15_v0, %v21_v3 }
  0x95   :  { %v23_v5 = vmul.f32 %v22_v4, %v22_v4 }
  0x97   :  { %v24_v6 = vsel %vm16_vm0, %v23_v5, 0.0 }
  0x98   :  { %25 = vadd.xlane.f32.xlu0 %v24_v6 }
 0x125   :  { %v26_v7 = vpop.xlane.xlu0 %25 }
 0x126   :  { %v27_v8 = vmul.f32 0.015625, %v26_v7 }
 0x128   :  { %v28_v9 = vadd.f32 1e-05, %v27_v8 }
 0x12a   :  { %65 = vrsqrt.f32 %v28_v9 }
 0x134   :  { %v66_v10 = vpop.eup %65 }
 0x135   :  { %v30_v12 = vmul.f32 %v66_v10, %v22_v4 }
 0x137   :  { %v38_v14 = vmul.f32 %v62_v11, %v30_v12 }
 0x139   :  { %v46_v15 = vadd.f32 %v63_v13, %v38_v14 }
 0x13b   :  { %47 = vst.msk [vmem:[#allocation2] sm:$0xff] %vm16_vm0, %v46_v15 }
 0x13c   :  { %78 = shalt.err (!%p75_p4)
}
 0x13d   :  { %s79_s21 = scalar_lea.hbm %s139_s3, 128 }
 0x13e   :  { %p80_p5 = scmp.ne.s32.totalorder %s139_s3, %s79_s21  ;;  %p83_p6 = scmp.lt.u32.totalorder %s79_s21, %s139_s3 }
 0x140   :  { %p85_p7 = pnand %p83_p6, %p80_p5 }
 0x142   :  { %88 = shalt.err (!%p85_p7)
}
 0x143   :  { %57 = dma.vmem_to_hbm [thread:$0]  %s55_s18, 128, %s139_s3, [#allocation3]  }
 0x144   :  { %89 = dma.done.wait [#allocation3], 128  }
 0x145   :  { %90 = vsyncadd [#allocation3], 4294967168 }
 0x146   :  { %61 = vsyncpa [#allocation3], 1 }

</bundles_post_ra>
